<compile_context>
chip_gen: v6e
topology: v6e:2x2x1
jax: 0.10.0
libtpu: 0.0.40
codegen_flags: <defaults>
</compile_context>

<pallas_src>
import jax
import jax.numpy as jnp
from jax.experimental import pallas as pl
from jax.experimental.pallas import tpu as pltpu

BN_EPS = 1e-5
MM_ROW_TILE = 256       # rows (N*H*W) per matmul block
ELEM_ROW_TILE = 1024    # rows per elementwise / pool / stats block (memory-bound)
COL_TILE = 128          # output-channel tile -> lane-dense stores


def _vmem_limit_bytes():
    # v5e/v6e: 128 MiB physical VMEM -> 64 MiB scoped; v7x: 64 MiB -> 32 MiB.
    try:
        cap = getattr(pltpu.get_tpu_info(), "vmem_capacity_bytes",
                      128 * 1024 * 1024)
    except Exception:
        cap = 128 * 1024 * 1024
    return int(max(32 * 1024 * 1024, min(64 * 1024 * 1024, cap // 2)))


VMEM_LIMIT = _vmem_limit_bytes()


# ------------------------------ Pallas kernels ------------------------------ #

def _mm_kernel(a_ref, w_ref, o_ref):
    # bf16 MXU inputs, f32 accumulation, bf16 (or f32) store.
    o_ref[...] = jnp.dot(a_ref[...], w_ref[...],
                         preferred_element_type=jnp.float32).astype(o_ref.dtype)


def _mm_stats_kernel(a_ref, w_ref, o_ref, sum_ref, sq_ref):
    # Plain matmul that also emits per-channel sum / sum-of-squares of the f32
    # result (fused statistics for the BatchNorm consuming this output).
    @pl.when(pl.program_id(1) == 0)
    def _():
        sum_ref[...] = jnp.zeros_like(sum_ref)
        sq_ref[...] = jnp.zeros_like(sq_ref)
    o = jnp.dot(a_ref[...], w_ref[...], preferred_element_type=jnp.float32)
    o_ref[...] = o.astype(o_ref.dtype)
    sum_ref[...] += jnp.sum(o, axis=0, keepdims=True)
    sq_ref[...] += jnp.sum(o * o, axis=0, keepdims=True)


def _mm_bn_stats_kernel(a_ref, s_ref, t_ref, w_ref, o_ref, sum_ref, sq_ref):
    # Fused BN(scale/shift)+ReLU prologue, bf16 MXU matmul, fused output stats.
    @pl.when(pl.program_id(1) == 0)
    def _():
        sum_ref[...] = jnp.zeros_like(sum_ref)
        sq_ref[...] = jnp.zeros_like(sq_ref)
    a = jnp.maximum(a_ref[...].astype(jnp.float32) * s_ref[...] + t_ref[...], 0.0)
    o = jnp.dot(a.astype(jnp.bfloat16), w_ref[...],
                preferred_element_type=jnp.float32)
    o_ref[...] = o.astype(o_ref.dtype)
    sum_ref[...] += jnp.sum(o, axis=0, keepdims=True)
    sq_ref[...] += jnp.sum(o * o, axis=0, keepdims=True)


def _bn_stats_kernel(x_ref, sum_ref, sq_ref):
    # Standalone per-channel sum / sum-of-squares over the bf16 feature map.
    @pl.when(pl.program_id(0) == 0)
    def _():
        sum_ref[...] = jnp.zeros_like(sum_ref)
        sq_ref[...] = jnp.zeros_like(sq_ref)
    x = x_ref[...].astype(jnp.float32)
    sum_ref[...] += jnp.sum(x, axis=0, keepdims=True)
    sq_ref[...] += jnp.sum(x * x, axis=0, keepdims=True)


def _bn_apply_kernel(x_ref, s_ref, t_ref, o_ref):
    y = jnp.maximum(x_ref[...].astype(jnp.float32) * s_ref[...] + t_ref[...], 0.0)
    o_ref[...] = y.astype(o_ref.dtype)


def _pool_max_kernel(x_ref, o_ref):
    # MaxPool: max over the leading tap axis.
    o_ref[...] = jnp.max(x_ref[...].astype(jnp.float32), axis=0).astype(o_ref.dtype)


def _pool_bn_mean_kernel(x_ref, s_ref, t_ref, o_ref):
    # Fused BN+ReLU then 2x2 average pool (mean over the leading tap axis).
    y = jnp.maximum(x_ref[...].astype(jnp.float32) * s_ref[...] + t_ref[...], 0.0)
    o_ref[...] = jnp.mean(y, axis=0).astype(o_ref.dtype)


def _conv3x3_kernel(hp_ref, w_ref, o_ref):
    # 3x3 / stride-1 conv on a padded bf16 block: 9 statically-sliced tap
    # matmuls accumulated in f32, bf16 store. Replaces im2col.
    _, H, W, g = o_ref.shape
    mid = hp_ref.shape[3]
    acc = jnp.zeros((H * W, g), jnp.float32)
    for t in range(9):
        dy, dx = t // 3, t % 3
        patch = hp_ref[0, dy:dy + H, dx:dx + W, :].reshape(H * W, mid)
        acc = acc + jnp.dot(patch, w_ref[t * mid:(t + 1) * mid, :],
                            preferred_element_type=jnp.float32)
    o_ref[...] = acc.reshape(1, H, W, g).astype(o_ref.dtype)


def _head_kernel(x_ref, s_ref, t_ref, w_ref, b_ref, o_ref):
    # Fused final BN+ReLU + adaptive_avg_pool2d(1,1) + Linear.
    h = jnp.maximum(x_ref[...].astype(jnp.float32) * s_ref[...] + t_ref[...], 0.0)
    pooled = jnp.mean(h, axis=1)                         # (N, C)
    o_ref[...] = (jnp.dot(pooled.astype(jnp.bfloat16), w_ref[...],
                          preferred_element_type=jnp.float32) + b_ref[...])


# ------------------------------ pallas_call glue ----------------------------- #

def _mosaic(dims):
    return pltpu.CompilerParams(dimension_semantics=dims,
                                vmem_limit_bytes=VMEM_LIMIT)


def _row_tile(m, cap):
    """Largest multiple-of-8 tile <= cap that exactly divides m, else full m."""
    if m <= cap:
        return m
    for t in range(cap, 7, -8):
        if m % t == 0:
            return t
    # TODO(synk): padded/ragged row path for row counts not divisible by 8.
    return m


def _col_tile(n):
    return n if n < COL_TILE else COL_TILE


def matmul_plain(a, w, out_dtype=jnp.bfloat16):
    M, K = a.shape
    _, N = w.shape
    tm, tn = _row_tile(M, MM_ROW_TILE), _col_tile(N)
    return pl.pallas_call(
        _mm_kernel,
        grid=(M // tm, pl.cdiv(N, tn)),
        in_specs=[pl.BlockSpec((tm, K), lambda i, j: (i, 0)),
                  pl.BlockSpec((K, tn), lambda i, j: (0, j))],
        out_specs=pl.BlockSpec((tm, tn), lambda i, j: (i, j)),
        out_shape=jax.ShapeDtypeStruct((M, N), out_dtype),
        compiler_params=_mosaic(("parallel", "parallel")),
    )(a, w)


def matmul_stats(a, w, out_dtype=jnp.bfloat16):
    M, K = a.shape
    _, N = w.shape
    tm, tn = _row_tile(M, MM_ROW_TILE), _col_tile(N)
    return pl.pallas_call(
        _mm_stats_kernel,
        grid=(pl.cdiv(N, tn), M // tm),          # rows innermost: resident stats
        in_specs=[pl.BlockSpec((tm, K), lambda j, i: (i, 0)),
                  pl.BlockSpec((K, tn), lambda j, i: (0, j))],
        out_specs=[pl.BlockSpec((tm, tn), lambda j, i: (i, j)),
                   pl.BlockSpec((1, tn), lambda j, i: (0, j)),
                   pl.BlockSpec((1, tn), lambda j, i: (0, j))],
        out_shape=[jax.ShapeDtypeStruct((M, N), out_dtype),
                   jax.ShapeDtypeStruct((1, N), jnp.float32),
                   jax.ShapeDtypeStruct((1, N), jnp.float32)],
        compiler_params=_mosaic(("parallel", "arbitrary")),
    )(a, w)


def matmul_bn_relu_stats(a, scale, shift, w, out_dtype=jnp.bfloat16):
    M, K = a.shape
    _, N = w.shape
    tm, tn = _row_tile(M, MM_ROW_TILE), _col_tile(N)
    return pl.pallas_call(
        _mm_bn_stats_kernel,
        grid=(pl.cdiv(N, tn), M // tm),
        in_specs=[pl.BlockSpec((tm, K), lambda j, i: (i, 0)),
                  pl.BlockSpec((1, K), lambda j, i: (0, 0)),
                  pl.BlockSpec((1, K), lambda j, i: (0, 0)),
                  pl.BlockSpec((K, tn), lambda j, i: (0, j))],
        out_specs=[pl.BlockSpec((tm, tn), lambda j, i: (i, j)),
                   pl.BlockSpec((1, tn), lambda j, i: (0, j)),
                   pl.BlockSpec((1, tn), lambda j, i: (0, j))],
        out_shape=[jax.ShapeDtypeStruct((M, N), out_dtype),
                   jax.ShapeDtypeStruct((1, N), jnp.float32),
                   jax.ShapeDtypeStruct((1, N), jnp.float32)],
        compiler_params=_mosaic(("parallel", "arbitrary")),
    )(a, scale, shift, w)


def bn_stats(x2d):
    M, C = x2d.shape
    tm = _row_tile(M, ELEM_ROW_TILE)
    return pl.pallas_call(
        _bn_stats_kernel,
        grid=(M // tm,),
        in_specs=[pl.BlockSpec((tm, C), lambda i: (i, 0))],
        out_specs=[pl.BlockSpec((1, C), lambda i: (0, 0)),
                   pl.BlockSpec((1, C), lambda i: (0, 0))],
        out_shape=[jax.ShapeDtypeStruct((1, C), jnp.float32),
                   jax.ShapeDtypeStruct((1, C), jnp.float32)],
        compiler_params=_mosaic(("arbitrary",)),
    )(x2d)


def _scale_shift(s, ss, count, gamma, beta):
    # Training-mode (biased) BatchNorm statistics.
    # TODO(synk): shifted/Welford accumulation to avoid E[x^2]-E[x]^2
    # cancellation for very large row counts.
    mean = s / count
    var = jnp.maximum(ss / count - mean * mean, 0.0)
    scale = gamma.reshape(1, -1) * jax.lax.rsqrt(var + BN_EPS)
    shift = beta.reshape(1, -1) - mean * scale
    return scale, shift


def bn_relu_apply(x2d, scale, shift, out_dtype=jnp.bfloat16):
    M, C = x2d.shape
    tm = _row_tile(M, ELEM_ROW_TILE)
    return pl.pallas_call(
        _bn_apply_kernel,
        grid=(M // tm,),
        in_specs=[pl.BlockSpec((tm, C), lambda i: (i, 0)),
                  pl.BlockSpec((1, C), lambda i: (0, 0)),
                  pl.BlockSpec((1, C), lambda i: (0, 0))],
        out_specs=pl.BlockSpec((tm, C), lambda i: (i, 0)),
        out_shape=jax.ShapeDtypeStruct((M, C), out_dtype),
        compiler_params=_mosaic(("parallel",)),
    )(x2d, scale, shift)


def maxpool_taps(taps, out_dtype=jnp.bfloat16):
    T, M, C = taps.shape
    tm = _row_tile(M, ELEM_ROW_TILE)
    return pl.pallas_call(
        _pool_max_kernel,
        grid=(M // tm,),
        in_specs=[pl.BlockSpec((T, tm, C), lambda i: (0, i, 0))],
        out_specs=pl.BlockSpec((tm, C), lambda i: (i, 0)),
        out_shape=jax.ShapeDtypeStruct((M, C), out_dtype),
        compiler_params=_mosaic(("parallel",)),
    )(taps)


def bn_relu_avgpool_taps(taps, scale, shift, out_dtype=jnp.bfloat16):
    T, M, C = taps.shape
    tm = _row_tile(M, ELEM_ROW_TILE)
    return pl.pallas_call(
        _pool_bn_mean_kernel,
        grid=(M // tm,),
        in_specs=[pl.BlockSpec((T, tm, C), lambda i: (0, i, 0)),
                  pl.BlockSpec((1, C), lambda i: (0, 0)),
                  pl.BlockSpec((1, C), lambda i: (0, 0))],
        out_specs=pl.BlockSpec((tm, C), lambda i: (i, 0)),
        out_shape=jax.ShapeDtypeStruct((M, C), out_dtype),
        compiler_params=_mosaic(("parallel",)),
    )(taps, scale, shift)


def conv3x3(hp, w_mat, growth):
    # hp: (N, H+2, W+2, mid) zero-padded bf16; w_mat: (9*mid, growth) bf16.
    N, Hp, Wp, mid = hp.shape
    H, W = Hp - 2, Wp - 2
    return pl.pallas_call(
        _conv3x3_kernel,
        grid=(N,),
        in_specs=[pl.BlockSpec((1, Hp, Wp, mid), lambda n: (n, 0, 0, 0)),
                  pl.BlockSpec((9 * mid, growth), lambda n: (0, 0))],
        out_specs=pl.BlockSpec((1, H, W, growth), lambda n: (n, 0, 0, 0)),
        out_shape=jax.ShapeDtypeStruct((N, H, W, growth), jnp.bfloat16),
        compiler_params=_mosaic(("parallel",)),
    )(hp, w_mat)


def head_call(x3d, scale, shift, w, bias):
    # TODO(synk): tile over batch / HW for large batches; the whole-tensor
    # block is fine at the shapes used here (post final dense block).
    N, HW, C = x3d.shape
    nc = w.shape[1]
    return pl.pallas_call(
        _head_kernel,
        grid=(1,),
        in_specs=[pl.BlockSpec((N, HW, C), lambda i: (0, 0, 0)),
                  pl.BlockSpec((1, C), lambda i: (0, 0)),
                  pl.BlockSpec((1, C), lambda i: (0, 0)),
                  pl.BlockSpec((C, nc), lambda i: (0, 0)),
                  pl.BlockSpec((1, nc), lambda i: (0, 0))],
        out_specs=pl.BlockSpec((N, nc), lambda i: (0, 0)),
        out_shape=jax.ShapeDtypeStruct((N, nc), jnp.float32),
        compiler_params=_mosaic(("arbitrary",)),
    )(x3d, scale, shift, w, bias)


# ----------------------- patch extraction (XLA slicing) ---------------------- #

def _im2col(x, kh, kw, stride, pad):
    """x (N,H,W,C) -> im2col matrix (N*Ho*Wo, kh*kw*C). Only used for the
    one-time 7x7 stem (K = 49*Cin, Cin = 1)."""
    N, H, W, C = x.shape
    Ho = (H + 2 * pad - kh) // stride + 1
    Wo = (W + 2 * pad - kw) // stride + 1
    xp = jnp.pad(x, ((0, 0), (pad, pad), (pad, pad), (0, 0)))
    cols = [xp[:, dy:dy + (Ho - 1) * stride + 1:stride,
                  dx:dx + (Wo - 1) * stride + 1:stride, :]
            for dy in range(kh) for dx in range(kw)]
    a = jnp.concatenate(cols, axis=-1)
    return a.reshape(N * Ho * Wo, kh * kw * C), (N, Ho, Wo)


def _extract_taps(x, kh, kw, stride, pad, pad_value):
    """x (N,H,W,C) -> (kh*kw, N*Ho*Wo, C) stacked taps (for pooling)."""
    N, H, W, C = x.shape
    Ho = (H + 2 * pad - kh) // stride + 1
    Wo = (W + 2 * pad - kw) // stride + 1
    xp = jnp.pad(x, ((0, 0), (pad, pad), (pad, pad), (0, 0)),
                 constant_values=pad_value)
    taps = [xp[:, dy:dy + (Ho - 1) * stride + 1:stride,
                  dx:dx + (Wo - 1) * stride + 1:stride, :]
            for dy in range(kh) for dx in range(kw)]
    return jnp.stack(taps, axis=0).reshape(kh * kw, N * Ho * Wo, C), (N, Ho, Wo)


def _conv_weight_matrix(w):
    """(Cout, Cin, kh, kw) PyTorch layout -> (kh*kw*Cin, Cout) bf16, row order
    (dy, dx, cin), matching _im2col and the 9-tap conv kernel."""
    Cout = w.shape[0]
    return jnp.transpose(w, (2, 3, 1, 0)).reshape(-1, Cout).astype(jnp.bfloat16)


# ------------------------------ parameter setup ------------------------------ #

def _conv_init(key, cout, cin, kh, kw):
    fan_in = cin * kh * kw
    return jax.random.normal(key, (cout, cin, kh, kw), jnp.float32) / jnp.sqrt(
        jnp.float32(fan_in))


def _bn_init(key, c):
    kg, kb = jax.random.split(key)
    gamma = 1.0 + 0.1 * jax.random.normal(kg, (c,), jnp.float32)
    beta = 0.1 * jax.random.normal(kb, (c,), jnp.float32)
    return gamma, beta


def init_densenet_params(key, num_classes=6, growth_rate=32,
                         block_layers=(6, 12, 24, 16), init_channels=64,
                         bn_size=4):
    keys = iter(jax.random.split(key, 4096))
    params = {}
    channels = init_channels
    params["init_conv_w"] = _conv_init(next(keys), channels, 1, 7, 7)
    params["init_bn"] = _bn_init(next(keys), channels)
    blocks = []
    for i, num_layers in enumerate(block_layers):
        layers = []
        for j in range(num_layers):
            in_ch = channels + j * growth_rate
            mid = bn_size * growth_rate
            layers.append({
                "bn1": _bn_init(next(keys), in_ch),
                "w1": _conv_init(next(keys), mid, in_ch, 1, 1),
                "bn2": _bn_init(next(keys), mid),
                "w2": _conv_init(next(keys), growth_rate, mid, 3, 3),
            })
        blocks.append(("dense", layers))
        channels += num_layers * growth_rate
        if i != len(block_layers) - 1:
            out_ch = channels // 2
            blocks.append(("transition", {
                "bn": _bn_init(next(keys), channels),
                "w": _conv_init(next(keys), out_ch, channels, 1, 1),
            }))
            channels = out_ch
    params["blocks"] = blocks
    params["final_bn"] = _bn_init(next(keys), channels)
    params["fc_w"] = jax.random.normal(next(keys), (num_classes, channels),
                                       jnp.float32) / jnp.sqrt(jnp.float32(channels))
    params["fc_b"] = 0.1 * jax.random.normal(next(keys), (num_classes,), jnp.float32)
    return params


# -------------------------------- forward pass ------------------------------- #

def dense_layer_forward(x, p):
    # x: (N, H, W, C) bf16 feature map.
    N, H, W, C = x.shape
    M = N * H * W
    x2d = x.reshape(M, C)

    # BN1 stats over the bf16 feature map; BN1+ReLU fused as the 1x1-conv
    # matmul prologue; BN2 stats fused as extra outputs of the same matmul.
    s1, t1 = _scale_shift(*bn_stats(x2d), M, *p["bn1"])
    w1 = p["w1"].reshape(p["w1"].shape[0], C).T.astype(jnp.bfloat16)     # (C, mid)
    h, hs, hss = matmul_bn_relu_stats(x2d, s1, t1, w1)                   # (M, mid) bf16

    # BN2+ReLU apply (bf16), zero-pad, then the in-kernel 9-tap 3x3 conv.
    s2, t2 = _scale_shift(hs, hss, M, *p["bn2"])
    mid = h.shape[1]
    hb = bn_relu_apply(h, s2, t2).reshape(N, H, W, mid)
    hp = jnp.pad(hb, ((0, 0), (1, 1), (1, 1), (0, 0)))
    growth = p["w2"].shape[0]
    nf = conv3x3(hp, _conv_weight_matrix(p["w2"]), growth)               # (N,H,W,g) bf16

    # TODO(synk): in-place growth-slice write via input_output_aliases.
    return jnp.concatenate([x, nf], axis=-1)          # torch.cat([x, new], dim=1)


def transition_forward(x, p):
    # BN+ReLU, 2x2 avg-pool FIRST (fused kernel), then the 1x1 conv at quarter
    # spatial resolution (pool and 1x1 conv commute exactly).
    N, H, W, C = x.shape
    M = N * H * W
    s, t = _scale_shift(*bn_stats(x.reshape(M, C)), M, *p["bn"])
    taps, (N2, Ho, Wo) = _extract_taps(x, 2, 2, 2, 0, 0.0)
    pooled = bn_relu_avgpool_taps(taps, s, t)                            # (M/4, C) bf16
    w = p["w"].reshape(p["w"].shape[0], C).T.astype(jnp.bfloat16)
    y = matmul_plain(pooled, w)                                          # bf16
    return y.reshape(N2, Ho, Wo, -1)


def densenet_forward(params, x_nchw):
    x = jnp.transpose(x_nchw, (0, 2, 3, 1)).astype(jnp.bfloat16)         # NCHW -> NHWC bf16

    # Stem: 7x7/2 conv (im2col, K=49) with fused BN stats, BN+ReLU apply,
    # 3x3/2 maxpool over stacked bf16 taps.
    a, (N, Ho, Wo) = _im2col(x, 7, 7, 2, 3)
    h, hs, hss = matmul_stats(a, _conv_weight_matrix(params["init_conv_w"]))
    s, t = _scale_shift(hs, hss, h.shape[0], *params["init_bn"])
    Cout = params["init_conv_w"].shape[0]
    hb = bn_relu_apply(h, s, t).reshape(N, Ho, Wo, Cout)
    taps, (N, Ho, Wo) = _extract_taps(hb, 3, 3, 2, 1, -jnp.inf)
    x = maxpool_taps(taps).reshape(N, Ho, Wo, Cout)

    for kind, p in params["blocks"]:
        if kind == "dense":
            for lp in p:
                x = dense_layer_forward(x, lp)
        else:
            x = transition_forward(x, p)

    # Head: final BN stats, then fused BN+ReLU + global avg pool + Linear.
    N, H, W, C = x.shape
    s, t = _scale_shift(*bn_stats(x.reshape(N * H * W, C)), N * H * W,
                        *params["final_bn"])
    wf = params["fc_w"].T.astype(jnp.bfloat16)
    bf = params["fc_b"].reshape(1, -1)
    return head_call(x.reshape(N, H * W, C), s, t, wf, bf)


# ------------------------- pure-JAX reference (check) ------------------------ #
# Mirrors the kernel path's precision: bf16 feature map / MXU inputs, f32
# accumulation, BN stats taken from the f32 conv results.

def _ref_conv(x_bf16, w, stride, pad):
    w_hwio = jnp.transpose(w, (2, 3, 1, 0)).astype(jnp.bfloat16)
    return jax.lax.conv_general_dilated(
        x_bf16.astype(jnp.bfloat16), w_hwio, window_strides=(stride, stride),
        padding=[(pad, pad), (pad, pad)],
        dimension_numbers=("NHWC", "HWIO", "NHWC"),
        preferred_element_type=jnp.float32)


def _ref_scale_shift(x32_2d, gamma, beta):
    s = jnp.sum(x32_2d, axis=0, keepdims=True)
    ss = jnp.sum(x32_2d * x32_2d, axis=0, keepdims=True)
    return _scale_shift(s, ss, x32_2d.shape[0], gamma, beta)


def _ref_bn_relu(x_bf, scale, shift):
    return jnp.maximum(x_bf.astype(jnp.float32) * scale.reshape(1, 1, 1, -1)
                       + shift.reshape(1, 1, 1, -1), 0.0)


def reference_forward(params, x_nchw):
    x = jnp.transpose(x_nchw, (0, 2, 3, 1)).astype(jnp.bfloat16)
    # Stem.
    h32 = _ref_conv(x, params["init_conv_w"], 2, 3)
    C0 = h32.shape[-1]
    s, t = _ref_scale_shift(h32.reshape(-1, C0), *params["init_bn"])
    hb = _ref_bn_relu(h32.astype(jnp.bfloat16), s, t).astype(jnp.bfloat16)
    x = jax.lax.reduce_window(hb, jnp.asarray(-jnp.inf, dtype=hb.dtype),
                              jax.lax.max, (1, 3, 3, 1), (1, 2, 2, 1),
                              [(0, 0), (1, 1), (1, 1), (0, 0)])
    for kind, p in params["blocks"]:
        if kind == "dense":
            for lp in p:
                C = x.shape[-1]
                s1, t1 = _ref_scale_shift(x.astype(jnp.float32).reshape(-1, C),
                                          *lp["bn1"])
                a = _ref_bn_relu(x, s1, t1)
                h32 = _ref_conv(a.astype(jnp.bfloat16), lp["w1"], 1, 0)
                mid = h32.shape[-1]
                s2, t2 = _ref_scale_shift(h32.reshape(-1, mid), *lp["bn2"])
                hb = _ref_bn_relu(h32.astype(jnp.bfloat16), s2, t2
                                  ).astype(jnp.bfloat16)
                nf = _ref_conv(hb, lp["w2"], 1, 1).astype(jnp.bfloat16)
                x = jnp.concatenate([x, nf], axis=-1)
        else:
            C = x.shape[-1]
            s, t = _ref_scale_shift(x.astype(jnp.float32).reshape(-1, C), *p["bn"])
            y = _ref_bn_relu(x, s, t)
            pooled = (jax.lax.reduce_window(y, jnp.asarray(0.0, jnp.float32),
                                            jax.lax.add, (1, 2, 2, 1),
                                            (1, 2, 2, 1), "VALID") / 4.0
                      ).astype(jnp.bfloat16)
            x = _ref_conv(pooled, p["w"], 1, 0).astype(jnp.bfloat16)
    C = x.shape[-1]
    s, t = _ref_scale_shift(x.astype(jnp.float32).reshape(-1, C),
                            *params["final_bn"])
    h = _ref_bn_relu(x, s, t)
    pooled = jnp.mean(h, axis=(1, 2))
    return (jnp.dot(pooled.astype(jnp.bfloat16),
                    params["fc_w"].T.astype(jnp.bfloat16),
                    preferred_element_type=jnp.float32)
            + params["fc_b"].reshape(1, -1))


# ----------------------------------- main ------------------------------------ #

if __name__ == "__main__":
    key = jax.random.PRNGKey(0)
    k_x, k_p = jax.random.split(key)

    # Small, forward-consistent shapes: NCHW input with 1 channel (the stem is
    # Conv2d(1, C, 7, stride=2, pad=3)); reduced DenseNet hyperparameters fed
    # through the same constructor logic as the PyTorch module.
    x = jax.random.normal(k_x, (2, 1, 32, 32), jnp.float32)
    params = init_densenet_params(k_p, num_classes=6, growth_rate=8,
                                  block_layers=(2, 3), init_channels=16)

    fwd = jax.jit(lambda xx: densenet_forward(params, xx))
    out = jax.block_until_ready(fwd(x))
    assert out.shape == (2, 6) and out.dtype == jnp.float32

    ref_fn = jax.jit(lambda xx: reference_forward(params, xx))
    ref = jax.block_until_ready(ref_fn(x))
    if not jnp.allclose(out, ref, rtol=2e-2, atol=2e-2):
        raise AssertionError(f"mismatch vs reference:\n{out}\nvs\n{ref}")

    print("KERNEL_OK")
</pallas_src>

<mosaic_0001>
module attributes {stable_mosaic.version = 11 : i64} {
  func.func @_mm_stats_kernel(%arg0: i32, %arg1: i32, %arg2: memref<256x49xbf16, #tpu.memory_space<vmem>>, %arg3: memref<49x16xbf16, #tpu.memory_space<vmem>>, %arg4: memref<256x16xbf16, #tpu.memory_space<vmem>>, %arg5: memref<1x16xf32, #tpu.memory_space<vmem>>, %arg6: memref<1x16xf32, #tpu.memory_space<vmem>>) attributes {dimension_semantics = [#tpu.dimension_semantics<parallel>, #tpu.dimension_semantics<arbitrary>], iteration_bounds = array<i64: 1, 2>, scalar_prefetch = 0 : i64, scratch_operands = 0 : i64, tpu.core_type = #tpu.core_type<tc>, window_params = [{transform_indices = @transform_0, window_bounds = array<i64: 256, 49>}, {transform_indices = @transform_1, window_bounds = array<i64: 49, 16>}, {transform_indices = @transform_2, window_bounds = array<i64: 256, 16>}, {transform_indices = @transform_3, window_bounds = array<i64: 1, 16>}, {transform_indices = @transform_4, window_bounds = array<i64: 1, 16>}]} {
    %c0_i32 = arith.constant 0 : i32
    %0 = arith.cmpi eq, %arg1, %c0_i32 : i32
    %1 = arith.extui %0 : i1 to i32
    %c0_i32_0 = arith.constant 0 : i32
    %2 = arith.cmpi ne, %1, %c0_i32_0 : i32
    scf.if %2 {
      %cst_16 = arith.constant 0.000000e+00 : f32
      %19 = vector.broadcast %cst_16 : f32 to vector<1x16xf32>
      %c0_17 = arith.constant 0 : index
      %c0_18 = arith.constant 0 : index
      %20 = vector.load %arg5[%c0_17, %c0_18] : memref<1x16xf32, #tpu.memory_space<vmem>>, vector<1x16xf32>
      tpu.vector_store %arg5[%c0_17, %c0_18], %19 {strides = array<i32>} : memref<1x16xf32, #tpu.memory_space<vmem>>, vector<1x16xf32>,
      %cst_19 = arith.constant 0.000000e+00 : f32
      %21 = vector.broadcast %cst_19 : f32 to vector<1x16xf32>
      %c0_20 = arith.constant 0 : index
      %c0_21 = arith.constant 0 : index
      %22 = vector.load %arg6[%c0_20, %c0_21] : memref<1x16xf32, #tpu.memory_space<vmem>>, vector<1x16xf32>
      tpu.vector_store %arg6[%c0_20, %c0_21], %21 {strides = array<i32>} : memref<1x16xf32, #tpu.memory_space<vmem>>, vector<1x16xf32>,
    } else {
    }
    %c0 = arith.constant 0 : index
    %c0_1 = arith.constant 0 : index
    %3 = vector.load %arg2[%c0, %c0_1] : memref<256x49xbf16, #tpu.memory_space<vmem>>, vector<256x49xbf16>
    %c0_2 = arith.constant 0 : index
    %c0_3 = arith.constant 0 : index
    %4 = vector.load %arg3[%c0_2, %c0_3] : memref<49x16xbf16, #tpu.memory_space<vmem>>, vector<49x16xbf16>
    %cst = arith.constant dense<0.000000e+00> : vector<256x16xf32>
    %5 = tpu.matmul %3, %4, %cst {dimension_numbers = #tpu.dot_dimension_numbers<[1], [0], [0], [1], [0, 0, 1, 1], [], []>} : vector<256x49xbf16>, vector<49x16xbf16>, vector<256x16xf32> -> vector<256x16xf32>
    %6 = arith.truncf %5 : vector<256x16xf32> to vector<256x16xbf16>
    %c0_4 = arith.constant 0 : index
    %c0_5 = arith.constant 0 : index
    %7 = vector.load %arg4[%c0_4, %c0_5] : memref<256x16xbf16, #tpu.memory_space<vmem>>, vector<256x16xbf16>
    tpu.vector_store %arg4[%c0_4, %c0_5], %6 {strides = array<i32>} : memref<256x16xbf16, #tpu.memory_space<vmem>>, vector<256x16xbf16>,
    %c0_6 = arith.constant 0 : index
    %c0_7 = arith.constant 0 : index
    %8 = vector.load %arg5[%c0_6, %c0_7] : memref<1x16xf32, #tpu.memory_space<vmem>>, vector<1x16xf32>
    %cst_8 = arith.constant dense<0.000000e+00> : vector<16xf32>
    %9 = vector.multi_reduction <add>, %5, %cst_8 [0] : vector<256x16xf32> to vector<16xf32>
    %10 = vector.shape_cast %9 : vector<16xf32> to vector<1x16xf32>
    %11 = arith.addf %8, %10 : vector<1x16xf32>
    %c0_9 = arith.constant 0 : index
    %c0_10 = arith.constant 0 : index
    %12 = vector.load %arg5[%c0_9, %c0_10] : memref<1x16xf32, #tpu.memory_space<vmem>>, vector<1x16xf32>
    tpu.vector_store %arg5[%c0_9, %c0_10], %11 {strides = array<i32>} : memref<1x16xf32, #tpu.memory_space<vmem>>, vector<1x16xf32>,
    %c0_11 = arith.constant 0 : index
    %c0_12 = arith.constant 0 : index
    %13 = vector.load %arg6[%c0_11, %c0_12] : memref<1x16xf32, #tpu.memory_space<vmem>>, vector<1x16xf32>
    %14 = arith.mulf %5, %5 : vector<256x16xf32>
    %cst_13 = arith.constant dense<0.000000e+00> : vector<16xf32>
    %15 = vector.multi_reduction <add>, %14, %cst_13 [0] : vector<256x16xf32> to vector<16xf32>
    %16 = vector.shape_cast %15 : vector<16xf32> to vector<1x16xf32>
    %17 = arith.addf %13, %16 : vector<1x16xf32>
    %c0_14 = arith.constant 0 : index
    %c0_15 = arith.constant 0 : index
    %18 = vector.load %arg6[%c0_14, %c0_15] : memref<1x16xf32, #tpu.memory_space<vmem>>, vector<1x16xf32>
    tpu.vector_store %arg6[%c0_14, %c0_15], %17 {strides = array<i32>} : memref<1x16xf32, #tpu.memory_space<vmem>>, vector<1x16xf32>,
    return
  }
  func.func @transform_0(%arg0: i32, %arg1: i32) -> (i32, i32) {
    %c0_i32 = arith.constant 0 : i32
    %c0_i32_0 = arith.constant 0 : i32
    return %arg1, %c0_i32 : i32, i32
  }
  func.func @transform_1(%arg0: i32, %arg1: i32) -> (i32, i32) {
    %c0_i32 = arith.constant 0 : i32
    %c0_i32_0 = arith.constant 0 : i32
    return %c0_i32, %arg0 : i32, i32
  }
  func.func @transform_2(%arg0: i32, %arg1: i32) -> (i32, i32) {
    %c0_i32 = arith.constant 0 : i32
    return %arg1, %arg0 : i32, i32
  }
  func.func @transform_3(%arg0: i32, %arg1: i32) -> (i32, i32) {
    %c0_i32 = arith.constant 0 : i32
    %c0_i32_0 = arith.constant 0 : i32
    return %c0_i32, %arg0 : i32, i32
  }
  func.func @transform_4(%arg0: i32, %arg1: i32) -> (i32, i32) {
    %c0_i32 = arith.constant 0 : i32
    %c0_i32_0 = arith.constant 0 : i32
    return %c0_i32, %arg0 : i32, i32
  }
}

module attributes {stable_mosaic.version = 11 : i64} {
  func.func @_bn_apply_kernel(%arg0: i32, %arg1: memref<512x16xbf16, #tpu.memory_space<vmem>>, %arg2: memref<1x16xf32, #tpu.memory_space<vmem>>, %arg3: memref<1x16xf32, #tpu.memory_space<vmem>>, %arg4: memref<512x16xbf16, #tpu.memory_space<vmem>>) attributes {dimension_semantics = [#tpu.dimension_semantics<parallel>], iteration_bounds = array<i64: 1>, scalar_prefetch = 0 : i64, scratch_operands = 0 : i64, tpu.core_type = #tpu.core_type<tc>, window_params = [{transform_indices = @transform_0, window_bounds = array<i64: 512, 16>}, {pipeline_mode = #tpu.pipeline_mode<synchronous>, transform_indices = @transform_1, window_bounds = array<i64: 1, 16>}, {pipeline_mode = #tpu.pipeline_mode<synchronous>, transform_indices = @transform_2, window_bounds = array<i64: 1, 16>}, {transform_indices = @transform_3, window_bounds = array<i64: 512, 16>}]} {
    %c0 = arith.constant 0 : index
    %c0_0 = arith.constant 0 : index
    %0 = vector.load %arg1[%c0, %c0_0] : memref<512x16xbf16, #tpu.memory_space<vmem>>, vector<512x16xbf16>
    %1 = arith.extf %0 : vector<512x16xbf16> to vector<512x16xf32>
    %c0_1 = arith.constant 0 : index
    %c0_2 = arith.constant 0 : index
    %2 = vector.load %arg2[%c0_1, %c0_2] : memref<1x16xf32, #tpu.memory_space<vmem>>, vector<1x16xf32>
    %3 = vector.broadcast %2 : vector<1x16xf32> to vector<512x16xf32>
    %4 = arith.mulf %1, %3 : vector<512x16xf32>
    %c0_3 = arith.constant 0 : index
    %c0_4 = arith.constant 0 : index
    %5 = vector.load %arg3[%c0_3, %c0_4] : memref<1x16xf32, #tpu.memory_space<vmem>>, vector<1x16xf32>
    %6 = vector.broadcast %5 : vector<1x16xf32> to vector<512x16xf32>
    %7 = arith.addf %4, %6 : vector<512x16xf32>
    %cst = arith.constant 0.000000e+00 : f32
    %8 = vector.broadcast %cst : f32 to vector<512x16xf32>
    %9 = arith.maximumf %7, %8 : vector<512x16xf32>
    %10 = arith.truncf %9 : vector<512x16xf32> to vector<512x16xbf16>
    %c0_5 = arith.constant 0 : index
    %c0_6 = arith.constant 0 : index
    %11 = vector.load %arg4[%c0_5, %c0_6] : memref<512x16xbf16, #tpu.memory_space<vmem>>, vector<512x16xbf16>
    tpu.vector_store %arg4[%c0_5, %c0_6], %10 {strides = array<i32>} : memref<512x16xbf16, #tpu.memory_space<vmem>>, vector<512x16xbf16>,
    return
  }
  func.func @transform_0(%arg0: i32) -> (i32, i32) {
    %c0_i32 = arith.constant 0 : i32
    %c0_i32_0 = arith.constant 0 : i32
    return %arg0, %c0_i32 : i32, i32
  }
  func.func @transform_1(%arg0: i32) -> (i32, i32) {
    %c0_i32 = arith.constant 0 : i32
    %c0_i32_0 = arith.constant 0 : i32
    %c0_i32_1 = arith.constant 0 : i32
    return %c0_i32, %c0_i32_0 : i32, i32
  }
  func.func @transform_2(%arg0: i32) -> (i32, i32) {
    %c0_i32 = arith.constant 0 : i32
    %c0_i32_0 = arith.constant 0 : i32
    %c0_i32_1 = arith.constant 0 : i32
    return %c0_i32, %c0_i32_0 : i32, i32
  }
  func.func @transform_3(%arg0: i32) -> (i32, i32) {
    %c0_i32 = arith.constant 0 : i32
    %c0_i32_0 = arith.constant 0 : i32
    return %arg0, %c0_i32 : i32, i32
  }
}

module attributes {stable_mosaic.version = 11 : i64} {
  func.func @_bn_stats_kernel(%arg0: i32, %arg1: memref<128x16xbf16, #tpu.memory_space<vmem>>, %arg2: memref<1x16xf32, #tpu.memory_space<vmem>>, %arg3: memref<1x16xf32, #tpu.memory_space<vmem>>) attributes {dimension_semantics = [#tpu.dimension_semantics<arbitrary>], iteration_bounds = array<i64: 1>, scalar_prefetch = 0 : i64, scratch_operands = 0 : i64, tpu.core_type = #tpu.core_type<tc>, window_params = [{transform_indices = @transform_0, window_bounds = array<i64: 128, 16>}, {pipeline_mode = #tpu.pipeline_mode<synchronous>, transform_indices = @transform_1, window_bounds = array<i64: 1, 16>}, {pipeline_mode = #tpu.pipeline_mode<synchronous>, transform_indices = @transform_2, window_bounds = array<i64: 1, 16>}]} {
    %c0_i32 = arith.constant 0 : i32
    %0 = arith.cmpi eq, %arg0, %c0_i32 : i32
    %1 = arith.extui %0 : i1 to i32
    %c0_i32_0 = arith.constant 0 : i32
    %2 = arith.cmpi ne, %1, %c0_i32_0 : i32
    scf.if %2 {
      %cst_11 = arith.constant 0.000000e+00 : f32
      %16 = vector.broadcast %cst_11 : f32 to vector<1x16xf32>
      %c0_12 = arith.constant 0 : index
      %c0_13 = arith.constant 0 : index
      %17 = vector.load %arg2[%c0_12, %c0_13] : memref<1x16xf32, #tpu.memory_space<vmem>>, vector<1x16xf32>
      tpu.vector_store %arg2[%c0_12, %c0_13], %16 {strides = array<i32>} : memref<1x16xf32, #tpu.memory_space<vmem>>, vector<1x16xf32>,
      %cst_14 = arith.constant 0.000000e+00 : f32
      %18 = vector.broadcast %cst_14 : f32 to vector<1x16xf32>
      %c0_15 = arith.constant 0 : index
      %c0_16 = arith.constant 0 : index
      %19 = vector.load %arg3[%c0_15, %c0_16] : memref<1x16xf32, #tpu.memory_space<vmem>>, vector<1x16xf32>
      tpu.vector_store %arg3[%c0_15, %c0_16], %18 {strides = array<i32>} : memref<1x16xf32, #tpu.memory_space<vmem>>, vector<1x16xf32>,
    } else {
    }
    %c0 = arith.constant 0 : index
    %c0_1 = arith.constant 0 : index
    %3 = vector.load %arg1[%c0, %c0_1] : memref<128x16xbf16, #tpu.memory_space<vmem>>, vector<128x16xbf16>
    %4 = arith.extf %3 : vector<128x16xbf16> to vector<128x16xf32>
    %c0_2 = arith.constant 0 : index
    %c0_3 = arith.constant 0 : index
    %5 = vector.load %arg2[%c0_2, %c0_3] : memref<1x16xf32, #tpu.memory_space<vmem>>, vector<1x16xf32>
    %cst = arith.constant dense<0.000000e+00> : vector<16xf32>
    %6 = vector.multi_reduction <add>, %4, %cst [0] : vector<128x16xf32> to vector<16xf32>
    %7 = vector.shape_cast %6 : vector<16xf32> to vector<1x16xf32>
    %8 = arith.addf %5, %7 : vector<1x16xf32>
    %c0_4 = arith.constant 0 : index
    %c0_5 = arith.constant 0 : index
    %9 = vector.load %arg2[%c0_4, %c0_5] : memref<1x16xf32, #tpu.memory_space<vmem>>, vector<1x16xf32>
    tpu.vector_store %arg2[%c0_4, %c0_5], %8 {strides = array<i32>} : memref<1x16xf32, #tpu.memory_space<vmem>>, vector<1x16xf32>,
    %c0_6 = arith.constant 0 : index
    %c0_7 = arith.constant 0 : index
    %10 = vector.load %arg3[%c0_6, %c0_7] : memref<1x16xf32, #tpu.memory_space<vmem>>, vector<1x16xf32>
    %11 = arith.mulf %4, %4 : vector<128x16xf32>
    %cst_8 = arith.constant dense<0.000000e+00> : vector<16xf32>
    %12 = vector.multi_reduction <add>, %11, %cst_8 [0] : vector<128x16xf32> to vector<16xf32>
    %13 = vector.shape_cast %12 : vector<16xf32> to vector<1x16xf32>
    %14 = arith.addf %10, %13 : vector<1x16xf32>
    %c0_9 = arith.constant 0 : index
    %c0_10 = arith.constant 0 : index
    %15 = vector.load %arg3[%c0_9, %c0_10] : memref<1x16xf32, #tpu.memory_space<vmem>>, vector<1x16xf32>
    tpu.vector_store %arg3[%c0_9, %c0_10], %14 {strides = array<i32>} : memref<1x16xf32, #tpu.memory_space<vmem>>, vector<1x16xf32>,
    return
  }
  func.func @transform_0(%arg0: i32) -> (i32, i32) {
    %c0_i32 = arith.constant 0 : i32
    %c0_i32_0 = arith.constant 0 : i32
    return %arg0, %c0_i32 : i32, i32
  }
  func.func @transform_1(%arg0: i32) -> (i32, i32) {
    %c0_i32 = arith.constant 0 : i32
    %c0_i32_0 = arith.constant 0 : i32
    %c0_i32_1 = arith.constant 0 : i32
    return %c0_i32, %c0_i32_0 : i32, i32
  }
  func.func @transform_2(%arg0: i32) -> (i32, i32) {
    %c0_i32 = arith.constant 0 : i32
    %c0_i32_0 = arith.constant 0 : i32
    %c0_i32_1 = arith.constant 0 : i32
    return %c0_i32, %c0_i32_0 : i32, i32
  }
}

module attributes {stable_mosaic.version = 11 : i64} {
  func.func @_pool_max_kernel(%arg0: i32, %arg1: memref<9x128x16xbf16, #tpu.memory_space<vmem>>, %arg2: memref<128x16xbf16, #tpu.memory_space<vmem>>) attributes {dimension_semantics = [#tpu.dimension_semantics<parallel>], iteration_bounds = array<i64: 1>, scalar_prefetch = 0 : i64, scratch_operands = 0 : i64, tpu.core_type = #tpu.core_type<tc>, window_params = [{transform_indices = @transform_0, window_bounds = array<i64: 9, 128, 16>}, {transform_indices = @transform_1, window_bounds = array<i64: 128, 16>}]} {
    %c0 = arith.constant 0 : index
    %c0_0 = arith.constant 0 : index
    %c0_1 = arith.constant 0 : index
    %0 = vector.load %arg1[%c0, %c0_0, %c0_1] : memref<9x128x16xbf16, #tpu.memory_space<vmem>>, vector<9x128x16xbf16>
    %1 = arith.extf %0 : vector<9x128x16xbf16> to vector<9x128x16xf32>
    %cst = arith.constant dense<0xFF800000> : vector<128x16xf32>
    %2 = vector.multi_reduction <maximumf>, %1, %cst [0] : vector<9x128x16xf32> to vector<128x16xf32>
    %3 = arith.truncf %2 : vector<128x16xf32> to vector<128x16xbf16>
    %c0_2 = arith.constant 0 : index
    %c0_3 = arith.constant 0 : index
    %4 = vector.load %arg2[%c0_2, %c0_3] : memref<128x16xbf16, #tpu.memory_space<vmem>>, vector<128x16xbf16>
    tpu.vector_store %arg2[%c0_2, %c0_3], %3 {strides = array<i32>} : memref<128x16xbf16, #tpu.memory_space<vmem>>, vector<128x16xbf16>,
    return
  }
  func.func @transform_0(%arg0: i32) -> (i32, i32, i32) {
    %c0_i32 = arith.constant 0 : i32
    %c0_i32_0 = arith.constant 0 : i32
    %c0_i32_1 = arith.constant 0 : i32
    return %c0_i32, %arg0, %c0_i32_0 : i32, i32, i32
  }
  func.func @transform_1(%arg0: i32) -> (i32, i32) {
    %c0_i32 = arith.constant 0 : i32
    %c0_i32_0 = arith.constant 0 : i32
    return %arg0, %c0_i32 : i32, i32
  }
}

module attributes {stable_mosaic.version = 11 : i64} {
  func.func @_mm_bn_stats_kernel(%arg0: i32, %arg1: i32, %arg2: memref<128x16xbf16, #tpu.memory_space<vmem>>, %arg3: memref<1x16xf32, #tpu.memory_space<vmem>>, %arg4: memref<1x16xf32, #tpu.memory_space<vmem>>, %arg5: memref<16x32xbf16, #tpu.memory_space<vmem>>, %arg6: memref<128x32xbf16, #tpu.memory_space<vmem>>, %arg7: memref<1x32xf32, #tpu.memory_space<vmem>>, %arg8: memref<1x32xf32, #tpu.memory_space<vmem>>) attributes {dimension_semantics = [#tpu.dimension_semantics<parallel>, #tpu.dimension_semantics<arbitrary>], iteration_bounds = array<i64: 1, 1>, scalar_prefetch = 0 : i64, scratch_operands = 0 : i64, tpu.core_type = #tpu.core_type<tc>, window_params = [{transform_indices = @transform_0, window_bounds = array<i64: 128, 16>}, {pipeline_mode = #tpu.pipeline_mode<synchronous>, transform_indices = @transform_1, window_bounds = array<i64: 1, 16>}, {pipeline_mode = #tpu.pipeline_mode<synchronous>, transform_indices = @transform_2, window_bounds = array<i64: 1, 16>}, {transform_indices = @transform_3, window_bounds = array<i64: 16, 32>}, {transform_indices = @transform_4, window_bounds = array<i64: 128, 32>}, {transform_indices = @transform_5, window_bounds = array<i64: 1, 32>}, {transform_indices = @transform_6, window_bounds = array<i64: 1, 32>}]} {
    %c0_i32 = arith.constant 0 : i32
    %0 = arith.cmpi eq, %arg1, %c0_i32 : i32
    %1 = arith.extui %0 : i1 to i32
    %c0_i32_0 = arith.constant 0 : i32
    %2 = arith.cmpi ne, %1, %c0_i32_0 : i32
    scf.if %2 {
      %cst_21 = arith.constant 0.000000e+00 : f32
      %29 = vector.broadcast %cst_21 : f32 to vector<1x32xf32>
      %c0_22 = arith.constant 0 : index
      %c0_23 = arith.constant 0 : index
      %30 = vector.load %arg7[%c0_22, %c0_23] : memref<1x32xf32, #tpu.memory_space<vmem>>, vector<1x32xf32>
      tpu.vector_store %arg7[%c0_22, %c0_23], %29 {strides = array<i32>} : memref<1x32xf32, #tpu.memory_space<vmem>>, vector<1x32xf32>,
      %cst_24 = arith.constant 0.000000e+00 : f32
      %31 = vector.broadcast %cst_24 : f32 to vector<1x32xf32>
      %c0_25 = arith.constant 0 : index
      %c0_26 = arith.constant 0 : index
      %32 = vector.load %arg8[%c0_25, %c0_26] : memref<1x32xf32, #tpu.memory_space<vmem>>, vector<1x32xf32>
      tpu.vector_store %arg8[%c0_25, %c0_26], %31 {strides = array<i32>} : memref<1x32xf32, #tpu.memory_space<vmem>>, vector<1x32xf32>,
    } else {
    }
    %c0 = arith.constant 0 : index
    %c0_1 = arith.constant 0 : index
    %3 = vector.load %arg2[%c0, %c0_1] : memref<128x16xbf16, #tpu.memory_space<vmem>>, vector<128x16xbf16>
    %4 = arith.extf %3 : vector<128x16xbf16> to vector<128x16xf32>
    %c0_2 = arith.constant 0 : index
    %c0_3 = arith.constant 0 : index
    %5 = vector.load %arg3[%c0_2, %c0_3] : memref<1x16xf32, #tpu.memory_space<vmem>>, vector<1x16xf32>
    %6 = vector.broadcast %5 : vector<1x16xf32> to vector<128x16xf32>
    %7 = arith.mulf %4, %6 : vector<128x16xf32>
    %c0_4 = arith.constant 0 : index
    %c0_5 = arith.constant 0 : index
    %8 = vector.load %arg4[%c0_4, %c0_5] : memref<1x16xf32, #tpu.memory_space<vmem>>, vector<1x16xf32>
    %9 = vector.broadcast %8 : vector<1x16xf32> to vector<128x16xf32>
    %10 = arith.addf %7, %9 : vector<128x16xf32>
    %cst = arith.constant 0.000000e+00 : f32
    %11 = vector.broadcast %cst : f32 to vector<128x16xf32>
    %12 = arith.maximumf %10, %11 : vector<128x16xf32>
    %13 = arith.truncf %12 : vector<128x16xf32> to vector<128x16xbf16>
    %c0_6 = arith.constant 0 : index
    %c0_7 = arith.constant 0 : index
    %14 = vector.load %arg5[%c0_6, %c0_7] : memref<16x32xbf16, #tpu.memory_space<vmem>>, vector<16x32xbf16>
    %cst_8 = arith.constant dense<0.000000e+00> : vector<128x32xf32>
    %15 = tpu.matmul %13, %14, %cst_8 {dimension_numbers = #tpu.dot_dimension_numbers<[1], [0], [0], [1], [0, 0, 1, 1], [], []>} : vector<128x16xbf16>, vector<16x32xbf16>, vector<128x32xf32> -> vector<128x32xf32>
    %16 = arith.truncf %15 : vector<128x32xf32> to vector<128x32xbf16>
    %c0_9 = arith.constant 0 : index
    %c0_10 = arith.constant 0 : index
    %17 = vector.load %arg6[%c0_9, %c0_10] : memref<128x32xbf16, #tpu.memory_space<vmem>>, vector<128x32xbf16>
    tpu.vector_store %arg6[%c0_9, %c0_10], %16 {strides = array<i32>} : memref<128x32xbf16, #tpu.memory_space<vmem>>, vector<128x32xbf16>,
    %c0_11 = arith.constant 0 : index
    %c0_12 = arith.constant 0 : index
    %18 = vector.load %arg7[%c0_11, %c0_12] : memref<1x32xf32, #tpu.memory_space<vmem>>, vector<1x32xf32>
    %cst_13 = arith.constant dense<0.000000e+00> : vector<32xf32>
    %19 = vector.multi_reduction <add>, %15, %cst_13 [0] : vector<128x32xf32> to vector<32xf32>
    %20 = vector.shape_cast %19 : vector<32xf32> to vector<1x32xf32>
    %21 = arith.addf %18, %20 : vector<1x32xf32>
    %c0_14 = arith.constant 0 : index
    %c0_15 = arith.constant 0 : index
    %22 = vector.load %arg7[%c0_14, %c0_15] : memref<1x32xf32, #tpu.memory_space<vmem>>, vector<1x32xf32>
    tpu.vector_store %arg7[%c0_14, %c0_15], %21 {strides = array<i32>} : memref<1x32xf32, #tpu.memory_space<vmem>>, vector<1x32xf32>,
    %c0_16 = arith.constant 0 : index
    %c0_17 = arith.constant 0 : index
    %23 = vector.load %arg8[%c0_16, %c0_17] : memref<1x32xf32, #tpu.memory_space<vmem>>, vector<1x32xf32>
    %24 = arith.mulf %15, %15 : vector<128x32xf32>
    %cst_18 = arith.constant dense<0.000000e+00> : vector<32xf32>
    %25 = vector.multi_reduction <add>, %24, %cst_18 [0] : vector<128x32xf32> to vector<32xf32>
    %26 = vector.shape_cast %25 : vector<32xf32> to vector<1x32xf32>
    %27 = arith.addf %23, %26 : vector<1x32xf32>
    %c0_19 = arith.constant 0 : index
    %c0_20 = arith.constant 0 : index
    %28 = vector.load %arg8[%c0_19, %c0_20] : memref<1x32xf32, #tpu.memory_space<vmem>>, vector<1x32xf32>
    tpu.vector_store %arg8[%c0_19, %c0_20], %27 {strides = array<i32>} : memref<1x32xf32, #tpu.memory_space<vmem>>, vector<1x32xf32>,
    return
  }
  func.func @transform_0(%arg0: i32, %arg1: i32) -> (i32, i32) {
    %c0_i32 = arith.constant 0 : i32
    %c0_i32_0 = arith.constant 0 : i32
    return %arg1, %c0_i32 : i32, i32
  }
  func.func @transform_1(%arg0: i32, %arg1: i32) -> (i32, i32) {
    %c0_i32 = arith.constant 0 : i32
    %c0_i32_0 = arith.constant 0 : i32
    %c0_i32_1 = arith.constant 0 : i32
    return %c0_i32, %c0_i32_0 : i32, i32
  }
  func.func @transform_2(%arg0: i32, %arg1: i32) -> (i32, i32) {
    %c0_i32 = arith.constant 0 : i32
    %c0_i32_0 = arith.constant 0 : i32
    %c0_i32_1 = arith.constant 0 : i32
    return %c0_i32, %c0_i32_0 : i32, i32
  }
  func.func @transform_3(%arg0: i32, %arg1: i32) -> (i32, i32) {
    %c0_i32 = arith.constant 0 : i32
    %c0_i32_0 = arith.constant 0 : i32
    return %c0_i32, %arg0 : i32, i32
  }
  func.func @transform_4(%arg0: i32, %arg1: i32) -> (i32, i32) {
    %c0_i32 = arith.constant 0 : i32
    return %arg1, %arg0 : i32, i32
  }
  func.func @transform_5(%arg0: i32, %arg1: i32) -> (i32, i32) {
    %c0_i32 = arith.constant 0 : i32
    %c0_i32_0 = arith.constant 0 : i32
    return %c0_i32, %arg0 : i32, i32
  }
  func.func @transform_6(%arg0: i32, %arg1: i32) -> (i32, i32) {
    %c0_i32 = arith.constant 0 : i32
    %c0_i32_0 = arith.constant 0 : i32
    return %c0_i32, %arg0 : i32, i32
  }
}

module attributes {stable_mosaic.version = 11 : i64} {
  func.func @_bn_apply_kernel(%arg0: i32, %arg1: memref<128x32xbf16, #tpu.memory_space<vmem>>, %arg2: memref<1x32xf32, #tpu.memory_space<vmem>>, %arg3: memref<1x32xf32, #tpu.memory_space<vmem>>, %arg4: memref<128x32xbf16, #tpu.memory_space<vmem>>) attributes {dimension_semantics = [#tpu.dimension_semantics<parallel>], iteration_bounds = array<i64: 1>, scalar_prefetch = 0 : i64, scratch_operands = 0 : i64, tpu.core_type = #tpu.core_type<tc>, window_params = [{transform_indices = @transform_0, window_bounds = array<i64: 128, 32>}, {pipeline_mode = #tpu.pipeline_mode<synchronous>, transform_indices = @transform_1, window_bounds = array<i64: 1, 32>}, {pipeline_mode = #tpu.pipeline_mode<synchronous>, transform_indices = @transform_2, window_bounds = array<i64: 1, 32>}, {transform_indices = @transform_3, window_bounds = array<i64: 128, 32>}]} {
    %c0 = arith.constant 0 : index
    %c0_0 = arith.constant 0 : index
    %0 = vector.load %arg1[%c0, %c0_0] : memref<128x32xbf16, #tpu.memory_space<vmem>>, vector<128x32xbf16>
    %1 = arith.extf %0 : vector<128x32xbf16> to vector<128x32xf32>
    %c0_1 = arith.constant 0 : index
    %c0_2 = arith.constant 0 : index
    %2 = vector.load %arg2[%c0_1, %c0_2] : memref<1x32xf32, #tpu.memory_space<vmem>>, vector<1x32xf32>
    %3 = vector.broadcast %2 : vector<1x32xf32> to vector<128x32xf32>
    %4 = arith.mulf %1, %3 : vector<128x32xf32>
    %c0_3 = arith.constant 0 : index
    %c0_4 = arith.constant 0 : index
    %5 = vector.load %arg3[%c0_3, %c0_4] : memref<1x32xf32, #tpu.memory_space<vmem>>, vector<1x32xf32>
    %6 = vector.broadcast %5 : vector<1x32xf32> to vector<128x32xf32>
    %7 = arith.addf %4, %6 : vector<128x32xf32>
    %cst = arith.constant 0.000000e+00 : f32
    %8 = vector.broadcast %cst : f32 to vector<128x32xf32>
    %9 = arith.maximumf %7, %8 : vector<128x32xf32>
    %10 = arith.truncf %9 : vector<128x32xf32> to vector<128x32xbf16>
    %c0_5 = arith.constant 0 : index
    %c0_6 = arith.constant 0 : index
    %11 = vector.load %arg4[%c0_5, %c0_6] : memref<128x32xbf16, #tpu.memory_space<vmem>>, vector<128x32xbf16>
    tpu.vector_store %arg4[%c0_5, %c0_6], %10 {strides = array<i32>} : memref<128x32xbf16, #tpu.memory_space<vmem>>, vector<128x32xbf16>,
    return
  }
  func.func @transform_0(%arg0: i32) -> (i32, i32) {
    %c0_i32 = arith.constant 0 : i32
    %c0_i32_0 = arith.constant 0 : i32
    return %arg0, %c0_i32 : i32, i32
  }
  func.func @transform_1(%arg0: i32) -> (i32, i32) {
    %c0_i32 = arith.constant 0 : i32
    %c0_i32_0 = arith.constant 0 : i32
    %c0_i32_1 = arith.constant 0 : i32
    return %c0_i32, %c0_i32_0 : i32, i32
  }
  func.func @transform_2(%arg0: i32) -> (i32, i32) {
    %c0_i32 = arith.constant 0 : i32
    %c0_i32_0 = arith.constant 0 : i32
    %c0_i32_1 = arith.constant 0 : i32
    return %c0_i32, %c0_i32_0 : i32, i32
  }
  func.func @transform_3(%arg0: i32) -> (i32, i32) {
    %c0_i32 = arith.constant 0 : i32
    %c0_i32_0 = arith.constant 0 : i32
    return %arg0, %c0_i32 : i32, i32
  }
}

module attributes {stable_mosaic.version = 11 : i64} {
  func.func @_conv3x3_kernel(%arg0: i32, %arg1: memref<1x10x10x32xbf16, #tpu.memory_space<vmem>>, %arg2: memref<288x8xbf16, #tpu.memory_space<vmem>>, %arg3: memref<1x8x8x8xbf16, #tpu.memory_space<vmem>>) attributes {dimension_semantics = [#tpu.dimension_semantics<parallel>], iteration_bounds = array<i64: 2>, scalar_prefetch = 0 : i64, scratch_operands = 0 : i64, tpu.core_type = #tpu.core_type<tc>, window_params = [{transform_indices = @transform_0, window_bounds = array<i64: 1, 10, 10, 32>}, {pipeline_mode = #tpu.pipeline_mode<synchronous>, transform_indices = @transform_1, window_bounds = array<i64: 288, 8>}, {transform_indices = @transform_2, window_bounds = array<i64: 1, 8, 8, 8>}]} {
    %cst = arith.constant 0.000000e+00 : f32
    %0 = vector.broadcast %cst : f32 to vector<64x8xf32>
    %c0 = arith.constant 0 : index
    %c0_0 = arith.constant 0 : index
    %c0_1 = arith.constant 0 : index
    %c0_2 = arith.constant 0 : index
    %1 = vector.load %arg1[%c0, %c0_0, %c0_1, %c0_2] : memref<1x10x10x32xbf16, #tpu.memory_space<vmem>>, vector<1x8x8x32xbf16>
    %2 = vector.shape_cast %1 : vector<1x8x8x32xbf16> to vector<8x8x32xbf16>
    %3 = vector.shape_cast %2 : vector<8x8x32xbf16> to vector<64x32xbf16>
    %c0_3 = arith.constant 0 : index
    %c0_4 = arith.constant 0 : index
    %4 = vector.load %arg2[%c0_3, %c0_4] : memref<288x8xbf16, #tpu.memory_space<vmem>>, vector<32x8xbf16>
    %cst_5 = arith.constant dense<0.000000e+00> : vector<64x8xf32>
    %5 = tpu.matmul %3, %4, %cst_5 {dimension_numbers = #tpu.dot_dimension_numbers<[1], [0], [0], [1], [0, 0, 1, 1], [], []>} : vector<64x32xbf16>, vector<32x8xbf16>, vector<64x8xf32> -> vector<64x8xf32>
    %6 = arith.addf %0, %5 : vector<64x8xf32>
    %c0_6 = arith.constant 0 : index
    %c0_7 = arith.constant 0 : index
    %c1 = arith.constant 1 : index
    %c0_8 = arith.constant 0 : index
    %7 = vector.load %arg1[%c0_6, %c0_7, %c1, %c0_8] : memref<1x10x10x32xbf16, #tpu.memory_space<vmem>>, vector<1x8x8x32xbf16>
    %8 = vector.shape_cast %7 : vector<1x8x8x32xbf16> to vector<8x8x32xbf16>
    %9 = vector.shape_cast %8 : vector<8x8x32xbf16> to vector<64x32xbf16>
    %c32 = arith.constant 32 : index
    %c0_9 = arith.constant 0 : index
    %10 = vector.load %arg2[%c32, %c0_9] : memref<288x8xbf16, #tpu.memory_space<vmem>>, vector<32x8xbf16>
    %cst_10 = arith.constant dense<0.000000e+00> : vector<64x8xf32>
    %11 = tpu.matmul %9, %10, %cst_10 {dimension_numbers = #tpu.dot_dimension_numbers<[1], [0], [0], [1], [0, 0, 1, 1], [], []>} : vector<64x32xbf16>, vector<32x8xbf16>, vector<64x8xf32> -> vector<64x8xf32>
    %12 = arith.addf %6, %11 : vector<64x8xf32>
    %c0_11 = arith.constant 0 : index
    %c0_12 = arith.constant 0 : index
    %c2 = arith.constant 2 : index
    %c0_13 = arith.constant 0 : index
    %13 = vector.load %arg1[%c0_11, %c0_12, %c2, %c0_13] : memref<1x10x10x32xbf16, #tpu.memory_space<vmem>>, vector<1x8x8x32xbf16>
    %14 = vector.shape_cast %13 : vector<1x8x8x32xbf16> to vector<8x8x32xbf16>
    %15 = vector.shape_cast %14 : vector<8x8x32xbf16> to vector<64x32xbf16>
    %c64 = arith.constant 64 : index
    %c0_14 = arith.constant 0 : index
    %16 = vector.load %arg2[%c64, %c0_14] : memref<288x8xbf16, #tpu.memory_space<vmem>>, vector<32x8xbf16>
    %cst_15 = arith.constant dense<0.000000e+00> : vector<64x8xf32>
    %17 = tpu.matmul %15, %16, %cst_15 {dimension_numbers = #tpu.dot_dimension_numbers<[1], [0], [0], [1], [0, 0, 1, 1], [], []>} : vector<64x32xbf16>, vector<32x8xbf16>, vector<64x8xf32> -> vector<64x8xf32>
    %18 = arith.addf %12, %17 : vector<64x8xf32>
    %c0_16 = arith.constant 0 : index
    %c1_17 = arith.constant 1 : index
    %c0_18 = arith.constant 0 : index
    %c0_19 = arith.constant 0 : index
    %19 = vector.load %arg1[%c0_16, %c1_17, %c0_18, %c0_19] : memref<1x10x10x32xbf16, #tpu.memory_space<vmem>>, vector<1x8x8x32xbf16>
    %20 = vector.shape_cast %19 : vector<1x8x8x32xbf16> to vector<8x8x32xbf16>
    %21 = vector.shape_cast %20 : vector<8x8x32xbf16> to vector<64x32xbf16>
    %c96 = arith.constant 96 : index
    %c0_20 = arith.constant 0 : index
    %22 = vector.load %arg2[%c96, %c0_20] : memref<288x8xbf16, #tpu.memory_space<vmem>>, vector<32x8xbf16>
    %cst_21 = arith.constant dense<0.000000e+00> : vector<64x8xf32>
    %23 = tpu.matmul %21, %22, %cst_21 {dimension_numbers = #tpu.dot_dimension_numbers<[1], [0], [0], [1], [0, 0, 1, 1], [], []>} : vector<64x32xbf16>, vector<32x8xbf16>, vector<64x8xf32> -> vector<64x8xf32>
    %24 = arith.addf %18, %23 : vector<64x8xf32>
    %c0_22 = arith.constant 0 : index
    %c1_23 = arith.constant 1 : index
    %c1_24 = arith.constant 1 : index
    %c0_25 = arith.constant 0 : index
    %25 = vector.load %arg1[%c0_22, %c1_23, %c1_24, %c0_25] : memref<1x10x10x32xbf16, #tpu.memory_space<vmem>>, vector<1x8x8x32xbf16>
    %26 = vector.shape_cast %25 : vector<1x8x8x32xbf16> to vector<8x8x32xbf16>
    %27 = vector.shape_cast %26 : vector<8x8x32xbf16> to vector<64x32xbf16>
    %c128 = arith.constant 128 : index
    %c0_26 = arith.constant 0 : index
    %28 = vector.load %arg2[%c128, %c0_26] : memref<288x8xbf16, #tpu.memory_space<vmem>>, vector<32x8xbf16>
    %cst_27 = arith.constant dense<0.000000e+00> : vector<64x8xf32>
    %29 = tpu.matmul %27, %28, %cst_27 {dimension_numbers = #tpu.dot_dimension_numbers<[1], [0], [0], [1], [0, 0, 1, 1], [], []>} : vector<64x32xbf16>, vector<32x8xbf16>, vector<64x8xf32> -> vector<64x8xf32>
    %30 = arith.addf %24, %29 : vector<64x8xf32>
    %c0_28 = arith.constant 0 : index
    %c1_29 = arith.constant 1 : index
    %c2_30 = arith.constant 2 : index
    %c0_31 = arith.constant 0 : index
    %31 = vector.load %arg1[%c0_28, %c1_29, %c2_30, %c0_31] : memref<1x10x10x32xbf16, #tpu.memory_space<vmem>>, vector<1x8x8x32xbf16>
    %32 = vector.shape_cast %31 : vector<1x8x8x32xbf16> to vector<8x8x32xbf16>
    %33 = vector.shape_cast %32 : vector<8x8x32xbf16> to vector<64x32xbf16>
    %c160 = arith.constant 160 : index
    %c0_32 = arith.constant 0 : index
    %34 = vector.load %arg2[%c160, %c0_32] : memref<288x8xbf16, #tpu.memory_space<vmem>>, vector<32x8xbf16>
    %cst_33 = arith.constant dense<0.000000e+00> : vector<64x8xf32>
    %35 = tpu.matmul %33, %34, %cst_33 {dimension_numbers = #tpu.dot_dimension_numbers<[1], [0], [0], [1], [0, 0, 1, 1], [], []>} : vector<64x32xbf16>, vector<32x8xbf16>, vector<64x8xf32> -> vector<64x8xf32>
    %36 = arith.addf %30, %35 : vector<64x8xf32>
    %c0_34 = arith.constant 0 : index
    %c2_35 = arith.constant 2 : index
    %c0_36 = arith.constant 0 : index
    %c0_37 = arith.constant 0 : index
    %37 = vector.load %arg1[%c0_34, %c2_35, %c0_36, %c0_37] : memref<1x10x10x32xbf16, #tpu.memory_space<vmem>>, vector<1x8x8x32xbf16>
    %38 = vector.shape_cast %37 : vector<1x8x8x32xbf16> to vector<8x8x32xbf16>
    %39 = vector.shape_cast %38 : vector<8x8x32xbf16> to vector<64x32xbf16>
    %c192 = arith.constant 192 : index
    %c0_38 = arith.constant 0 : index
    %40 = vector.load %arg2[%c192, %c0_38] : memref<288x8xbf16, #tpu.memory_space<vmem>>, vector<32x8xbf16>
    %cst_39 = arith.constant dense<0.000000e+00> : vector<64x8xf32>
    %41 = tpu.matmul %39, %40, %cst_39 {dimension_numbers = #tpu.dot_dimension_numbers<[1], [0], [0], [1], [0, 0, 1, 1], [], []>} : vector<64x32xbf16>, vector<32x8xbf16>, vector<64x8xf32> -> vector<64x8xf32>
    %42 = arith.addf %36, %41 : vector<64x8xf32>
    %c0_40 = arith.constant 0 : index
    %c2_41 = arith.constant 2 : index
    %c1_42 = arith.constant 1 : index
    %c0_43 = arith.constant 0 : index
    %43 = vector.load %arg1[%c0_40, %c2_41, %c1_42, %c0_43] : memref<1x10x10x32xbf16, #tpu.memory_space<vmem>>, vector<1x8x8x32xbf16>
    %44 = vector.shape_cast %43 : vector<1x8x8x32xbf16> to vector<8x8x32xbf16>
    %45 = vector.shape_cast %44 : vector<8x8x32xbf16> to vector<64x32xbf16>
    %c224 = arith.constant 224 : index
    %c0_44 = arith.constant 0 : index
    %46 = vector.load %arg2[%c224, %c0_44] : memref<288x8xbf16, #tpu.memory_space<vmem>>, vector<32x8xbf16>
    %cst_45 = arith.constant dense<0.000000e+00> : vector<64x8xf32>
    %47 = tpu.matmul %45, %46, %cst_45 {dimension_numbers = #tpu.dot_dimension_numbers<[1], [0], [0], [1], [0, 0, 1, 1], [], []>} : vector<64x32xbf16>, vector<32x8xbf16>, vector<64x8xf32> -> vector<64x8xf32>
    %48 = arith.addf %42, %47 : vector<64x8xf32>
    %c0_46 = arith.constant 0 : index
    %c2_47 = arith.constant 2 : index
    %c2_48 = arith.constant 2 : index
    %c0_49 = arith.constant 0 : index
    %49 = vector.load %arg1[%c0_46, %c2_47, %c2_48, %c0_49] : memref<1x10x10x32xbf16, #tpu.memory_space<vmem>>, vector<1x8x8x32xbf16>
    %50 = vector.shape_cast %49 : vector<1x8x8x32xbf16> to vector<8x8x32xbf16>
    %51 = vector.shape_cast %50 : vector<8x8x32xbf16> to vector<64x32xbf16>
    %c256 = arith.constant 256 : index
    %c0_50 = arith.constant 0 : index
    %52 = vector.load %arg2[%c256, %c0_50] : memref<288x8xbf16, #tpu.memory_space<vmem>>, vector<32x8xbf16>
    %cst_51 = arith.constant dense<0.000000e+00> : vector<64x8xf32>
    %53 = tpu.matmul %51, %52, %cst_51 {dimension_numbers = #tpu.dot_dimension_numbers<[1], [0], [0], [1], [0, 0, 1, 1], [], []>} : vector<64x32xbf16>, vector<32x8xbf16>, vector<64x8xf32> -> vector<64x8xf32>
    %54 = arith.addf %48, %53 : vector<64x8xf32>
    %55 = vector.shape_cast %54 : vector<64x8xf32> to vector<1x8x8x8xf32>
    %56 = arith.truncf %55 : vector<1x8x8x8xf32> to vector<1x8x8x8xbf16>
    %c0_52 = arith.constant 0 : index
    %c0_53 = arith.constant 0 : index
    %c0_54 = arith.constant 0 : index
    %c0_55 = arith.constant 0 : index
    %57 = vector.load %arg3[%c0_52, %c0_53, %c0_54, %c0_55] : memref<1x8x8x8xbf16, #tpu.memory_space<vmem>>, vector<1x8x8x8xbf16>
    tpu.vector_store %arg3[%c0_52, %c0_53, %c0_54, %c0_55], %56 {strides = array<i32>} : memref<1x8x8x8xbf16, #tpu.memory_space<vmem>>, vector<1x8x8x8xbf16>,
    return
  }
  func.func @transform_0(%arg0: i32) -> (i32, i32, i32, i32) {
    %c0_i32 = arith.constant 0 : i32
    %c0_i32_0 = arith.constant 0 : i32
    %c0_i32_1 = arith.constant 0 : i32
    %c0_i32_2 = arith.constant 0 : i32
    return %arg0, %c0_i32, %c0_i32_0, %c0_i32_1 : i32, i32, i32, i32
  }
  func.func @transform_1(%arg0: i32) -> (i32, i32) {
    %c0_i32 = arith.constant 0 : i32
    %c0_i32_0 = arith.constant 0 : i32
    %c0_i32_1 = arith.constant 0 : i32
    return %c0_i32, %c0_i32_0 : i32, i32
  }
  func.func @transform_2(%arg0: i32) -> (i32, i32, i32, i32) {
    %c0_i32 = arith.constant 0 : i32
    %c0_i32_0 = arith.constant 0 : i32
    %c0_i32_1 = arith.constant 0 : i32
    %c0_i32_2 = arith.constant 0 : i32
    return %arg0, %c0_i32, %c0_i32_0, %c0_i32_1 : i32, i32, i32, i32
  }
}

module attributes {stable_mosaic.version = 11 : i64} {
  func.func @_bn_stats_kernel(%arg0: i32, %arg1: memref<128x24xbf16, #tpu.memory_space<vmem>>, %arg2: memref<1x24xf32, #tpu.memory_space<vmem>>, %arg3: memref<1x24xf32, #tpu.memory_space<vmem>>) attributes {dimension_semantics = [#tpu.dimension_semantics<arbitrary>], iteration_bounds = array<i64: 1>, scalar_prefetch = 0 : i64, scratch_operands = 0 : i64, tpu.core_type = #tpu.core_type<tc>, window_params = [{transform_indices = @transform_0, window_bounds = array<i64: 128, 24>}, {pipeline_mode = #tpu.pipeline_mode<synchronous>, transform_indices = @transform_1, window_bounds = array<i64: 1, 24>}, {pipeline_mode = #tpu.pipeline_mode<synchronous>, transform_indices = @transform_2, window_bounds = array<i64: 1, 24>}]} {
    %c0_i32 = arith.constant 0 : i32
    %0 = arith.cmpi eq, %arg0, %c0_i32 : i32
    %1 = arith.extui %0 : i1 to i32
    %c0_i32_0 = arith.constant 0 : i32
    %2 = arith.cmpi ne, %1, %c0_i32_0 : i32
    scf.if %2 {
      %cst_11 = arith.constant 0.000000e+00 : f32
      %16 = vector.broadcast %cst_11 : f32 to vector<1x24xf32>
      %c0_12 = arith.constant 0 : index
      %c0_13 = arith.constant 0 : index
      %17 = vector.load %arg2[%c0_12, %c0_13] : memref<1x24xf32, #tpu.memory_space<vmem>>, vector<1x24xf32>
      tpu.vector_store %arg2[%c0_12, %c0_13], %16 {strides = array<i32>} : memref<1x24xf32, #tpu.memory_space<vmem>>, vector<1x24xf32>,
      %cst_14 = arith.constant 0.000000e+00 : f32
      %18 = vector.broadcast %cst_14 : f32 to vector<1x24xf32>
      %c0_15 = arith.constant 0 : index
      %c0_16 = arith.constant 0 : index
      %19 = vector.load %arg3[%c0_15, %c0_16] : memref<1x24xf32, #tpu.memory_space<vmem>>, vector<1x24xf32>
      tpu.vector_store %arg3[%c0_15, %c0_16], %18 {strides = array<i32>} : memref<1x24xf32, #tpu.memory_space<vmem>>, vector<1x24xf32>,
    } else {
    }
    %c0 = arith.constant 0 : index
    %c0_1 = arith.constant 0 : index
    %3 = vector.load %arg1[%c0, %c0_1] : memref<128x24xbf16, #tpu.memory_space<vmem>>, vector<128x24xbf16>
    %4 = arith.extf %3 : vector<128x24xbf16> to vector<128x24xf32>
    %c0_2 = arith.constant 0 : index
    %c0_3 = arith.constant 0 : index
    %5 = vector.load %arg2[%c0_2, %c0_3] : memref<1x24xf32, #tpu.memory_space<vmem>>, vector<1x24xf32>
    %cst = arith.constant dense<0.000000e+00> : vector<24xf32>
    %6 = vector.multi_reduction <add>, %4, %cst [0] : vector<128x24xf32> to vector<24xf32>
    %7 = vector.shape_cast %6 : vector<24xf32> to vector<1x24xf32>
    %8 = arith.addf %5, %7 : vector<1x24xf32>
    %c0_4 = arith.constant 0 : index
    %c0_5 = arith.constant 0 : index
    %9 = vector.load %arg2[%c0_4, %c0_5] : memref<1x24xf32, #tpu.memory_space<vmem>>, vector<1x24xf32>
    tpu.vector_store %arg2[%c0_4, %c0_5], %8 {strides = array<i32>} : memref<1x24xf32, #tpu.memory_space<vmem>>, vector<1x24xf32>,
    %c0_6 = arith.constant 0 : index
    %c0_7 = arith.constant 0 : index
    %10 = vector.load %arg3[%c0_6, %c0_7] : memref<1x24xf32, #tpu.memory_space<vmem>>, vector<1x24xf32>
    %11 = arith.mulf %4, %4 : vector<128x24xf32>
    %cst_8 = arith.constant dense<0.000000e+00> : vector<24xf32>
    %12 = vector.multi_reduction <add>, %11, %cst_8 [0] : vector<128x24xf32> to vector<24xf32>
    %13 = vector.shape_cast %12 : vector<24xf32> to vector<1x24xf32>
    %14 = arith.addf %10, %13 : vector<1x24xf32>
    %c0_9 = arith.constant 0 : index
    %c0_10 = arith.constant 0 : index
    %15 = vector.load %arg3[%c0_9, %c0_10] : memref<1x24xf32, #tpu.memory_space<vmem>>, vector<1x24xf32>
    tpu.vector_store %arg3[%c0_9, %c0_10], %14 {strides = array<i32>} : memref<1x24xf32, #tpu.memory_space<vmem>>, vector<1x24xf32>,
    return
  }
  func.func @transform_0(%arg0: i32) -> (i32, i32) {
    %c0_i32 = arith.constant 0 : i32
    %c0_i32_0 = arith.constant 0 : i32
    return %arg0, %c0_i32 : i32, i32
  }
  func.func @transform_1(%arg0: i32) -> (i32, i32) {
    %c0_i32 = arith.constant 0 : i32
    %c0_i32_0 = arith.constant 0 : i32
    %c0_i32_1 = arith.constant 0 : i32
    return %c0_i32, %c0_i32_0 : i32, i32
  }
  func.func @transform_2(%arg0: i32) -> (i32, i32) {
    %c0_i32 = arith.constant 0 : i32
    %c0_i32_0 = arith.constant 0 : i32
    %c0_i32_1 = arith.constant 0 : i32
    return %c0_i32, %c0_i32_0 : i32, i32
  }
}

module attributes {stable_mosaic.version = 11 : i64} {
  func.func @_mm_bn_stats_kernel(%arg0: i32, %arg1: i32, %arg2: memref<128x24xbf16, #tpu.memory_space<vmem>>, %arg3: memref<1x24xf32, #tpu.memory_space<vmem>>, %arg4: memref<1x24xf32, #tpu.memory_space<vmem>>, %arg5: memref<24x32xbf16, #tpu.memory_space<vmem>>, %arg6: memref<128x32xbf16, #tpu.memory_space<vmem>>, %arg7: memref<1x32xf32, #tpu.memory_space<vmem>>, %arg8: memref<1x32xf32, #tpu.memory_space<vmem>>) attributes {dimension_semantics = [#tpu.dimension_semantics<parallel>, #tpu.dimension_semantics<arbitrary>], iteration_bounds = array<i64: 1, 1>, scalar_prefetch = 0 : i64, scratch_operands = 0 : i64, tpu.core_type = #tpu.core_type<tc>, window_params = [{transform_indices = @transform_0, window_bounds = array<i64: 128, 24>}, {pipeline_mode = #tpu.pipeline_mode<synchronous>, transform_indices = @transform_1, window_bounds = array<i64: 1, 24>}, {pipeline_mode = #tpu.pipeline_mode<synchronous>, transform_indices = @transform_2, window_bounds = array<i64: 1, 24>}, {transform_indices = @transform_3, window_bounds = array<i64: 24, 32>}, {transform_indices = @transform_4, window_bounds = array<i64: 128, 32>}, {transform_indices = @transform_5, window_bounds = array<i64: 1, 32>}, {transform_indices = @transform_6, window_bounds = array<i64: 1, 32>}]} {
    %c0_i32 = arith.constant 0 : i32
    %0 = arith.cmpi eq, %arg1, %c0_i32 : i32
    %1 = arith.extui %0 : i1 to i32
    %c0_i32_0 = arith.constant 0 : i32
    %2 = arith.cmpi ne, %1, %c0_i32_0 : i32
    scf.if %2 {
      %cst_21 = arith.constant 0.000000e+00 : f32
      %29 = vector.broadcast %cst_21 : f32 to vector<1x32xf32>
      %c0_22 = arith.constant 0 : index
      %c0_23 = arith.constant 0 : index
      %30 = vector.load %arg7[%c0_22, %c0_23] : memref<1x32xf32, #tpu.memory_space<vmem>>, vector<1x32xf32>
      tpu.vector_store %arg7[%c0_22, %c0_23], %29 {strides = array<i32>} : memref<1x32xf32, #tpu.memory_space<vmem>>, vector<1x32xf32>,
      %cst_24 = arith.constant 0.000000e+00 : f32
      %31 = vector.broadcast %cst_24 : f32 to vector<1x32xf32>
      %c0_25 = arith.constant 0 : index
      %c0_26 = arith.constant 0 : index
      %32 = vector.load %arg8[%c0_25, %c0_26] : memref<1x32xf32, #tpu.memory_space<vmem>>, vector<1x32xf32>
      tpu.vector_store %arg8[%c0_25, %c0_26], %31 {strides = array<i32>} : memref<1x32xf32, #tpu.memory_space<vmem>>, vector<1x32xf32>,
    } else {
    }
    %c0 = arith.constant 0 : index
    %c0_1 = arith.constant 0 : index
    %3 = vector.load %arg2[%c0, %c0_1] : memref<128x24xbf16, #tpu.memory_space<vmem>>, vector<128x24xbf16>
    %4 = arith.extf %3 : vector<128x24xbf16> to vector<128x24xf32>
    %c0_2 = arith.constant 0 : index
    %c0_3 = arith.constant 0 : index
    %5 = vector.load %arg3[%c0_2, %c0_3] : memref<1x24xf32, #tpu.memory_space<vmem>>, vector<1x24xf32>
    %6 = vector.broadcast %5 : vector<1x24xf32> to vector<128x24xf32>
    %7 = arith.mulf %4, %6 : vector<128x24xf32>
    %c0_4 = arith.constant 0 : index
    %c0_5 = arith.constant 0 : index
    %8 = vector.load %arg4[%c0_4, %c0_5] : memref<1x24xf32, #tpu.memory_space<vmem>>, vector<1x24xf32>
    %9 = vector.broadcast %8 : vector<1x24xf32> to vector<128x24xf32>
    %10 = arith.addf %7, %9 : vector<128x24xf32>
    %cst = arith.constant 0.000000e+00 : f32
    %11 = vector.broadcast %cst : f32 to vector<128x24xf32>
    %12 = arith.maximumf %10, %11 : vector<128x24xf32>
    %13 = arith.truncf %12 : vector<128x24xf32> to vector<128x24xbf16>
    %c0_6 = arith.constant 0 : index
    %c0_7 = arith.constant 0 : index
    %14 = vector.load %arg5[%c0_6, %c0_7] : memref<24x32xbf16, #tpu.memory_space<vmem>>, vector<24x32xbf16>
    %cst_8 = arith.constant dense<0.000000e+00> : vector<128x32xf32>
    %15 = tpu.matmul %13, %14, %cst_8 {dimension_numbers = #tpu.dot_dimension_numbers<[1], [0], [0], [1], [0, 0, 1, 1], [], []>} : vector<128x24xbf16>, vector<24x32xbf16>, vector<128x32xf32> -> vector<128x32xf32>
    %16 = arith.truncf %15 : vector<128x32xf32> to vector<128x32xbf16>
    %c0_9 = arith.constant 0 : index
    %c0_10 = arith.constant 0 : index
    %17 = vector.load %arg6[%c0_9, %c0_10] : memref<128x32xbf16, #tpu.memory_space<vmem>>, vector<128x32xbf16>
    tpu.vector_store %arg6[%c0_9, %c0_10], %16 {strides = array<i32>} : memref<128x32xbf16, #tpu.memory_space<vmem>>, vector<128x32xbf16>,
    %c0_11 = arith.constant 0 : index
    %c0_12 = arith.constant 0 : index
    %18 = vector.load %arg7[%c0_11, %c0_12] : memref<1x32xf32, #tpu.memory_space<vmem>>, vector<1x32xf32>
    %cst_13 = arith.constant dense<0.000000e+00> : vector<32xf32>
    %19 = vector.multi_reduction <add>, %15, %cst_13 [0] : vector<128x32xf32> to vector<32xf32>
    %20 = vector.shape_cast %19 : vector<32xf32> to vector<1x32xf32>
    %21 = arith.addf %18, %20 : vector<1x32xf32>
    %c0_14 = arith.constant 0 : index
    %c0_15 = arith.constant 0 : index
    %22 = vector.load %arg7[%c0_14, %c0_15] : memref<1x32xf32, #tpu.memory_space<vmem>>, vector<1x32xf32>
    tpu.vector_store %arg7[%c0_14, %c0_15], %21 {strides = array<i32>} : memref<1x32xf32, #tpu.memory_space<vmem>>, vector<1x32xf32>,
    %c0_16 = arith.constant 0 : index
    %c0_17 = arith.constant 0 : index
    %23 = vector.load %arg8[%c0_16, %c0_17] : memref<1x32xf32, #tpu.memory_space<vmem>>, vector<1x32xf32>
    %24 = arith.mulf %15, %15 : vector<128x32xf32>
    %cst_18 = arith.constant dense<0.000000e+00> : vector<32xf32>
    %25 = vector.multi_reduction <add>, %24, %cst_18 [0] : vector<128x32xf32> to vector<32xf32>
    %26 = vector.shape_cast %25 : vector<32xf32> to vector<1x32xf32>
    %27 = arith.addf %23, %26 : vector<1x32xf32>
    %c0_19 = arith.constant 0 : index
    %c0_20 = arith.constant 0 : index
    %28 = vector.load %arg8[%c0_19, %c0_20] : memref<1x32xf32, #tpu.memory_space<vmem>>, vector<1x32xf32>
    tpu.vector_store %arg8[%c0_19, %c0_20], %27 {strides = array<i32>} : memref<1x32xf32, #tpu.memory_space<vmem>>, vector<1x32xf32>,
    return
  }
  func.func @transform_0(%arg0: i32, %arg1: i32) -> (i32, i32) {
    %c0_i32 = arith.constant 0 : i32
    %c0_i32_0 = arith.constant 0 : i32
    return %arg1, %c0_i32 : i32, i32
  }
  func.func @transform_1(%arg0: i32, %arg1: i32) -> (i32, i32) {
    %c0_i32 = arith.constant 0 : i32
    %c0_i32_0 = arith.constant 0 : i32
    %c0_i32_1 = arith.constant 0 : i32
    return %c0_i32, %c0_i32_0 : i32, i32
  }
  func.func @transform_2(%arg0: i32, %arg1: i32) -> (i32, i32) {
    %c0_i32 = arith.constant 0 : i32
    %c0_i32_0 = arith.constant 0 : i32
    %c0_i32_1 = arith.constant 0 : i32
    return %c0_i32, %c0_i32_0 : i32, i32
  }
  func.func @transform_3(%arg0: i32, %arg1: i32) -> (i32, i32) {
    %c0_i32 = arith.constant 0 : i32
    %c0_i32_0 = arith.constant 0 : i32
    return %c0_i32, %arg0 : i32, i32
  }
  func.func @transform_4(%arg0: i32, %arg1: i32) -> (i32, i32) {
    %c0_i32 = arith.constant 0 : i32
    return %arg1, %arg0 : i32, i32
  }
  func.func @transform_5(%arg0: i32, %arg1: i32) -> (i32, i32) {
    %c0_i32 = arith.constant 0 : i32
    %c0_i32_0 = arith.constant 0 : i32
    return %c0_i32, %arg0 : i32, i32
  }
  func.func @transform_6(%arg0: i32, %arg1: i32) -> (i32, i32) {
    %c0_i32 = arith.constant 0 : i32
    %c0_i32_0 = arith.constant 0 : i32
    return %c0_i32, %arg0 : i32, i32
  }
}

module attributes {stable_mosaic.version = 11 : i64} {
  func.func @_bn_stats_kernel(%arg0: i32, %arg1: memref<128x32xbf16, #tpu.memory_space<vmem>>, %arg2: memref<1x32xf32, #tpu.memory_space<vmem>>, %arg3: memref<1x32xf32, #tpu.memory_space<vmem>>) attributes {dimension_semantics = [#tpu.dimension_semantics<arbitrary>], iteration_bounds = array<i64: 1>, scalar_prefetch = 0 : i64, scratch_operands = 0 : i64, tpu.core_type = #tpu.core_type<tc>, window_params = [{transform_indices = @transform_0, window_bounds = array<i64: 128, 32>}, {pipeline_mode = #tpu.pipeline_mode<synchronous>, transform_indices = @transform_1, window_bounds = array<i64: 1, 32>}, {pipeline_mode = #tpu.pipeline_mode<synchronous>, transform_indices = @transform_2, window_bounds = array<i64: 1, 32>}]} {
    %c0_i32 = arith.constant 0 : i32
    %0 = arith.cmpi eq, %arg0, %c0_i32 : i32
    %1 = arith.extui %0 : i1 to i32
    %c0_i32_0 = arith.constant 0 : i32
    %2 = arith.cmpi ne, %1, %c0_i32_0 : i32
    scf.if %2 {
      %cst_11 = arith.constant 0.000000e+00 : f32
      %16 = vector.broadcast %cst_11 : f32 to vector<1x32xf32>
      %c0_12 = arith.constant 0 : index
      %c0_13 = arith.constant 0 : index
      %17 = vector.load %arg2[%c0_12, %c0_13] : memref<1x32xf32, #tpu.memory_space<vmem>>, vector<1x32xf32>
      tpu.vector_store %arg2[%c0_12, %c0_13], %16 {strides = array<i32>} : memref<1x32xf32, #tpu.memory_space<vmem>>, vector<1x32xf32>,
      %cst_14 = arith.constant 0.000000e+00 : f32
      %18 = vector.broadcast %cst_14 : f32 to vector<1x32xf32>
      %c0_15 = arith.constant 0 : index
      %c0_16 = arith.constant 0 : index
      %19 = vector.load %arg3[%c0_15, %c0_16] : memref<1x32xf32, #tpu.memory_space<vmem>>, vector<1x32xf32>
      tpu.vector_store %arg3[%c0_15, %c0_16], %18 {strides = array<i32>} : memref<1x32xf32, #tpu.memory_space<vmem>>, vector<1x32xf32>,
    } else {
    }
    %c0 = arith.constant 0 : index
    %c0_1 = arith.constant 0 : index
    %3 = vector.load %arg1[%c0, %c0_1] : memref<128x32xbf16, #tpu.memory_space<vmem>>, vector<128x32xbf16>
    %4 = arith.extf %3 : vector<128x32xbf16> to vector<128x32xf32>
    %c0_2 = arith.constant 0 : index
    %c0_3 = arith.constant 0 : index
    %5 = vector.load %arg2[%c0_2, %c0_3] : memref<1x32xf32, #tpu.memory_space<vmem>>, vector<1x32xf32>
    %cst = arith.constant dense<0.000000e+00> : vector<32xf32>
    %6 = vector.multi_reduction <add>, %4, %cst [0] : vector<128x32xf32> to vector<32xf32>
    %7 = vector.shape_cast %6 : vector<32xf32> to vector<1x32xf32>
    %8 = arith.addf %5, %7 : vector<1x32xf32>
    %c0_4 = arith.constant 0 : index
    %c0_5 = arith.constant 0 : index
    %9 = vector.load %arg2[%c0_4, %c0_5] : memref<1x32xf32, #tpu.memory_space<vmem>>, vector<1x32xf32>
    tpu.vector_store %arg2[%c0_4, %c0_5], %8 {strides = array<i32>} : memref<1x32xf32, #tpu.memory_space<vmem>>, vector<1x32xf32>,
    %c0_6 = arith.constant 0 : index
    %c0_7 = arith.constant 0 : index
    %10 = vector.load %arg3[%c0_6, %c0_7] : memref<1x32xf32, #tpu.memory_space<vmem>>, vector<1x32xf32>
    %11 = arith.mulf %4, %4 : vector<128x32xf32>
    %cst_8 = arith.constant dense<0.000000e+00> : vector<32xf32>
    %12 = vector.multi_reduction <add>, %11, %cst_8 [0] : vector<128x32xf32> to vector<32xf32>
    %13 = vector.shape_cast %12 : vector<32xf32> to vector<1x32xf32>
    %14 = arith.addf %10, %13 : vector<1x32xf32>
    %c0_9 = arith.constant 0 : index
    %c0_10 = arith.constant 0 : index
    %15 = vector.load %arg3[%c0_9, %c0_10] : memref<1x32xf32, #tpu.memory_space<vmem>>, vector<1x32xf32>
    tpu.vector_store %arg3[%c0_9, %c0_10], %14 {strides = array<i32>} : memref<1x32xf32, #tpu.memory_space<vmem>>, vector<1x32xf32>,
    return
  }
  func.func @transform_0(%arg0: i32) -> (i32, i32) {
    %c0_i32 = arith.constant 0 : i32
    %c0_i32_0 = arith.constant 0 : i32
    return %arg0, %c0_i32 : i32, i32
  }
  func.func @transform_1(%arg0: i32) -> (i32, i32) {
    %c0_i32 = arith.constant 0 : i32
    %c0_i32_0 = arith.constant 0 : i32
    %c0_i32_1 = arith.constant 0 : i32
    return %c0_i32, %c0_i32_0 : i32, i32
  }
  func.func @transform_2(%arg0: i32) -> (i32, i32) {
    %c0_i32 = arith.constant 0 : i32
    %c0_i32_0 = arith.constant 0 : i32
    %c0_i32_1 = arith.constant 0 : i32
    return %c0_i32, %c0_i32_0 : i32, i32
  }
}

module attributes {stable_mosaic.version = 11 : i64} {
  func.func @_pool_bn_mean_kernel(%arg0: i32, %arg1: memref<4x32x32xbf16, #tpu.memory_space<vmem>>, %arg2: memref<1x32xf32, #tpu.memory_space<vmem>>, %arg3: memref<1x32xf32, #tpu.memory_space<vmem>>, %arg4: memref<32x32xbf16, #tpu.memory_space<vmem>>) attributes {dimension_semantics = [#tpu.dimension_semantics<parallel>], iteration_bounds = array<i64: 1>, scalar_prefetch = 0 : i64, scratch_operands = 0 : i64, tpu.core_type = #tpu.core_type<tc>, window_params = [{transform_indices = @transform_0, window_bounds = array<i64: 4, 32, 32>}, {pipeline_mode = #tpu.pipeline_mode<synchronous>, transform_indices = @transform_1, window_bounds = array<i64: 1, 32>}, {pipeline_mode = #tpu.pipeline_mode<synchronous>, transform_indices = @transform_2, window_bounds = array<i64: 1, 32>}, {transform_indices = @transform_3, window_bounds = array<i64: 32, 32>}]} {
    %c0 = arith.constant 0 : index
    %c0_0 = arith.constant 0 : index
    %c0_1 = arith.constant 0 : index
    %0 = vector.load %arg1[%c0, %c0_0, %c0_1] : memref<4x32x32xbf16, #tpu.memory_space<vmem>>, vector<4x32x32xbf16>
    %1 = arith.extf %0 : vector<4x32x32xbf16> to vector<4x32x32xf32>
    %c0_2 = arith.constant 0 : index
    %c0_3 = arith.constant 0 : index
    %2 = vector.load %arg2[%c0_2, %c0_3] : memref<1x32xf32, #tpu.memory_space<vmem>>, vector<1x32xf32>
    %3 = vector.shape_cast %2 : vector<1x32xf32> to vector<1x1x32xf32>
    %4 = vector.broadcast %3 : vector<1x1x32xf32> to vector<4x32x32xf32>
    %5 = arith.mulf %1, %4 : vector<4x32x32xf32>
    %c0_4 = arith.constant 0 : index
    %c0_5 = arith.constant 0 : index
    %6 = vector.load %arg3[%c0_4, %c0_5] : memref<1x32xf32, #tpu.memory_space<vmem>>, vector<1x32xf32>
    %7 = vector.shape_cast %6 : vector<1x32xf32> to vector<1x1x32xf32>
    %8 = vector.broadcast %7 : vector<1x1x32xf32> to vector<4x32x32xf32>
    %9 = arith.addf %5, %8 : vector<4x32x32xf32>
    %cst = arith.constant 0.000000e+00 : f32
    %10 = vector.broadcast %cst : f32 to vector<4x32x32xf32>
    %11 = arith.maximumf %9, %10 : vector<4x32x32xf32>
    %cst_6 = arith.constant dense<0.000000e+00> : vector<32x32xf32>
    %12 = vector.multi_reduction <add>, %11, %cst_6 [0] : vector<4x32x32xf32> to vector<32x32xf32>
    %cst_7 = arith.constant 4.000000e+00 : f32
    %13 = vector.broadcast %cst_7 : f32 to vector<32x32xf32>
    %14 = arith.divf %12, %13 : vector<32x32xf32>
    %15 = arith.truncf %14 : vector<32x32xf32> to vector<32x32xbf16>
    %c0_8 = arith.constant 0 : index
    %c0_9 = arith.constant 0 : index
    %16 = vector.load %arg4[%c0_8, %c0_9] : memref<32x32xbf16, #tpu.memory_space<vmem>>, vector<32x32xbf16>
    tpu.vector_store %arg4[%c0_8, %c0_9], %15 {strides = array<i32>} : memref<32x32xbf16, #tpu.memory_space<vmem>>, vector<32x32xbf16>,
    return
  }
  func.func @transform_0(%arg0: i32) -> (i32, i32, i32) {
    %c0_i32 = arith.constant 0 : i32
    %c0_i32_0 = arith.constant 0 : i32
    %c0_i32_1 = arith.constant 0 : i32
    return %c0_i32, %arg0, %c0_i32_0 : i32, i32, i32
  }
  func.func @transform_1(%arg0: i32) -> (i32, i32) {
    %c0_i32 = arith.constant 0 : i32
    %c0_i32_0 = arith.constant 0 : i32
    %c0_i32_1 = arith.constant 0 : i32
    return %c0_i32, %c0_i32_0 : i32, i32
  }
  func.func @transform_2(%arg0: i32) -> (i32, i32) {
    %c0_i32 = arith.constant 0 : i32
    %c0_i32_0 = arith.constant 0 : i32
    %c0_i32_1 = arith.constant 0 : i32
    return %c0_i32, %c0_i32_0 : i32, i32
  }
  func.func @transform_3(%arg0: i32) -> (i32, i32) {
    %c0_i32 = arith.constant 0 : i32
    %c0_i32_0 = arith.constant 0 : i32
    return %arg0, %c0_i32 : i32, i32
  }
}

module attributes {stable_mosaic.version = 11 : i64} {
  func.func @_mm_kernel(%arg0: i32, %arg1: i32, %arg2: memref<32x32xbf16, #tpu.memory_space<vmem>>, %arg3: memref<32x16xbf16, #tpu.memory_space<vmem>>, %arg4: memref<32x16xbf16, #tpu.memory_space<vmem>>) attributes {dimension_semantics = [#tpu.dimension_semantics<parallel>, #tpu.dimension_semantics<parallel>], iteration_bounds = array<i64: 1, 1>, scalar_prefetch = 0 : i64, scratch_operands = 0 : i64, tpu.core_type = #tpu.core_type<tc>, window_params = [{transform_indices = @transform_0, window_bounds = array<i64: 32, 32>}, {transform_indices = @transform_1, window_bounds = array<i64: 32, 16>}, {transform_indices = @transform_2, window_bounds = array<i64: 32, 16>}]} {
    %c0 = arith.constant 0 : index
    %c0_0 = arith.constant 0 : index
    %0 = vector.load %arg2[%c0, %c0_0] : memref<32x32xbf16, #tpu.memory_space<vmem>>, vector<32x32xbf16>
    %c0_1 = arith.constant 0 : index
    %c0_2 = arith.constant 0 : index
    %1 = vector.load %arg3[%c0_1, %c0_2] : memref<32x16xbf16, #tpu.memory_space<vmem>>, vector<32x16xbf16>
    %cst = arith.constant dense<0.000000e+00> : vector<32x16xf32>
    %2 = tpu.matmul %0, %1, %cst {dimension_numbers = #tpu.dot_dimension_numbers<[1], [0], [0], [1], [0, 0, 1, 1], [], []>} : vector<32x32xbf16>, vector<32x16xbf16>, vector<32x16xf32> -> vector<32x16xf32>
    %3 = arith.truncf %2 : vector<32x16xf32> to vector<32x16xbf16>
    %c0_3 = arith.constant 0 : index
    %c0_4 = arith.constant 0 : index
    %4 = vector.load %arg4[%c0_3, %c0_4] : memref<32x16xbf16, #tpu.memory_space<vmem>>, vector<32x16xbf16>
    tpu.vector_store %arg4[%c0_3, %c0_4], %3 {strides = array<i32>} : memref<32x16xbf16, #tpu.memory_space<vmem>>, vector<32x16xbf16>,
    return
  }
  func.func @transform_0(%arg0: i32, %arg1: i32) -> (i32, i32) {
    %c0_i32 = arith.constant 0 : i32
    %c0_i32_0 = arith.constant 0 : i32
    return %arg0, %c0_i32 : i32, i32
  }
  func.func @transform_1(%arg0: i32, %arg1: i32) -> (i32, i32) {
    %c0_i32 = arith.constant 0 : i32
    %c0_i32_0 = arith.constant 0 : i32
    return %c0_i32, %arg1 : i32, i32
  }
  func.func @transform_2(%arg0: i32, %arg1: i32) -> (i32, i32) {
    %c0_i32 = arith.constant 0 : i32
    return %arg0, %arg1 : i32, i32
  }
}

module attributes {stable_mosaic.version = 11 : i64} {
  func.func @_bn_stats_kernel(%arg0: i32, %arg1: memref<32x16xbf16, #tpu.memory_space<vmem>>, %arg2: memref<1x16xf32, #tpu.memory_space<vmem>>, %arg3: memref<1x16xf32, #tpu.memory_space<vmem>>) attributes {dimension_semantics = [#tpu.dimension_semantics<arbitrary>], iteration_bounds = array<i64: 1>, scalar_prefetch = 0 : i64, scratch_operands = 0 : i64, tpu.core_type = #tpu.core_type<tc>, window_params = [{transform_indices = @transform_0, window_bounds = array<i64: 32, 16>}, {pipeline_mode = #tpu.pipeline_mode<synchronous>, transform_indices = @transform_1, window_bounds = array<i64: 1, 16>}, {pipeline_mode = #tpu.pipeline_mode<synchronous>, transform_indices = @transform_2, window_bounds = array<i64: 1, 16>}]} {
    %c0_i32 = arith.constant 0 : i32
    %0 = arith.cmpi eq, %arg0, %c0_i32 : i32
    %1 = arith.extui %0 : i1 to i32
    %c0_i32_0 = arith.constant 0 : i32
    %2 = arith.cmpi ne, %1, %c0_i32_0 : i32
    scf.if %2 {
      %cst_11 = arith.constant 0.000000e+00 : f32
      %16 = vector.broadcast %cst_11 : f32 to vector<1x16xf32>
      %c0_12 = arith.constant 0 : index
      %c0_13 = arith.constant 0 : index
      %17 = vector.load %arg2[%c0_12, %c0_13] : memref<1x16xf32, #tpu.memory_space<vmem>>, vector<1x16xf32>
      tpu.vector_store %arg2[%c0_12, %c0_13], %16 {strides = array<i32>} : memref<1x16xf32, #tpu.memory_space<vmem>>, vector<1x16xf32>,
      %cst_14 = arith.constant 0.000000e+00 : f32
      %18 = vector.broadcast %cst_14 : f32 to vector<1x16xf32>
      %c0_15 = arith.constant 0 : index
      %c0_16 = arith.constant 0 : index
      %19 = vector.load %arg3[%c0_15, %c0_16] : memref<1x16xf32, #tpu.memory_space<vmem>>, vector<1x16xf32>
      tpu.vector_store %arg3[%c0_15, %c0_16], %18 {strides = array<i32>} : memref<1x16xf32, #tpu.memory_space<vmem>>, vector<1x16xf32>,
    } else {
    }
    %c0 = arith.constant 0 : index
    %c0_1 = arith.constant 0 : index
    %3 = vector.load %arg1[%c0, %c0_1] : memref<32x16xbf16, #tpu.memory_space<vmem>>, vector<32x16xbf16>
    %4 = arith.extf %3 : vector<32x16xbf16> to vector<32x16xf32>
    %c0_2 = arith.constant 0 : index
    %c0_3 = arith.constant 0 : index
    %5 = vector.load %arg2[%c0_2, %c0_3] : memref<1x16xf32, #tpu.memory_space<vmem>>, vector<1x16xf32>
    %cst = arith.constant dense<0.000000e+00> : vector<16xf32>
    %6 = vector.multi_reduction <add>, %4, %cst [0] : vector<32x16xf32> to vector<16xf32>
    %7 = vector.shape_cast %6 : vector<16xf32> to vector<1x16xf32>
    %8 = arith.addf %5, %7 : vector<1x16xf32>
    %c0_4 = arith.constant 0 : index
    %c0_5 = arith.constant 0 : index
    %9 = vector.load %arg2[%c0_4, %c0_5] : memref<1x16xf32, #tpu.memory_space<vmem>>, vector<1x16xf32>
    tpu.vector_store %arg2[%c0_4, %c0_5], %8 {strides = array<i32>} : memref<1x16xf32, #tpu.memory_space<vmem>>, vector<1x16xf32>,
    %c0_6 = arith.constant 0 : index
    %c0_7 = arith.constant 0 : index
    %10 = vector.load %arg3[%c0_6, %c0_7] : memref<1x16xf32, #tpu.memory_space<vmem>>, vector<1x16xf32>
    %11 = arith.mulf %4, %4 : vector<32x16xf32>
    %cst_8 = arith.constant dense<0.000000e+00> : vector<16xf32>
    %12 = vector.multi_reduction <add>, %11, %cst_8 [0] : vector<32x16xf32> to vector<16xf32>
    %13 = vector.shape_cast %12 : vector<16xf32> to vector<1x16xf32>
    %14 = arith.addf %10, %13 : vector<1x16xf32>
    %c0_9 = arith.constant 0 : index
    %c0_10 = arith.constant 0 : index
    %15 = vector.load %arg3[%c0_9, %c0_10] : memref<1x16xf32, #tpu.memory_space<vmem>>, vector<1x16xf32>
    tpu.vector_store %arg3[%c0_9, %c0_10], %14 {strides = array<i32>} : memref<1x16xf32, #tpu.memory_space<vmem>>, vector<1x16xf32>,
    return
  }
  func.func @transform_0(%arg0: i32) -> (i32, i32) {
    %c0_i32 = arith.constant 0 : i32
    %c0_i32_0 = arith.constant 0 : i32
    return %arg0, %c0_i32 : i32, i32
  }
  func.func @transform_1(%arg0: i32) -> (i32, i32) {
    %c0_i32 = arith.constant 0 : i32
    %c0_i32_0 = arith.constant 0 : i32
    %c0_i32_1 = arith.constant 0 : i32
    return %c0_i32, %c0_i32_0 : i32, i32
  }
  func.func @transform_2(%arg0: i32) -> (i32, i32) {
    %c0_i32 = arith.constant 0 : i32
    %c0_i32_0 = arith.constant 0 : i32
    %c0_i32_1 = arith.constant 0 : i32
    return %c0_i32, %c0_i32_0 : i32, i32
  }
}

module attributes {stable_mosaic.version = 11 : i64} {
  func.func @_bn_apply_kernel(%arg0: i32, %arg1: memref<32x32xbf16, #tpu.memory_space<vmem>>, %arg2: memref<1x32xf32, #tpu.memory_space<vmem>>, %arg3: memref<1x32xf32, #tpu.memory_space<vmem>>, %arg4: memref<32x32xbf16, #tpu.memory_space<vmem>>) attributes {dimension_semantics = [#tpu.dimension_semantics<parallel>], iteration_bounds = array<i64: 1>, scalar_prefetch = 0 : i64, scratch_operands = 0 : i64, tpu.core_type = #tpu.core_type<tc>, window_params = [{transform_indices = @transform_0, window_bounds = array<i64: 32, 32>}, {pipeline_mode = #tpu.pipeline_mode<synchronous>, transform_indices = @transform_1, window_bounds = array<i64: 1, 32>}, {pipeline_mode = #tpu.pipeline_mode<synchronous>, transform_indices = @transform_2, window_bounds = array<i64: 1, 32>}, {transform_indices = @transform_3, window_bounds = array<i64: 32, 32>}]} {
    %c0 = arith.constant 0 : index
    %c0_0 = arith.constant 0 : index
    %0 = vector.load %arg1[%c0, %c0_0] : memref<32x32xbf16, #tpu.memory_space<vmem>>, vector<32x32xbf16>
    %1 = arith.extf %0 : vector<32x32xbf16> to vector<32x32xf32>
    %c0_1 = arith.constant 0 : index
    %c0_2 = arith.constant 0 : index
    %2 = vector.load %arg2[%c0_1, %c0_2] : memref<1x32xf32, #tpu.memory_space<vmem>>, vector<1x32xf32>
    %3 = vector.broadcast %2 : vector<1x32xf32> to vector<32x32xf32>
    %4 = arith.mulf %1, %3 : vector<32x32xf32>
    %c0_3 = arith.constant 0 : index
    %c0_4 = arith.constant 0 : index
    %5 = vector.load %arg3[%c0_3, %c0_4] : memref<1x32xf32, #tpu.memory_space<vmem>>, vector<1x32xf32>
    %6 = vector.broadcast %5 : vector<1x32xf32> to vector<32x32xf32>
    %7 = arith.addf %4, %6 : vector<32x32xf32>
    %cst = arith.constant 0.000000e+00 : f32
    %8 = vector.broadcast %cst : f32 to vector<32x32xf32>
    %9 = arith.maximumf %7, %8 : vector<32x32xf32>
    %10 = arith.truncf %9 : vector<32x32xf32> to vector<32x32xbf16>
    %c0_5 = arith.constant 0 : index
    %c0_6 = arith.constant 0 : index
    %11 = vector.load %arg4[%c0_5, %c0_6] : memref<32x32xbf16, #tpu.memory_space<vmem>>, vector<32x32xbf16>
    tpu.vector_store %arg4[%c0_5, %c0_6], %10 {strides = array<i32>} : memref<32x32xbf16, #tpu.memory_space<vmem>>, vector<32x32xbf16>,
    return
  }
  func.func @transform_0(%arg0: i32) -> (i32, i32) {
    %c0_i32 = arith.constant 0 : i32
    %c0_i32_0 = arith.constant 0 : i32
    return %arg0, %c0_i32 : i32, i32
  }
  func.func @transform_1(%arg0: i32) -> (i32, i32) {
    %c0_i32 = arith.constant 0 : i32
    %c0_i32_0 = arith.constant 0 : i32
    %c0_i32_1 = arith.constant 0 : i32
    return %c0_i32, %c0_i32_0 : i32, i32
  }
  func.func @transform_2(%arg0: i32) -> (i32, i32) {
    %c0_i32 = arith.constant 0 : i32
    %c0_i32_0 = arith.constant 0 : i32
    %c0_i32_1 = arith.constant 0 : i32
    return %c0_i32, %c0_i32_0 : i32, i32
  }
  func.func @transform_3(%arg0: i32) -> (i32, i32) {
    %c0_i32 = arith.constant 0 : i32
    %c0_i32_0 = arith.constant 0 : i32
    return %arg0, %c0_i32 : i32, i32
  }
}

module attributes {stable_mosaic.version = 11 : i64} {
  func.func @_mm_bn_stats_kernel(%arg0: i32, %arg1: i32, %arg2: memref<32x16xbf16, #tpu.memory_space<vmem>>, %arg3: memref<1x16xf32, #tpu.memory_space<vmem>>, %arg4: memref<1x16xf32, #tpu.memory_space<vmem>>, %arg5: memref<16x32xbf16, #tpu.memory_space<vmem>>, %arg6: memref<32x32xbf16, #tpu.memory_space<vmem>>, %arg7: memref<1x32xf32, #tpu.memory_space<vmem>>, %arg8: memref<1x32xf32, #tpu.memory_space<vmem>>) attributes {dimension_semantics = [#tpu.dimension_semantics<parallel>, #tpu.dimension_semantics<arbitrary>], iteration_bounds = array<i64: 1, 1>, scalar_prefetch = 0 : i64, scratch_operands = 0 : i64, tpu.core_type = #tpu.core_type<tc>, window_params = [{transform_indices = @transform_0, window_bounds = array<i64: 32, 16>}, {pipeline_mode = #tpu.pipeline_mode<synchronous>, transform_indices = @transform_1, window_bounds = array<i64: 1, 16>}, {pipeline_mode = #tpu.pipeline_mode<synchronous>, transform_indices = @transform_2, window_bounds = array<i64: 1, 16>}, {transform_indices = @transform_3, window_bounds = array<i64: 16, 32>}, {transform_indices = @transform_4, window_bounds = array<i64: 32, 32>}, {transform_indices = @transform_5, window_bounds = array<i64: 1, 32>}, {transform_indices = @transform_6, window_bounds = array<i64: 1, 32>}]} {
    %c0_i32 = arith.constant 0 : i32
    %0 = arith.cmpi eq, %arg1, %c0_i32 : i32
    %1 = arith.extui %0 : i1 to i32
    %c0_i32_0 = arith.constant 0 : i32
    %2 = arith.cmpi ne, %1, %c0_i32_0 : i32
    scf.if %2 {
      %cst_21 = arith.constant 0.000000e+00 : f32
      %29 = vector.broadcast %cst_21 : f32 to vector<1x32xf32>
      %c0_22 = arith.constant 0 : index
      %c0_23 = arith.constant 0 : index
      %30 = vector.load %arg7[%c0_22, %c0_23] : memref<1x32xf32, #tpu.memory_space<vmem>>, vector<1x32xf32>
      tpu.vector_store %arg7[%c0_22, %c0_23], %29 {strides = array<i32>} : memref<1x32xf32, #tpu.memory_space<vmem>>, vector<1x32xf32>,
      %cst_24 = arith.constant 0.000000e+00 : f32
      %31 = vector.broadcast %cst_24 : f32 to vector<1x32xf32>
      %c0_25 = arith.constant 0 : index
      %c0_26 = arith.constant 0 : index
      %32 = vector.load %arg8[%c0_25, %c0_26] : memref<1x32xf32, #tpu.memory_space<vmem>>, vector<1x32xf32>
      tpu.vector_store %arg8[%c0_25, %c0_26], %31 {strides = array<i32>} : memref<1x32xf32, #tpu.memory_space<vmem>>, vector<1x32xf32>,
    } else {
    }
    %c0 = arith.constant 0 : index
    %c0_1 = arith.constant 0 : index
    %3 = vector.load %arg2[%c0, %c0_1] : memref<32x16xbf16, #tpu.memory_space<vmem>>, vector<32x16xbf16>
    %4 = arith.extf %3 : vector<32x16xbf16> to vector<32x16xf32>
    %c0_2 = arith.constant 0 : index
    %c0_3 = arith.constant 0 : index
    %5 = vector.load %arg3[%c0_2, %c0_3] : memref<1x16xf32, #tpu.memory_space<vmem>>, vector<1x16xf32>
    %6 = vector.broadcast %5 : vector<1x16xf32> to vector<32x16xf32>
    %7 = arith.mulf %4, %6 : vector<32x16xf32>
    %c0_4 = arith.constant 0 : index
    %c0_5 = arith.constant 0 : index
    %8 = vector.load %arg4[%c0_4, %c0_5] : memref<1x16xf32, #tpu.memory_space<vmem>>, vector<1x16xf32>
    %9 = vector.broadcast %8 : vector<1x16xf32> to vector<32x16xf32>
    %10 = arith.addf %7, %9 : vector<32x16xf32>
    %cst = arith.constant 0.000000e+00 : f32
    %11 = vector.broadcast %cst : f32 to vector<32x16xf32>
    %12 = arith.maximumf %10, %11 : vector<32x16xf32>
    %13 = arith.truncf %12 : vector<32x16xf32> to vector<32x16xbf16>
    %c0_6 = arith.constant 0 : index
    %c0_7 = arith.constant 0 : index
    %14 = vector.load %arg5[%c0_6, %c0_7] : memref<16x32xbf16, #tpu.memory_space<vmem>>, vector<16x32xbf16>
    %cst_8 = arith.constant dense<0.000000e+00> : vector<32x32xf32>
    %15 = tpu.matmul %13, %14, %cst_8 {dimension_numbers = #tpu.dot_dimension_numbers<[1], [0], [0], [1], [0, 0, 1, 1], [], []>} : vector<32x16xbf16>, vector<16x32xbf16>, vector<32x32xf32> -> vector<32x32xf32>
    %16 = arith.truncf %15 : vector<32x32xf32> to vector<32x32xbf16>
    %c0_9 = arith.constant 0 : index
    %c0_10 = arith.constant 0 : index
    %17 = vector.load %arg6[%c0_9, %c0_10] : memref<32x32xbf16, #tpu.memory_space<vmem>>, vector<32x32xbf16>
    tpu.vector_store %arg6[%c0_9, %c0_10], %16 {strides = array<i32>} : memref<32x32xbf16, #tpu.memory_space<vmem>>, vector<32x32xbf16>,
    %c0_11 = arith.constant 0 : index
    %c0_12 = arith.constant 0 : index
    %18 = vector.load %arg7[%c0_11, %c0_12] : memref<1x32xf32, #tpu.memory_space<vmem>>, vector<1x32xf32>
    %cst_13 = arith.constant dense<0.000000e+00> : vector<32xf32>
    %19 = vector.multi_reduction <add>, %15, %cst_13 [0] : vector<32x32xf32> to vector<32xf32>
    %20 = vector.shape_cast %19 : vector<32xf32> to vector<1x32xf32>
    %21 = arith.addf %18, %20 : vector<1x32xf32>
    %c0_14 = arith.constant 0 : index
    %c0_15 = arith.constant 0 : index
    %22 = vector.load %arg7[%c0_14, %c0_15] : memref<1x32xf32, #tpu.memory_space<vmem>>, vector<1x32xf32>
    tpu.vector_store %arg7[%c0_14, %c0_15], %21 {strides = array<i32>} : memref<1x32xf32, #tpu.memory_space<vmem>>, vector<1x32xf32>,
    %c0_16 = arith.constant 0 : index
    %c0_17 = arith.constant 0 : index
    %23 = vector.load %arg8[%c0_16, %c0_17] : memref<1x32xf32, #tpu.memory_space<vmem>>, vector<1x32xf32>
    %24 = arith.mulf %15, %15 : vector<32x32xf32>
    %cst_18 = arith.constant dense<0.000000e+00> : vector<32xf32>
    %25 = vector.multi_reduction <add>, %24, %cst_18 [0] : vector<32x32xf32> to vector<32xf32>
    %26 = vector.shape_cast %25 : vector<32xf32> to vector<1x32xf32>
    %27 = arith.addf %23, %26 : vector<1x32xf32>
    %c0_19 = arith.constant 0 : index
    %c0_20 = arith.constant 0 : index
    %28 = vector.load %arg8[%c0_19, %c0_20] : memref<1x32xf32, #tpu.memory_space<vmem>>, vector<1x32xf32>
    tpu.vector_store %arg8[%c0_19, %c0_20], %27 {strides = array<i32>} : memref<1x32xf32, #tpu.memory_space<vmem>>, vector<1x32xf32>,
    return
  }
  func.func @transform_0(%arg0: i32, %arg1: i32) -> (i32, i32) {
    %c0_i32 = arith.constant 0 : i32
    %c0_i32_0 = arith.constant 0 : i32
    return %arg1, %c0_i32 : i32, i32
  }
  func.func @transform_1(%arg0: i32, %arg1: i32) -> (i32, i32) {
    %c0_i32 = arith.constant 0 : i32
    %c0_i32_0 = arith.constant 0 : i32
    %c0_i32_1 = arith.constant 0 : i32
    return %c0_i32, %c0_i32_0 : i32, i32
  }
  func.func @transform_2(%arg0: i32, %arg1: i32) -> (i32, i32) {
    %c0_i32 = arith.constant 0 : i32
    %c0_i32_0 = arith.constant 0 : i32
    %c0_i32_1 = arith.constant 0 : i32
    return %c0_i32, %c0_i32_0 : i32, i32
  }
  func.func @transform_3(%arg0: i32, %arg1: i32) -> (i32, i32) {
    %c0_i32 = arith.constant 0 : i32
    %c0_i32_0 = arith.constant 0 : i32
    return %c0_i32, %arg0 : i32, i32
  }
  func.func @transform_4(%arg0: i32, %arg1: i32) -> (i32, i32) {
    %c0_i32 = arith.constant 0 : i32
    return %arg1, %arg0 : i32, i32
  }
  func.func @transform_5(%arg0: i32, %arg1: i32) -> (i32, i32) {
    %c0_i32 = arith.constant 0 : i32
    %c0_i32_0 = arith.constant 0 : i32
    return %c0_i32, %arg0 : i32, i32
  }
  func.func @transform_6(%arg0: i32, %arg1: i32) -> (i32, i32) {
    %c0_i32 = arith.constant 0 : i32
    %c0_i32_0 = arith.constant 0 : i32
    return %c0_i32, %arg0 : i32, i32
  }
}

module attributes {stable_mosaic.version = 11 : i64} {
  func.func @_conv3x3_kernel(%arg0: i32, %arg1: memref<1x6x6x32xbf16, #tpu.memory_space<vmem>>, %arg2: memref<288x8xbf16, #tpu.memory_space<vmem>>, %arg3: memref<1x4x4x8xbf16, #tpu.memory_space<vmem>>) attributes {dimension_semantics = [#tpu.dimension_semantics<parallel>], iteration_bounds = array<i64: 2>, scalar_prefetch = 0 : i64, scratch_operands = 0 : i64, tpu.core_type = #tpu.core_type<tc>, window_params = [{transform_indices = @transform_0, window_bounds = array<i64: 1, 6, 6, 32>}, {pipeline_mode = #tpu.pipeline_mode<synchronous>, transform_indices = @transform_1, window_bounds = array<i64: 288, 8>}, {transform_indices = @transform_2, window_bounds = array<i64: 1, 4, 4, 8>}]} {
    %cst = arith.constant 0.000000e+00 : f32
    %0 = vector.broadcast %cst : f32 to vector<16x8xf32>
    %c0 = arith.constant 0 : index
    %c0_0 = arith.constant 0 : index
    %c0_1 = arith.constant 0 : index
    %c0_2 = arith.constant 0 : index
    %1 = vector.load %arg1[%c0, %c0_0, %c0_1, %c0_2] : memref<1x6x6x32xbf16, #tpu.memory_space<vmem>>, vector<1x4x4x32xbf16>
    %2 = vector.shape_cast %1 : vector<1x4x4x32xbf16> to vector<4x4x32xbf16>
    %3 = vector.shape_cast %2 : vector<4x4x32xbf16> to vector<16x32xbf16>
    %c0_3 = arith.constant 0 : index
    %c0_4 = arith.constant 0 : index
    %4 = vector.load %arg2[%c0_3, %c0_4] : memref<288x8xbf16, #tpu.memory_space<vmem>>, vector<32x8xbf16>
    %cst_5 = arith.constant dense<0.000000e+00> : vector<16x8xf32>
    %5 = tpu.matmul %3, %4, %cst_5 {dimension_numbers = #tpu.dot_dimension_numbers<[1], [0], [0], [1], [0, 0, 1, 1], [], []>} : vector<16x32xbf16>, vector<32x8xbf16>, vector<16x8xf32> -> vector<16x8xf32>
    %6 = arith.addf %0, %5 : vector<16x8xf32>
    %c0_6 = arith.constant 0 : index
    %c0_7 = arith.constant 0 : index
    %c1 = arith.constant 1 : index
    %c0_8 = arith.constant 0 : index
    %7 = vector.load %arg1[%c0_6, %c0_7, %c1, %c0_8] : memref<1x6x6x32xbf16, #tpu.memory_space<vmem>>, vector<1x4x4x32xbf16>
    %8 = vector.shape_cast %7 : vector<1x4x4x32xbf16> to vector<4x4x32xbf16>
    %9 = vector.shape_cast %8 : vector<4x4x32xbf16> to vector<16x32xbf16>
    %c32 = arith.constant 32 : index
    %c0_9 = arith.constant 0 : index
    %10 = vector.load %arg2[%c32, %c0_9] : memref<288x8xbf16, #tpu.memory_space<vmem>>, vector<32x8xbf16>
    %cst_10 = arith.constant dense<0.000000e+00> : vector<16x8xf32>
    %11 = tpu.matmul %9, %10, %cst_10 {dimension_numbers = #tpu.dot_dimension_numbers<[1], [0], [0], [1], [0, 0, 1, 1], [], []>} : vector<16x32xbf16>, vector<32x8xbf16>, vector<16x8xf32> -> vector<16x8xf32>
    %12 = arith.addf %6, %11 : vector<16x8xf32>
    %c0_11 = arith.constant 0 : index
    %c0_12 = arith.constant 0 : index
    %c2 = arith.constant 2 : index
    %c0_13 = arith.constant 0 : index
    %13 = vector.load %arg1[%c0_11, %c0_12, %c2, %c0_13] : memref<1x6x6x32xbf16, #tpu.memory_space<vmem>>, vector<1x4x4x32xbf16>
    %14 = vector.shape_cast %13 : vector<1x4x4x32xbf16> to vector<4x4x32xbf16>
    %15 = vector.shape_cast %14 : vector<4x4x32xbf16> to vector<16x32xbf16>
    %c64 = arith.constant 64 : index
    %c0_14 = arith.constant 0 : index
    %16 = vector.load %arg2[%c64, %c0_14] : memref<288x8xbf16, #tpu.memory_space<vmem>>, vector<32x8xbf16>
    %cst_15 = arith.constant dense<0.000000e+00> : vector<16x8xf32>
    %17 = tpu.matmul %15, %16, %cst_15 {dimension_numbers = #tpu.dot_dimension_numbers<[1], [0], [0], [1], [0, 0, 1, 1], [], []>} : vector<16x32xbf16>, vector<32x8xbf16>, vector<16x8xf32> -> vector<16x8xf32>
    %18 = arith.addf %12, %17 : vector<16x8xf32>
    %c0_16 = arith.constant 0 : index
    %c1_17 = arith.constant 1 : index
    %c0_18 = arith.constant 0 : index
    %c0_19 = arith.constant 0 : index
    %19 = vector.load %arg1[%c0_16, %c1_17, %c0_18, %c0_19] : memref<1x6x6x32xbf16, #tpu.memory_space<vmem>>, vector<1x4x4x32xbf16>
    %20 = vector.shape_cast %19 : vector<1x4x4x32xbf16> to vector<4x4x32xbf16>
    %21 = vector.shape_cast %20 : vector<4x4x32xbf16> to vector<16x32xbf16>
    %c96 = arith.constant 96 : index
    %c0_20 = arith.constant 0 : index
    %22 = vector.load %arg2[%c96, %c0_20] : memref<288x8xbf16, #tpu.memory_space<vmem>>, vector<32x8xbf16>
    %cst_21 = arith.constant dense<0.000000e+00> : vector<16x8xf32>
    %23 = tpu.matmul %21, %22, %cst_21 {dimension_numbers = #tpu.dot_dimension_numbers<[1], [0], [0], [1], [0, 0, 1, 1], [], []>} : vector<16x32xbf16>, vector<32x8xbf16>, vector<16x8xf32> -> vector<16x8xf32>
    %24 = arith.addf %18, %23 : vector<16x8xf32>
    %c0_22 = arith.constant 0 : index
    %c1_23 = arith.constant 1 : index
    %c1_24 = arith.constant 1 : index
    %c0_25 = arith.constant 0 : index
    %25 = vector.load %arg1[%c0_22, %c1_23, %c1_24, %c0_25] : memref<1x6x6x32xbf16, #tpu.memory_space<vmem>>, vector<1x4x4x32xbf16>
    %26 = vector.shape_cast %25 : vector<1x4x4x32xbf16> to vector<4x4x32xbf16>
    %27 = vector.shape_cast %26 : vector<4x4x32xbf16> to vector<16x32xbf16>
    %c128 = arith.constant 128 : index
    %c0_26 = arith.constant 0 : index
    %28 = vector.load %arg2[%c128, %c0_26] : memref<288x8xbf16, #tpu.memory_space<vmem>>, vector<32x8xbf16>
    %cst_27 = arith.constant dense<0.000000e+00> : vector<16x8xf32>
    %29 = tpu.matmul %27, %28, %cst_27 {dimension_numbers = #tpu.dot_dimension_numbers<[1], [0], [0], [1], [0, 0, 1, 1], [], []>} : vector<16x32xbf16>, vector<32x8xbf16>, vector<16x8xf32> -> vector<16x8xf32>
    %30 = arith.addf %24, %29 : vector<16x8xf32>
    %c0_28 = arith.constant 0 : index
    %c1_29 = arith.constant 1 : index
    %c2_30 = arith.constant 2 : index
    %c0_31 = arith.constant 0 : index
    %31 = vector.load %arg1[%c0_28, %c1_29, %c2_30, %c0_31] : memref<1x6x6x32xbf16, #tpu.memory_space<vmem>>, vector<1x4x4x32xbf16>
    %32 = vector.shape_cast %31 : vector<1x4x4x32xbf16> to vector<4x4x32xbf16>
    %33 = vector.shape_cast %32 : vector<4x4x32xbf16> to vector<16x32xbf16>
    %c160 = arith.constant 160 : index
    %c0_32 = arith.constant 0 : index
    %34 = vector.load %arg2[%c160, %c0_32] : memref<288x8xbf16, #tpu.memory_space<vmem>>, vector<32x8xbf16>
    %cst_33 = arith.constant dense<0.000000e+00> : vector<16x8xf32>
    %35 = tpu.matmul %33, %34, %cst_33 {dimension_numbers = #tpu.dot_dimension_numbers<[1], [0], [0], [1], [0, 0, 1, 1], [], []>} : vector<16x32xbf16>, vector<32x8xbf16>, vector<16x8xf32> -> vector<16x8xf32>
    %36 = arith.addf %30, %35 : vector<16x8xf32>
    %c0_34 = arith.constant 0 : index
    %c2_35 = arith.constant 2 : index
    %c0_36 = arith.constant 0 : index
    %c0_37 = arith.constant 0 : index
    %37 = vector.load %arg1[%c0_34, %c2_35, %c0_36, %c0_37] : memref<1x6x6x32xbf16, #tpu.memory_space<vmem>>, vector<1x4x4x32xbf16>
    %38 = vector.shape_cast %37 : vector<1x4x4x32xbf16> to vector<4x4x32xbf16>
    %39 = vector.shape_cast %38 : vector<4x4x32xbf16> to vector<16x32xbf16>
    %c192 = arith.constant 192 : index
    %c0_38 = arith.constant 0 : index
    %40 = vector.load %arg2[%c192, %c0_38] : memref<288x8xbf16, #tpu.memory_space<vmem>>, vector<32x8xbf16>
    %cst_39 = arith.constant dense<0.000000e+00> : vector<16x8xf32>
    %41 = tpu.matmul %39, %40, %cst_39 {dimension_numbers = #tpu.dot_dimension_numbers<[1], [0], [0], [1], [0, 0, 1, 1], [], []>} : vector<16x32xbf16>, vector<32x8xbf16>, vector<16x8xf32> -> vector<16x8xf32>
    %42 = arith.addf %36, %41 : vector<16x8xf32>
    %c0_40 = arith.constant 0 : index
    %c2_41 = arith.constant 2 : index
    %c1_42 = arith.constant 1 : index
    %c0_43 = arith.constant 0 : index
    %43 = vector.load %arg1[%c0_40, %c2_41, %c1_42, %c0_43] : memref<1x6x6x32xbf16, #tpu.memory_space<vmem>>, vector<1x4x4x32xbf16>
    %44 = vector.shape_cast %43 : vector<1x4x4x32xbf16> to vector<4x4x32xbf16>
    %45 = vector.shape_cast %44 : vector<4x4x32xbf16> to vector<16x32xbf16>
    %c224 = arith.constant 224 : index
    %c0_44 = arith.constant 0 : index
    %46 = vector.load %arg2[%c224, %c0_44] : memref<288x8xbf16, #tpu.memory_space<vmem>>, vector<32x8xbf16>
    %cst_45 = arith.constant dense<0.000000e+00> : vector<16x8xf32>
    %47 = tpu.matmul %45, %46, %cst_45 {dimension_numbers = #tpu.dot_dimension_numbers<[1], [0], [0], [1], [0, 0, 1, 1], [], []>} : vector<16x32xbf16>, vector<32x8xbf16>, vector<16x8xf32> -> vector<16x8xf32>
    %48 = arith.addf %42, %47 : vector<16x8xf32>
    %c0_46 = arith.constant 0 : index
    %c2_47 = arith.constant 2 : index
    %c2_48 = arith.constant 2 : index
    %c0_49 = arith.constant 0 : index
    %49 = vector.load %arg1[%c0_46, %c2_47, %c2_48, %c0_49] : memref<1x6x6x32xbf16, #tpu.memory_space<vmem>>, vector<1x4x4x32xbf16>
    %50 = vector.shape_cast %49 : vector<1x4x4x32xbf16> to vector<4x4x32xbf16>
    %51 = vector.shape_cast %50 : vector<4x4x32xbf16> to vector<16x32xbf16>
    %c256 = arith.constant 256 : index
    %c0_50 = arith.constant 0 : index
    %52 = vector.load %arg2[%c256, %c0_50] : memref<288x8xbf16, #tpu.memory_space<vmem>>, vector<32x8xbf16>
    %cst_51 = arith.constant dense<0.000000e+00> : vector<16x8xf32>
    %53 = tpu.matmul %51, %52, %cst_51 {dimension_numbers = #tpu.dot_dimension_numbers<[1], [0], [0], [1], [0, 0, 1, 1], [], []>} : vector<16x32xbf16>, vector<32x8xbf16>, vector<16x8xf32> -> vector<16x8xf32>
    %54 = arith.addf %48, %53 : vector<16x8xf32>
    %55 = vector.shape_cast %54 : vector<16x8xf32> to vector<1x4x4x8xf32>
    %56 = arith.truncf %55 : vector<1x4x4x8xf32> to vector<1x4x4x8xbf16>
    %c0_52 = arith.constant 0 : index
    %c0_53 = arith.constant 0 : index
    %c0_54 = arith.constant 0 : index
    %c0_55 = arith.constant 0 : index
    %57 = vector.load %arg3[%c0_52, %c0_53, %c0_54, %c0_55] : memref<1x4x4x8xbf16, #tpu.memory_space<vmem>>, vector<1x4x4x8xbf16>
    tpu.vector_store %arg3[%c0_52, %c0_53, %c0_54, %c0_55], %56 {strides = array<i32>} : memref<1x4x4x8xbf16, #tpu.memory_space<vmem>>, vector<1x4x4x8xbf16>,
    return
  }
  func.func @transform_0(%arg0: i32) -> (i32, i32, i32, i32) {
    %c0_i32 = arith.constant 0 : i32
    %c0_i32_0 = arith.constant 0 : i32
    %c0_i32_1 = arith.constant 0 : i32
    %c0_i32_2 = arith.constant 0 : i32
    return %arg0, %c0_i32, %c0_i32_0, %c0_i32_1 : i32, i32, i32, i32
  }
  func.func @transform_1(%arg0: i32) -> (i32, i32) {
    %c0_i32 = arith.constant 0 : i32
    %c0_i32_0 = arith.constant 0 : i32
    %c0_i32_1 = arith.constant 0 : i32
    return %c0_i32, %c0_i32_0 : i32, i32
  }
  func.func @transform_2(%arg0: i32) -> (i32, i32, i32, i32) {
    %c0_i32 = arith.constant 0 : i32
    %c0_i32_0 = arith.constant 0 : i32
    %c0_i32_1 = arith.constant 0 : i32
    %c0_i32_2 = arith.constant 0 : i32
    return %arg0, %c0_i32, %c0_i32_0, %c0_i32_1 : i32, i32, i32, i32
  }
}

module attributes {stable_mosaic.version = 11 : i64} {
  func.func @_bn_stats_kernel(%arg0: i32, %arg1: memref<32x24xbf16, #tpu.memory_space<vmem>>, %arg2: memref<1x24xf32, #tpu.memory_space<vmem>>, %arg3: memref<1x24xf32, #tpu.memory_space<vmem>>) attributes {dimension_semantics = [#tpu.dimension_semantics<arbitrary>], iteration_bounds = array<i64: 1>, scalar_prefetch = 0 : i64, scratch_operands = 0 : i64, tpu.core_type = #tpu.core_type<tc>, window_params = [{transform_indices = @transform_0, window_bounds = array<i64: 32, 24>}, {pipeline_mode = #tpu.pipeline_mode<synchronous>, transform_indices = @transform_1, window_bounds = array<i64: 1, 24>}, {pipeline_mode = #tpu.pipeline_mode<synchronous>, transform_indices = @transform_2, window_bounds = array<i64: 1, 24>}]} {
    %c0_i32 = arith.constant 0 : i32
    %0 = arith.cmpi eq, %arg0, %c0_i32 : i32
    %1 = arith.extui %0 : i1 to i32
    %c0_i32_0 = arith.constant 0 : i32
    %2 = arith.cmpi ne, %1, %c0_i32_0 : i32
    scf.if %2 {
      %cst_11 = arith.constant 0.000000e+00 : f32
      %16 = vector.broadcast %cst_11 : f32 to vector<1x24xf32>
      %c0_12 = arith.constant 0 : index
      %c0_13 = arith.constant 0 : index
      %17 = vector.load %arg2[%c0_12, %c0_13] : memref<1x24xf32, #tpu.memory_space<vmem>>, vector<1x24xf32>
      tpu.vector_store %arg2[%c0_12, %c0_13], %16 {strides = array<i32>} : memref<1x24xf32, #tpu.memory_space<vmem>>, vector<1x24xf32>,
      %cst_14 = arith.constant 0.000000e+00 : f32
      %18 = vector.broadcast %cst_14 : f32 to vector<1x24xf32>
      %c0_15 = arith.constant 0 : index
      %c0_16 = arith.constant 0 : index
      %19 = vector.load %arg3[%c0_15, %c0_16] : memref<1x24xf32, #tpu.memory_space<vmem>>, vector<1x24xf32>
      tpu.vector_store %arg3[%c0_15, %c0_16], %18 {strides = array<i32>} : memref<1x24xf32, #tpu.memory_space<vmem>>, vector<1x24xf32>,
    } else {
    }
    %c0 = arith.constant 0 : index
    %c0_1 = arith.constant 0 : index
    %3 = vector.load %arg1[%c0, %c0_1] : memref<32x24xbf16, #tpu.memory_space<vmem>>, vector<32x24xbf16>
    %4 = arith.extf %3 : vector<32x24xbf16> to vector<32x24xf32>
    %c0_2 = arith.constant 0 : index
    %c0_3 = arith.constant 0 : index
    %5 = vector.load %arg2[%c0_2, %c0_3] : memref<1x24xf32, #tpu.memory_space<vmem>>, vector<1x24xf32>
    %cst = arith.constant dense<0.000000e+00> : vector<24xf32>
    %6 = vector.multi_reduction <add>, %4, %cst [0] : vector<32x24xf32> to vector<24xf32>
    %7 = vector.shape_cast %6 : vector<24xf32> to vector<1x24xf32>
    %8 = arith.addf %5, %7 : vector<1x24xf32>
    %c0_4 = arith.constant 0 : index
    %c0_5 = arith.constant 0 : index
    %9 = vector.load %arg2[%c0_4, %c0_5] : memref<1x24xf32, #tpu.memory_space<vmem>>, vector<1x24xf32>
    tpu.vector_store %arg2[%c0_4, %c0_5], %8 {strides = array<i32>} : memref<1x24xf32, #tpu.memory_space<vmem>>, vector<1x24xf32>,
    %c0_6 = arith.constant 0 : index
    %c0_7 = arith.constant 0 : index
    %10 = vector.load %arg3[%c0_6, %c0_7] : memref<1x24xf32, #tpu.memory_space<vmem>>, vector<1x24xf32>
    %11 = arith.mulf %4, %4 : vector<32x24xf32>
    %cst_8 = arith.constant dense<0.000000e+00> : vector<24xf32>
    %12 = vector.multi_reduction <add>, %11, %cst_8 [0] : vector<32x24xf32> to vector<24xf32>
    %13 = vector.shape_cast %12 : vector<24xf32> to vector<1x24xf32>
    %14 = arith.addf %10, %13 : vector<1x24xf32>
    %c0_9 = arith.constant 0 : index
    %c0_10 = arith.constant 0 : index
    %15 = vector.load %arg3[%c0_9, %c0_10] : memref<1x24xf32, #tpu.memory_space<vmem>>, vector<1x24xf32>
    tpu.vector_store %arg3[%c0_9, %c0_10], %14 {strides = array<i32>} : memref<1x24xf32, #tpu.memory_space<vmem>>, vector<1x24xf32>,
    return
  }
  func.func @transform_0(%arg0: i32) -> (i32, i32) {
    %c0_i32 = arith.constant 0 : i32
    %c0_i32_0 = arith.constant 0 : i32
    return %arg0, %c0_i32 : i32, i32
  }
  func.func @transform_1(%arg0: i32) -> (i32, i32) {
    %c0_i32 = arith.constant 0 : i32
    %c0_i32_0 = arith.constant 0 : i32
    %c0_i32_1 = arith.constant 0 : i32
    return %c0_i32, %c0_i32_0 : i32, i32
  }
  func.func @transform_2(%arg0: i32) -> (i32, i32) {
    %c0_i32 = arith.constant 0 : i32
    %c0_i32_0 = arith.constant 0 : i32
    %c0_i32_1 = arith.constant 0 : i32
    return %c0_i32, %c0_i32_0 : i32, i32
  }
}

module attributes {stable_mosaic.version = 11 : i64} {
  func.func @_mm_bn_stats_kernel(%arg0: i32, %arg1: i32, %arg2: memref<32x24xbf16, #tpu.memory_space<vmem>>, %arg3: memref<1x24xf32, #tpu.memory_space<vmem>>, %arg4: memref<1x24xf32, #tpu.memory_space<vmem>>, %arg5: memref<24x32xbf16, #tpu.memory_space<vmem>>, %arg6: memref<32x32xbf16, #tpu.memory_space<vmem>>, %arg7: memref<1x32xf32, #tpu.memory_space<vmem>>, %arg8: memref<1x32xf32, #tpu.memory_space<vmem>>) attributes {dimension_semantics = [#tpu.dimension_semantics<parallel>, #tpu.dimension_semantics<arbitrary>], iteration_bounds = array<i64: 1, 1>, scalar_prefetch = 0 : i64, scratch_operands = 0 : i64, tpu.core_type = #tpu.core_type<tc>, window_params = [{transform_indices = @transform_0, window_bounds = array<i64: 32, 24>}, {pipeline_mode = #tpu.pipeline_mode<synchronous>, transform_indices = @transform_1, window_bounds = array<i64: 1, 24>}, {pipeline_mode = #tpu.pipeline_mode<synchronous>, transform_indices = @transform_2, window_bounds = array<i64: 1, 24>}, {transform_indices = @transform_3, window_bounds = array<i64: 24, 32>}, {transform_indices = @transform_4, window_bounds = array<i64: 32, 32>}, {transform_indices = @transform_5, window_bounds = array<i64: 1, 32>}, {transform_indices = @transform_6, window_bounds = array<i64: 1, 32>}]} {
    %c0_i32 = arith.constant 0 : i32
    %0 = arith.cmpi eq, %arg1, %c0_i32 : i32
    %1 = arith.extui %0 : i1 to i32
    %c0_i32_0 = arith.constant 0 : i32
    %2 = arith.cmpi ne, %1, %c0_i32_0 : i32
    scf.if %2 {
      %cst_21 = arith.constant 0.000000e+00 : f32
      %29 = vector.broadcast %cst_21 : f32 to vector<1x32xf32>
      %c0_22 = arith.constant 0 : index
      %c0_23 = arith.constant 0 : index
      %30 = vector.load %arg7[%c0_22, %c0_23] : memref<1x32xf32, #tpu.memory_space<vmem>>, vector<1x32xf32>
      tpu.vector_store %arg7[%c0_22, %c0_23], %29 {strides = array<i32>} : memref<1x32xf32, #tpu.memory_space<vmem>>, vector<1x32xf32>,
      %cst_24 = arith.constant 0.000000e+00 : f32
      %31 = vector.broadcast %cst_24 : f32 to vector<1x32xf32>
      %c0_25 = arith.constant 0 : index
      %c0_26 = arith.constant 0 : index
      %32 = vector.load %arg8[%c0_25, %c0_26] : memref<1x32xf32, #tpu.memory_space<vmem>>, vector<1x32xf32>
      tpu.vector_store %arg8[%c0_25, %c0_26], %31 {strides = array<i32>} : memref<1x32xf32, #tpu.memory_space<vmem>>, vector<1x32xf32>,
    } else {
    }
    %c0 = arith.constant 0 : index
    %c0_1 = arith.constant 0 : index
    %3 = vector.load %arg2[%c0, %c0_1] : memref<32x24xbf16, #tpu.memory_space<vmem>>, vector<32x24xbf16>
    %4 = arith.extf %3 : vector<32x24xbf16> to vector<32x24xf32>
    %c0_2 = arith.constant 0 : index
    %c0_3 = arith.constant 0 : index
    %5 = vector.load %arg3[%c0_2, %c0_3] : memref<1x24xf32, #tpu.memory_space<vmem>>, vector<1x24xf32>
    %6 = vector.broadcast %5 : vector<1x24xf32> to vector<32x24xf32>
    %7 = arith.mulf %4, %6 : vector<32x24xf32>
    %c0_4 = arith.constant 0 : index
    %c0_5 = arith.constant 0 : index
    %8 = vector.load %arg4[%c0_4, %c0_5] : memref<1x24xf32, #tpu.memory_space<vmem>>, vector<1x24xf32>
    %9 = vector.broadcast %8 : vector<1x24xf32> to vector<32x24xf32>
    %10 = arith.addf %7, %9 : vector<32x24xf32>
    %cst = arith.constant 0.000000e+00 : f32
    %11 = vector.broadcast %cst : f32 to vector<32x24xf32>
    %12 = arith.maximumf %10, %11 : vector<32x24xf32>
    %13 = arith.truncf %12 : vector<32x24xf32> to vector<32x24xbf16>
    %c0_6 = arith.constant 0 : index
    %c0_7 = arith.constant 0 : index
    %14 = vector.load %arg5[%c0_6, %c0_7] : memref<24x32xbf16, #tpu.memory_space<vmem>>, vector<24x32xbf16>
    %cst_8 = arith.constant dense<0.000000e+00> : vector<32x32xf32>
    %15 = tpu.matmul %13, %14, %cst_8 {dimension_numbers = #tpu.dot_dimension_numbers<[1], [0], [0], [1], [0, 0, 1, 1], [], []>} : vector<32x24xbf16>, vector<24x32xbf16>, vector<32x32xf32> -> vector<32x32xf32>
    %16 = arith.truncf %15 : vector<32x32xf32> to vector<32x32xbf16>
    %c0_9 = arith.constant 0 : index
    %c0_10 = arith.constant 0 : index
    %17 = vector.load %arg6[%c0_9, %c0_10] : memref<32x32xbf16, #tpu.memory_space<vmem>>, vector<32x32xbf16>
    tpu.vector_store %arg6[%c0_9, %c0_10], %16 {strides = array<i32>} : memref<32x32xbf16, #tpu.memory_space<vmem>>, vector<32x32xbf16>,
    %c0_11 = arith.constant 0 : index
    %c0_12 = arith.constant 0 : index
    %18 = vector.load %arg7[%c0_11, %c0_12] : memref<1x32xf32, #tpu.memory_space<vmem>>, vector<1x32xf32>
    %cst_13 = arith.constant dense<0.000000e+00> : vector<32xf32>
    %19 = vector.multi_reduction <add>, %15, %cst_13 [0] : vector<32x32xf32> to vector<32xf32>
    %20 = vector.shape_cast %19 : vector<32xf32> to vector<1x32xf32>
    %21 = arith.addf %18, %20 : vector<1x32xf32>
    %c0_14 = arith.constant 0 : index
    %c0_15 = arith.constant 0 : index
    %22 = vector.load %arg7[%c0_14, %c0_15] : memref<1x32xf32, #tpu.memory_space<vmem>>, vector<1x32xf32>
    tpu.vector_store %arg7[%c0_14, %c0_15], %21 {strides = array<i32>} : memref<1x32xf32, #tpu.memory_space<vmem>>, vector<1x32xf32>,
    %c0_16 = arith.constant 0 : index
    %c0_17 = arith.constant 0 : index
    %23 = vector.load %arg8[%c0_16, %c0_17] : memref<1x32xf32, #tpu.memory_space<vmem>>, vector<1x32xf32>
    %24 = arith.mulf %15, %15 : vector<32x32xf32>
    %cst_18 = arith.constant dense<0.000000e+00> : vector<32xf32>
    %25 = vector.multi_reduction <add>, %24, %cst_18 [0] : vector<32x32xf32> to vector<32xf32>
    %26 = vector.shape_cast %25 : vector<32xf32> to vector<1x32xf32>
    %27 = arith.addf %23, %26 : vector<1x32xf32>
    %c0_19 = arith.constant 0 : index
    %c0_20 = arith.constant 0 : index
    %28 = vector.load %arg8[%c0_19, %c0_20] : memref<1x32xf32, #tpu.memory_space<vmem>>, vector<1x32xf32>
    tpu.vector_store %arg8[%c0_19, %c0_20], %27 {strides = array<i32>} : memref<1x32xf32, #tpu.memory_space<vmem>>, vector<1x32xf32>,
    return
  }
  func.func @transform_0(%arg0: i32, %arg1: i32) -> (i32, i32) {
    %c0_i32 = arith.constant 0 : i32
    %c0_i32_0 = arith.constant 0 : i32
    return %arg1, %c0_i32 : i32, i32
  }
  func.func @transform_1(%arg0: i32, %arg1: i32) -> (i32, i32) {
    %c0_i32 = arith.constant 0 : i32
    %c0_i32_0 = arith.constant 0 : i32
    %c0_i32_1 = arith.constant 0 : i32
    return %c0_i32, %c0_i32_0 : i32, i32
  }
  func.func @transform_2(%arg0: i32, %arg1: i32) -> (i32, i32) {
    %c0_i32 = arith.constant 0 : i32
    %c0_i32_0 = arith.constant 0 : i32
    %c0_i32_1 = arith.constant 0 : i32
    return %c0_i32, %c0_i32_0 : i32, i32
  }
  func.func @transform_3(%arg0: i32, %arg1: i32) -> (i32, i32) {
    %c0_i32 = arith.constant 0 : i32
    %c0_i32_0 = arith.constant 0 : i32
    return %c0_i32, %arg0 : i32, i32
  }
  func.func @transform_4(%arg0: i32, %arg1: i32) -> (i32, i32) {
    %c0_i32 = arith.constant 0 : i32
    return %arg1, %arg0 : i32, i32
  }
  func.func @transform_5(%arg0: i32, %arg1: i32) -> (i32, i32) {
    %c0_i32 = arith.constant 0 : i32
    %c0_i32_0 = arith.constant 0 : i32
    return %c0_i32, %arg0 : i32, i32
  }
  func.func @transform_6(%arg0: i32, %arg1: i32) -> (i32, i32) {
    %c0_i32 = arith.constant 0 : i32
    %c0_i32_0 = arith.constant 0 : i32
    return %c0_i32, %arg0 : i32, i32
  }
}

module attributes {stable_mosaic.version = 11 : i64} {
  func.func @_bn_stats_kernel(%arg0: i32, %arg1: memref<32x32xbf16, #tpu.memory_space<vmem>>, %arg2: memref<1x32xf32, #tpu.memory_space<vmem>>, %arg3: memref<1x32xf32, #tpu.memory_space<vmem>>) attributes {dimension_semantics = [#tpu.dimension_semantics<arbitrary>], iteration_bounds = array<i64: 1>, scalar_prefetch = 0 : i64, scratch_operands = 0 : i64, tpu.core_type = #tpu.core_type<tc>, window_params = [{transform_indices = @transform_0, window_bounds = array<i64: 32, 32>}, {pipeline_mode = #tpu.pipeline_mode<synchronous>, transform_indices = @transform_1, window_bounds = array<i64: 1, 32>}, {pipeline_mode = #tpu.pipeline_mode<synchronous>, transform_indices = @transform_2, window_bounds = array<i64: 1, 32>}]} {
    %c0_i32 = arith.constant 0 : i32
    %0 = arith.cmpi eq, %arg0, %c0_i32 : i32
    %1 = arith.extui %0 : i1 to i32
    %c0_i32_0 = arith.constant 0 : i32
    %2 = arith.cmpi ne, %1, %c0_i32_0 : i32
    scf.if %2 {
      %cst_11 = arith.constant 0.000000e+00 : f32
      %16 = vector.broadcast %cst_11 : f32 to vector<1x32xf32>
      %c0_12 = arith.constant 0 : index
      %c0_13 = arith.constant 0 : index
      %17 = vector.load %arg2[%c0_12, %c0_13] : memref<1x32xf32, #tpu.memory_space<vmem>>, vector<1x32xf32>
      tpu.vector_store %arg2[%c0_12, %c0_13], %16 {strides = array<i32>} : memref<1x32xf32, #tpu.memory_space<vmem>>, vector<1x32xf32>,
      %cst_14 = arith.constant 0.000000e+00 : f32
      %18 = vector.broadcast %cst_14 : f32 to vector<1x32xf32>
      %c0_15 = arith.constant 0 : index
      %c0_16 = arith.constant 0 : index
      %19 = vector.load %arg3[%c0_15, %c0_16] : memref<1x32xf32, #tpu.memory_space<vmem>>, vector<1x32xf32>
      tpu.vector_store %arg3[%c0_15, %c0_16], %18 {strides = array<i32>} : memref<1x32xf32, #tpu.memory_space<vmem>>, vector<1x32xf32>,
    } else {
    }
    %c0 = arith.constant 0 : index
    %c0_1 = arith.constant 0 : index
    %3 = vector.load %arg1[%c0, %c0_1] : memref<32x32xbf16, #tpu.memory_space<vmem>>, vector<32x32xbf16>
    %4 = arith.extf %3 : vector<32x32xbf16> to vector<32x32xf32>
    %c0_2 = arith.constant 0 : index
    %c0_3 = arith.constant 0 : index
    %5 = vector.load %arg2[%c0_2, %c0_3] : memref<1x32xf32, #tpu.memory_space<vmem>>, vector<1x32xf32>
    %cst = arith.constant dense<0.000000e+00> : vector<32xf32>
    %6 = vector.multi_reduction <add>, %4, %cst [0] : vector<32x32xf32> to vector<32xf32>
    %7 = vector.shape_cast %6 : vector<32xf32> to vector<1x32xf32>
    %8 = arith.addf %5, %7 : vector<1x32xf32>
    %c0_4 = arith.constant 0 : index
    %c0_5 = arith.constant 0 : index
    %9 = vector.load %arg2[%c0_4, %c0_5] : memref<1x32xf32, #tpu.memory_space<vmem>>, vector<1x32xf32>
    tpu.vector_store %arg2[%c0_4, %c0_5], %8 {strides = array<i32>} : memref<1x32xf32, #tpu.memory_space<vmem>>, vector<1x32xf32>,
    %c0_6 = arith.constant 0 : index
    %c0_7 = arith.constant 0 : index
    %10 = vector.load %arg3[%c0_6, %c0_7] : memref<1x32xf32, #tpu.memory_space<vmem>>, vector<1x32xf32>
    %11 = arith.mulf %4, %4 : vector<32x32xf32>
    %cst_8 = arith.constant dense<0.000000e+00> : vector<32xf32>
    %12 = vector.multi_reduction <add>, %11, %cst_8 [0] : vector<32x32xf32> to vector<32xf32>
    %13 = vector.shape_cast %12 : vector<32xf32> to vector<1x32xf32>
    %14 = arith.addf %10, %13 : vector<1x32xf32>
    %c0_9 = arith.constant 0 : index
    %c0_10 = arith.constant 0 : index
    %15 = vector.load %arg3[%c0_9, %c0_10] : memref<1x32xf32, #tpu.memory_space<vmem>>, vector<1x32xf32>
    tpu.vector_store %arg3[%c0_9, %c0_10], %14 {strides = array<i32>} : memref<1x32xf32, #tpu.memory_space<vmem>>, vector<1x32xf32>,
    return
  }
  func.func @transform_0(%arg0: i32) -> (i32, i32) {
    %c0_i32 = arith.constant 0 : i32
    %c0_i32_0 = arith.constant 0 : i32
    return %arg0, %c0_i32 : i32, i32
  }
  func.func @transform_1(%arg0: i32) -> (i32, i32) {
    %c0_i32 = arith.constant 0 : i32
    %c0_i32_0 = arith.constant 0 : i32
    %c0_i32_1 = arith.constant 0 : i32
    return %c0_i32, %c0_i32_0 : i32, i32
  }
  func.func @transform_2(%arg0: i32) -> (i32, i32) {
    %c0_i32 = arith.constant 0 : i32
    %c0_i32_0 = arith.constant 0 : i32
    %c0_i32_1 = arith.constant 0 : i32
    return %c0_i32, %c0_i32_0 : i32, i32
  }
}

module attributes {stable_mosaic.version = 11 : i64} {
  func.func @_mm_bn_stats_kernel(%arg0: i32, %arg1: i32, %arg2: memref<32x32xbf16, #tpu.memory_space<vmem>>, %arg3: memref<1x32xf32, #tpu.memory_space<vmem>>, %arg4: memref<1x32xf32, #tpu.memory_space<vmem>>, %arg5: memref<32x32xbf16, #tpu.memory_space<vmem>>, %arg6: memref<32x32xbf16, #tpu.memory_space<vmem>>, %arg7: memref<1x32xf32, #tpu.memory_space<vmem>>, %arg8: memref<1x32xf32, #tpu.memory_space<vmem>>) attributes {dimension_semantics = [#tpu.dimension_semantics<parallel>, #tpu.dimension_semantics<arbitrary>], iteration_bounds = array<i64: 1, 1>, scalar_prefetch = 0 : i64, scratch_operands = 0 : i64, tpu.core_type = #tpu.core_type<tc>, window_params = [{transform_indices = @transform_0, window_bounds = array<i64: 32, 32>}, {pipeline_mode = #tpu.pipeline_mode<synchronous>, transform_indices = @transform_1, window_bounds = array<i64: 1, 32>}, {pipeline_mode = #tpu.pipeline_mode<synchronous>, transform_indices = @transform_2, window_bounds = array<i64: 1, 32>}, {transform_indices = @transform_3, window_bounds = array<i64: 32, 32>}, {transform_indices = @transform_4, window_bounds = array<i64: 32, 32>}, {transform_indices = @transform_5, window_bounds = array<i64: 1, 32>}, {transform_indices = @transform_6, window_bounds = array<i64: 1, 32>}]} {
    %c0_i32 = arith.constant 0 : i32
    %0 = arith.cmpi eq, %arg1, %c0_i32 : i32
    %1 = arith.extui %0 : i1 to i32
    %c0_i32_0 = arith.constant 0 : i32
    %2 = arith.cmpi ne, %1, %c0_i32_0 : i32
    scf.if %2 {
      %cst_21 = arith.constant 0.000000e+00 : f32
      %29 = vector.broadcast %cst_21 : f32 to vector<1x32xf32>
      %c0_22 = arith.constant 0 : index
      %c0_23 = arith.constant 0 : index
      %30 = vector.load %arg7[%c0_22, %c0_23] : memref<1x32xf32, #tpu.memory_space<vmem>>, vector<1x32xf32>
      tpu.vector_store %arg7[%c0_22, %c0_23], %29 {strides = array<i32>} : memref<1x32xf32, #tpu.memory_space<vmem>>, vector<1x32xf32>,
      %cst_24 = arith.constant 0.000000e+00 : f32
      %31 = vector.broadcast %cst_24 : f32 to vector<1x32xf32>
      %c0_25 = arith.constant 0 : index
      %c0_26 = arith.constant 0 : index
      %32 = vector.load %arg8[%c0_25, %c0_26] : memref<1x32xf32, #tpu.memory_space<vmem>>, vector<1x32xf32>
      tpu.vector_store %arg8[%c0_25, %c0_26], %31 {strides = array<i32>} : memref<1x32xf32, #tpu.memory_space<vmem>>, vector<1x32xf32>,
    } else {
    }
    %c0 = arith.constant 0 : index
    %c0_1 = arith.constant 0 : index
    %3 = vector.load %arg2[%c0, %c0_1] : memref<32x32xbf16, #tpu.memory_space<vmem>>, vector<32x32xbf16>
    %4 = arith.extf %3 : vector<32x32xbf16> to vector<32x32xf32>
    %c0_2 = arith.constant 0 : index
    %c0_3 = arith.constant 0 : index
    %5 = vector.load %arg3[%c0_2, %c0_3] : memref<1x32xf32, #tpu.memory_space<vmem>>, vector<1x32xf32>
    %6 = vector.broadcast %5 : vector<1x32xf32> to vector<32x32xf32>
    %7 = arith.mulf %4, %6 : vector<32x32xf32>
    %c0_4 = arith.constant 0 : index
    %c0_5 = arith.constant 0 : index
    %8 = vector.load %arg4[%c0_4, %c0_5] : memref<1x32xf32, #tpu.memory_space<vmem>>, vector<1x32xf32>
    %9 = vector.broadcast %8 : vector<1x32xf32> to vector<32x32xf32>
    %10 = arith.addf %7, %9 : vector<32x32xf32>
    %cst = arith.constant 0.000000e+00 : f32
    %11 = vector.broadcast %cst : f32 to vector<32x32xf32>
    %12 = arith.maximumf %10, %11 : vector<32x32xf32>
    %13 = arith.truncf %12 : vector<32x32xf32> to vector<32x32xbf16>
    %c0_6 = arith.constant 0 : index
    %c0_7 = arith.constant 0 : index
    %14 = vector.load %arg5[%c0_6, %c0_7] : memref<32x32xbf16, #tpu.memory_space<vmem>>, vector<32x32xbf16>
    %cst_8 = arith.constant dense<0.000000e+00> : vector<32x32xf32>
    %15 = tpu.matmul %13, %14, %cst_8 {dimension_numbers = #tpu.dot_dimension_numbers<[1], [0], [0], [1], [0, 0, 1, 1], [], []>} : vector<32x32xbf16>, vector<32x32xbf16>, vector<32x32xf32> -> vector<32x32xf32>
    %16 = arith.truncf %15 : vector<32x32xf32> to vector<32x32xbf16>
    %c0_9 = arith.constant 0 : index
    %c0_10 = arith.constant 0 : index
    %17 = vector.load %arg6[%c0_9, %c0_10] : memref<32x32xbf16, #tpu.memory_space<vmem>>, vector<32x32xbf16>
    tpu.vector_store %arg6[%c0_9, %c0_10], %16 {strides = array<i32>} : memref<32x32xbf16, #tpu.memory_space<vmem>>, vector<32x32xbf16>,
    %c0_11 = arith.constant 0 : index
    %c0_12 = arith.constant 0 : index
    %18 = vector.load %arg7[%c0_11, %c0_12] : memref<1x32xf32, #tpu.memory_space<vmem>>, vector<1x32xf32>
    %cst_13 = arith.constant dense<0.000000e+00> : vector<32xf32>
    %19 = vector.multi_reduction <add>, %15, %cst_13 [0] : vector<32x32xf32> to vector<32xf32>
    %20 = vector.shape_cast %19 : vector<32xf32> to vector<1x32xf32>
    %21 = arith.addf %18, %20 : vector<1x32xf32>
    %c0_14 = arith.constant 0 : index
    %c0_15 = arith.constant 0 : index
    %22 = vector.load %arg7[%c0_14, %c0_15] : memref<1x32xf32, #tpu.memory_space<vmem>>, vector<1x32xf32>
    tpu.vector_store %arg7[%c0_14, %c0_15], %21 {strides = array<i32>} : memref<1x32xf32, #tpu.memory_space<vmem>>, vector<1x32xf32>,
    %c0_16 = arith.constant 0 : index
    %c0_17 = arith.constant 0 : index
    %23 = vector.load %arg8[%c0_16, %c0_17] : memref<1x32xf32, #tpu.memory_space<vmem>>, vector<1x32xf32>
    %24 = arith.mulf %15, %15 : vector<32x32xf32>
    %cst_18 = arith.constant dense<0.000000e+00> : vector<32xf32>
    %25 = vector.multi_reduction <add>, %24, %cst_18 [0] : vector<32x32xf32> to vector<32xf32>
    %26 = vector.shape_cast %25 : vector<32xf32> to vector<1x32xf32>
    %27 = arith.addf %23, %26 : vector<1x32xf32>
    %c0_19 = arith.constant 0 : index
    %c0_20 = arith.constant 0 : index
    %28 = vector.load %arg8[%c0_19, %c0_20] : memref<1x32xf32, #tpu.memory_space<vmem>>, vector<1x32xf32>
    tpu.vector_store %arg8[%c0_19, %c0_20], %27 {strides = array<i32>} : memref<1x32xf32, #tpu.memory_space<vmem>>, vector<1x32xf32>,
    return
  }
  func.func @transform_0(%arg0: i32, %arg1: i32) -> (i32, i32) {
    %c0_i32 = arith.constant 0 : i32
    %c0_i32_0 = arith.constant 0 : i32
    return %arg1, %c0_i32 : i32, i32
  }
  func.func @transform_1(%arg0: i32, %arg1: i32) -> (i32, i32) {
    %c0_i32 = arith.constant 0 : i32
    %c0_i32_0 = arith.constant 0 : i32
    %c0_i32_1 = arith.constant 0 : i32
    return %c0_i32, %c0_i32_0 : i32, i32
  }
  func.func @transform_2(%arg0: i32, %arg1: i32) -> (i32, i32) {
    %c0_i32 = arith.constant 0 : i32
    %c0_i32_0 = arith.constant 0 : i32
    %c0_i32_1 = arith.constant 0 : i32
    return %c0_i32, %c0_i32_0 : i32, i32
  }
  func.func @transform_3(%arg0: i32, %arg1: i32) -> (i32, i32) {
    %c0_i32 = arith.constant 0 : i32
    %c0_i32_0 = arith.constant 0 : i32
    return %c0_i32, %arg0 : i32, i32
  }
  func.func @transform_4(%arg0: i32, %arg1: i32) -> (i32, i32) {
    %c0_i32 = arith.constant 0 : i32
    return %arg1, %arg0 : i32, i32
  }
  func.func @transform_5(%arg0: i32, %arg1: i32) -> (i32, i32) {
    %c0_i32 = arith.constant 0 : i32
    %c0_i32_0 = arith.constant 0 : i32
    return %c0_i32, %arg0 : i32, i32
  }
  func.func @transform_6(%arg0: i32, %arg1: i32) -> (i32, i32) {
    %c0_i32 = arith.constant 0 : i32
    %c0_i32_0 = arith.constant 0 : i32
    return %c0_i32, %arg0 : i32, i32
  }
}

module attributes {stable_mosaic.version = 11 : i64} {
  func.func @_bn_stats_kernel(%arg0: i32, %arg1: memref<32x40xbf16, #tpu.memory_space<vmem>>, %arg2: memref<1x40xf32, #tpu.memory_space<vmem>>, %arg3: memref<1x40xf32, #tpu.memory_space<vmem>>) attributes {dimension_semantics = [#tpu.dimension_semantics<arbitrary>], iteration_bounds = array<i64: 1>, scalar_prefetch = 0 : i64, scratch_operands = 0 : i64, tpu.core_type = #tpu.core_type<tc>, window_params = [{transform_indices = @transform_0, window_bounds = array<i64: 32, 40>}, {pipeline_mode = #tpu.pipeline_mode<synchronous>, transform_indices = @transform_1, window_bounds = array<i64: 1, 40>}, {pipeline_mode = #tpu.pipeline_mode<synchronous>, transform_indices = @transform_2, window_bounds = array<i64: 1, 40>}]} {
    %c0_i32 = arith.constant 0 : i32
    %0 = arith.cmpi eq, %arg0, %c0_i32 : i32
    %1 = arith.extui %0 : i1 to i32
    %c0_i32_0 = arith.constant 0 : i32
    %2 = arith.cmpi ne, %1, %c0_i32_0 : i32
    scf.if %2 {
      %cst_11 = arith.constant 0.000000e+00 : f32
      %16 = vector.broadcast %cst_11 : f32 to vector<1x40xf32>
      %c0_12 = arith.constant 0 : index
      %c0_13 = arith.constant 0 : index
      %17 = vector.load %arg2[%c0_12, %c0_13] : memref<1x40xf32, #tpu.memory_space<vmem>>, vector<1x40xf32>
      tpu.vector_store %arg2[%c0_12, %c0_13], %16 {strides = array<i32>} : memref<1x40xf32, #tpu.memory_space<vmem>>, vector<1x40xf32>,
      %cst_14 = arith.constant 0.000000e+00 : f32
      %18 = vector.broadcast %cst_14 : f32 to vector<1x40xf32>
      %c0_15 = arith.constant 0 : index
      %c0_16 = arith.constant 0 : index
      %19 = vector.load %arg3[%c0_15, %c0_16] : memref<1x40xf32, #tpu.memory_space<vmem>>, vector<1x40xf32>
      tpu.vector_store %arg3[%c0_15, %c0_16], %18 {strides = array<i32>} : memref<1x40xf32, #tpu.memory_space<vmem>>, vector<1x40xf32>,
    } else {
    }
    %c0 = arith.constant 0 : index
    %c0_1 = arith.constant 0 : index
    %3 = vector.load %arg1[%c0, %c0_1] : memref<32x40xbf16, #tpu.memory_space<vmem>>, vector<32x40xbf16>
    %4 = arith.extf %3 : vector<32x40xbf16> to vector<32x40xf32>
    %c0_2 = arith.constant 0 : index
    %c0_3 = arith.constant 0 : index
    %5 = vector.load %arg2[%c0_2, %c0_3] : memref<1x40xf32, #tpu.memory_space<vmem>>, vector<1x40xf32>
    %cst = arith.constant dense<0.000000e+00> : vector<40xf32>
    %6 = vector.multi_reduction <add>, %4, %cst [0] : vector<32x40xf32> to vector<40xf32>
    %7 = vector.shape_cast %6 : vector<40xf32> to vector<1x40xf32>
    %8 = arith.addf %5, %7 : vector<1x40xf32>
    %c0_4 = arith.constant 0 : index
    %c0_5 = arith.constant 0 : index
    %9 = vector.load %arg2[%c0_4, %c0_5] : memref<1x40xf32, #tpu.memory_space<vmem>>, vector<1x40xf32>
    tpu.vector_store %arg2[%c0_4, %c0_5], %8 {strides = array<i32>} : memref<1x40xf32, #tpu.memory_space<vmem>>, vector<1x40xf32>,
    %c0_6 = arith.constant 0 : index
    %c0_7 = arith.constant 0 : index
    %10 = vector.load %arg3[%c0_6, %c0_7] : memref<1x40xf32, #tpu.memory_space<vmem>>, vector<1x40xf32>
    %11 = arith.mulf %4, %4 : vector<32x40xf32>
    %cst_8 = arith.constant dense<0.000000e+00> : vector<40xf32>
    %12 = vector.multi_reduction <add>, %11, %cst_8 [0] : vector<32x40xf32> to vector<40xf32>
    %13 = vector.shape_cast %12 : vector<40xf32> to vector<1x40xf32>
    %14 = arith.addf %10, %13 : vector<1x40xf32>
    %c0_9 = arith.constant 0 : index
    %c0_10 = arith.constant 0 : index
    %15 = vector.load %arg3[%c0_9, %c0_10] : memref<1x40xf32, #tpu.memory_space<vmem>>, vector<1x40xf32>
    tpu.vector_store %arg3[%c0_9, %c0_10], %14 {strides = array<i32>} : memref<1x40xf32, #tpu.memory_space<vmem>>, vector<1x40xf32>,
    return
  }
  func.func @transform_0(%arg0: i32) -> (i32, i32) {
    %c0_i32 = arith.constant 0 : i32
    %c0_i32_0 = arith.constant 0 : i32
    return %arg0, %c0_i32 : i32, i32
  }
  func.func @transform_1(%arg0: i32) -> (i32, i32) {
    %c0_i32 = arith.constant 0 : i32
    %c0_i32_0 = arith.constant 0 : i32
    %c0_i32_1 = arith.constant 0 : i32
    return %c0_i32, %c0_i32_0 : i32, i32
  }
  func.func @transform_2(%arg0: i32) -> (i32, i32) {
    %c0_i32 = arith.constant 0 : i32
    %c0_i32_0 = arith.constant 0 : i32
    %c0_i32_1 = arith.constant 0 : i32
    return %c0_i32, %c0_i32_0 : i32, i32
  }
}

module attributes {stable_mosaic.version = 11 : i64} {
  func.func @_head_kernel(%arg0: i32, %arg1: memref<2x16x40xbf16, #tpu.memory_space<vmem>>, %arg2: memref<1x40xf32, #tpu.memory_space<vmem>>, %arg3: memref<1x40xf32, #tpu.memory_space<vmem>>, %arg4: memref<40x6xbf16, #tpu.memory_space<vmem>>, %arg5: memref<1x6xf32, #tpu.memory_space<vmem>>, %arg6: memref<2x6xf32, #tpu.memory_space<vmem>>) attributes {dimension_semantics = [#tpu.dimension_semantics<arbitrary>], iteration_bounds = array<i64: 1>, scalar_prefetch = 0 : i64, scratch_operands = 0 : i64, tpu.core_type = #tpu.core_type<tc>, window_params = [{pipeline_mode = #tpu.pipeline_mode<synchronous>, transform_indices = @transform_0, window_bounds = array<i64: 2, 16, 40>}, {pipeline_mode = #tpu.pipeline_mode<synchronous>, transform_indices = @transform_1, window_bounds = array<i64: 1, 40>}, {pipeline_mode = #tpu.pipeline_mode<synchronous>, transform_indices = @transform_2, window_bounds = array<i64: 1, 40>}, {pipeline_mode = #tpu.pipeline_mode<synchronous>, transform_indices = @transform_3, window_bounds = array<i64: 40, 6>}, {pipeline_mode = #tpu.pipeline_mode<synchronous>, transform_indices = @transform_4, window_bounds = array<i64: 1, 6>}, {pipeline_mode = #tpu.pipeline_mode<synchronous>, transform_indices = @transform_5, window_bounds = array<i64: 2, 6>}]} {
    %c0 = arith.constant 0 : index
    %c0_0 = arith.constant 0 : index
    %c0_1 = arith.constant 0 : index
    %0 = vector.load %arg1[%c0, %c0_0, %c0_1] : memref<2x16x40xbf16, #tpu.memory_space<vmem>>, vector<2x16x40xbf16>
    %1 = arith.extf %0 : vector<2x16x40xbf16> to vector<2x16x40xf32>
    %c0_2 = arith.constant 0 : index
    %c0_3 = arith.constant 0 : index
    %2 = vector.load %arg2[%c0_2, %c0_3] : memref<1x40xf32, #tpu.memory_space<vmem>>, vector<1x40xf32>
    %3 = vector.shape_cast %2 : vector<1x40xf32> to vector<1x1x40xf32>
    %4 = vector.broadcast %3 : vector<1x1x40xf32> to vector<2x16x40xf32>
    %5 = arith.mulf %1, %4 : vector<2x16x40xf32>
    %c0_4 = arith.constant 0 : index
    %c0_5 = arith.constant 0 : index
    %6 = vector.load %arg3[%c0_4, %c0_5] : memref<1x40xf32, #tpu.memory_space<vmem>>, vector<1x40xf32>
    %7 = vector.shape_cast %6 : vector<1x40xf32> to vector<1x1x40xf32>
    %8 = vector.broadcast %7 : vector<1x1x40xf32> to vector<2x16x40xf32>
    %9 = arith.addf %5, %8 : vector<2x16x40xf32>
    %cst = arith.constant 0.000000e+00 : f32
    %10 = vector.broadcast %cst : f32 to vector<2x16x40xf32>
    %11 = arith.maximumf %9, %10 : vector<2x16x40xf32>
    %cst_6 = arith.constant dense<0.000000e+00> : vector<2x40xf32>
    %12 = vector.multi_reduction <add>, %11, %cst_6 [1] : vector<2x16x40xf32> to vector<2x40xf32>
    %cst_7 = arith.constant 1.600000e+01 : f32
    %13 = vector.broadcast %cst_7 : f32 to vector<2x40xf32>
    %14 = arith.divf %12, %13 : vector<2x40xf32>
    %15 = arith.truncf %14 : vector<2x40xf32> to vector<2x40xbf16>
    %c0_8 = arith.constant 0 : index
    %c0_9 = arith.constant 0 : index
    %16 = vector.load %arg4[%c0_8, %c0_9] : memref<40x6xbf16, #tpu.memory_space<vmem>>, vector<40x6xbf16>
    %cst_10 = arith.constant dense<0.000000e+00> : vector<2x6xf32>
    %17 = tpu.matmul %15, %16, %cst_10 {dimension_numbers = #tpu.dot_dimension_numbers<[1], [0], [0], [1], [0, 0, 1, 1], [], []>} : vector<2x40xbf16>, vector<40x6xbf16>, vector<2x6xf32> -> vector<2x6xf32>
    %c0_11 = arith.constant 0 : index
    %c0_12 = arith.constant 0 : index
    %18 = vector.load %arg5[%c0_11, %c0_12] : memref<1x6xf32, #tpu.memory_space<vmem>>, vector<1x6xf32>
    %19 = vector.broadcast %18 : vector<1x6xf32> to vector<2x6xf32>
    %20 = arith.addf %17, %19 : vector<2x6xf32>
    %c0_13 = arith.constant 0 : index
    %c0_14 = arith.constant 0 : index
    %21 = vector.load %arg6[%c0_13, %c0_14] : memref<2x6xf32, #tpu.memory_space<vmem>>, vector<2x6xf32>
    tpu.vector_store %arg6[%c0_13, %c0_14], %20 {strides = array<i32>} : memref<2x6xf32, #tpu.memory_space<vmem>>, vector<2x6xf32>,
    return
  }
  func.func @transform_0(%arg0: i32) -> (i32, i32, i32) {
    %c0_i32 = arith.constant 0 : i32
    %c0_i32_0 = arith.constant 0 : i32
    %c0_i32_1 = arith.constant 0 : i32
    %c0_i32_2 = arith.constant 0 : i32
    return %c0_i32, %c0_i32_0, %c0_i32_1 : i32, i32, i32
  }
  func.func @transform_1(%arg0: i32) -> (i32, i32) {
    %c0_i32 = arith.constant 0 : i32
    %c0_i32_0 = arith.constant 0 : i32
    %c0_i32_1 = arith.constant 0 : i32
    return %c0_i32, %c0_i32_0 : i32, i32
  }
  func.func @transform_2(%arg0: i32) -> (i32, i32) {
    %c0_i32 = arith.constant 0 : i32
    %c0_i32_0 = arith.constant 0 : i32
    %c0_i32_1 = arith.constant 0 : i32
    return %c0_i32, %c0_i32_0 : i32, i32
  }
  func.func @transform_3(%arg0: i32) -> (i32, i32) {
    %c0_i32 = arith.constant 0 : i32
    %c0_i32_0 = arith.constant 0 : i32
    %c0_i32_1 = arith.constant 0 : i32
    return %c0_i32, %c0_i32_0 : i32, i32
  }
  func.func @transform_4(%arg0: i32) -> (i32, i32) {
    %c0_i32 = arith.constant 0 : i32
    %c0_i32_0 = arith.constant 0 : i32
    %c0_i32_1 = arith.constant 0 : i32
    return %c0_i32, %c0_i32_0 : i32, i32
  }
  func.func @transform_5(%arg0: i32) -> (i32, i32) {
    %c0_i32 = arith.constant 0 : i32
    %c0_i32_0 = arith.constant 0 : i32
    %c0_i32_1 = arith.constant 0 : i32
    return %c0_i32, %c0_i32_0 : i32, i32
  }
}

</mosaic_0001>

<bundles_post_ra>
// kernel: _lambda_.29
= control target key start
LH: loop header
LB: loop body
LE: loop exit
PB: predicated region body
PF: predicated region fallthrough
CT: control target
= control target key end

     0   :  { %vm604_vm0 = vcmask 125952   ;;  %s1472_s0 = inlined_call_operand.vmem [shape: bf16[512,16], index: 0, kind: input, shape index: {}]   ;;  %s1473_s1 = inlined_call_operand.vmem [shape: f32[1,16], index: 1, kind: input, shape index: {}]   ;;  %s1474_s2 = inlined_call_operand.vmem [shape: f32[1,16], index: 2, kind: input, shape index: {}]   ;;  %s1475_s3 = inlined_call_operand.vmem [shape: bf16[512,16], index: 3, kind: output, shape index: {}]  }
   0x1   :  { %v804_v0 = vld [vmem:[%s1472_s0] sm:$0xff]   ;;  %v931_v4 = vld [vmem:[%s1472_s0 + $0x8] sm:$0xff]   ;;  %v932_v5 = vld [vmem:[%s1472_s0 + $0x10] sm:$0xff]  }
   0x2   :  { %v988_v1 = vld [vmem:[%s1473_s1] ss:$0 sm:$0xff]  ;;  %v805_v2 = vunpack.c.l.bf16 %v804_v0  ;;  %v806_v3 = vunpack.c.h.bf16 %v804_v0  ;;  %v933_v6 = vld [vmem:[%s1472_s0 + $0x18] sm:$0xff]   ;;  %v809_v8 = vunpack.c.l.bf16 %v931_v4  ;;  %v810_v9 = vunpack.c.h.bf16 %v931_v4  ;;  %v935_v41 = vld [vmem:[%s1472_s0 + $0x28] sm:$0xff]  }
   0x3   :  { %v1002_v7 = vld [vmem:[%s1474_s2] ss:$0 sm:$0xff]  ;;  %v813_v10 = vunpack.c.l.bf16 %v932_v5  ;;  %v814_v11 = vunpack.c.h.bf16 %v932_v5  ;;  %v817_v14 = vunpack.c.l.bf16 %v933_v6  ;;  %v818_v15 = vunpack.c.h.bf16 %v933_v6  ;;  %v936_v42 = vld [vmem:[%s1472_s0 + $0x30] sm:$0xff]   ;;  %v937_v47 = vld [vmem:[%s1472_s0 + $0x38] sm:$0xff]  }
   0x4   :  { %v149_v12 = vmul.f32 %v805_v2, %v988_v1  ;;  %v150_v13 = vmul.f32 %v806_v3, %v988_v1  ;;  %v151_v16 = vmul.f32 %v809_v8, %v988_v1  ;;  %v152_v17 = vmul.f32 %v810_v9, %v988_v1  ;;  %v934_v36 = vld [vmem:[%s1472_s0 + $0x20] sm:$0xff]  }
   0x5   :  { %v153_v18 = vmul.f32 %v813_v10, %v988_v1  ;;  %v154_v19 = vmul.f32 %v814_v11, %v988_v1  ;;  %v155_v22 = vmul.f32 %v817_v14, %v988_v1  ;;  %v156_v23 = vmul.f32 %v818_v15, %v988_v1 }
   0x6   :  { %v220_v20 = vadd.f32 %v1002_v7, %v149_v12  ;;  %v221_v21 = vadd.f32 %v1002_v7, %v150_v13  ;;  %v222_v24 = vadd.f32 %v1002_v7, %v151_v16  ;;  %v223_v25 = vadd.f32 %v1002_v7, %v152_v17 }
   0x7   :  { %v224_v26 = vadd.f32 %v1002_v7, %v153_v18  ;;  %v225_v27 = vadd.f32 %v1002_v7, %v154_v19  ;;  %v226_v30 = vadd.f32 %v1002_v7, %v155_v22  ;;  %v227_v31 = vadd.f32 %v1002_v7, %v156_v23  ;;  %v938_v18 = vld [vmem:[%s1472_s0 + $0x40] sm:$0xff]   ;;  %v939_v23 = vld [vmem:[%s1472_s0 + $0x48] sm:$0xff]  }
   0x8   :  { %v284_v28 = vmax.f32 %v220_v20, 0.0  ;;  %v285_v29 = vmax.f32 %v221_v21, 0.0  ;;  %v286_v32 = vmax.f32 %v222_v24, 0.0  ;;  %v287_v33 = vmax.f32 %v223_v25, 0.0  ;;  %v940_v24 = vld [vmem:[%s1472_s0 + $0x50] sm:$0xff]  }
   0x9   :  { %v288_v34 = vmax.f32 %v224_v26, 0.0  ;;  %v289_v35 = vmax.f32 %v225_v27, 0.0  ;;  %v290_v39 = vmax.f32 %v226_v30, 0.0  ;;  %v291_v40 = vmax.f32 %v227_v31, 0.0 }
   0xa   :  { %v739_v37 = vpack.c.bf16 %v284_v28, %v284_v28  ;;  %v740_v38 = vpack.c.bf16 %v285_v29, %v285_v29  ;;  %v741_v43 = vpack.c.bf16 %v286_v32, %v286_v32  ;;  %v742_v44 = vpack.c.bf16 %v287_v33, %v287_v33  ;;  %v941_v29 = vld [vmem:[%s1472_s0 + $0x58] sm:$0xff]  }
   0xb   :  { %v743_v45 = vpack.c.bf16 %v288_v34, %v288_v34  ;;  %v744_v46 = vpack.c.bf16 %v289_v35, %v289_v35  ;;  %v745_v48 = vpack.c.bf16 %v290_v39, %v290_v39  ;;  %v746_v49 = vpack.c.bf16 %v291_v40, %v291_v40 }
   0xc   :  { %605 = vst.msk [vmem:[%s1475_s3] sm:$0xf] %vm604_vm0, %v739_v37  ;;  %606 = vst.msk [vmem:[%s1475_s3 + $0x4] sm:$0xf] %vm604_vm0, %v740_v38  ;;  %v821_v50 = vunpack.c.l.bf16 %v934_v36  ;;  %v822_v51 = vunpack.c.h.bf16 %v934_v36  ;;  %v825_v52 = vunpack.c.l.bf16 %v935_v41  ;;  %v826_v53 = vunpack.c.h.bf16 %v935_v41 }
   0xd   :  { %607 = vst.msk [vmem:[%s1475_s3 + $0x8] sm:$0xf] %vm604_vm0, %v741_v43  ;;  %608 = vst.msk [vmem:[%s1475_s3 + $0xc] sm:$0xf] %vm604_vm0, %v742_v44  ;;  %v829_v54 = vunpack.c.l.bf16 %v936_v42  ;;  %v830_v55 = vunpack.c.h.bf16 %v936_v42  ;;  %v833_v58 = vunpack.c.l.bf16 %v937_v47  ;;  %v834_v59 = vunpack.c.h.bf16 %v937_v47 }
   0xe   :  { %609 = vst.msk [vmem:[%s1475_s3 + $0x10] sm:$0xf] %vm604_vm0, %v743_v45  ;;  %610 = vst.msk [vmem:[%s1475_s3 + $0x14] sm:$0xf] %vm604_vm0, %v744_v46  ;;  %v157_v56 = vmul.f32 %v821_v50, %v988_v1  ;;  %v158_v57 = vmul.f32 %v822_v51, %v988_v1  ;;  %v159_v60 = vmul.f32 %v825_v52, %v988_v1  ;;  %v837_v32 = vunpack.c.l.bf16 %v938_v18 }
   0xf   :  { %611 = vst.msk [vmem:[%s1475_s3 + $0x18] sm:$0xf] %vm604_vm0, %v745_v48  ;;  %612 = vst.msk [vmem:[%s1475_s3 + $0x1c] sm:$0xf] %vm604_vm0, %v746_v49  ;;  %v160_v61 = vmul.f32 %v826_v53, %v988_v1  ;;  %v161_v62 = vmul.f32 %v829_v54, %v988_v1  ;;  %v162_v63 = vmul.f32 %v830_v55, %v988_v1  ;;  %v838_v33 = vunpack.c.h.bf16 %v938_v18 }
  0x10   :  { %v228_v0 = vadd.f32 %v1002_v7, %v157_v56  ;;  %v229_v2 = vadd.f32 %v1002_v7, %v158_v57  ;;  %v163_v3 = vmul.f32 %v833_v58, %v988_v1  ;;  %v164_v4 = vmul.f32 %v834_v59, %v988_v1 }
  0x11   :  { %v230_v5 = vadd.f32 %v1002_v7, %v159_v60  ;;  %v231_v6 = vadd.f32 %v1002_v7, %v160_v61  ;;  %v232_v8 = vadd.f32 %v1002_v7, %v161_v62  ;;  %v233_v9 = vadd.f32 %v1002_v7, %v162_v63  ;;  %v942_v62 = vld [vmem:[%s1472_s0 + $0x60] sm:$0xff]  }
  0x12   :  { %v292_v10 = vmax.f32 %v228_v0, 0.0  ;;  %v293_v11 = vmax.f32 %v229_v2, 0.0  ;;  %v234_v12 = vadd.f32 %v1002_v7, %v163_v3  ;;  %v235_v13 = vadd.f32 %v1002_v7, %v164_v4  ;;  %v943_v4 = vld [vmem:[%s1472_s0 + $0x68] sm:$0xff]  }
  0x13   :  { %v294_v14 = vmax.f32 %v230_v5, 0.0  ;;  %v295_v15 = vmax.f32 %v231_v6, 0.0  ;;  %v296_v16 = vmax.f32 %v232_v8, 0.0  ;;  %v297_v17 = vmax.f32 %v233_v9, 0.0  ;;  %v944_v5 = vld [vmem:[%s1472_s0 + $0x70] sm:$0xff]  }
  0x14   :  { %v747_v19 = vpack.c.bf16 %v292_v10, %v292_v10  ;;  %v748_v20 = vpack.c.bf16 %v293_v11, %v293_v11  ;;  %v298_v21 = vmax.f32 %v234_v12, 0.0  ;;  %v299_v22 = vmax.f32 %v235_v13, 0.0  ;;  %v945_v11 = vld [vmem:[%s1472_s0 + $0x78] sm:$0xff]  }
  0x15   :  { %v749_v25 = vpack.c.bf16 %v294_v14, %v294_v14  ;;  %v750_v26 = vpack.c.bf16 %v295_v15, %v295_v15  ;;  %v751_v27 = vpack.c.bf16 %v296_v16, %v296_v16  ;;  %v752_v28 = vpack.c.bf16 %v297_v17, %v297_v17 }
  0x16   :  { %613 = vst.msk [vmem:[%s1475_s3 + $0x20] sm:$0xf] %vm604_vm0, %v747_v19  ;;  %614 = vst.msk [vmem:[%s1475_s3 + $0x24] sm:$0xf] %vm604_vm0, %v748_v20  ;;  %v753_v30 = vpack.c.bf16 %v298_v21, %v298_v21  ;;  %v754_v31 = vpack.c.bf16 %v299_v22, %v299_v22  ;;  %v841_v34 = vunpack.c.l.bf16 %v939_v23  ;;  %v842_v35 = vunpack.c.h.bf16 %v939_v23 }
  0x17   :  { %615 = vst.msk [vmem:[%s1475_s3 + $0x28] sm:$0xf] %vm604_vm0, %v749_v25  ;;  %616 = vst.msk [vmem:[%s1475_s3 + $0x2c] sm:$0xf] %vm604_vm0, %v750_v26  ;;  %v845_v36 = vunpack.c.l.bf16 %v940_v24  ;;  %v846_v37 = vunpack.c.h.bf16 %v940_v24  ;;  %v165_v38 = vmul.f32 %v837_v32, %v988_v1  ;;  %v166_v39 = vmul.f32 %v838_v33, %v988_v1 }
  0x18   :  { %617 = vst.msk [vmem:[%s1475_s3 + $0x30] sm:$0xf] %vm604_vm0, %v751_v27  ;;  %618 = vst.msk [vmem:[%s1475_s3 + $0x34] sm:$0xf] %vm604_vm0, %v752_v28  ;;  %v849_v40 = vunpack.c.l.bf16 %v941_v29  ;;  %v850_v41 = vunpack.c.h.bf16 %v941_v29  ;;  %v167_v42 = vmul.f32 %v841_v34, %v988_v1  ;;  %v168_v43 = vmul.f32 %v842_v35, %v988_v1 }
  0x19   :  { %619 = vst.msk [vmem:[%s1475_s3 + $0x38] sm:$0xf] %vm604_vm0, %v753_v30  ;;  %620 = vst.msk [vmem:[%s1475_s3 + $0x3c] sm:$0xf] %vm604_vm0, %v754_v31  ;;  %v169_v44 = vmul.f32 %v845_v36, %v988_v1  ;;  %v170_v45 = vmul.f32 %v846_v37, %v988_v1  ;;  %v236_v46 = vadd.f32 %v1002_v7, %v165_v38  ;;  %v853_v14 = vunpack.c.l.bf16 %v942_v62 }
  0x1a   :  { %v237_v47 = vadd.f32 %v1002_v7, %v166_v39  ;;  %v171_v48 = vmul.f32 %v849_v40, %v988_v1  ;;  %v172_v49 = vmul.f32 %v850_v41, %v988_v1  ;;  %v238_v50 = vadd.f32 %v1002_v7, %v167_v42 }
  0x1b   :  { %v239_v51 = vadd.f32 %v1002_v7, %v168_v43  ;;  %v240_v52 = vadd.f32 %v1002_v7, %v169_v44  ;;  %v241_v53 = vadd.f32 %v1002_v7, %v170_v45  ;;  %v300_v54 = vmax.f32 %v236_v46, 0.0  ;;  %v946_v44 = vld [vmem:[%s1472_s0 + $0x80] sm:$0xff]  }
  0x1c   :  { %v301_v55 = vmax.f32 %v237_v47, 0.0  ;;  %v242_v56 = vadd.f32 %v1002_v7, %v171_v48  ;;  %v243_v57 = vadd.f32 %v1002_v7, %v172_v49  ;;  %v302_v58 = vmax.f32 %v238_v50, 0.0  ;;  %v947_v49 = vld [vmem:[%s1472_s0 + $0x88] sm:$0xff]   ;;  %v948_v50 = vld [vmem:[%s1472_s0 + $0x90] sm:$0xff]  }
  0x1d   :  { %v303_v59 = vmax.f32 %v239_v51, 0.0  ;;  %v304_v60 = vmax.f32 %v240_v52, 0.0  ;;  %v305_v61 = vmax.f32 %v241_v53, 0.0  ;;  %v755_v63 = vpack.c.bf16 %v300_v54, %v300_v54 }
  0x1e   :  { %v756_v0 = vpack.c.bf16 %v301_v55, %v301_v55  ;;  %v306_v2 = vmax.f32 %v242_v56, 0.0  ;;  %v307_v3 = vmax.f32 %v243_v57, 0.0  ;;  %v757_v6 = vpack.c.bf16 %v302_v58, %v302_v58  ;;  %v949_v55 = vld [vmem:[%s1472_s0 + $0x98] sm:$0xff]  }
  0x1f   :  { %v758_v8 = vpack.c.bf16 %v303_v59, %v303_v59  ;;  %v759_v9 = vpack.c.bf16 %v304_v60, %v304_v60  ;;  %v760_v10 = vpack.c.bf16 %v305_v61, %v305_v61  ;;  %621 = vst.msk [vmem:[%s1475_s3 + $0x40] sm:$0xf] %vm604_vm0, %v755_v63  ;;  %v854_v15 = vunpack.c.h.bf16 %v942_v62 }
  0x20   :  { %622 = vst.msk [vmem:[%s1475_s3 + $0x44] sm:$0xf] %vm604_vm0, %v756_v0  ;;  %v761_v12 = vpack.c.bf16 %v306_v2, %v306_v2  ;;  %v762_v13 = vpack.c.bf16 %v307_v3, %v307_v3  ;;  %623 = vst.msk [vmem:[%s1475_s3 + $0x48] sm:$0xf] %vm604_vm0, %v757_v6  ;;  %v857_v16 = vunpack.c.l.bf16 %v943_v4  ;;  %v858_v17 = vunpack.c.h.bf16 %v943_v4 }
  0x21   :  { %624 = vst.msk [vmem:[%s1475_s3 + $0x4c] sm:$0xf] %vm604_vm0, %v758_v8  ;;  %625 = vst.msk [vmem:[%s1475_s3 + $0x50] sm:$0xf] %vm604_vm0, %v759_v9  ;;  %v861_v18 = vunpack.c.l.bf16 %v944_v5  ;;  %v862_v19 = vunpack.c.h.bf16 %v944_v5  ;;  %v173_v20 = vmul.f32 %v853_v14, %v988_v1  ;;  %v174_v21 = vmul.f32 %v854_v15, %v988_v1 }
  0x22   :  { %626 = vst.msk [vmem:[%s1475_s3 + $0x54] sm:$0xf] %vm604_vm0, %v760_v10  ;;  %627 = vst.msk [vmem:[%s1475_s3 + $0x58] sm:$0xf] %vm604_vm0, %v761_v12  ;;  %v865_v22 = vunpack.c.l.bf16 %v945_v11  ;;  %v866_v23 = vunpack.c.h.bf16 %v945_v11  ;;  %v175_v24 = vmul.f32 %v857_v16, %v988_v1  ;;  %v176_v25 = vmul.f32 %v858_v17, %v988_v1 }
  0x23   :  { %628 = vst.msk [vmem:[%s1475_s3 + $0x5c] sm:$0xf] %vm604_vm0, %v762_v13  ;;  %v177_v26 = vmul.f32 %v861_v18, %v988_v1  ;;  %v178_v27 = vmul.f32 %v862_v19, %v988_v1  ;;  %v244_v28 = vadd.f32 %v1002_v7, %v173_v20  ;;  %v245_v29 = vadd.f32 %v1002_v7, %v174_v21 }
  0x24   :  { %v179_v30 = vmul.f32 %v865_v22, %v988_v1  ;;  %v180_v31 = vmul.f32 %v866_v23, %v988_v1  ;;  %v246_v32 = vadd.f32 %v1002_v7, %v175_v24  ;;  %v247_v33 = vadd.f32 %v1002_v7, %v176_v25 }
  0x25   :  { %v248_v34 = vadd.f32 %v1002_v7, %v177_v26  ;;  %v249_v35 = vadd.f32 %v1002_v7, %v178_v27  ;;  %v308_v36 = vmax.f32 %v244_v28, 0.0  ;;  %v309_v37 = vmax.f32 %v245_v29, 0.0  ;;  %v950_v26 = vld [vmem:[%s1472_s0 + $0xa0] sm:$0xff]  }
  0x26   :  { %v250_v38 = vadd.f32 %v1002_v7, %v179_v30  ;;  %v251_v39 = vadd.f32 %v1002_v7, %v180_v31  ;;  %v310_v40 = vmax.f32 %v246_v32, 0.0  ;;  %v311_v41 = vmax.f32 %v247_v33, 0.0  ;;  %v951_v31 = vld [vmem:[%s1472_s0 + $0xa8] sm:$0xff]   ;;  %v952_v32 = vld [vmem:[%s1472_s0 + $0xb0] sm:$0xff]  }
  0x27   :  { %v312_v42 = vmax.f32 %v248_v34, 0.0  ;;  %v313_v43 = vmax.f32 %v249_v35, 0.0  ;;  %v763_v45 = vpack.c.bf16 %v308_v36, %v308_v36  ;;  %v764_v46 = vpack.c.bf16 %v309_v37, %v309_v37  ;;  %v953_v37 = vld [vmem:[%s1472_s0 + $0xb8] sm:$0xff]  }
  0x28   :  { %v314_v47 = vmax.f32 %v250_v38, 0.0  ;;  %v315_v48 = vmax.f32 %v251_v39, 0.0  ;;  %v765_v51 = vpack.c.bf16 %v310_v40, %v310_v40  ;;  %v766_v52 = vpack.c.bf16 %v311_v41, %v311_v41 }
  0x29   :  { %v767_v53 = vpack.c.bf16 %v312_v42, %v312_v42  ;;  %v768_v54 = vpack.c.bf16 %v313_v43, %v313_v43  ;;  %629 = vst.msk [vmem:[%s1475_s3 + $0x60] sm:$0xf] %vm604_vm0, %v763_v45  ;;  %630 = vst.msk [vmem:[%s1475_s3 + $0x64] sm:$0xf] %vm604_vm0, %v764_v46  ;;  %v869_v58 = vunpack.c.l.bf16 %v946_v44  ;;  %v870_v59 = vunpack.c.h.bf16 %v946_v44 }
  0x2a   :  { %v769_v56 = vpack.c.bf16 %v314_v47, %v314_v47  ;;  %v770_v57 = vpack.c.bf16 %v315_v48, %v315_v48  ;;  %631 = vst.msk [vmem:[%s1475_s3 + $0x68] sm:$0xf] %vm604_vm0, %v765_v51  ;;  %632 = vst.msk [vmem:[%s1475_s3 + $0x6c] sm:$0xf] %vm604_vm0, %v766_v52  ;;  %v873_v60 = vunpack.c.l.bf16 %v947_v49  ;;  %v874_v61 = vunpack.c.h.bf16 %v947_v49 }
  0x2b   :  { %633 = vst.msk [vmem:[%s1475_s3 + $0x70] sm:$0xf] %vm604_vm0, %v767_v53  ;;  %634 = vst.msk [vmem:[%s1475_s3 + $0x74] sm:$0xf] %vm604_vm0, %v768_v54  ;;  %v877_v62 = vunpack.c.l.bf16 %v948_v50  ;;  %v878_v63 = vunpack.c.h.bf16 %v948_v50  ;;  %v181_v0 = vmul.f32 %v869_v58, %v988_v1  ;;  %v182_v2 = vmul.f32 %v870_v59, %v988_v1 }
  0x2c   :  { %635 = vst.msk [vmem:[%s1475_s3 + $0x78] sm:$0xf] %vm604_vm0, %v769_v56  ;;  %636 = vst.msk [vmem:[%s1475_s3 + $0x7c] sm:$0xf] %vm604_vm0, %v770_v57  ;;  %v881_v3 = vunpack.c.l.bf16 %v949_v55  ;;  %v882_v4 = vunpack.c.h.bf16 %v949_v55  ;;  %v183_v5 = vmul.f32 %v873_v60, %v988_v1  ;;  %v184_v6 = vmul.f32 %v874_v61, %v988_v1 }
  0x2d   :  { %v185_v8 = vmul.f32 %v877_v62, %v988_v1  ;;  %v186_v9 = vmul.f32 %v878_v63, %v988_v1  ;;  %v252_v10 = vadd.f32 %v1002_v7, %v181_v0  ;;  %v253_v11 = vadd.f32 %v1002_v7, %v182_v2 }
  0x2e   :  { %v187_v12 = vmul.f32 %v881_v3, %v988_v1  ;;  %v188_v13 = vmul.f32 %v882_v4, %v988_v1  ;;  %v254_v14 = vadd.f32 %v1002_v7, %v183_v5  ;;  %v255_v15 = vadd.f32 %v1002_v7, %v184_v6 }
  0x2f   :  { %v256_v16 = vadd.f32 %v1002_v7, %v185_v8  ;;  %v257_v17 = vadd.f32 %v1002_v7, %v186_v9  ;;  %v316_v18 = vmax.f32 %v252_v10, 0.0  ;;  %v317_v19 = vmax.f32 %v253_v11, 0.0  ;;  %v954_v8 = vld [vmem:[%s1472_s0 + $0xc0] sm:$0xff]  }
  0x30   :  { %v258_v20 = vadd.f32 %v1002_v7, %v187_v12  ;;  %v259_v21 = vadd.f32 %v1002_v7, %v188_v13  ;;  %v318_v22 = vmax.f32 %v254_v14, 0.0  ;;  %v319_v23 = vmax.f32 %v255_v15, 0.0  ;;  %v955_v13 = vld [vmem:[%s1472_s0 + $0xc8] sm:$0xff]   ;;  %v956_v14 = vld [vmem:[%s1472_s0 + $0xd0] sm:$0xff]  }
  0x31   :  { %v320_v24 = vmax.f32 %v256_v16, 0.0  ;;  %v321_v25 = vmax.f32 %v257_v17, 0.0  ;;  %v771_v27 = vpack.c.bf16 %v316_v18, %v316_v18  ;;  %v772_v28 = vpack.c.bf16 %v317_v19, %v317_v19  ;;  %v957_v19 = vld [vmem:[%s1472_s0 + $0xd8] sm:$0xff]  }
  0x32   :  { %v322_v29 = vmax.f32 %v258_v20, 0.0  ;;  %v323_v30 = vmax.f32 %v259_v21, 0.0  ;;  %v773_v33 = vpack.c.bf16 %v318_v22, %v318_v22  ;;  %v774_v34 = vpack.c.bf16 %v319_v23, %v319_v23 }
  0x33   :  { %v775_v35 = vpack.c.bf16 %v320_v24, %v320_v24  ;;  %v776_v36 = vpack.c.bf16 %v321_v25, %v321_v25  ;;  %637 = vst.msk [vmem:[%s1475_s3 + $0x80] sm:$0xf] %vm604_vm0, %v771_v27  ;;  %638 = vst.msk [vmem:[%s1475_s3 + $0x84] sm:$0xf] %vm604_vm0, %v772_v28  ;;  %v885_v40 = vunpack.c.l.bf16 %v950_v26  ;;  %v886_v41 = vunpack.c.h.bf16 %v950_v26 }
  0x34   :  { %v777_v38 = vpack.c.bf16 %v322_v29, %v322_v29  ;;  %v778_v39 = vpack.c.bf16 %v323_v30, %v323_v30  ;;  %639 = vst.msk [vmem:[%s1475_s3 + $0x88] sm:$0xf] %vm604_vm0, %v773_v33  ;;  %640 = vst.msk [vmem:[%s1475_s3 + $0x8c] sm:$0xf] %vm604_vm0, %v774_v34  ;;  %v889_v42 = vunpack.c.l.bf16 %v951_v31  ;;  %v890_v43 = vunpack.c.h.bf16 %v951_v31 }
  0x35   :  { %641 = vst.msk [vmem:[%s1475_s3 + $0x90] sm:$0xf] %vm604_vm0, %v775_v35  ;;  %642 = vst.msk [vmem:[%s1475_s3 + $0x94] sm:$0xf] %vm604_vm0, %v776_v36  ;;  %v893_v44 = vunpack.c.l.bf16 %v952_v32  ;;  %v894_v45 = vunpack.c.h.bf16 %v952_v32  ;;  %v189_v46 = vmul.f32 %v885_v40, %v988_v1  ;;  %v190_v47 = vmul.f32 %v886_v41, %v988_v1 }
  0x36   :  { %643 = vst.msk [vmem:[%s1475_s3 + $0x98] sm:$0xf] %vm604_vm0, %v777_v38  ;;  %644 = vst.msk [vmem:[%s1475_s3 + $0x9c] sm:$0xf] %vm604_vm0, %v778_v39  ;;  %v897_v48 = vunpack.c.l.bf16 %v953_v37  ;;  %v898_v49 = vunpack.c.h.bf16 %v953_v37  ;;  %v191_v50 = vmul.f32 %v889_v42, %v988_v1  ;;  %v192_v51 = vmul.f32 %v890_v43, %v988_v1 }
  0x37   :  { %v193_v52 = vmul.f32 %v893_v44, %v988_v1  ;;  %v194_v53 = vmul.f32 %v894_v45, %v988_v1  ;;  %v260_v54 = vadd.f32 %v1002_v7, %v189_v46  ;;  %v261_v55 = vadd.f32 %v1002_v7, %v190_v47 }
  0x38   :  { %v195_v56 = vmul.f32 %v897_v48, %v988_v1  ;;  %v196_v57 = vmul.f32 %v898_v49, %v988_v1  ;;  %v262_v58 = vadd.f32 %v1002_v7, %v191_v50  ;;  %v263_v59 = vadd.f32 %v1002_v7, %v192_v51 }
  0x39   :  { %v264_v60 = vadd.f32 %v1002_v7, %v193_v52  ;;  %v265_v61 = vadd.f32 %v1002_v7, %v194_v53  ;;  %v324_v62 = vmax.f32 %v260_v54, 0.0  ;;  %v325_v63 = vmax.f32 %v261_v55, 0.0  ;;  %v958_v52 = vld [vmem:[%s1472_s0 + $0xe0] sm:$0xff]  }
  0x3a   :  { %v266_v0 = vadd.f32 %v1002_v7, %v195_v56  ;;  %v267_v2 = vadd.f32 %v1002_v7, %v196_v57  ;;  %v326_v3 = vmax.f32 %v262_v58, 0.0  ;;  %v327_v4 = vmax.f32 %v263_v59, 0.0  ;;  %v959_v57 = vld [vmem:[%s1472_s0 + $0xe8] sm:$0xff]   ;;  %v960_v58 = vld [vmem:[%s1472_s0 + $0xf0] sm:$0xff]  }
  0x3b   :  { %v328_v5 = vmax.f32 %v264_v60, 0.0  ;;  %v329_v6 = vmax.f32 %v265_v61, 0.0  ;;  %v779_v9 = vpack.c.bf16 %v324_v62, %v324_v62  ;;  %v780_v10 = vpack.c.bf16 %v325_v63, %v325_v63  ;;  %v961_v63 = vld [vmem:[%s1472_s0 + $0xf8] sm:$0xff]  }
  0x3c   :  { %v330_v11 = vmax.f32 %v266_v0, 0.0  ;;  %v331_v12 = vmax.f32 %v267_v2, 0.0  ;;  %v781_v15 = vpack.c.bf16 %v326_v3, %v326_v3  ;;  %v782_v16 = vpack.c.bf16 %v327_v4, %v327_v4 }
  0x3d   :  { %v783_v17 = vpack.c.bf16 %v328_v5, %v328_v5  ;;  %v784_v18 = vpack.c.bf16 %v329_v6, %v329_v6  ;;  %645 = vst.msk [vmem:[%s1475_s3 + $0xa0] sm:$0xf] %vm604_vm0, %v779_v9  ;;  %646 = vst.msk [vmem:[%s1475_s3 + $0xa4] sm:$0xf] %vm604_vm0, %v780_v10  ;;  %v901_v22 = vunpack.c.l.bf16 %v954_v8  ;;  %v902_v23 = vunpack.c.h.bf16 %v954_v8 }
  0x3e   :  { %v785_v20 = vpack.c.bf16 %v330_v11, %v330_v11  ;;  %v786_v21 = vpack.c.bf16 %v331_v12, %v331_v12  ;;  %647 = vst.msk [vmem:[%s1475_s3 + $0xa8] sm:$0xf] %vm604_vm0, %v781_v15  ;;  %648 = vst.msk [vmem:[%s1475_s3 + $0xac] sm:$0xf] %vm604_vm0, %v782_v16  ;;  %v905_v24 = vunpack.c.l.bf16 %v955_v13  ;;  %v906_v25 = vunpack.c.h.bf16 %v955_v13 }
  0x3f   :  { %649 = vst.msk [vmem:[%s1475_s3 + $0xb0] sm:$0xf] %vm604_vm0, %v783_v17  ;;  %650 = vst.msk [vmem:[%s1475_s3 + $0xb4] sm:$0xf] %vm604_vm0, %v784_v18  ;;  %v909_v26 = vunpack.c.l.bf16 %v956_v14  ;;  %v910_v27 = vunpack.c.h.bf16 %v956_v14  ;;  %v197_v28 = vmul.f32 %v901_v22, %v988_v1  ;;  %v198_v29 = vmul.f32 %v902_v23, %v988_v1 }
  0x40   :  { %651 = vst.msk [vmem:[%s1475_s3 + $0xb8] sm:$0xf] %vm604_vm0, %v785_v20  ;;  %652 = vst.msk [vmem:[%s1475_s3 + $0xbc] sm:$0xf] %vm604_vm0, %v786_v21  ;;  %v913_v30 = vunpack.c.l.bf16 %v957_v19  ;;  %v914_v31 = vunpack.c.h.bf16 %v957_v19  ;;  %v199_v32 = vmul.f32 %v905_v24, %v988_v1  ;;  %v200_v33 = vmul.f32 %v906_v25, %v988_v1 }
  0x41   :  { %v201_v34 = vmul.f32 %v909_v26, %v988_v1  ;;  %v202_v35 = vmul.f32 %v910_v27, %v988_v1  ;;  %v268_v36 = vadd.f32 %v1002_v7, %v197_v28  ;;  %v269_v37 = vadd.f32 %v1002_v7, %v198_v29 }
  0x42   :  { %v203_v38 = vmul.f32 %v913_v30, %v988_v1  ;;  %v204_v39 = vmul.f32 %v914_v31, %v988_v1  ;;  %v270_v40 = vadd.f32 %v1002_v7, %v199_v32  ;;  %v271_v41 = vadd.f32 %v1002_v7, %v200_v33 }
  0x43   :  { %v272_v42 = vadd.f32 %v1002_v7, %v201_v34  ;;  %v273_v43 = vadd.f32 %v1002_v7, %v202_v35  ;;  %v332_v44 = vmax.f32 %v268_v36, 0.0  ;;  %v333_v45 = vmax.f32 %v269_v37, 0.0 }
  0x44   :  { %v274_v46 = vadd.f32 %v1002_v7, %v203_v38  ;;  %v275_v47 = vadd.f32 %v1002_v7, %v204_v39  ;;  %v334_v48 = vmax.f32 %v270_v40, 0.0  ;;  %v335_v49 = vmax.f32 %v271_v41, 0.0 }
  0x45   :  { %v336_v50 = vmax.f32 %v272_v42, 0.0  ;;  %v337_v51 = vmax.f32 %v273_v43, 0.0  ;;  %v787_v53 = vpack.c.bf16 %v332_v44, %v332_v44  ;;  %v788_v54 = vpack.c.bf16 %v333_v45, %v333_v45 }
  0x46   :  { %v338_v55 = vmax.f32 %v274_v46, 0.0  ;;  %v339_v56 = vmax.f32 %v275_v47, 0.0  ;;  %v789_v59 = vpack.c.bf16 %v334_v48, %v334_v48  ;;  %v790_v60 = vpack.c.bf16 %v335_v49, %v335_v49 }
  0x47   :  { %v791_v61 = vpack.c.bf16 %v336_v50, %v336_v50  ;;  %v792_v62 = vpack.c.bf16 %v337_v51, %v337_v51  ;;  %653 = vst.msk [vmem:[%s1475_s3 + $0xc0] sm:$0xf] %vm604_vm0, %v787_v53  ;;  %654 = vst.msk [vmem:[%s1475_s3 + $0xc4] sm:$0xf] %vm604_vm0, %v788_v54  ;;  %v917_v3 = vunpack.c.l.bf16 %v958_v52  ;;  %v918_v4 = vunpack.c.h.bf16 %v958_v52 }
  0x48   :  { %v793_v0 = vpack.c.bf16 %v338_v55, %v338_v55  ;;  %v794_v2 = vpack.c.bf16 %v339_v56, %v339_v56  ;;  %655 = vst.msk [vmem:[%s1475_s3 + $0xc8] sm:$0xf] %vm604_vm0, %v789_v59  ;;  %656 = vst.msk [vmem:[%s1475_s3 + $0xcc] sm:$0xf] %vm604_vm0, %v790_v60  ;;  %v921_v5 = vunpack.c.l.bf16 %v959_v57  ;;  %v922_v6 = vunpack.c.h.bf16 %v959_v57 }
  0x49   :  { %657 = vst.msk [vmem:[%s1475_s3 + $0xd0] sm:$0xf] %vm604_vm0, %v791_v61  ;;  %658 = vst.msk [vmem:[%s1475_s3 + $0xd4] sm:$0xf] %vm604_vm0, %v792_v62  ;;  %v925_v8 = vunpack.c.l.bf16 %v960_v58  ;;  %v926_v9 = vunpack.c.h.bf16 %v960_v58  ;;  %v205_v10 = vmul.f32 %v917_v3, %v988_v1  ;;  %v206_v11 = vmul.f32 %v918_v4, %v988_v1 }
  0x4a   :  { %659 = vst.msk [vmem:[%s1475_s3 + $0xd8] sm:$0xf] %vm604_vm0, %v793_v0  ;;  %660 = vst.msk [vmem:[%s1475_s3 + $0xdc] sm:$0xf] %vm604_vm0, %v794_v2  ;;  %v929_v12 = vunpack.c.l.bf16 %v961_v63  ;;  %v930_v13 = vunpack.c.h.bf16 %v961_v63  ;;  %v207_v14 = vmul.f32 %v921_v5, %v988_v1  ;;  %v208_v15 = vmul.f32 %v922_v6, %v988_v1 }
  0x4b   :  { %v209_v16 = vmul.f32 %v925_v8, %v988_v1  ;;  %v210_v17 = vmul.f32 %v926_v9, %v988_v1  ;;  %v276_v18 = vadd.f32 %v1002_v7, %v205_v10  ;;  %v277_v19 = vadd.f32 %v1002_v7, %v206_v11 }
  0x4c   :  { %v211_v20 = vmul.f32 %v929_v12, %v988_v1  ;;  %v212_v21 = vmul.f32 %v930_v13, %v988_v1  ;;  %v278_v22 = vadd.f32 %v1002_v7, %v207_v14  ;;  %v279_v23 = vadd.f32 %v1002_v7, %v208_v15 }
  0x4d   :  { %v280_v24 = vadd.f32 %v1002_v7, %v209_v16  ;;  %v281_v25 = vadd.f32 %v1002_v7, %v210_v17  ;;  %v340_v26 = vmax.f32 %v276_v18, 0.0  ;;  %v341_v27 = vmax.f32 %v277_v19, 0.0 }
  0x4e   :  { %v282_v28 = vadd.f32 %v1002_v7, %v211_v20  ;;  %v283_v29 = vadd.f32 %v1002_v7, %v212_v21  ;;  %v342_v30 = vmax.f32 %v278_v22, 0.0  ;;  %v343_v31 = vmax.f32 %v279_v23, 0.0 }
  0x4f   :  { %v344_v32 = vmax.f32 %v280_v24, 0.0  ;;  %v345_v33 = vmax.f32 %v281_v25, 0.0  ;;  %v795_v34 = vpack.c.bf16 %v340_v26, %v340_v26  ;;  %v796_v1 = vpack.c.bf16 %v341_v27, %v341_v27 }
  0x50   :  { %v346_v35 = vmax.f32 %v282_v28, 0.0  ;;  %v347_v36 = vmax.f32 %v283_v29, 0.0  ;;  %v797_v37 = vpack.c.bf16 %v342_v30, %v342_v30  ;;  %v798_v38 = vpack.c.bf16 %v343_v31, %v343_v31 }
  0x51   :  { %v799_v39 = vpack.c.bf16 %v344_v32, %v344_v32  ;;  %v800_v40 = vpack.c.bf16 %v345_v33, %v345_v33  ;;  %661 = vst.msk [vmem:[%s1475_s3 + $0xe0] sm:$0xf] %vm604_vm0, %v795_v34  ;;  %662 = vst.msk [vmem:[%s1475_s3 + $0xe4] sm:$0xf] %vm604_vm0, %v796_v1 }
  0x52   :  { %v801_v7 = vpack.c.bf16 %v346_v35, %v346_v35  ;;  %v802_v41 = vpack.c.bf16 %v347_v36, %v347_v36  ;;  %663 = vst.msk [vmem:[%s1475_s3 + $0xe8] sm:$0xf] %vm604_vm0, %v797_v37  ;;  %664 = vst.msk [vmem:[%s1475_s3 + $0xec] sm:$0xf] %vm604_vm0, %v798_v38 }
  0x53   :  { %665 = vst.msk [vmem:[%s1475_s3 + $0xf0] sm:$0xf] %vm604_vm0, %v799_v39  ;;  %666 = vst.msk [vmem:[%s1475_s3 + $0xf4] sm:$0xf] %vm604_vm0, %v800_v40 }
  0x54   :  { %667 = vst.msk [vmem:[%s1475_s3 + $0xf8] sm:$0xf] %vm604_vm0, %v801_v7  ;;  %668 = vst.msk [vmem:[%s1475_s3 + $0xfc] sm:$0xf] %vm604_vm0, %v802_v41 }

// kernel: _lambda_.28
= control target key start
LH: loop header
LB: loop body
LE: loop exit
PB: predicated region body
PF: predicated region fallthrough
CT: control target
= control target key end

     0   :  { %s1372_s15 = smov 0   ;;  %s1374_s16 = smov 0   ;;  %s1711_s0 = inlined_call_operand.vmem [shape: bf16[512,49], index: 0, kind: input, shape index: {}]   ;;  %s1712_s1 = inlined_call_operand.vmem [shape: bf16[49,16], index: 1, kind: input, shape index: {}]   ;;  %s1713_s2 = inlined_call_operand.vmem [shape: bf16[512,16], index: 2, kind: output, shape index: {0}]   ;;  %s1714_s3 = inlined_call_operand.vmem [shape: f32[1,16], index: 3, kind: output, shape index: {1}]   ;;  %s1715_s4 = inlined_call_operand.vmem [shape: f32[1,16], index: 4, kind: output, shape index: {2}]  }
   0x1   :  { %s1376_s17 = smov 0  }
   0x2 LB: > { %s24_s18 = sadd.s32 1, %s1339_s16  ;;  %p1097_p0 = scmp.ge.s32.totalorder %s1343_s17, 1  ;;  %s1343_s17 = sphi %s1376_s17, %s15_s17   ;;  %s1339_s16 = sphi %s1374_s16, %s1717_s16   ;;  %s1335_s15 = sphi %s1372_s15, %s1716_s15  }
   0x3   : > { %p25_p1 = scmp.ge.s32.totalorder %s24_s18, 2  ;;  %p191_p2 = scmp.lt.s32.totalorder %s1343_s17, 3 }
   0x5   : > { %s1719_s18 = smov (%p25_p1, %s24_s18), 0  ;;  %p192_p3 = pnand %p1097_p0, %p191_p2 }
   0x6   : > { %s1098_s19 = sshll.u32 (!%p192_p3), %s1335_s15, 5  ;;  %p1102_p5 = scmp.ne.s32.totalorder (!%p192_p3), %s1335_s15, 0 }
   0x7   : > { %195 = sbr.rel (%p192_p3) target bundleno = 318 (0x13e), region = 28  ;;  %p231_p4 = scmp.lt.s32.totalorder (!%p192_p3), %s1098_s19, 63 }
   0xc   : > { %s1721_s19 = smov (!%p231_p4, %s1098_s19), 63  ;;  %259 = sbr.rel (%p1102_p5) target bundleno = 19 (0x13), region = 32 }
   0xd   : > { %s1099_s20 = sshll.u32 %s1721_s19, 2 }
   0xe   : > { %s1393_s23 = scalar_lea.vmem %s1711_s0, %s1099_s20  ;;  %s1398_s26 = scalar_lea.vmem %s1713_s2, %s1099_s20 }
  0x11   : > { %vm260_vm0 = vcmask 122880   ;;  %v1345_v0 = vmov 0.0  }
  0x12   : > { %261 = vst.msk [vmem:[%s1714_s3] sm:$0x1] %vm260_vm0, %v1345_v0  ;;  %262 = vst.msk [vmem:[%s1715_s4] sm:$0x1] %vm260_vm0, %v1345_v0 }
  0x13 PF: > { %v1301_v1 = vld [vmem:[%s1712_s1 + $0x18] ss:$0 sps:$4 sm:$0x11]   ;;  %vm452_vm1 = vcmask 1040384   ;;  %v1346_v2 = vmov 0   ;;  %v1302_v5 = vld [vmem:[%s1712_s1 + $0x10] sm:$0xff]  }
  0x14   : > { %v454_v3 = vsel %vm452_vm1, 65535, %v1346_v2  ;;  %vm403_vm2 = vcmask 400384   ;;  %v1305_v6 = vld [vmem:[%s1393_s23] sm:$0xff]   ;;  %v1303_v7 = vld [vmem:[%s1712_s1 + $0x8] sm:$0xff]   ;;  %v1307_v11 = vld [vmem:[%s1393_s23 + $0x10] sm:$0xff]   ;;  %vm747_vm3 = vcmask 125952  }
  0x15   : > { %v456_v4 = vand.u32 %v1301_v1, %v454_v3  ;;  %1235 = vmatprep.mubr.msk.bf16.mxu0 %vm403_vm2, %v1305_v6  ;;  %v1304_v8 = vld [vmem:[%s1712_s1] sm:$0xff]   ;;  %v1306_v10 = vld [vmem:[%s1393_s23 + $0x8] sm:$0xff]   ;;  %v1315_v13 = vld [vmem:[%s1393_s23 + $0x50] sm:$0xff]   ;;  %vm781_vm4 = vcmask 130048   ;;  %vm852_vm5 = vcmask 122880  }
  0x16   : > { %v1313_v9 = vld [vmem:[%s1393_s23 + $0x40] sm:$0xff]   ;;  %v1314_v12 = vld [vmem:[%s1393_s23 + $0x48] sm:$0xff]   ;;  %v1308_v14 = vld [vmem:[%s1393_s23 + $0x18] sm:$0xff]  }
  0x17   : > { %1227 = vmatprep.subr.bf16.mxu0 %v456_v4  ;;  %1267 = vmatprep.subr.bf16.mxu1 %v456_v4  ;;  %v1309_v15 = vld [vmem:[%s1393_s23 + $0x20] sm:$0xff]   ;;  %v1316_v16 = vld [vmem:[%s1393_s23 + $0x58] sm:$0xff]   ;;  %v1310_v18 = vld [vmem:[%s1393_s23 + $0x28] sm:$0xff]  }
  0x18   : > { %1228 = vmatpush3.bf16.msra.mxu0 %v456_v4  ;;  %1271 = vmatpush3.bf16.msra.mxu1 %v456_v4  ;;  %v1317_v17 = vld [vmem:[%s1393_s23 + $0x60] sm:$0xff]   ;;  %v1311_v19 = vld [vmem:[%s1393_s23 + $0x30] sm:$0xff]   ;;  %v1318_v20 = vld [vmem:[%s1393_s23 + $0x68] sm:$0xff]  }
  0x19   : > { %1229 = vmatprep.subr.bf16.mxu0 %v1302_v5  ;;  %1268 = vmatprep.subr.bf16.mxu1 %v1302_v5  ;;  %v1319_v21 = vld [vmem:[%s1393_s23 + $0x70] sm:$0xff]   ;;  %v1312_v22 = vld [vmem:[%s1393_s23 + $0x38] sm:$0xff]  }
  0x1a   : > { %1251 = vmatprep.mubr.msk.bf16.mxu1 %vm403_vm2, %v1313_v9  ;;  %v1320_v23 = vld [vmem:[%s1393_s23 + $0x78] sm:$0xff]  }
  0x1c   : > { %1230 = vmatpush3.bf16.msra.mxu0 %v1302_v5  ;;  %1272 = vmatpush3.bf16.msra.mxu1 %v1302_v5 }
  0x1d   : > { %1231 = vmatprep.subr.bf16.mxu0 %v1303_v7  ;;  %1269 = vmatprep.subr.bf16.mxu1 %v1303_v7 }
  0x20   : > { %1232 = vmatpush3.bf16.msra.mxu0 %v1303_v7  ;;  %1273 = vmatpush3.bf16.msra.mxu1 %v1303_v7 }
  0x21   : > { %1233 = vmatprep.subr.bf16.mxu0 %v1304_v8  ;;  %1270 = vmatprep.subr.bf16.mxu1 %v1304_v8 }
  0x24   : > { %1234 = vmatpush3.bf16.msra.mxu0 %v1304_v8  ;;  %1274 = vmatpush3.bf16.msra.mxu1 %v1304_v8 }
  0x27   : > { %1236 = vmatmul.mubr.msk.bf16.vlgmr.msra.gmra.mxu0 %vm403_vm2, %v1306_v10  ;;  %1252 = vmatmul.mubr.msk.bf16.vlgmr.msra.gmra.mxu1 %vm403_vm2, %v1314_v12 }
  0x28   : > { %1239 = vmatprep.mubr.msk.bf16.mxu0 %vm403_vm2, %v1307_v11  ;;  %1255 = vmatprep.mubr.msk.bf16.mxu1 %vm403_vm2, %v1315_v13 }
  0x2f   : > { %1240 = vmatmul.mubr.msk.bf16.gmra.mxu0 %vm403_vm2, %v1308_v14  ;;  %1256 = vmatmul.mubr.msk.bf16.gmra.mxu1 %vm403_vm2, %v1316_v16 }
  0x30   : > { %1243 = vmatprep.mubr.msk.bf16.mxu0 %vm403_vm2, %v1309_v15  ;;  %1259 = vmatprep.mubr.msk.bf16.mxu1 %vm403_vm2, %v1317_v17 }
  0x37   : > { %1244 = vmatmul.mubr.msk.bf16.gmra.mxu0 %vm403_vm2, %v1310_v18  ;;  %1260 = vmatmul.mubr.msk.bf16.gmra.mxu1 %vm403_vm2, %v1318_v20 }
  0x38   : > { %1247 = vmatprep.mubr.msk.bf16.mxu0 %vm403_vm2, %v1311_v19  ;;  %1263 = vmatprep.mubr.msk.bf16.mxu1 %vm403_vm2, %v1319_v21 }
  0x3f   : > { %1248 = vmatmul.mubr.msk.bf16.gmra.mxu0 %vm403_vm2, %v1312_v22  ;;  %1264 = vmatmul.mubr.msk.bf16.gmra.mxu1 %vm403_vm2, %v1320_v23 }
  0xe7   : > { %v1237_v24 = vpop.f32.mrf.mxu0  ;;  %v1450_v26 = vpop.f32.mrf.mxu1 }
  0xe8   : > { %v1177_v25 = vpack.c.bf16 %v1237_v24, %v1237_v24  ;;  %v1193_v28 = vpack.c.bf16 %v1450_v26, %v1450_v26  ;;  %v857_v36 = vmul.f32 %v1237_v24, %v1237_v24  ;;  %v785_v44 = vsel %vm781_vm4, %v1237_v24, 0.0 }
  0xe9   : > { %v492_v27 = vpop.f32.mrf.mxu0  ;;  %v1456_v30 = vpop.f32.mrf.mxu1 }
  0xea   : > { %750 = vst.msk [vmem:[%s1398_s26 + $0x8] sm:$0xf] %vm747_vm3, %v1177_v25  ;;  %v1175_v29 = vpack.c.bf16 %v492_v27, %v492_v27  ;;  %766 = vst.msk [vmem:[%s1398_s26 + $0x48] sm:$0xf] %vm747_vm3, %v1193_v28  ;;  %v1191_v32 = vpack.c.bf16 %v1456_v30, %v1456_v30  ;;  %v855_v33 = vmul.f32 %v492_v27, %v492_v27  ;;  %v782_v39 = vsel %vm781_vm4, %v492_v27, 0.0 }
  0xeb   : > { %v1238_v31 = vpop.f32.mrf.mxu0  ;;  %v1464_v35 = vpop.f32.mrf.mxu1  ;;  %v890_v57 = vsel %vm781_vm4, %v857_v36, 0.0 }
  0xec   : > { %748 = vst.msk [vmem:[%s1398_s26] sm:$0xf] %vm747_vm3, %v1175_v29  ;;  %v1178_v34 = vpack.c.bf16 %v1238_v31, %v1238_v31  ;;  %764 = vst.msk [vmem:[%s1398_s26 + $0x40] sm:$0xf] %vm747_vm3, %v1191_v32  ;;  %v1194_v38 = vpack.c.bf16 %v1464_v35, %v1464_v35  ;;  %v887_v48 = vsel %vm781_vm4, %v855_v33, 0.0  ;;  %v858_v49 = vmul.f32 %v1238_v31, %v1238_v31 }
  0xed   : > { %v495_v37 = vpop.f32.mrf.mxu0  ;;  %v1474_v43 = vpop.f32.mrf.mxu1  ;;  %v787_v58 = vsel %vm781_vm4, %v1238_v31, 0.0 }
  0xee   : > { %751 = vst.msk [vmem:[%s1398_s26 + $0xc] sm:$0xf] %vm747_vm3, %v1178_v34  ;;  %v1176_v40 = vpack.c.bf16 %v495_v37, %v495_v37  ;;  %v783_v41 = vsel %vm781_vm4, %v495_v37, 0.0  ;;  %v856_v42 = vmul.f32 %v495_v37, %v495_v37  ;;  %767 = vst.msk [vmem:[%s1398_s26 + $0x4c] sm:$0xf] %vm747_vm3, %v1194_v38  ;;  %v1192_v47 = vpack.c.bf16 %v1474_v43, %v1474_v43 }
  0xef   : > { %v784_v45 = vadd.f32 %v783_v41, %v782_v39  ;;  %v1241_v46 = vpop.f32.mrf.mxu0  ;;  %v1485_v52 = vpop.f32.mrf.mxu1  ;;  %v892_v1 = vsel %vm781_vm4, %v858_v49, 0.0 }
  0xf0   : > { %749 = vst.msk [vmem:[%s1398_s26 + $0x4] sm:$0xf] %vm747_vm3, %v1176_v40  ;;  %v888_v50 = vsel %vm781_vm4, %v856_v42, 0.0  ;;  %v1181_v51 = vpack.c.bf16 %v1241_v46, %v1241_v46  ;;  %765 = vst.msk [vmem:[%s1398_s26 + $0x44] sm:$0xf] %vm747_vm3, %v1192_v47  ;;  %v1197_v56 = vpack.c.bf16 %v1485_v52, %v1485_v52  ;;  %v861_v5 = vmul.f32 %v1241_v46, %v1241_v46 }
  0xf1   : > { %v786_v53 = vadd.f32 %v785_v44, %v784_v45  ;;  %v889_v54 = vadd.f32 %v888_v50, %v887_v48  ;;  %v508_v55 = vpop.f32.mrf.mxu0  ;;  %v1495_v61 = vpop.f32.mrf.mxu1  ;;  %v793_v18 = vsel %vm781_vm4, %v1241_v46, 0.0 }
  0xf2   : > { %754 = vst.msk [vmem:[%s1398_s26 + $0x18] sm:$0xf] %vm747_vm3, %v1181_v51  ;;  %v1179_v59 = vpack.c.bf16 %v508_v55, %v508_v55  ;;  %v859_v60 = vmul.f32 %v508_v55, %v508_v55  ;;  %770 = vst.msk [vmem:[%s1398_s26 + $0x58] sm:$0xf] %vm747_vm3, %v1197_v56  ;;  %v789_v2 = vsel %vm781_vm4, %v508_v55, 0.0  ;;  %v1195_v9 = vpack.c.bf16 %v1495_v61, %v1495_v61 }
  0xf3   : > { %v891_v62 = vadd.f32 %v890_v57, %v889_v54  ;;  %v788_v63 = vadd.f32 %v787_v58, %v786_v53  ;;  %v1242_v0 = vpop.f32.mrf.mxu0  ;;  %v1503_v4 = vpop.f32.mrf.mxu1  ;;  %v898_v28 = vsel %vm781_vm4, %v861_v5, 0.0 }
  0xf4   : > { %752 = vst.msk [vmem:[%s1398_s26 + $0x10] sm:$0xf] %vm747_vm3, %v1179_v59  ;;  %v1182_v3 = vpack.c.bf16 %v1242_v0, %v1242_v0  ;;  %v894_v10 = vsel %vm781_vm4, %v859_v60, 0.0  ;;  %768 = vst.msk [vmem:[%s1398_s26 + $0x50] sm:$0xf] %vm747_vm3, %v1195_v9  ;;  %v862_v19 = vmul.f32 %v1242_v0, %v1242_v0  ;;  %v1198_v27 = vpack.c.bf16 %v1503_v4, %v1503_v4 }
  0xf5   : > { %v790_v6 = vadd.f32 %v789_v2, %v788_v63  ;;  %v893_v7 = vadd.f32 %v892_v1, %v891_v62  ;;  %v511_v8 = vpop.f32.mrf.mxu0  ;;  %v1511_v14 = vpop.f32.mrf.mxu1  ;;  %v795_v29 = vsel %vm781_vm4, %v1242_v0, 0.0 }
  0xf6   : > { %755 = vst.msk [vmem:[%s1398_s26 + $0x1c] sm:$0xf] %vm747_vm3, %v1182_v3  ;;  %v1180_v11 = vpack.c.bf16 %v511_v8, %v511_v8  ;;  %v791_v12 = vsel %vm781_vm4, %v511_v8, 0.0  ;;  %v860_v13 = vmul.f32 %v511_v8, %v511_v8  ;;  %771 = vst.msk [vmem:[%s1398_s26 + $0x5c] sm:$0xf] %vm747_vm3, %v1198_v27  ;;  %v900_v38 = vsel %vm781_vm4, %v862_v19, 0.0 }
  0xf7   : > { %v895_v15 = vadd.f32 %v894_v10, %v893_v7  ;;  %v792_v16 = vadd.f32 %v791_v12, %v790_v6  ;;  %v1245_v17 = vpop.f32.mrf.mxu0  ;;  %v1519_v22 = vpop.f32.mrf.mxu1  ;;  %v1196_v47 = vpack.c.bf16 %v1511_v14, %v1511_v14 }
  0xf8   : > { %753 = vst.msk [vmem:[%s1398_s26 + $0x14] sm:$0xf] %vm747_vm3, %v1180_v11  ;;  %v896_v20 = vsel %vm781_vm4, %v860_v13, 0.0  ;;  %v1185_v21 = vpack.c.bf16 %v1245_v17, %v1245_v17  ;;  %v865_v42 = vmul.f32 %v1245_v17, %v1245_v17  ;;  %v801_v57 = vsel %vm781_vm4, %v1245_v17, 0.0 }
  0xf9   : > { %v794_v23 = vadd.f32 %v793_v18, %v792_v16  ;;  %v897_v24 = vadd.f32 %v896_v20, %v895_v15  ;;  %v524_v25 = vpop.f32.mrf.mxu0  ;;  %v1527_v33 = vpop.f32.mrf.mxu1  ;;  %769 = vst.msk [vmem:[%s1398_s26 + $0x54] sm:$0xf] %vm747_vm3, %v1196_v47  ;;  %v1201_v2 = vpack.c.bf16 %v1519_v22, %v1519_v22 }
  0xfa   : > { %758 = vst.msk [vmem:[%s1398_s26 + $0x28] sm:$0xf] %vm747_vm3, %v1185_v21  ;;  %v1183_v31 = vpack.c.bf16 %v524_v25, %v524_v25  ;;  %v863_v32 = vmul.f32 %v524_v25, %v524_v25  ;;  %v797_v39 = vsel %vm781_vm4, %v524_v25, 0.0  ;;  %v906_v3 = vsel %vm781_vm4, %v865_v42, 0.0 }
  0xfb   : > { %v899_v34 = vadd.f32 %v898_v28, %v897_v24  ;;  %v796_v36 = vadd.f32 %v795_v29, %v794_v23  ;;  %v1246_v37 = vpop.f32.mrf.mxu0  ;;  %v1535_v41 = vpop.f32.mrf.mxu1  ;;  %774 = vst.msk [vmem:[%s1398_s26 + $0x68] sm:$0xf] %vm747_vm3, %v1201_v2  ;;  %v1199_v20 = vpack.c.bf16 %v1527_v33, %v1527_v33  ;;  %v874_v2 = vmul.f32 %v1464_v35, %v1464_v35 }
  0xfc   : > { %756 = vst.msk [vmem:[%s1398_s26 + $0x20] sm:$0xf] %vm747_vm3, %v1183_v31  ;;  %v1186_v40 = vpack.c.bf16 %v1246_v37, %v1246_v37  ;;  %v902_v48 = vsel %vm781_vm4, %v863_v32, 0.0  ;;  %v866_v58 = vmul.f32 %v1246_v37, %v1246_v37  ;;  %v803_v5 = vsel %vm781_vm4, %v1246_v37, 0.0 }
  0xfd   : > { %v798_v44 = vadd.f32 %v797_v39, %v796_v36  ;;  %v901_v45 = vadd.f32 %v900_v38, %v899_v34  ;;  %v527_v46 = vpop.f32.mrf.mxu0  ;;  %v1543_v53 = vpop.f32.mrf.mxu1  ;;  %772 = vst.msk [vmem:[%s1398_s26 + $0x60] sm:$0xf] %vm747_vm3, %v1199_v20  ;;  %v1202_v36 = vpack.c.bf16 %v1535_v41, %v1535_v41 }
  0xfe   : > { %759 = vst.msk [vmem:[%s1398_s26 + $0x2c] sm:$0xf] %vm747_vm3, %v1186_v40  ;;  %v1184_v49 = vpack.c.bf16 %v527_v46, %v527_v46  ;;  %v799_v50 = vsel %vm781_vm4, %v527_v46, 0.0  ;;  %v864_v51 = vmul.f32 %v527_v46, %v527_v46  ;;  %v908_v12 = vsel %vm781_vm4, %v866_v58, 0.0 }
  0xff   : > { %v903_v54 = vadd.f32 %v902_v48, %v901_v45  ;;  %v800_v55 = vadd.f32 %v799_v50, %v798_v44  ;;  %v1249_v56 = vpop.f32.mrf.mxu0  ;;  %v1551_v62 = vpop.f32.mrf.mxu1  ;;  %v1200_v39 = vpack.c.bf16 %v1543_v53, %v1543_v53  ;;  %v871_v44 = vmul.f32 %v1456_v30, %v1456_v30  ;;  %775 = vst.msk [vmem:[%s1398_s26 + $0x6c] sm:$0xf] %vm747_vm3, %v1202_v36 }
 0x100   : > { %757 = vst.msk [vmem:[%s1398_s26 + $0x24] sm:$0xf] %vm747_vm3, %v1184_v49  ;;  %v904_v59 = vsel %vm781_vm4, %v864_v51, 0.0  ;;  %v1189_v60 = vpack.c.bf16 %v1249_v56, %v1249_v56  ;;  %v869_v16 = vmul.f32 %v1249_v56, %v1249_v56  ;;  %v809_v31 = vsel %vm781_vm4, %v1249_v56, 0.0 }
 0x101   : > { %v802_v63 = vadd.f32 %v801_v57, %v800_v55  ;;  %v905_v0 = vadd.f32 %v904_v59, %v903_v54  ;;  %v540_v1 = vpop.f32.mrf.mxu0  ;;  %v1561_v11 = vpop.f32.mrf.mxu1  ;;  %v1205_v45 = vpack.c.bf16 %v1551_v62, %v1551_v62  ;;  %773 = vst.msk [vmem:[%s1398_s26 + $0x64] sm:$0xf] %vm747_vm3, %v1200_v39  ;;  %v813_v50 = vsel %vm781_vm4, %v1456_v30, 0.0 }
 0x102   : > { %762 = vst.msk [vmem:[%s1398_s26 + $0x38] sm:$0xf] %vm747_vm3, %v1189_v60  ;;  %v1187_v6 = vpack.c.bf16 %v540_v1, %v540_v1  ;;  %v867_v7 = vmul.f32 %v540_v1, %v540_v1  ;;  %v805_v13 = vsel %vm781_vm4, %v540_v1, 0.0  ;;  %v914_v40 = vsel %vm781_vm4, %v869_v16, 0.0 }
 0x103   : > { %v907_v8 = vadd.f32 %v906_v3, %v905_v0  ;;  %v804_v9 = vadd.f32 %v803_v5, %v802_v63  ;;  %v1250_v10 = vpop.f32.mrf.mxu0  ;;  %v1575_v29 = vpop.f32.mrf.mxu1  ;;  %v872_v51 = vmul.f32 %v1474_v43, %v1474_v43  ;;  %778 = vst.msk [vmem:[%s1398_s26 + $0x78] sm:$0xf] %vm747_vm3, %v1205_v45  ;;  %v1203_v54 = vpack.c.bf16 %v1561_v11, %v1561_v11 }
 0x104   : > { %760 = vst.msk [vmem:[%s1398_s26 + $0x30] sm:$0xf] %vm747_vm3, %v1187_v6  ;;  %v1190_v15 = vpack.c.bf16 %v1250_v10, %v1250_v10  ;;  %v910_v21 = vsel %vm781_vm4, %v867_v7, 0.0  ;;  %v870_v32 = vmul.f32 %v1250_v10, %v1250_v10  ;;  %v811_v42 = vsel %vm781_vm4, %v1250_v10, 0.0 }
 0x105   : > { %v806_v17 = vadd.f32 %v805_v13, %v804_v9  ;;  %v909_v18 = vadd.f32 %v908_v12, %v907_v8  ;;  %v543_v19 = vpop.f32.mrf.mxu0  ;;  %v1595_v48 = vpop.f32.mrf.mxu1  ;;  %v1206_v57 = vpack.c.bf16 %v1575_v29, %v1575_v29  ;;  %v873_v58 = vmul.f32 %v1450_v26, %v1450_v26  ;;  %776 = vst.msk [vmem:[%s1398_s26 + $0x70] sm:$0xf] %vm747_vm3, %v1203_v54 }
 0x106   : > { %763 = vst.msk [vmem:[%s1398_s26 + $0x3c] sm:$0xf] %vm747_vm3, %v1190_v15  ;;  %v1188_v23 = vpack.c.bf16 %v543_v19, %v543_v19  ;;  %v807_v24 = vsel %vm781_vm4, %v543_v19, 0.0  ;;  %v868_v25 = vmul.f32 %v543_v19, %v543_v19  ;;  %v916_v49 = vsel %vm781_vm4, %v870_v32, 0.0 }
 0x107   : > { %v911_v27 = vadd.f32 %v910_v21, %v909_v18  ;;  %v808_v28 = vadd.f32 %v807_v24, %v806_v17  ;;  %v918_v59 = vsel %vm781_vm4, %v871_v44, 0.0  ;;  %v815_v30 = vsel %vm781_vm4, %v1474_v43, 0.0  ;;  %779 = vst.msk [vmem:[%s1398_s26 + $0x7c] sm:$0xf] %vm747_vm3, %v1206_v57 }
 0x108   : > { %761 = vst.msk [vmem:[%s1398_s26 + $0x34] sm:$0xf] %vm747_vm3, %v1188_v23  ;;  %v912_v34 = vsel %vm781_vm4, %v868_v25, 0.0  ;;  %v1204_v60 = vpack.c.bf16 %v1595_v48, %v1595_v48  ;;  %v817_v1 = vsel %vm781_vm4, %v1450_v26, 0.0  ;;  %v920_v3 = vsel %vm781_vm4, %v872_v51, 0.0 }
 0x109   : > { %v810_v37 = vadd.f32 %v809_v31, %v808_v28  ;;  %v913_v38 = vadd.f32 %v912_v34, %v911_v27  ;;  %v922_v6 = vsel %vm781_vm4, %v873_v58, 0.0  ;;  %v819_v7 = vsel %vm781_vm4, %v1464_v35, 0.0 }
 0x10a   : > { %777 = vst.msk [vmem:[%s1398_s26 + $0x74] sm:$0xf] %vm747_vm3, %v1204_v60  ;;  %v875_v8 = vmul.f32 %v1495_v61, %v1495_v61  ;;  %v924_v26 = vsel %vm781_vm4, %v874_v2, 0.0  ;;  %v821_v12 = vsel %vm781_vm4, %v1495_v61, 0.0  ;;  %v876_v13 = vmul.f32 %v1511_v14, %v1511_v14 }
 0x10b   : > { %v812_v46 = vadd.f32 %v811_v42, %v810_v37  ;;  %v915_v47 = vadd.f32 %v914_v40, %v913_v38  ;;  %v877_v17 = vmul.f32 %v1485_v52, %v1485_v52  ;;  %v823_v18 = vsel %vm781_vm4, %v1511_v14, 0.0 }
 0x10c   : > { %v926_v35 = vsel %vm781_vm4, %v875_v8, 0.0  ;;  %v825_v21 = vsel %vm781_vm4, %v1485_v52, 0.0  ;;  %v878_v61 = vmul.f32 %v1503_v4, %v1503_v4  ;;  %v928_v23 = vsel %vm781_vm4, %v876_v13, 0.0 }
 0x10d   : > { %v917_v55 = vadd.f32 %v916_v49, %v915_v47  ;;  %v814_v56 = vadd.f32 %v813_v50, %v812_v46  ;;  %v930_v27 = vsel %vm781_vm4, %v877_v17, 0.0  ;;  %v827_v28 = vsel %vm781_vm4, %v1503_v4, 0.0 }
 0x10e   : > { %v879_v14 = vmul.f32 %v1527_v33, %v1527_v33  ;;  %v932_v34 = vsel %vm781_vm4, %v878_v61, 0.0  ;;  %v829_v52 = vsel %vm781_vm4, %v1527_v33, 0.0  ;;  %v880_v36 = vmul.f32 %v1543_v53, %v1543_v53 }
 0x10f   : > { %v816_v63 = vadd.f32 %v815_v30, %v814_v56  ;;  %v919_v0 = vadd.f32 %v918_v59, %v917_v55  ;;  %v881_v39 = vmul.f32 %v1519_v22, %v1519_v22  ;;  %v831_v40 = vsel %vm781_vm4, %v1543_v53, 0.0 }
 0x110   : > { %v934_v4 = vsel %vm781_vm4, %v879_v14, 0.0  ;;  %v833_v45 = vsel %vm781_vm4, %v1519_v22, 0.0  ;;  %v882_v33 = vmul.f32 %v1535_v41, %v1535_v41  ;;  %v936_v46 = vsel %vm781_vm4, %v880_v36, 0.0 }
 0x111   : > { %v818_v43 = vadd.f32 %v817_v1, %v816_v63  ;;  %v921_v5 = vadd.f32 %v920_v3, %v919_v0  ;;  %v938_v50 = vsel %vm781_vm4, %v881_v39, 0.0  ;;  %v835_v51 = vsel %vm781_vm4, %v1535_v41, 0.0 }
 0x112   : > { %v883_v53 = vmul.f32 %v1561_v11, %v1561_v11  ;;  %v940_v56 = vsel %vm781_vm4, %v882_v33, 0.0  ;;  %v837_v22 = vsel %vm781_vm4, %v1561_v11, 0.0  ;;  %v884_v57 = vmul.f32 %v1595_v48, %v1595_v48 }
 0x113   : > { %v923_v9 = vadd.f32 %v922_v6, %v921_v5  ;;  %v820_v10 = vadd.f32 %v819_v7, %v818_v43  ;;  %v885_v30 = vmul.f32 %v1551_v62, %v1551_v62  ;;  %v839_v60 = vsel %vm781_vm4, %v1595_v48, 0.0 }
 0x114   : > { %v942_v41 = vsel %vm781_vm4, %v883_v53, 0.0  ;;  %v841_v1 = vsel %vm781_vm4, %v1551_v62, 0.0  ;;  %v886_v11 = vmul.f32 %v1575_v29, %v1575_v29  ;;  %v944_v2 = vsel %vm781_vm4, %v884_v57, 0.0 }
 0x115   : > { %v822_v15 = vadd.f32 %v821_v12, %v820_v10  ;;  %v925_v16 = vadd.f32 %v924_v26, %v923_v9  ;;  %v946_v5 = vsel %vm781_vm4, %v885_v30, 0.0  ;;  %v843_v6 = vsel %vm781_vm4, %v1575_v29, 0.0 }
 0x116   : > { %v948_v48 = vsel %vm781_vm4, %v886_v11, 0.0 }
 0x117   : > { %v927_v19 = vadd.f32 %v926_v35, %v925_v16  ;;  %v824_v20 = vadd.f32 %v823_v18, %v822_v15  ;;  %v780_v18 = vld [vmem:[%s1714_s3] sm:$0x1] }
 0x119   : > { %v826_v24 = vadd.f32 %v825_v21, %v824_v20  ;;  %v929_v25 = vadd.f32 %v928_v23, %v927_v19  ;;  %v854_v20 = vld [vmem:[%s1715_s4] sm:$0x1] }
 0x11b   : > { %v931_v31 = vadd.f32 %v930_v27, %v929_v25  ;;  %v828_v32 = vadd.f32 %v827_v28, %v826_v24 }
 0x11d   : > { %v830_v37 = vadd.f32 %v829_v52, %v828_v32  ;;  %v933_v38 = vadd.f32 %v932_v34, %v931_v31 }
 0x11f   : > { %v935_v42 = vadd.f32 %v934_v4, %v933_v38  ;;  %v832_v44 = vadd.f32 %v831_v40, %v830_v37 }
 0x121   : > { %v834_v47 = vadd.f32 %v833_v45, %v832_v44  ;;  %v937_v49 = vadd.f32 %v936_v46, %v935_v42 }
 0x123   : > { %v939_v54 = vadd.f32 %v938_v50, %v937_v49  ;;  %v836_v55 = vadd.f32 %v835_v51, %v834_v47 }
 0x125   : > { %v838_v58 = vadd.f32 %v837_v22, %v836_v55  ;;  %v941_v59 = vadd.f32 %v940_v56, %v939_v54 }
 0x127   : > { %v943_v63 = vadd.f32 %v942_v41, %v941_v59  ;;  %v840_v0 = vadd.f32 %v839_v60, %v838_v58 }
 0x129   : > { %v842_v3 = vadd.f32 %v841_v1, %v840_v0  ;;  %v945_v43 = vadd.f32 %v944_v2, %v943_v63 }
 0x12b   : > { %v844_v7 = vadd.f32 %v843_v6, %v842_v3  ;;  %v947_v8 = vadd.f32 %v946_v5, %v945_v43 }
 0x12d   : > { %v845_v9 = vrot.slane %v844_v7, 4  ;;  %v949_v10 = vadd.f32 %v948_v48, %v947_v8 }
 0x12f   : > { %v846_v26 = vadd.f32 %v845_v9, %v844_v7  ;;  %v950_v62 = vrot.slane %v949_v10, 4 }
 0x131   : > { %v847_v12 = vrot.slane %v846_v26, 2  ;;  %v951_v13 = vadd.f32 %v950_v62, %v949_v10 }
 0x133   : > { %v848_v15 = vadd.f32 %v847_v12, %v846_v26  ;;  %v952_v16 = vrot.slane %v951_v13, 2 }
 0x135   : > { %v849_v17 = vrot.slane %v848_v15, 1  ;;  %v953_v35 = vadd.f32 %v952_v16, %v951_v13 }
 0x137   : > { %v850_v19 = vadd.f32 %v849_v17, %v848_v15  ;;  %v954_v29 = vrot.slane %v953_v35, 1 }
 0x139   : > { %v851_v21 = vadd.f32 %v850_v19, %v780_v18  ;;  %v955_v61 = vadd.f32 %v954_v29, %v953_v35 }
 0x13b   : > { %853 = vst.msk [vmem:[%s1714_s3] sm:$0x1] %vm852_vm5, %v851_v21  ;;  %v956_v23 = vadd.f32 %v955_v61, %v854_v20 }
 0x13d   : > { %957 = vst.msk [vmem:[%s1715_s4] sm:$0x1] %vm852_vm5, %v956_v23 }
 0x13e PF: > { %s15_s17 = sadd.s32 1, %s1343_s17   ;;  %s1716_s15 = smov %s1339_s16 }
 0x13f   : > { %p12_p6 = scmp.ge.s32.totalorder %s15_s17, 4   ;;  %s1717_s16 = smov %s1719_s18 }
 0x141   :  { %14 = sbr.rel (!%p12_p6) target bundleno = 2 (0x2), region = 89 }

// kernel: _lambda_.31
= control target key start
LH: loop header
LB: loop body
LE: loop exit
PB: predicated region body
PF: predicated region fallthrough
CT: control target
= control target key end

     0   :  { %vm14_vm0 = vcmask 122880   ;;  %v195_v0 = vmov 0.0   ;;  %vm50_vm1 = vcmask 130048   ;;  %s289_s0 = inlined_call_operand.vmem [shape: bf16[128,16], index: 0, kind: input, shape index: {}]   ;;  %s290_s1 = inlined_call_operand.vmem [shape: f32[1,16], index: 1, kind: output, shape index: {0}]   ;;  %s291_s2 = inlined_call_operand.vmem [shape: f32[1,16], index: 2, kind: output, shape index: {1}]  }
   0x1   :  { %15 = vst.msk [vmem:[%s290_s1] sm:$0x1] %vm14_vm0, %v195_v0  ;;  %v156_v1 = vld [vmem:[%s289_s0] sm:$0xff]   ;;  %v187_v2 = vld [vmem:[%s289_s0 + $0x8] sm:$0xff]   ;;  %16 = vst.msk [vmem:[%s291_s2] sm:$0x1] %vm14_vm0, %v195_v0 }
   0x2   :  { %v157_v3 = vunpack.c.l.bf16 %v156_v1  ;;  %v158_v4 = vunpack.c.h.bf16 %v156_v1  ;;  %v161_v5 = vunpack.c.l.bf16 %v187_v2  ;;  %v188_v6 = vld [vmem:[%s289_s0 + $0x10] sm:$0xff]   ;;  %v162_v7 = vunpack.c.h.bf16 %v187_v2  ;;  %v189_v14 = vld [vmem:[%s289_s0 + $0x18] sm:$0xff]   ;;  %v190_v24 = vld [vmem:[%s289_s0 + $0x20] sm:$0xff]  }
   0x3   :  { %v165_v12 = vunpack.c.l.bf16 %v188_v6  ;;  %v166_v16 = vunpack.c.h.bf16 %v188_v6  ;;  %v169_v22 = vunpack.c.l.bf16 %v189_v14  ;;  %v170_v27 = vunpack.c.h.bf16 %v189_v14  ;;  %v191_v37 = vld [vmem:[%s289_s0 + $0x28] sm:$0xff]   ;;  %v192_v50 = vld [vmem:[%s289_s0 + $0x30] sm:$0xff]   ;;  %v193_v63 = vld [vmem:[%s289_s0 + $0x38] sm:$0xff]  }
   0x4   :  { %v51_v8 = vsel %vm50_vm1, %v157_v3, 0.0  ;;  %v52_v9 = vsel %vm50_vm1, %v158_v4, 0.0  ;;  %v54_v10 = vsel %vm50_vm1, %v161_v5, 0.0  ;;  %v56_v13 = vsel %vm50_vm1, %v162_v7, 0.0 }
   0x5   :  { %v53_v11 = vadd.f32 %v52_v9, %v51_v8  ;;  %v58_v17 = vsel %vm50_vm1, %v165_v12, 0.0  ;;  %v92_v19 = vmul.f32 %v157_v3, %v157_v3  ;;  %v93_v20 = vmul.f32 %v158_v4, %v158_v4 }
   0x6   :  { %v94_v21 = vmul.f32 %v161_v5, %v161_v5  ;;  %v60_v23 = vsel %vm50_vm1, %v166_v16, 0.0  ;;  %v95_v26 = vmul.f32 %v162_v7, %v162_v7  ;;  %v62_v28 = vsel %vm50_vm1, %v169_v22, 0.0 }
   0x7   :  { %v55_v15 = vadd.f32 %v54_v10, %v53_v11  ;;  %v96_v29 = vmul.f32 %v165_v12, %v165_v12  ;;  %v108_v31 = vsel %vm50_vm1, %v92_v19, 0.0  ;;  %v109_v32 = vsel %vm50_vm1, %v93_v20, 0.0 }
   0x8   :  { %v111_v33 = vsel %vm50_vm1, %v94_v21, 0.0  ;;  %v173_v34 = vunpack.c.l.bf16 %v190_v24  ;;  %v64_v35 = vsel %vm50_vm1, %v170_v27, 0.0  ;;  %v110_v36 = vadd.f32 %v109_v32, %v108_v31 }
   0x9   :  { %v57_v18 = vadd.f32 %v56_v13, %v55_v15  ;;  %v97_v39 = vmul.f32 %v166_v16, %v166_v16  ;;  %v113_v40 = vsel %vm50_vm1, %v95_v26, 0.0  ;;  %v174_v41 = vunpack.c.h.bf16 %v190_v24 }
   0xa   :  { %v66_v42 = vsel %vm50_vm1, %v173_v34, 0.0  ;;  %v112_v43 = vadd.f32 %v111_v33, %v110_v36  ;;  %v98_v45 = vmul.f32 %v169_v22, %v169_v22  ;;  %v115_v46 = vsel %vm50_vm1, %v96_v29, 0.0 }
   0xb   :  { %v59_v25 = vadd.f32 %v58_v17, %v57_v18  ;;  %v177_v47 = vunpack.c.l.bf16 %v191_v37  ;;  %v68_v48 = vsel %vm50_vm1, %v174_v41, 0.0  ;;  %v99_v52 = vmul.f32 %v170_v27, %v170_v27 }
   0xc   :  { %v114_v49 = vadd.f32 %v113_v40, %v112_v43  ;;  %v117_v53 = vsel %vm50_vm1, %v97_v39, 0.0  ;;  %v178_v54 = vunpack.c.h.bf16 %v191_v37  ;;  %v100_v58 = vmul.f32 %v173_v34, %v173_v34 }
   0xd   :  { %v61_v30 = vadd.f32 %v60_v23, %v59_v25  ;;  %v70_v55 = vsel %vm50_vm1, %v177_v47, 0.0  ;;  %v119_v59 = vsel %vm50_vm1, %v98_v45, 0.0  ;;  %v181_v60 = vunpack.c.l.bf16 %v192_v50 }
   0xe   :  { %v116_v56 = vadd.f32 %v115_v46, %v114_v49  ;;  %v72_v61 = vsel %vm50_vm1, %v178_v54, 0.0  ;;  %v101_v1 = vmul.f32 %v174_v41, %v174_v41  ;;  %v121_v2 = vsel %vm50_vm1, %v99_v52, 0.0  ;;  %v91_v52 = vld [vmem:[%s291_s2] sm:$0x1] }
   0xf   :  { %v63_v38 = vadd.f32 %v62_v28, %v61_v30  ;;  %v182_v3 = vunpack.c.h.bf16 %v192_v50  ;;  %v74_v4 = vsel %vm50_vm1, %v181_v60, 0.0  ;;  %v102_v7 = vmul.f32 %v177_v47, %v177_v47 }
  0x10   :  { %v118_v62 = vadd.f32 %v117_v53, %v116_v56  ;;  %v123_v8 = vsel %vm50_vm1, %v100_v58, 0.0  ;;  %v185_v9 = vunpack.c.l.bf16 %v193_v63  ;;  %v103_v13 = vmul.f32 %v178_v54, %v178_v54 }
  0x11   :  { %v65_v44 = vadd.f32 %v64_v35, %v63_v38  ;;  %v76_v10 = vsel %vm50_vm1, %v182_v3, 0.0  ;;  %v125_v14 = vsel %vm50_vm1, %v101_v1, 0.0  ;;  %v186_v15 = vunpack.c.h.bf16 %v193_v63 }
  0x12   :  { %v120_v5 = vadd.f32 %v119_v59, %v118_v62  ;;  %v78_v16 = vsel %vm50_vm1, %v185_v9, 0.0  ;;  %v104_v19 = vmul.f32 %v181_v60, %v181_v60  ;;  %v127_v20 = vsel %vm50_vm1, %v102_v7, 0.0 }
  0x13   :  { %v67_v51 = vadd.f32 %v66_v42, %v65_v44  ;;  %v80_v21 = vsel %vm50_vm1, %v186_v15, 0.0  ;;  %v105_v24 = vmul.f32 %v182_v3, %v182_v3  ;;  %v129_v25 = vsel %vm50_vm1, %v103_v13, 0.0  ;;  %v49_v44 = vld [vmem:[%s290_s1] sm:$0x1] }
  0x14   :  { %v122_v11 = vadd.f32 %v121_v2, %v120_v5  ;;  %v106_v28 = vmul.f32 %v185_v9, %v185_v9  ;;  %v131_v29 = vsel %vm50_vm1, %v104_v19, 0.0  ;;  %v107_v32 = vmul.f32 %v186_v15, %v186_v15 }
  0x15   :  { %v69_v57 = vadd.f32 %v68_v48, %v67_v51  ;;  %v133_v33 = vsel %vm50_vm1, %v105_v24, 0.0 }
  0x16   :  { %v124_v17 = vadd.f32 %v123_v8, %v122_v11  ;;  %v135_v36 = vsel %vm50_vm1, %v106_v28, 0.0  ;;  %v137_v39 = vsel %vm50_vm1, %v107_v32, 0.0 }
  0x17   :  { %v71_v0 = vadd.f32 %v70_v55, %v69_v57 }
  0x18   :  { %v126_v22 = vadd.f32 %v125_v14, %v124_v17 }
  0x19   :  { %v73_v6 = vadd.f32 %v72_v61, %v71_v0 }
  0x1a   :  { %v128_v26 = vadd.f32 %v127_v20, %v126_v22 }
  0x1b   :  { %v75_v12 = vadd.f32 %v74_v4, %v73_v6 }
  0x1c   :  { %v130_v30 = vadd.f32 %v129_v25, %v128_v26 }
  0x1d   :  { %v77_v18 = vadd.f32 %v76_v10, %v75_v12 }
  0x1e   :  { %v132_v34 = vadd.f32 %v131_v29, %v130_v30 }
  0x1f   :  { %v79_v23 = vadd.f32 %v78_v16, %v77_v18 }
  0x20   :  { %v134_v37 = vadd.f32 %v133_v33, %v132_v34 }
  0x21   :  { %v81_v27 = vadd.f32 %v80_v21, %v79_v23 }
  0x22   :  { %v136_v40 = vadd.f32 %v135_v36, %v134_v37 }
  0x23   :  { %v82_v31 = vrot.slane %v81_v27, 4 }
  0x24   :  { %v138_v42 = vadd.f32 %v137_v39, %v136_v40 }
  0x25   :  { %v83_v35 = vadd.f32 %v82_v31, %v81_v27 }
  0x26   :  { %v139_v45 = vrot.slane %v138_v42, 4 }
  0x27   :  { %v84_v38 = vrot.slane %v83_v35, 2 }
  0x28   :  { %v140_v47 = vadd.f32 %v139_v45, %v138_v42 }
  0x29   :  { %v85_v41 = vadd.f32 %v84_v38, %v83_v35 }
  0x2a   :  { %v141_v49 = vrot.slane %v140_v47, 2 }
  0x2b   :  { %v86_v43 = vrot.slane %v85_v41, 1 }
  0x2c   :  { %v142_v50 = vadd.f32 %v141_v49, %v140_v47 }
  0x2d   :  { %v87_v46 = vadd.f32 %v86_v43, %v85_v41 }
  0x2e   :  { %v143_v51 = vrot.slane %v142_v50, 1 }
  0x2f   :  { %v88_v48 = vadd.f32 %v87_v46, %v49_v44 }
  0x30   :  { %v144_v53 = vadd.f32 %v143_v51, %v142_v50 }
  0x31   :  { %90 = vst.msk [vmem:[%s290_s1] sm:$0x1] %vm14_vm0, %v88_v48 }
  0x32   :  { %v145_v54 = vadd.f32 %v144_v53, %v91_v52 }
  0x34   :  { %146 = vst.msk [vmem:[%s291_s2] sm:$0x1] %vm14_vm0, %v145_v54 }

// kernel: _lambda_.32
= control target key start
LH: loop header
LB: loop body
LE: loop exit
PB: predicated region body
PF: predicated region fallthrough
CT: control target
= control target key end

     0   :  { %vm138_vm0 = vcmask 130048   ;;  %vm25_vm1 = vcmask 253952   ;;  %vm324_vm2 = vcmask 257024   ;;  %vm342_vm3 = vcmask 261120   ;;  %s802_s3 = inlined_call_operand.vmem [shape: bf16[16,32], index: 3, kind: input, shape index: {}]   ;;  %s803_s0 = inlined_call_operand.vmem [shape: bf16[128,16], index: 0, kind: input, shape index: {}]   ;;  %s804_s1 = inlined_call_operand.vmem [shape: f32[1,16], index: 1, kind: input, shape index: {}]   ;;  %s805_s2 = inlined_call_operand.vmem [shape: f32[1,16], index: 2, kind: input, shape index: {}]   ;;  %s806_s5 = inlined_call_operand.vmem [shape: f32[1,32], index: 5, kind: output, shape index: {1}]   ;;  %s807_s6 = inlined_call_operand.vmem [shape: f32[1,32], index: 6, kind: output, shape index: {2}]   ;;  %s808_s4 = inlined_call_operand.vmem [shape: bf16[128,32], index: 4, kind: output, shape index: {0}]  }
   0x1   :  { %v563_v0 = vld [vmem:[%s802_s3] sm:$0xff]   ;;  %v526_v5 = vld [vmem:[%s803_s0 + $0x8] sm:$0xff]   ;;  %v527_v6 = vld [vmem:[%s803_s0 + $0x10] sm:$0xff]  }
   0x2   :  { %v495_v1 = vld [vmem:[%s803_s0] sm:$0xff]   ;;  %542 = vmatprep.subr.bf16.mxu0 %v563_v0  ;;  %560 = vmatprep.subr.bf16.mxu1 %v563_v0  ;;  %v528_v7 = vld [vmem:[%s803_s0 + $0x18] sm:$0xff]   ;;  %v500_v9 = vunpack.c.l.bf16 %v526_v5  ;;  %v501_v10 = vunpack.c.h.bf16 %v526_v5  ;;  %v504_v11 = vunpack.c.l.bf16 %v527_v6  ;;  %v505_v12 = vunpack.c.h.bf16 %v527_v6  ;;  %v530_v34 = vld [vmem:[%s803_s0 + $0x28] sm:$0xff]  }
   0x3   :  { %v609_v2 = vld [vmem:[%s804_s1] ss:$0 sm:$0xff]  ;;  %v496_v3 = vunpack.c.l.bf16 %v495_v1  ;;  %v497_v4 = vunpack.c.h.bf16 %v495_v1  ;;  %543 = vmatpush3.bf16.msra.mxu0 %v563_v0  ;;  %561 = vmatpush3.bf16.msra.mxu1 %v563_v0  ;;  %v508_v15 = vunpack.c.l.bf16 %v528_v7  ;;  %v509_v16 = vunpack.c.h.bf16 %v528_v7  ;;  %v531_v39 = vld [vmem:[%s803_s0 + $0x30] sm:$0xff]   ;;  %v532_v43 = vld [vmem:[%s803_s0 + $0x38] sm:$0xff]  }
   0x4   :  { %v623_v8 = vld [vmem:[%s805_s2] ss:$0 sm:$0xff]  ;;  %v69_v17 = vmul.f32 %v500_v9, %v609_v2  ;;  %v70_v18 = vmul.f32 %v501_v10, %v609_v2  ;;  %v71_v19 = vmul.f32 %v504_v11, %v609_v2  ;;  %v72_v20 = vmul.f32 %v505_v12, %v609_v2 }
   0x5   :  { %v67_v13 = vmul.f32 %v496_v3, %v609_v2  ;;  %v68_v14 = vmul.f32 %v497_v4, %v609_v2  ;;  %v73_v23 = vmul.f32 %v508_v15, %v609_v2  ;;  %v74_v24 = vmul.f32 %v509_v16, %v609_v2  ;;  %v529_v29 = vld [vmem:[%s803_s0 + $0x20] sm:$0xff]  }
   0x6   :  { %v92_v25 = vadd.f32 %v623_v8, %v69_v17  ;;  %v93_v26 = vadd.f32 %v623_v8, %v70_v18  ;;  %v94_v27 = vadd.f32 %v623_v8, %v71_v19  ;;  %v95_v28 = vadd.f32 %v623_v8, %v72_v20 }
   0x7   :  { %v90_v21 = vadd.f32 %v623_v8, %v67_v13  ;;  %v91_v22 = vadd.f32 %v623_v8, %v68_v14  ;;  %v96_v32 = vadd.f32 %v623_v8, %v73_v23  ;;  %v97_v33 = vadd.f32 %v623_v8, %v74_v24 }
   0x8   :  { %v108_v35 = vmax.f32 %v92_v25, 0.0  ;;  %v109_v36 = vmax.f32 %v93_v26, 0.0  ;;  %v110_v37 = vmax.f32 %v94_v27, 0.0  ;;  %v111_v38 = vmax.f32 %v95_v28, 0.0 }
   0x9   :  { %v106_v30 = vmax.f32 %v90_v21, 0.0  ;;  %v107_v31 = vmax.f32 %v91_v22, 0.0  ;;  %v112_v41 = vmax.f32 %v96_v32, 0.0  ;;  %v512_v42 = vunpack.c.l.bf16 %v529_v29 }
   0xa   :  { %v123_v44 = vpack.c.bf16 %v109_v36, %v108_v35  ;;  %v124_v45 = vpack.c.bf16 %v111_v38, %v110_v37  ;;  %v513_v46 = vunpack.c.h.bf16 %v529_v29  ;;  %v516_v47 = vunpack.c.l.bf16 %v530_v34 }
   0xb   :  { %v122_v40 = vpack.c.bf16 %v107_v31, %v106_v30  ;;  %v113_v48 = vmax.f32 %v97_v33, 0.0  ;;  %v75_v49 = vmul.f32 %v512_v42, %v609_v2  ;;  %v517_v50 = vunpack.c.h.bf16 %v530_v34 }
   0xc   :  { %v520_v51 = vunpack.c.l.bf16 %v531_v39  ;;  %v76_v52 = vmul.f32 %v513_v46, %v609_v2  ;;  %v77_v53 = vmul.f32 %v516_v47, %v609_v2  ;;  %v521_v54 = vunpack.c.h.bf16 %v531_v39 }
   0xd   :  { %544 = vmatprep.mubr.msk.bf16.mxu0 %vm138_vm0, %v122_v40  ;;  %v524_v55 = vunpack.c.l.bf16 %v532_v43  ;;  %v98_v56 = vadd.f32 %v623_v8, %v75_v49  ;;  %v78_v57 = vmul.f32 %v517_v50, %v609_v2  ;;  %v525_v59 = vunpack.c.h.bf16 %v532_v43 }
   0xe   :  { %545 = vmatmul.mubr.msk.bf16.vlgmr.msra.gmra.mxu0 %vm138_vm0, %v123_v44  ;;  %v79_v58 = vmul.f32 %v520_v51, %v609_v2  ;;  %v99_v60 = vadd.f32 %v623_v8, %v76_v52  ;;  %v100_v61 = vadd.f32 %v623_v8, %v77_v53  ;;  %v80_v62 = vmul.f32 %v521_v54, %v609_v2 }
   0xf   :  { %548 = vmatprep.mubr.msk.bf16.mxu0 %vm138_vm0, %v124_v45  ;;  %v81_v63 = vmul.f32 %v524_v55, %v609_v2  ;;  %v114_v0 = vmax.f32 %v98_v56, 0.0  ;;  %v101_v1 = vadd.f32 %v623_v8, %v78_v57  ;;  %v82_v4 = vmul.f32 %v525_v59, %v609_v2 }
  0x10   :  { %v102_v3 = vadd.f32 %v623_v8, %v79_v58  ;;  %v125_v5 = vpack.c.bf16 %v113_v48, %v112_v41  ;;  %v115_v6 = vmax.f32 %v99_v60, 0.0  ;;  %v116_v7 = vmax.f32 %v100_v61, 0.0 }
  0x11   :  { %v103_v9 = vadd.f32 %v623_v8, %v80_v62  ;;  %v117_v10 = vmax.f32 %v101_v1, 0.0  ;;  %v104_v12 = vadd.f32 %v623_v8, %v81_v63  ;;  %v105_v13 = vadd.f32 %v623_v8, %v82_v4 }
  0x12   :  { %v118_v11 = vmax.f32 %v102_v3, 0.0  ;;  %v126_v14 = vpack.c.bf16 %v115_v6, %v114_v0  ;;  %v564_v20 = vmov 0.0  }
  0x13   :  { %v119_v15 = vmax.f32 %v103_v9, 0.0  ;;  %v127_v16 = vpack.c.bf16 %v117_v10, %v116_v7  ;;  %v120_v2 = vmax.f32 %v104_v12, 0.0  ;;  %v121_v18 = vmax.f32 %v105_v13, 0.0  ;;  %26 = vst.msk [vmem:[%s806_s5] sm:$0x1] %vm25_vm1, %v564_v20 }
  0x14   :  { %552 = vmatprep.mubr.msk.bf16.mxu1 %vm138_vm0, %v126_v14  ;;  %27 = vst.msk [vmem:[%s807_s6] sm:$0x1] %vm25_vm1, %v564_v20 }
  0x15   :  { %v128_v17 = vpack.c.bf16 %v119_v15, %v118_v11  ;;  %553 = vmatmul.mubr.msk.bf16.vlgmr.msra.gmra.mxu1 %vm138_vm0, %v127_v16  ;;  %v129_v19 = vpack.c.bf16 %v121_v18, %v120_v2 }
  0x16   :  { %549 = vmatmul.mubr.msk.bf16.gmra.mxu0 %vm138_vm0, %v125_v5 }
  0x17   :  { %556 = vmatprep.mubr.msk.bf16.mxu1 %vm138_vm0, %v128_v17 }
  0x1d   :  { %557 = vmatmul.mubr.msk.bf16.gmra.mxu1 %vm138_vm0, %v129_v19 }
  0xce   :  { %v546_v8 = vpop.f32.mrf.mxu0 }
  0xcf   :  { %v480_v21 = vpack.c.bf16 %v546_v8, %v546_v8  ;;  %v386_v27 = vmul.f32 %v546_v8, %v546_v8  ;;  %v346_v33 = vsel %vm342_vm3, %v546_v8, 0.0 }
  0xd0   :  { %v197_v22 = vpop.f32.mrf.mxu0 }
  0xd1   :  { %327 = vst.msk [vmem:[%s808_s4 + $0x8] sm:$0xf] %vm324_vm2, %v480_v21  ;;  %v478_v23 = vpack.c.bf16 %v197_v22, %v197_v22  ;;  %v384_v25 = vmul.f32 %v197_v22, %v197_v22  ;;  %v343_v29 = vsel %vm342_vm3, %v197_v22, 0.0  ;;  %v403_v45 = vsel %vm342_vm3, %v386_v27, 0.0 }
  0xd2   :  { %v547_v24 = vpop.f32.mrf.mxu0 }
  0xd3   :  { %325 = vst.msk [vmem:[%s808_s4] sm:$0xf] %vm324_vm2, %v478_v23  ;;  %v481_v26 = vpack.c.bf16 %v547_v24, %v547_v24  ;;  %v400_v36 = vsel %vm342_vm3, %v384_v25, 0.0  ;;  %v387_v37 = vmul.f32 %v547_v24, %v547_v24  ;;  %v348_v46 = vsel %vm342_vm3, %v547_v24, 0.0 }
  0xd4   :  { %v200_v28 = vpop.f32.mrf.mxu0 }
  0xd5   :  { %328 = vst.msk [vmem:[%s808_s4 + $0xc] sm:$0xf] %vm324_vm2, %v481_v26  ;;  %v479_v30 = vpack.c.bf16 %v200_v28, %v200_v28  ;;  %v344_v31 = vsel %vm342_vm3, %v200_v28, 0.0  ;;  %v385_v32 = vmul.f32 %v200_v28, %v200_v28  ;;  %v706_v40 = vpop.f32.mrf.mxu1  ;;  %v405_v54 = vsel %vm342_vm3, %v387_v37, 0.0 }
  0xd6   :  { %v345_v34 = vadd.f32 %v344_v31, %v343_v29  ;;  %v550_v35 = vpop.f32.mrf.mxu0  ;;  %v488_v44 = vpack.c.bf16 %v706_v40, %v706_v40 }
  0xd7   :  { %326 = vst.msk [vmem:[%s808_s4 + $0x4] sm:$0xf] %vm324_vm2, %v479_v30  ;;  %v401_v38 = vsel %vm342_vm3, %v385_v32, 0.0  ;;  %v484_v39 = vpack.c.bf16 %v550_v35, %v550_v35  ;;  %v229_v49 = vpop.f32.mrf.mxu1  ;;  %v390_v61 = vmul.f32 %v550_v35, %v550_v35  ;;  %v354_v7 = vsel %vm342_vm3, %v550_v35, 0.0 }
  0xd8   :  { %v347_v41 = vadd.f32 %v346_v33, %v345_v34  ;;  %v402_v42 = vadd.f32 %v401_v38, %v400_v36  ;;  %v213_v43 = vpop.f32.mrf.mxu0  ;;  %335 = vst.msk [vmem:[%s808_s4 + $0x28] sm:$0xf] %vm324_vm2, %v488_v44  ;;  %v486_v53 = vpack.c.bf16 %v229_v49, %v229_v49  ;;  %v392_v18 = vmul.f32 %v229_v49, %v229_v49 }
  0xd9   :  { %331 = vst.msk [vmem:[%s808_s4 + $0x18] sm:$0xf] %vm324_vm2, %v484_v39  ;;  %v482_v47 = vpack.c.bf16 %v213_v43, %v213_v43  ;;  %v388_v48 = vmul.f32 %v213_v43, %v213_v43  ;;  %v350_v55 = vsel %vm342_vm3, %v213_v43, 0.0  ;;  %v555_v57 = vpop.f32.mrf.mxu1  ;;  %v411_v2 = vsel %vm342_vm3, %v390_v61, 0.0 }
  0xda   :  { %v404_v50 = vadd.f32 %v403_v45, %v402_v42  ;;  %v349_v51 = vadd.f32 %v348_v46, %v347_v41  ;;  %v551_v52 = vpop.f32.mrf.mxu0  ;;  %333 = vst.msk [vmem:[%s808_s4 + $0x20] sm:$0xf] %vm324_vm2, %v486_v53  ;;  %v489_v6 = vpack.c.bf16 %v555_v57, %v555_v57  ;;  %v358_v8 = vsel %vm342_vm3, %v229_v49, 0.0 }
  0xdb   :  { %329 = vst.msk [vmem:[%s808_s4 + $0x10] sm:$0xf] %vm324_vm2, %v482_v47  ;;  %v485_v56 = vpack.c.bf16 %v551_v52, %v551_v52  ;;  %v407_v62 = vsel %vm342_vm3, %v388_v48, 0.0  ;;  %v232_v1 = vpop.f32.mrf.mxu1  ;;  %v391_v11 = vmul.f32 %v551_v52, %v551_v52  ;;  %v356_v14 = vsel %vm342_vm3, %v551_v52, 0.0 }
  0xdc   :  { %v351_v58 = vadd.f32 %v350_v55, %v349_v51  ;;  %v406_v59 = vadd.f32 %v405_v54, %v404_v50  ;;  %v216_v60 = vpop.f32.mrf.mxu0  ;;  %v487_v9 = vpack.c.bf16 %v232_v1, %v232_v1  ;;  %336 = vst.msk [vmem:[%s808_s4 + $0x2c] sm:$0xf] %vm324_vm2, %v489_v6  ;;  %v393_v25 = vmul.f32 %v232_v1, %v232_v1 }
  0xdd   :  { %332 = vst.msk [vmem:[%s808_s4 + $0x1c] sm:$0xf] %vm324_vm2, %v485_v56  ;;  %v483_v63 = vpack.c.bf16 %v216_v60, %v216_v60  ;;  %v352_v0 = vsel %vm342_vm3, %v216_v60, 0.0  ;;  %v389_v5 = vmul.f32 %v216_v60, %v216_v60  ;;  %v558_v10 = vpop.f32.mrf.mxu1  ;;  %v413_v23 = vsel %vm342_vm3, %v391_v11, 0.0 }
  0xde   :  { %v408_v3 = vadd.f32 %v407_v62, %v406_v59  ;;  %v353_v4 = vadd.f32 %v352_v0, %v351_v58  ;;  %334 = vst.msk [vmem:[%s808_s4 + $0x24] sm:$0xf] %vm324_vm2, %v487_v9  ;;  %v492_v16 = vpack.c.bf16 %v558_v10, %v558_v10  ;;  %v360_v28 = vsel %vm342_vm3, %v232_v1, 0.0 }
  0xdf   :  { %330 = vst.msk [vmem:[%s808_s4 + $0x14] sm:$0xf] %vm324_vm2, %v483_v63  ;;  %v409_v13 = vsel %vm342_vm3, %v389_v5, 0.0  ;;  %v245_v17 = vpop.f32.mrf.mxu1  ;;  %v394_v30 = vmul.f32 %v706_v40, %v706_v40  ;;  %v415_v31 = vsel %vm342_vm3, %v392_v18, 0.0  ;;  %v362_v34 = vsel %vm342_vm3, %v706_v40, 0.0 }
  0xe0   :  { %v355_v12 = vadd.f32 %v354_v7, %v353_v4  ;;  %v410_v15 = vadd.f32 %v409_v13, %v408_v3  ;;  %v490_v20 = vpack.c.bf16 %v245_v17, %v245_v17  ;;  %339 = vst.msk [vmem:[%s808_s4 + $0x38] sm:$0xf] %vm324_vm2, %v492_v16  ;;  %v395_v36 = vmul.f32 %v555_v57, %v555_v57 }
  0xe1   :  { %v559_v22 = vpop.f32.mrf.mxu1  ;;  %v417_v38 = vsel %vm342_vm3, %v393_v25, 0.0  ;;  %v364_v39 = vsel %vm342_vm3, %v555_v57, 0.0  ;;  %v419_v42 = vsel %vm342_vm3, %v394_v30, 0.0  ;;  %v396_v44 = vmul.f32 %v245_v17, %v245_v17 }
  0xe2   :  { %v357_v19 = vadd.f32 %v356_v14, %v355_v12  ;;  %v412_v21 = vadd.f32 %v411_v2, %v410_v15  ;;  %337 = vst.msk [vmem:[%s808_s4 + $0x30] sm:$0xf] %vm324_vm2, %v490_v20  ;;  %v493_v26 = vpack.c.bf16 %v559_v22, %v559_v22  ;;  %v366_v40 = vsel %vm342_vm3, %v245_v17, 0.0  ;;  %v341_v12 = vld [vmem:[%s806_s5] sm:$0x1] }
  0xe3   :  { %v248_v29 = vpop.f32.mrf.mxu1  ;;  %v421_v46 = vsel %vm342_vm3, %v395_v36, 0.0  ;;  %v398_v51 = vmul.f32 %v558_v10, %v558_v10  ;;  %v423_v52 = vsel %vm342_vm3, %v396_v44, 0.0  ;;  %v370_v54 = vsel %vm342_vm3, %v558_v10, 0.0  ;;  %v383_v17 = vld [vmem:[%s807_s6] sm:$0x1] }
  0xe4   :  { %v359_v24 = vadd.f32 %v358_v8, %v357_v19  ;;  %v414_v27 = vadd.f32 %v413_v23, %v412_v21  ;;  %340 = vst.msk [vmem:[%s808_s4 + $0x3c] sm:$0xf] %vm324_vm2, %v493_v26  ;;  %v491_v33 = vpack.c.bf16 %v248_v29, %v248_v29  ;;  %v397_v48 = vmul.f32 %v248_v29, %v248_v29 }
  0xe5   :  { %v368_v50 = vsel %vm342_vm3, %v248_v29, 0.0  ;;  %v399_v56 = vmul.f32 %v559_v22, %v559_v22  ;;  %v372_v59 = vsel %vm342_vm3, %v559_v22, 0.0  ;;  %v427_v61 = vsel %vm342_vm3, %v398_v51, 0.0 }
  0xe6   :  { %v361_v32 = vadd.f32 %v360_v28, %v359_v24  ;;  %v416_v35 = vadd.f32 %v415_v31, %v414_v27  ;;  %338 = vst.msk [vmem:[%s808_s4 + $0x34] sm:$0xf] %vm324_vm2, %v491_v33  ;;  %v425_v58 = vsel %vm342_vm3, %v397_v48, 0.0 }
  0xe7   :  { %v429_v0 = vsel %vm342_vm3, %v399_v56, 0.0 }
  0xe8   :  { %v363_v37 = vadd.f32 %v362_v34, %v361_v32  ;;  %v418_v41 = vadd.f32 %v417_v38, %v416_v35 }
  0xea   :  { %v365_v43 = vadd.f32 %v364_v39, %v363_v37  ;;  %v420_v45 = vadd.f32 %v419_v42, %v418_v41 }
  0xec   :  { %v367_v47 = vadd.f32 %v366_v40, %v365_v43  ;;  %v422_v49 = vadd.f32 %v421_v46, %v420_v45 }
  0xee   :  { %v369_v53 = vadd.f32 %v368_v50, %v367_v47  ;;  %v424_v55 = vadd.f32 %v423_v52, %v422_v49 }
  0xf0   :  { %v371_v57 = vadd.f32 %v370_v54, %v369_v53  ;;  %v426_v60 = vadd.f32 %v425_v58, %v424_v55 }
  0xf2   :  { %v373_v62 = vadd.f32 %v372_v59, %v371_v57  ;;  %v428_v63 = vadd.f32 %v427_v61, %v426_v60 }
  0xf4   :  { %v374_v1 = vrot.slane %v373_v62, 4  ;;  %v430_v3 = vadd.f32 %v429_v0, %v428_v63 }
  0xf6   :  { %v375_v4 = vadd.f32 %v374_v1, %v373_v62  ;;  %v431_v5 = vrot.slane %v430_v3, 4 }
  0xf8   :  { %v376_v6 = vrot.slane %v375_v4, 2  ;;  %v432_v7 = vadd.f32 %v431_v5, %v430_v3 }
  0xfa   :  { %v377_v9 = vadd.f32 %v376_v6, %v375_v4  ;;  %v433_v10 = vrot.slane %v432_v7, 2 }
  0xfc   :  { %v378_v11 = vrot.slane %v377_v9, 1  ;;  %v434_v13 = vadd.f32 %v433_v10, %v432_v7 }
  0xfe   :  { %v379_v14 = vadd.f32 %v378_v11, %v377_v9  ;;  %v435_v15 = vrot.slane %v434_v13, 1 }
 0x100   :  { %v380_v16 = vadd.f32 %v379_v14, %v341_v12  ;;  %v436_v2 = vadd.f32 %v435_v15, %v434_v13 }
 0x102   :  { %382 = vst.msk [vmem:[%s806_s5] sm:$0x1] %vm25_vm1, %v380_v16  ;;  %v437_v18 = vadd.f32 %v436_v2, %v383_v17 }
 0x104   :  { %438 = vst.msk [vmem:[%s807_s6] sm:$0x1] %vm25_vm1, %v437_v18 }

// kernel: _lambda_.30
= control target key start
LH: loop header
LB: loop body
LE: loop exit
PB: predicated region body
PF: predicated region fallthrough
CT: control target
= control target key end

     0   :  { %vm296_vm0 = vcmask 130048   ;;  %vm633_vm1 = vcmask 125952   ;;  %s1619_s0 = inlined_call_operand.vmem [shape: bf16[9,128,16], index: 0, kind: input, shape index: {}]   ;;  %s1620_s1 = inlined_call_operand.vmem [shape: bf16[128,16], index: 1, kind: output, shape index: {}]  }
   0x1   :  { %v687_v0 = vld [vmem:[%s1619_s0] sm:$0xff]   ;;  %v1098_v35 = vld [vmem:[%s1619_s0 + $0x8] sm:$0xff]  }
   0x2   :  { %v981_v1 = vld [vmem:[%s1619_s0 + $0x40] sm:$0xff]   ;;  %v688_v3 = vunpack.c.l.bf16 %v687_v0  ;;  %v689_v19 = vunpack.c.h.bf16 %v687_v0  ;;  %v1103_v36 = vld [vmem:[%s1619_s0 + $0x48] sm:$0xff]   ;;  %v692_v49 = vunpack.c.l.bf16 %v1098_v35 }
   0x3   :  { %v989_v2 = vld [vmem:[%s1619_s0 + $0x80] sm:$0xff]   ;;  %v720_v4 = vunpack.c.l.bf16 %v981_v1  ;;  %v721_v20 = vunpack.c.h.bf16 %v981_v1  ;;  %v990_v41 = vld [vmem:[%s1619_s0 + $0x88] sm:$0xff]   ;;  %v724_v50 = vunpack.c.l.bf16 %v1103_v36 }
   0x4   :  { %v752_v5 = vunpack.c.l.bf16 %v989_v2  ;;  %v997_v6 = vld [vmem:[%s1619_s0 + $0xc0] sm:$0xff]   ;;  %v297_v16 = vsel %vm296_vm0, %v688_v3, -inf  ;;  %v753_v25 = vunpack.c.h.bf16 %v989_v2  ;;  %v314_v32 = vsel %vm296_vm0, %v689_v19, -inf  ;;  %v1111_v42 = vld [vmem:[%s1619_s0 + $0xc8] sm:$0xff]  }
   0x5   :  { %v1005_v7 = vld [vmem:[%s1619_s0 + $0x100] sm:$0xff]   ;;  %v784_v9 = vunpack.c.l.bf16 %v997_v6  ;;  %v298_v17 = vsel %vm296_vm0, %v720_v4, -inf  ;;  %v785_v26 = vunpack.c.h.bf16 %v997_v6  ;;  %v315_v33 = vsel %vm296_vm0, %v721_v20, -inf  ;;  %v1121_v51 = vld [vmem:[%s1619_s0 + $0x108] sm:$0xff]  }
   0x6   :  { %v1013_v8 = vld [vmem:[%s1619_s0 + $0x140] sm:$0xff]   ;;  %v816_v12 = vunpack.c.l.bf16 %v1005_v7  ;;  %v300_v18 = vsel %vm296_vm0, %v752_v5, -inf  ;;  %v299_v22 = vmax.f32 %v297_v16, %v298_v17  ;;  %v817_v31 = vunpack.c.h.bf16 %v1005_v7  ;;  %v1131_v60 = vld [vmem:[%s1619_s0 + $0x148] sm:$0xff]  }
   0x7   :  { %v1021_v10 = vld [vmem:[%s1619_s0 + $0x180] sm:$0xff]   ;;  %v848_v13 = vunpack.c.l.bf16 %v1013_v8  ;;  %v302_v24 = vsel %vm296_vm0, %v784_v9, -inf  ;;  %v317_v34 = vsel %vm296_vm0, %v753_v25, -inf  ;;  %v849_v38 = vunpack.c.h.bf16 %v1013_v8  ;;  %v1136_v61 = vld [vmem:[%s1619_s0 + $0x188] sm:$0xff]  }
   0x8   :  { %v1029_v11 = vld [vmem:[%s1619_s0 + $0x1c0] sm:$0xff]   ;;  %v880_v14 = vunpack.c.l.bf16 %v1021_v10  ;;  %v301_v27 = vmax.f32 %v299_v22, %v300_v18  ;;  %v304_v28 = vsel %vm296_vm0, %v816_v12, -inf  ;;  %v881_v39 = vunpack.c.h.bf16 %v1021_v10  ;;  %v1141_v62 = vld [vmem:[%s1619_s0 + $0x1c8] sm:$0xff]  }
   0x9   :  { %v1082_v15 = vld [vmem:[%s1619_s0 + $0x200] sm:$0xff]   ;;  %v912_v21 = vunpack.c.l.bf16 %v1029_v11  ;;  %v306_v29 = vsel %vm296_vm0, %v848_v13, -inf  ;;  %v316_v40 = vmax.f32 %v314_v32, %v315_v33  ;;  %v913_v45 = vunpack.c.h.bf16 %v1029_v11  ;;  %v1154_v10 = vld [vmem:[%s1619_s0 + $0x208] sm:$0xff]   ;;  %v1170_v32 = vld [vmem:[%s1619_s0 + $0x10] sm:$0xff]  }
   0xa   :  { %v944_v23 = vunpack.c.l.bf16 %v1082_v15  ;;  %v308_v30 = vsel %vm296_vm0, %v880_v14, -inf  ;;  %v303_v37 = vmax.f32 %v301_v27, %v302_v24  ;;  %v319_v46 = vsel %vm296_vm0, %v785_v26, -inf }
   0xb   :  { %v310_v43 = vsel %vm296_vm0, %v912_v21, -inf  ;;  %v318_v48 = vmax.f32 %v316_v40, %v317_v34  ;;  %v945_v52 = vunpack.c.h.bf16 %v1082_v15  ;;  %v321_v53 = vsel %vm296_vm0, %v817_v31, -inf }
   0xc   :  { %v312_v44 = vsel %vm296_vm0, %v944_v23, -inf  ;;  %v305_v47 = vmax.f32 %v303_v37, %v304_v28  ;;  %v756_v54 = vunpack.c.l.bf16 %v990_v41  ;;  %v788_v55 = vunpack.c.l.bf16 %v1111_v42  ;;  %v983_v37 = vld [vmem:[%s1619_s0 + $0x50] sm:$0xff]  }
   0xd   :  { %v320_v57 = vmax.f32 %v318_v48, %v319_v46  ;;  %v323_v58 = vsel %vm296_vm0, %v849_v38, -inf  ;;  %v325_v59 = vsel %vm296_vm0, %v881_v39, -inf  ;;  %v820_v63 = vunpack.c.l.bf16 %v1121_v51 }
   0xe   :  { %v307_v56 = vmax.f32 %v305_v47, %v306_v29  ;;  %v331_v0 = vsel %vm296_vm0, %v692_v49, -inf  ;;  %v332_v1 = vsel %vm296_vm0, %v724_v50, -inf  ;;  %v334_v2 = vsel %vm296_vm0, %v756_v54, -inf }
   0xf   :  { %v322_v4 = vmax.f32 %v320_v57, %v321_v53  ;;  %v327_v5 = vsel %vm296_vm0, %v913_v45, -inf  ;;  %v333_v6 = vmax.f32 %v331_v0, %v332_v1  ;;  %v852_v7 = vunpack.c.l.bf16 %v1131_v60  ;;  %v1222_v0 = vld [vmem:[%s1619_s0 + $0x1d0] sm:$0xff]  }
  0x10   :  { %v309_v3 = vmax.f32 %v307_v56, %v308_v30  ;;  %v884_v8 = vunpack.c.l.bf16 %v1136_v61  ;;  %v916_v9 = vunpack.c.l.bf16 %v1141_v62  ;;  %v336_v11 = vsel %vm296_vm0, %v788_v55, -inf }
  0x11   :  { %v324_v13 = vmax.f32 %v322_v4, %v323_v58  ;;  %v329_v14 = vsel %vm296_vm0, %v945_v52, -inf  ;;  %v335_v15 = vmax.f32 %v333_v6, %v334_v2  ;;  %v338_v16 = vsel %vm296_vm0, %v820_v63, -inf  ;;  %v1199_v52 = vld [vmem:[%s1619_s0 + $0x110] sm:$0xff]  }
  0x12   :  { %v311_v12 = vmax.f32 %v309_v3, %v310_v43  ;;  %v693_v17 = vunpack.c.h.bf16 %v1098_v35  ;;  %v725_v18 = vunpack.c.h.bf16 %v1103_v36  ;;  %v757_v19 = vunpack.c.h.bf16 %v990_v41  ;;  %v1190_v43 = vld [vmem:[%s1619_s0 + $0xd0] sm:$0xff]  }
  0x13   :  { %v326_v21 = vmax.f32 %v324_v13, %v325_v59  ;;  %v948_v22 = vunpack.c.l.bf16 %v1154_v10  ;;  %v337_v23 = vmax.f32 %v335_v15, %v336_v11  ;;  %v340_v24 = vsel %vm296_vm0, %v852_v7, -inf  ;;  %v1039_v11 = vld [vmem:[%s1619_s0 + $0x210] sm:$0xff]  }
  0x14   :  { %v313_v20 = vmax.f32 %v311_v12, %v312_v44  ;;  %v342_v25 = vsel %vm296_vm0, %v884_v8, -inf  ;;  %v344_v26 = vsel %vm296_vm0, %v916_v9, -inf  ;;  %v789_v27 = vunpack.c.h.bf16 %v1111_v42  ;;  %v991_v42 = vld [vmem:[%s1619_s0 + $0x90] sm:$0xff]  }
  0x15   :  { %v328_v29 = vmax.f32 %v326_v21, %v327_v5  ;;  %v339_v30 = vmax.f32 %v337_v23, %v338_v16  ;;  %v348_v31 = vsel %vm296_vm0, %v693_v17, -inf  ;;  %v821_v33 = vunpack.c.h.bf16 %v1121_v51 }
  0x16   :  { %v670_v28 = vpack.c.bf16 %v313_v20, %v313_v20  ;;  %v853_v34 = vunpack.c.h.bf16 %v1131_v60  ;;  %v349_v35 = vsel %vm296_vm0, %v725_v18, -inf  ;;  %v351_v36 = vsel %vm296_vm0, %v757_v19, -inf }
  0x17   :  { %v330_v38 = vmax.f32 %v328_v29, %v329_v14  ;;  %v341_v39 = vmax.f32 %v339_v30, %v340_v24  ;;  %v885_v40 = vunpack.c.h.bf16 %v1136_v61  ;;  %v350_v41 = vmax.f32 %v348_v31, %v349_v35  ;;  %v1015_v61 = vld [vmem:[%s1619_s0 + $0x150] sm:$0xff]  }
  0x18   :  { %634 = vst.msk [vmem:[%s1620_s1] sm:$0xf] %vm633_vm1, %v670_v28  ;;  %v346_v44 = vsel %vm296_vm0, %v948_v22, -inf  ;;  %v917_v45 = vunpack.c.h.bf16 %v1141_v62  ;;  %v353_v46 = vsel %vm296_vm0, %v789_v27, -inf  ;;  %v696_v47 = vunpack.c.l.bf16 %v1170_v32  ;;  %v1216_v62 = vld [vmem:[%s1619_s0 + $0x190] sm:$0xff]  }
  0x19   :  { %v671_v48 = vpack.c.bf16 %v330_v38, %v330_v38  ;;  %v343_v49 = vmax.f32 %v341_v39, %v342_v25  ;;  %v352_v50 = vmax.f32 %v350_v41, %v351_v36  ;;  %v728_v51 = vunpack.c.l.bf16 %v983_v37  ;;  %v992_v39 = vld [vmem:[%s1619_s0 + $0x98] sm:$0xff]  }
  0x1a   :  { %v949_v53 = vunpack.c.h.bf16 %v1154_v10  ;;  %v355_v54 = vsel %vm296_vm0, %v821_v33, -inf  ;;  %v760_v55 = vunpack.c.l.bf16 %v991_v42  ;;  %v792_v56 = vunpack.c.l.bf16 %v1190_v43  ;;  %v976_v33 = vld [vmem:[%s1619_s0 + $0x18] sm:$0xff]  }
  0x1b   :  { %635 = vst.msk [vmem:[%s1620_s1 + $0x4] sm:$0xf] %vm633_vm1, %v671_v48  ;;  %v345_v57 = vmax.f32 %v343_v49, %v344_v26  ;;  %v354_v58 = vmax.f32 %v352_v50, %v353_v46  ;;  %v357_v59 = vsel %vm296_vm0, %v853_v34, -inf  ;;  %v359_v60 = vsel %vm296_vm0, %v885_v40, -inf  ;;  %v984_v34 = vld [vmem:[%s1619_s0 + $0x58] sm:$0xff]  }
  0x1c   :  { %v824_v63 = vunpack.c.l.bf16 %v1199_v52  ;;  %v365_v1 = vsel %vm296_vm0, %v696_v47, -inf  ;;  %v366_v2 = vsel %vm296_vm0, %v728_v51, -inf  ;;  %v368_v3 = vsel %vm296_vm0, %v760_v55, -inf }
  0x1d   :  { %v347_v4 = vmax.f32 %v345_v57, %v346_v44  ;;  %v356_v5 = vmax.f32 %v354_v58, %v355_v54  ;;  %v361_v6 = vsel %vm296_vm0, %v917_v45, -inf  ;;  %v367_v7 = vmax.f32 %v365_v1, %v366_v2  ;;  %v1264_v44 = vld [vmem:[%s1619_s0 + $0xd8] sm:$0xff]  }
  0x1e   :  { %v363_v8 = vsel %vm296_vm0, %v949_v53, -inf  ;;  %v856_v9 = vunpack.c.l.bf16 %v1015_v61  ;;  %v888_v10 = vunpack.c.l.bf16 %v1216_v62  ;;  %v370_v12 = vsel %vm296_vm0, %v792_v56, -inf  ;;  %v1008_v53 = vld [vmem:[%s1619_s0 + $0x118] sm:$0xff]  }
  0x1f   :  { %v672_v13 = vpack.c.bf16 %v347_v4, %v347_v4  ;;  %v358_v14 = vmax.f32 %v356_v5, %v357_v59  ;;  %v920_v15 = vunpack.c.l.bf16 %v1222_v0  ;;  %v369_v16 = vmax.f32 %v367_v7, %v368_v3  ;;  %v1276_v58 = vld [vmem:[%s1619_s0 + $0x158] sm:$0xff]  }
  0x20   :  { %v372_v17 = vsel %vm296_vm0, %v824_v63, -inf  ;;  %v697_v18 = vunpack.c.h.bf16 %v1170_v32  ;;  %v729_v19 = vunpack.c.h.bf16 %v983_v37  ;;  %v761_v20 = vunpack.c.h.bf16 %v991_v42  ;;  %v1292_v63 = vld [vmem:[%s1619_s0 + $0x1d8] sm:$0xff]  }
  0x21   :  { %636 = vst.msk [vmem:[%s1620_s1 + $0x8] sm:$0xf] %vm633_vm1, %v672_v13  ;;  %v360_v21 = vmax.f32 %v358_v14, %v359_v60  ;;  %v952_v22 = vunpack.c.l.bf16 %v1039_v11  ;;  %v371_v23 = vmax.f32 %v369_v16, %v370_v12  ;;  %v793_v24 = vunpack.c.h.bf16 %v1190_v43  ;;  %v1304_v12 = vld [vmem:[%s1619_s0 + $0x218] sm:$0xff]  }
  0x22   :  { %v374_v25 = vsel %vm296_vm0, %v856_v9, -inf  ;;  %v376_v26 = vsel %vm296_vm0, %v888_v10, -inf  ;;  %v825_v27 = vunpack.c.h.bf16 %v1199_v52  ;;  %v382_v28 = vsel %vm296_vm0, %v697_v18, -inf }
  0x23   :  { %v362_v29 = vmax.f32 %v360_v21, %v361_v6  ;;  %v373_v30 = vmax.f32 %v371_v23, %v372_v17  ;;  %v383_v31 = vsel %vm296_vm0, %v729_v19, -inf  ;;  %v385_v32 = vsel %vm296_vm0, %v761_v20, -inf }
  0x24   :  { %v378_v35 = vsel %vm296_vm0, %v920_v15, -inf  ;;  %v857_v36 = vunpack.c.h.bf16 %v1015_v61  ;;  %v889_v37 = vunpack.c.h.bf16 %v1216_v62  ;;  %v384_v38 = vmax.f32 %v382_v28, %v383_v31  ;;  %v1287_v62 = vld [vmem:[%s1619_s0 + $0x198] sm:$0xff]  }
  0x25   :  { %v364_v40 = vmax.f32 %v362_v29, %v363_v8  ;;  %v375_v41 = vmax.f32 %v373_v30, %v374_v25  ;;  %v921_v42 = vunpack.c.h.bf16 %v1222_v0  ;;  %v387_v43 = vsel %vm296_vm0, %v793_v24, -inf }
  0x26   :  { %v953_v45 = vunpack.c.h.bf16 %v1039_v11  ;;  %v386_v46 = vmax.f32 %v384_v38, %v385_v32  ;;  %v700_v47 = vunpack.c.l.bf16 %v976_v33  ;;  %v732_v48 = vunpack.c.l.bf16 %v984_v34 }
  0x27   :  { %v673_v49 = vpack.c.bf16 %v364_v40, %v364_v40  ;;  %v377_v50 = vmax.f32 %v375_v41, %v376_v26  ;;  %v389_v51 = vsel %vm296_vm0, %v825_v27, -inf  ;;  %v764_v52 = vunpack.c.l.bf16 %v992_v39  ;;  %v1335_v41 = vld [vmem:[%s1619_s0 + $0xe0] sm:$0xff]  }
  0x28   :  { %v380_v54 = vsel %vm296_vm0, %v952_v22, -inf  ;;  %v388_v55 = vmax.f32 %v386_v46, %v387_v43  ;;  %v391_v56 = vsel %vm296_vm0, %v857_v36, -inf  ;;  %v796_v57 = vunpack.c.l.bf16 %v1264_v44  ;;  %v993_v36 = vld [vmem:[%s1619_s0 + $0xa0] sm:$0xff]  }
  0x29   :  { %637 = vst.msk [vmem:[%s1620_s1 + $0xc] sm:$0xf] %vm633_vm1, %v673_v49  ;;  %v379_v59 = vmax.f32 %v377_v50, %v378_v35  ;;  %v393_v60 = vsel %vm296_vm0, %v889_v37, -inf  ;;  %v395_v61 = vsel %vm296_vm0, %v921_v42, -inf  ;;  %v399_v0 = vsel %vm296_vm0, %v700_v47, -inf  ;;  %v985_v35 = vld [vmem:[%s1619_s0 + $0x60] sm:$0xff]  }
  0x2a   :  { %v390_v1 = vmax.f32 %v388_v55, %v389_v51  ;;  %v828_v2 = vunpack.c.l.bf16 %v1008_v53  ;;  %v400_v3 = vsel %vm296_vm0, %v732_v48, -inf  ;;  %v402_v4 = vsel %vm296_vm0, %v764_v52, -inf  ;;  %v1342_v46 = vld [vmem:[%s1619_s0 + $0x120] sm:$0xff]  }
  0x2b   :  { %v381_v5 = vmax.f32 %v379_v59, %v380_v54  ;;  %v397_v6 = vsel %vm296_vm0, %v953_v45, -inf  ;;  %v860_v7 = vunpack.c.l.bf16 %v1276_v58  ;;  %v401_v8 = vmax.f32 %v399_v0, %v400_v3  ;;  %v1349_v55 = vld [vmem:[%s1619_s0 + $0x160] sm:$0xff]  }
  0x2c   :  { %v392_v9 = vmax.f32 %v390_v1, %v391_v56  ;;  %v892_v10 = vunpack.c.l.bf16 %v1287_v62  ;;  %v924_v11 = vunpack.c.l.bf16 %v1292_v63  ;;  %v404_v13 = vsel %vm296_vm0, %v796_v57, -inf }
  0x2d   :  { %v674_v14 = vpack.c.bf16 %v381_v5, %v381_v5  ;;  %v403_v15 = vmax.f32 %v401_v8, %v402_v4  ;;  %v701_v16 = vunpack.c.h.bf16 %v976_v33  ;;  %v733_v17 = vunpack.c.h.bf16 %v984_v34  ;;  %v977_v34 = vld [vmem:[%s1619_s0 + $0x20] sm:$0xff]  }
  0x2e   :  { %v394_v18 = vmax.f32 %v392_v9, %v393_v60  ;;  %v406_v19 = vsel %vm296_vm0, %v828_v2, -inf  ;;  %v765_v20 = vunpack.c.h.bf16 %v992_v39  ;;  %v797_v21 = vunpack.c.h.bf16 %v1264_v44  ;;  %v1362_v60 = vld [vmem:[%s1619_s0 + $0x1a0] sm:$0xff]  }
  0x2f   :  { %638 = vst.msk [vmem:[%s1620_s1 + $0x10] sm:$0xf] %vm633_vm1, %v674_v14  ;;  %v956_v22 = vunpack.c.l.bf16 %v1304_v12  ;;  %v405_v23 = vmax.f32 %v403_v15, %v404_v13  ;;  %v408_v24 = vsel %vm296_vm0, %v860_v7, -inf  ;;  %v829_v25 = vunpack.c.h.bf16 %v1008_v53  ;;  %v1041_v9 = vld [vmem:[%s1619_s0 + $0x220] sm:$0xff]  }
  0x30   :  { %v396_v26 = vmax.f32 %v394_v18, %v395_v61  ;;  %v410_v27 = vsel %vm296_vm0, %v892_v10, -inf  ;;  %v416_v28 = vsel %vm296_vm0, %v701_v16, -inf  ;;  %v417_v29 = vsel %vm296_vm0, %v733_v17, -inf }
  0x31   :  { %v407_v30 = vmax.f32 %v405_v23, %v406_v19  ;;  %v412_v31 = vsel %vm296_vm0, %v924_v11, -inf  ;;  %v418_v32 = vmax.f32 %v416_v28, %v417_v29  ;;  %v419_v33 = vsel %vm296_vm0, %v765_v20, -inf }
  0x32   :  { %v398_v37 = vmax.f32 %v396_v26, %v397_v6  ;;  %v861_v38 = vunpack.c.h.bf16 %v1276_v58  ;;  %v893_v39 = vunpack.c.h.bf16 %v1287_v62  ;;  %v421_v40 = vsel %vm296_vm0, %v797_v21, -inf }
  0x33   :  { %v409_v42 = vmax.f32 %v407_v30, %v408_v24  ;;  %v925_v43 = vunpack.c.h.bf16 %v1292_v63  ;;  %v420_v44 = vmax.f32 %v418_v32, %v419_v33  ;;  %v423_v45 = vsel %vm296_vm0, %v829_v25, -inf  ;;  %v1367_v63 = vld [vmem:[%s1619_s0 + $0x1e0] sm:$0xff]  }
  0x34   :  { %v675_v47 = vpack.c.bf16 %v398_v37, %v398_v37  ;;  %v704_v48 = vunpack.c.l.bf16 %v977_v34  ;;  %v736_v49 = vunpack.c.l.bf16 %v985_v35  ;;  %v768_v50 = vunpack.c.l.bf16 %v993_v36  ;;  %v994_v37 = vld [vmem:[%s1619_s0 + $0xa8] sm:$0xff]  }
  0x35   :  { %v411_v51 = vmax.f32 %v409_v42, %v410_v27  ;;  %v414_v52 = vsel %vm296_vm0, %v956_v22, -inf  ;;  %v422_v53 = vmax.f32 %v420_v44, %v421_v40  ;;  %v800_v54 = vunpack.c.l.bf16 %v1335_v41  ;;  %v1410_v42 = vld [vmem:[%s1619_s0 + $0xe8] sm:$0xff]  }
  0x36   :  { %639 = vst.msk [vmem:[%s1620_s1 + $0x14] sm:$0xf] %vm633_vm1, %v675_v47  ;;  %v957_v56 = vunpack.c.h.bf16 %v1304_v12  ;;  %v425_v57 = vsel %vm296_vm0, %v861_v38, -inf  ;;  %v427_v58 = vsel %vm296_vm0, %v893_v39, -inf  ;;  %v832_v59 = vunpack.c.l.bf16 %v1342_v46 }
  0x37   :  { %v413_v61 = vmax.f32 %v411_v51, %v412_v31  ;;  %v424_v62 = vmax.f32 %v422_v53, %v423_v45  ;;  %v433_v0 = vsel %vm296_vm0, %v704_v48, -inf  ;;  %v434_v1 = vsel %vm296_vm0, %v736_v49, -inf  ;;  %v978_v31 = vld [vmem:[%s1619_s0 + $0x28] sm:$0xff]  }
  0x38   :  { %v429_v2 = vsel %vm296_vm0, %v925_v43, -inf  ;;  %v864_v3 = vunpack.c.l.bf16 %v1349_v55  ;;  %v435_v4 = vmax.f32 %v433_v0, %v434_v1  ;;  %v436_v5 = vsel %vm296_vm0, %v768_v50, -inf  ;;  %v1010_v51 = vld [vmem:[%s1619_s0 + $0x128] sm:$0xff]  }
  0x39   :  { %v415_v6 = vmax.f32 %v413_v61, %v414_v52  ;;  %v426_v7 = vmax.f32 %v424_v62, %v425_v57  ;;  %v896_v8 = vunpack.c.l.bf16 %v1362_v60  ;;  %v438_v10 = vsel %vm296_vm0, %v800_v54, -inf  ;;  %v1438_v61 = vld [vmem:[%s1619_s0 + $0x1e8] sm:$0xff]  }
  0x3a   :  { %v928_v11 = vunpack.c.l.bf16 %v1367_v63  ;;  %v437_v12 = vmax.f32 %v435_v4, %v436_v5  ;;  %v440_v13 = vsel %vm296_vm0, %v832_v59, -inf  ;;  %v705_v14 = vunpack.c.h.bf16 %v977_v34 }
  0x3b   :  { %v676_v15 = vpack.c.bf16 %v415_v6, %v415_v6  ;;  %v428_v16 = vmax.f32 %v426_v7, %v427_v58  ;;  %v737_v17 = vunpack.c.h.bf16 %v985_v35  ;;  %v769_v18 = vunpack.c.h.bf16 %v993_v36  ;;  %v986_v36 = vld [vmem:[%s1619_s0 + $0x68] sm:$0xff]  }
  0x3c   :  { %v431_v19 = vsel %vm296_vm0, %v957_v56, -inf  ;;  %v960_v20 = vunpack.c.l.bf16 %v1041_v9  ;;  %v439_v21 = vmax.f32 %v437_v12, %v438_v10  ;;  %v801_v22 = vunpack.c.h.bf16 %v1335_v41  ;;  %v1426_v56 = vld [vmem:[%s1619_s0 + $0x168] sm:$0xff]  }
  0x3d   :  { %640 = vst.msk [vmem:[%s1620_s1 + $0x18] sm:$0xf] %vm633_vm1, %v676_v15  ;;  %v430_v23 = vmax.f32 %v428_v16, %v429_v2  ;;  %v442_v24 = vsel %vm296_vm0, %v864_v3, -inf  ;;  %v444_v25 = vsel %vm296_vm0, %v896_v8, -inf  ;;  %v833_v26 = vunpack.c.h.bf16 %v1342_v46  ;;  %v1450_v10 = vld [vmem:[%s1619_s0 + $0x228] sm:$0xff]  }
  0x3e   :  { %v441_v27 = vmax.f32 %v439_v21, %v440_v13  ;;  %v450_v28 = vsel %vm296_vm0, %v705_v14, -inf  ;;  %v451_v29 = vsel %vm296_vm0, %v737_v17, -inf  ;;  %v453_v30 = vsel %vm296_vm0, %v769_v18, -inf }
  0x3f   :  { %v432_v32 = vmax.f32 %v430_v23, %v431_v19  ;;  %v446_v33 = vsel %vm296_vm0, %v928_v11, -inf  ;;  %v865_v34 = vunpack.c.h.bf16 %v1349_v55  ;;  %v452_v35 = vmax.f32 %v450_v28, %v451_v29 }
  0x40   :  { %v443_v38 = vmax.f32 %v441_v27, %v442_v24  ;;  %v897_v39 = vunpack.c.h.bf16 %v1362_v60  ;;  %v929_v40 = vunpack.c.h.bf16 %v1367_v63  ;;  %v455_v41 = vsel %vm296_vm0, %v801_v22, -inf  ;;  %v1433_v60 = vld [vmem:[%s1619_s0 + $0x1a8] sm:$0xff]  }
  0x41   :  { %v677_v43 = vpack.c.bf16 %v432_v32, %v432_v32  ;;  %v961_v44 = vunpack.c.h.bf16 %v1041_v9  ;;  %v454_v45 = vmax.f32 %v452_v35, %v453_v30  ;;  %v708_v46 = vunpack.c.l.bf16 %v978_v31  ;;  %v979_v32 = vld [vmem:[%s1619_s0 + $0x30] sm:$0xff]  }
  0x42   :  { %v445_v47 = vmax.f32 %v443_v38, %v444_v25  ;;  %v457_v48 = vsel %vm296_vm0, %v833_v26, -inf  ;;  %v740_v49 = vunpack.c.l.bf16 %v986_v36  ;;  %v772_v50 = vunpack.c.l.bf16 %v994_v37 }
  0x43   :  { %641 = vst.msk [vmem:[%s1620_s1 + $0x1c] sm:$0xf] %vm633_vm1, %v677_v43  ;;  %v448_v52 = vsel %vm296_vm0, %v960_v20, -inf  ;;  %v456_v53 = vmax.f32 %v454_v45, %v455_v41  ;;  %v459_v54 = vsel %vm296_vm0, %v865_v34, -inf  ;;  %v804_v55 = vunpack.c.l.bf16 %v1410_v42  ;;  %v995_v34 = vld [vmem:[%s1619_s0 + $0xb0] sm:$0xff]  }
  0x44   :  { %v447_v57 = vmax.f32 %v445_v47, %v446_v33  ;;  %v461_v58 = vsel %vm296_vm0, %v897_v39, -inf  ;;  %v463_v59 = vsel %vm296_vm0, %v929_v40, -inf  ;;  %v467_v62 = vsel %vm296_vm0, %v708_v46, -inf  ;;  %v987_v33 = vld [vmem:[%s1619_s0 + $0x70] sm:$0xff]  }
  0x45   :  { %v458_v63 = vmax.f32 %v456_v53, %v457_v48  ;;  %v836_v0 = vunpack.c.l.bf16 %v1010_v51  ;;  %v468_v1 = vsel %vm296_vm0, %v740_v49, -inf  ;;  %v470_v2 = vsel %vm296_vm0, %v772_v50, -inf  ;;  %v1481_v39 = vld [vmem:[%s1619_s0 + $0xf0] sm:$0xff]  }
  0x46   :  { %v449_v3 = vmax.f32 %v447_v57, %v448_v52  ;;  %v465_v4 = vsel %vm296_vm0, %v961_v44, -inf  ;;  %v868_v5 = vunpack.c.l.bf16 %v1426_v56  ;;  %v469_v6 = vmax.f32 %v467_v62, %v468_v1  ;;  %v1488_v44 = vld [vmem:[%s1619_s0 + $0x130] sm:$0xff]  }
  0x47   :  { %v460_v7 = vmax.f32 %v458_v63, %v459_v54  ;;  %v900_v8 = vunpack.c.l.bf16 %v1433_v60  ;;  %v932_v9 = vunpack.c.l.bf16 %v1438_v61  ;;  %v472_v11 = vsel %vm296_vm0, %v804_v55, -inf }
  0x48   :  { %v678_v12 = vpack.c.bf16 %v449_v3, %v449_v3  ;;  %v471_v13 = vmax.f32 %v469_v6, %v470_v2  ;;  %v709_v14 = vunpack.c.h.bf16 %v978_v31  ;;  %v741_v15 = vunpack.c.h.bf16 %v986_v36 }
  0x49   :  { %v462_v16 = vmax.f32 %v460_v7, %v461_v58  ;;  %v474_v17 = vsel %vm296_vm0, %v836_v0, -inf  ;;  %v773_v18 = vunpack.c.h.bf16 %v994_v37  ;;  %v805_v19 = vunpack.c.h.bf16 %v1410_v42 }
  0x4a   :  { %642 = vst.msk [vmem:[%s1620_s1 + $0x20] sm:$0xf] %vm633_vm1, %v678_v12  ;;  %v964_v20 = vunpack.c.l.bf16 %v1450_v10  ;;  %v473_v21 = vmax.f32 %v471_v13, %v472_v11  ;;  %v476_v22 = vsel %vm296_vm0, %v868_v5, -inf  ;;  %v837_v23 = vunpack.c.h.bf16 %v1010_v51  ;;  %v1518_v5 = vld [vmem:[%s1619_s0 + $0x1f0] sm:$0xff]  }
  0x4b   :  { %v464_v24 = vmax.f32 %v462_v16, %v463_v59  ;;  %v478_v25 = vsel %vm296_vm0, %v900_v8, -inf  ;;  %v484_v26 = vsel %vm296_vm0, %v709_v14, -inf  ;;  %v485_v27 = vsel %vm296_vm0, %v741_v15, -inf  ;;  %v1507_v59 = vld [vmem:[%s1619_s0 + $0x1b0] sm:$0xff]  }
  0x4c   :  { %v475_v28 = vmax.f32 %v473_v21, %v474_v17  ;;  %v480_v29 = vsel %vm296_vm0, %v932_v9, -inf  ;;  %v486_v30 = vmax.f32 %v484_v26, %v485_v27  ;;  %v487_v31 = vsel %vm296_vm0, %v773_v18, -inf  ;;  %v1528_v17 = vld [vmem:[%s1619_s0 + $0x230] sm:$0xff]   ;;  %v980_v27 = vld [vmem:[%s1619_s0 + $0x38] sm:$0xff]  }
  0x4d   :  { %v466_v35 = vmax.f32 %v464_v24, %v465_v4  ;;  %v869_v36 = vunpack.c.h.bf16 %v1426_v56  ;;  %v901_v37 = vunpack.c.h.bf16 %v1433_v60  ;;  %v489_v38 = vsel %vm296_vm0, %v805_v19, -inf  ;;  %v1502_v56 = vld [vmem:[%s1619_s0 + $0x170] sm:$0xff]  }
  0x4e   :  { %v477_v40 = vmax.f32 %v475_v28, %v476_v22  ;;  %v933_v41 = vunpack.c.h.bf16 %v1438_v61  ;;  %v488_v42 = vmax.f32 %v486_v30, %v487_v31  ;;  %v491_v43 = vsel %vm296_vm0, %v837_v23, -inf }
  0x4f   :  { %v679_v45 = vpack.c.bf16 %v466_v35, %v466_v35  ;;  %v712_v46 = vunpack.c.l.bf16 %v979_v32  ;;  %v744_v47 = vunpack.c.l.bf16 %v987_v33  ;;  %v776_v48 = vunpack.c.l.bf16 %v995_v34 }
  0x50   :  { %v479_v49 = vmax.f32 %v477_v40, %v478_v25  ;;  %v490_v50 = vmax.f32 %v488_v42, %v489_v38  ;;  %v808_v51 = vunpack.c.l.bf16 %v1481_v39  ;;  %v482_v52 = vsel %vm296_vm0, %v964_v20, -inf  ;;  %v1004_v38 = vld [vmem:[%s1619_s0 + $0xf8] sm:$0xff]  }
  0x51   :  { %643 = vst.msk [vmem:[%s1620_s1 + $0x24] sm:$0xf] %vm633_vm1, %v679_v45  ;;  %v965_v53 = vunpack.c.h.bf16 %v1450_v10  ;;  %v493_v54 = vsel %vm296_vm0, %v869_v36, -inf  ;;  %v840_v55 = vunpack.c.l.bf16 %v1488_v44  ;;  %v501_v60 = vsel %vm296_vm0, %v712_v46, -inf }
  0x52   :  { %v481_v57 = vmax.f32 %v479_v49, %v480_v29  ;;  %v492_v58 = vmax.f32 %v490_v50, %v491_v43  ;;  %v502_v61 = vsel %vm296_vm0, %v744_v47, -inf  ;;  %v495_v62 = vsel %vm296_vm0, %v901_v37, -inf  ;;  %v1012_v47 = vld [vmem:[%s1619_s0 + $0x138] sm:$0xff]  }
  0x53   :  { %v497_v63 = vsel %vm296_vm0, %v933_v41, -inf  ;;  %v503_v0 = vmax.f32 %v501_v60, %v502_v61  ;;  %v504_v1 = vsel %vm296_vm0, %v776_v48, -inf  ;;  %v872_v4 = vunpack.c.l.bf16 %v1502_v56 }
  0x54   :  { %v483_v2 = vmax.f32 %v481_v57, %v482_v52  ;;  %v494_v3 = vmax.f32 %v492_v58, %v493_v54  ;;  %v506_v6 = vsel %vm296_vm0, %v808_v51, -inf  ;;  %v904_v7 = vunpack.c.l.bf16 %v1507_v59  ;;  %v1020_v52 = vld [vmem:[%s1619_s0 + $0x178] sm:$0xff]  }
  0x55   :  { %v505_v8 = vmax.f32 %v503_v0, %v504_v1  ;;  %v508_v9 = vsel %vm296_vm0, %v840_v55, -inf  ;;  %v713_v10 = vunpack.c.h.bf16 %v979_v32  ;;  %v745_v13 = vunpack.c.h.bf16 %v987_v33  ;;  %v988_v32 = vld [vmem:[%s1619_s0 + $0x78] sm:$0xff]  }
  0x56   :  { %v680_v11 = vpack.c.bf16 %v483_v2, %v483_v2  ;;  %v496_v12 = vmax.f32 %v494_v3, %v495_v62  ;;  %v777_v14 = vunpack.c.h.bf16 %v995_v34  ;;  %v499_v15 = vsel %vm296_vm0, %v965_v53, -inf  ;;  %v996_v33 = vld [vmem:[%s1619_s0 + $0xb8] sm:$0xff]  }
  0x57   :  { %v936_v16 = vunpack.c.l.bf16 %v1518_v5  ;;  %v507_v18 = vmax.f32 %v505_v8, %v506_v6  ;;  %v809_v19 = vunpack.c.h.bf16 %v1481_v39  ;;  %v510_v21 = vsel %vm296_vm0, %v872_v4, -inf }
  0x58   :  { %644 = vst.msk [vmem:[%s1620_s1 + $0x28] sm:$0xf] %vm633_vm1, %v680_v11  ;;  %v498_v20 = vmax.f32 %v496_v12, %v497_v63  ;;  %v841_v22 = vunpack.c.h.bf16 %v1488_v44  ;;  %v518_v24 = vsel %vm296_vm0, %v713_v10, -inf  ;;  %v519_v25 = vsel %vm296_vm0, %v745_v13, -inf  ;;  %v1044_v12 = vld [vmem:[%s1619_s0 + $0x238] sm:$0xff]  }
  0x59   :  { %v509_v23 = vmax.f32 %v507_v18, %v508_v9  ;;  %v521_v26 = vsel %vm296_vm0, %v777_v14, -inf  ;;  %v968_v29 = vunpack.c.l.bf16 %v1528_v17  ;;  %v512_v30 = vsel %vm296_vm0, %v904_v7, -inf }
  0x5a   :  { %v500_v28 = vmax.f32 %v498_v20, %v499_v15  ;;  %v520_v31 = vmax.f32 %v518_v24, %v519_v25  ;;  %v514_v35 = vsel %vm296_vm0, %v936_v16, -inf  ;;  %v873_v36 = vunpack.c.h.bf16 %v1502_v56  ;;  %v1028_v56 = vld [vmem:[%s1619_s0 + $0x1b8] sm:$0xff]  }
  0x5b   :  { %v511_v34 = vmax.f32 %v509_v23, %v510_v21  ;;  %v523_v37 = vsel %vm296_vm0, %v809_v19, -inf  ;;  %v905_v40 = vunpack.c.h.bf16 %v1507_v59  ;;  %v716_v42 = vunpack.c.l.bf16 %v980_v27 }
  0x5c   :  { %v681_v39 = vpack.c.bf16 %v500_v28, %v500_v28  ;;  %v522_v41 = vmax.f32 %v520_v31, %v521_v26  ;;  %v525_v44 = vsel %vm296_vm0, %v841_v22, -inf  ;;  %v748_v45 = vunpack.c.l.bf16 %v988_v32 }
  0x5d   :  { %v513_v43 = vmax.f32 %v511_v34, %v512_v30  ;;  %v780_v46 = vunpack.c.l.bf16 %v996_v33  ;;  %v516_v48 = vsel %vm296_vm0, %v968_v29, -inf  ;;  %v937_v49 = vunpack.c.h.bf16 %v1518_v5  ;;  %v1036_v5 = vld [vmem:[%s1619_s0 + $0x1f8] sm:$0xff]  }
  0x5e   :  { %645 = vst.msk [vmem:[%s1620_s1 + $0x2c] sm:$0xf] %vm633_vm1, %v681_v39  ;;  %v524_v50 = vmax.f32 %v522_v41, %v523_v37  ;;  %v812_v51 = vunpack.c.l.bf16 %v1004_v38  ;;  %v969_v54 = vunpack.c.h.bf16 %v1528_v17  ;;  %v527_v55 = vsel %vm296_vm0, %v873_v36, -inf }
  0x5f   :  { %v515_v53 = vmax.f32 %v513_v43, %v514_v35  ;;  %v535_v57 = vsel %vm296_vm0, %v716_v42, -inf  ;;  %v844_v59 = vunpack.c.l.bf16 %v1012_v47  ;;  %v536_v60 = vsel %vm296_vm0, %v748_v45, -inf }
  0x60   :  { %v526_v58 = vmax.f32 %v524_v50, %v525_v44  ;;  %v538_v61 = vsel %vm296_vm0, %v780_v46, -inf  ;;  %v529_v63 = vsel %vm296_vm0, %v905_v40, -inf  ;;  %v876_v0 = vunpack.c.l.bf16 %v1020_v52 }
  0x61   :  { %v517_v62 = vmax.f32 %v515_v53, %v516_v48  ;;  %v537_v1 = vmax.f32 %v535_v57, %v536_v60  ;;  %v531_v3 = vsel %vm296_vm0, %v937_v49, -inf  ;;  %v908_v4 = vunpack.c.l.bf16 %v1028_v56 }
  0x62   :  { %v528_v2 = vmax.f32 %v526_v58, %v527_v55  ;;  %v540_v6 = vsel %vm296_vm0, %v812_v51, -inf  ;;  %v717_v9 = vunpack.c.h.bf16 %v980_v27  ;;  %v749_v10 = vunpack.c.h.bf16 %v988_v32 }
  0x63   :  { %v682_v7 = vpack.c.bf16 %v517_v62, %v517_v62  ;;  %v539_v8 = vmax.f32 %v537_v1, %v538_v61  ;;  %v542_v13 = vsel %vm296_vm0, %v844_v59, -inf  ;;  %v781_v14 = vunpack.c.h.bf16 %v996_v33 }
  0x64   :  { %v530_v11 = vmax.f32 %v528_v2, %v529_v63  ;;  %v813_v15 = vunpack.c.h.bf16 %v1004_v38  ;;  %v533_v16 = vsel %vm296_vm0, %v969_v54, -inf  ;;  %v940_v17 = vunpack.c.l.bf16 %v1036_v5 }
  0x65   :  { %646 = vst.msk [vmem:[%s1620_s1 + $0x30] sm:$0xf] %vm633_vm1, %v682_v7  ;;  %v541_v18 = vmax.f32 %v539_v8, %v540_v6  ;;  %v544_v19 = vsel %vm296_vm0, %v876_v0, -inf  ;;  %v845_v21 = vunpack.c.h.bf16 %v1012_v47  ;;  %v552_v22 = vsel %vm296_vm0, %v717_v9, -inf }
  0x66   :  { %v532_v20 = vmax.f32 %v530_v11, %v531_v3  ;;  %v553_v23 = vsel %vm296_vm0, %v749_v10, -inf  ;;  %v972_v24 = vunpack.c.l.bf16 %v1044_v12  ;;  %v555_v27 = vsel %vm296_vm0, %v781_v14, -inf }
  0x67   :  { %v543_v25 = vmax.f32 %v541_v18, %v542_v13  ;;  %v554_v26 = vmax.f32 %v552_v22, %v553_v23  ;;  %v546_v29 = vsel %vm296_vm0, %v908_v4, -inf  ;;  %v877_v30 = vunpack.c.h.bf16 %v1020_v52 }
  0x68   :  { %v534_v28 = vmax.f32 %v532_v20, %v533_v16  ;;  %v557_v31 = vsel %vm296_vm0, %v813_v15, -inf  ;;  %v548_v35 = vsel %vm296_vm0, %v940_v17, -inf  ;;  %v909_v36 = vunpack.c.h.bf16 %v1028_v56 }
  0x69   :  { %v545_v32 = vmax.f32 %v543_v25, %v544_v19  ;;  %v556_v33 = vmax.f32 %v554_v26, %v555_v27  ;;  %v559_v37 = vsel %vm296_vm0, %v845_v21, -inf  ;;  %v550_v40 = vsel %vm296_vm0, %v972_v24, -inf }
  0x6a   :  { %v683_v34 = vpack.c.bf16 %v534_v28, %v534_v28  ;;  %v941_v41 = vunpack.c.h.bf16 %v1036_v5  ;;  %v561_v42 = vsel %vm296_vm0, %v877_v30, -inf  ;;  %v973_v45 = vunpack.c.h.bf16 %v1044_v12 }
  0x6b   :  { %v547_v38 = vmax.f32 %v545_v32, %v546_v29  ;;  %v558_v39 = vmax.f32 %v556_v33, %v557_v31  ;;  %v563_v46 = vsel %vm296_vm0, %v909_v36, -inf }
  0x6c   :  { %647 = vst.msk [vmem:[%s1620_s1 + $0x34] sm:$0xf] %vm633_vm1, %v683_v34  ;;  %v565_v49 = vsel %vm296_vm0, %v941_v41, -inf  ;;  %v567_v52 = vsel %vm296_vm0, %v973_v45, -inf }
  0x6d   :  { %v549_v43 = vmax.f32 %v547_v38, %v548_v35  ;;  %v560_v44 = vmax.f32 %v558_v39, %v559_v37 }
  0x6f   :  { %v551_v47 = vmax.f32 %v549_v43, %v550_v40  ;;  %v562_v48 = vmax.f32 %v560_v44, %v561_v42 }
  0x71   :  { %v684_v50 = vpack.c.bf16 %v551_v47, %v551_v47  ;;  %v564_v51 = vmax.f32 %v562_v48, %v563_v46 }
  0x73   :  { %648 = vst.msk [vmem:[%s1620_s1 + $0x38] sm:$0xf] %vm633_vm1, %v684_v50  ;;  %v566_v53 = vmax.f32 %v564_v51, %v565_v49 }
  0x75   :  { %v568_v54 = vmax.f32 %v566_v53, %v567_v52 }
  0x77   :  { %v685_v55 = vpack.c.bf16 %v568_v54, %v568_v54 }
  0x79   :  { %649 = vst.msk [vmem:[%s1620_s1 + $0x3c] sm:$0xf] %vm633_vm1, %v685_v55 }

// kernel: _lambda_.33
= control target key start
LH: loop header
LB: loop body
LE: loop exit
PB: predicated region body
PF: predicated region fallthrough
CT: control target
= control target key end

     0   :  { %vm172_vm0 = vcmask 257024   ;;  %s416_s0 = inlined_call_operand.vmem [shape: bf16[128,32], index: 0, kind: input, shape index: {}]   ;;  %s417_s1 = inlined_call_operand.vmem [shape: f32[1,32], index: 1, kind: input, shape index: {}]   ;;  %s418_s2 = inlined_call_operand.vmem [shape: f32[1,32], index: 2, kind: input, shape index: {}]   ;;  %s419_s3 = inlined_call_operand.vmem [shape: bf16[128,32], index: 3, kind: output, shape index: {}]  }
   0x1   :  { %v228_v0 = vld [vmem:[%s416_s0] sm:$0xff]   ;;  %v259_v4 = vld [vmem:[%s416_s0 + $0x8] sm:$0xff]   ;;  %v260_v5 = vld [vmem:[%s416_s0 + $0x10] sm:$0xff]  }
   0x2   :  { %v292_v1 = vld [vmem:[%s417_s1] ss:$0 sm:$0xff]  ;;  %v229_v2 = vunpack.c.l.bf16 %v228_v0  ;;  %v230_v3 = vunpack.c.h.bf16 %v228_v0  ;;  %v261_v6 = vld [vmem:[%s416_s0 + $0x18] sm:$0xff]   ;;  %v233_v8 = vunpack.c.l.bf16 %v259_v4  ;;  %v234_v9 = vunpack.c.h.bf16 %v259_v4  ;;  %v263_v41 = vld [vmem:[%s416_s0 + $0x28] sm:$0xff]  }
   0x3   :  { %v306_v7 = vld [vmem:[%s418_s2] ss:$0 sm:$0xff]  ;;  %v237_v10 = vunpack.c.l.bf16 %v260_v5  ;;  %v238_v11 = vunpack.c.h.bf16 %v260_v5  ;;  %v241_v14 = vunpack.c.l.bf16 %v261_v6  ;;  %v242_v15 = vunpack.c.h.bf16 %v261_v6  ;;  %v264_v42 = vld [vmem:[%s416_s0 + $0x30] sm:$0xff]   ;;  %v265_v47 = vld [vmem:[%s416_s0 + $0x38] sm:$0xff]  }
   0x4   :  { %v53_v12 = vmul.f32 %v229_v2, %v292_v1  ;;  %v54_v13 = vmul.f32 %v230_v3, %v292_v1  ;;  %v55_v16 = vmul.f32 %v233_v8, %v292_v1  ;;  %v56_v17 = vmul.f32 %v234_v9, %v292_v1  ;;  %v262_v36 = vld [vmem:[%s416_s0 + $0x20] sm:$0xff]  }
   0x5   :  { %v57_v18 = vmul.f32 %v237_v10, %v292_v1  ;;  %v58_v19 = vmul.f32 %v238_v11, %v292_v1  ;;  %v59_v22 = vmul.f32 %v241_v14, %v292_v1  ;;  %v60_v23 = vmul.f32 %v242_v15, %v292_v1 }
   0x6   :  { %v76_v20 = vadd.f32 %v306_v7, %v53_v12  ;;  %v77_v21 = vadd.f32 %v306_v7, %v54_v13  ;;  %v78_v24 = vadd.f32 %v306_v7, %v55_v16  ;;  %v79_v25 = vadd.f32 %v306_v7, %v56_v17 }
   0x7   :  { %v80_v26 = vadd.f32 %v306_v7, %v57_v18  ;;  %v81_v27 = vadd.f32 %v306_v7, %v58_v19  ;;  %v82_v30 = vadd.f32 %v306_v7, %v59_v22  ;;  %v83_v31 = vadd.f32 %v306_v7, %v60_v23 }
   0x8   :  { %v92_v28 = vmax.f32 %v76_v20, 0.0  ;;  %v93_v29 = vmax.f32 %v77_v21, 0.0  ;;  %v94_v32 = vmax.f32 %v78_v24, 0.0  ;;  %v95_v33 = vmax.f32 %v79_v25, 0.0 }
   0x9   :  { %v96_v34 = vmax.f32 %v80_v26, 0.0  ;;  %v97_v35 = vmax.f32 %v81_v27, 0.0  ;;  %v98_v39 = vmax.f32 %v82_v30, 0.0  ;;  %v99_v40 = vmax.f32 %v83_v31, 0.0 }
   0xa   :  { %v211_v37 = vpack.c.bf16 %v92_v28, %v92_v28  ;;  %v212_v38 = vpack.c.bf16 %v93_v29, %v93_v29  ;;  %v213_v43 = vpack.c.bf16 %v94_v32, %v94_v32  ;;  %v214_v44 = vpack.c.bf16 %v95_v33, %v95_v33 }
   0xb   :  { %v215_v45 = vpack.c.bf16 %v96_v34, %v96_v34  ;;  %v216_v46 = vpack.c.bf16 %v97_v35, %v97_v35  ;;  %v217_v48 = vpack.c.bf16 %v98_v39, %v98_v39  ;;  %v218_v49 = vpack.c.bf16 %v99_v40, %v99_v40 }
   0xc   :  { %173 = vst.msk [vmem:[%s419_s3] sm:$0xf] %vm172_vm0, %v211_v37  ;;  %174 = vst.msk [vmem:[%s419_s3 + $0x4] sm:$0xf] %vm172_vm0, %v212_v38  ;;  %v245_v50 = vunpack.c.l.bf16 %v262_v36  ;;  %v246_v51 = vunpack.c.h.bf16 %v262_v36  ;;  %v249_v52 = vunpack.c.l.bf16 %v263_v41  ;;  %v250_v53 = vunpack.c.h.bf16 %v263_v41 }
   0xd   :  { %175 = vst.msk [vmem:[%s419_s3 + $0x8] sm:$0xf] %vm172_vm0, %v213_v43  ;;  %176 = vst.msk [vmem:[%s419_s3 + $0xc] sm:$0xf] %vm172_vm0, %v214_v44  ;;  %v253_v54 = vunpack.c.l.bf16 %v264_v42  ;;  %v254_v55 = vunpack.c.h.bf16 %v264_v42  ;;  %v257_v58 = vunpack.c.l.bf16 %v265_v47  ;;  %v258_v59 = vunpack.c.h.bf16 %v265_v47 }
   0xe   :  { %177 = vst.msk [vmem:[%s419_s3 + $0x10] sm:$0xf] %vm172_vm0, %v215_v45  ;;  %178 = vst.msk [vmem:[%s419_s3 + $0x14] sm:$0xf] %vm172_vm0, %v216_v46  ;;  %v61_v56 = vmul.f32 %v245_v50, %v292_v1  ;;  %v62_v57 = vmul.f32 %v246_v51, %v292_v1  ;;  %v63_v60 = vmul.f32 %v249_v52, %v292_v1 }
   0xf   :  { %179 = vst.msk [vmem:[%s419_s3 + $0x18] sm:$0xf] %vm172_vm0, %v217_v48  ;;  %180 = vst.msk [vmem:[%s419_s3 + $0x1c] sm:$0xf] %vm172_vm0, %v218_v49  ;;  %v64_v61 = vmul.f32 %v250_v53, %v292_v1  ;;  %v65_v62 = vmul.f32 %v253_v54, %v292_v1  ;;  %v66_v63 = vmul.f32 %v254_v55, %v292_v1 }
  0x10   :  { %v84_v0 = vadd.f32 %v306_v7, %v61_v56  ;;  %v85_v2 = vadd.f32 %v306_v7, %v62_v57  ;;  %v67_v3 = vmul.f32 %v257_v58, %v292_v1  ;;  %v68_v4 = vmul.f32 %v258_v59, %v292_v1 }
  0x11   :  { %v86_v5 = vadd.f32 %v306_v7, %v63_v60  ;;  %v87_v6 = vadd.f32 %v306_v7, %v64_v61  ;;  %v88_v8 = vadd.f32 %v306_v7, %v65_v62  ;;  %v89_v9 = vadd.f32 %v306_v7, %v66_v63 }
  0x12   :  { %v100_v10 = vmax.f32 %v84_v0, 0.0  ;;  %v101_v11 = vmax.f32 %v85_v2, 0.0  ;;  %v90_v12 = vadd.f32 %v306_v7, %v67_v3  ;;  %v91_v13 = vadd.f32 %v306_v7, %v68_v4 }
  0x13   :  { %v102_v14 = vmax.f32 %v86_v5, 0.0  ;;  %v103_v15 = vmax.f32 %v87_v6, 0.0  ;;  %v104_v16 = vmax.f32 %v88_v8, 0.0  ;;  %v105_v17 = vmax.f32 %v89_v9, 0.0 }
  0x14   :  { %v219_v18 = vpack.c.bf16 %v100_v10, %v100_v10  ;;  %v220_v1 = vpack.c.bf16 %v101_v11, %v101_v11  ;;  %v106_v19 = vmax.f32 %v90_v12, 0.0  ;;  %v107_v20 = vmax.f32 %v91_v13, 0.0 }
  0x15   :  { %v221_v21 = vpack.c.bf16 %v102_v14, %v102_v14  ;;  %v222_v22 = vpack.c.bf16 %v103_v15, %v103_v15  ;;  %v223_v23 = vpack.c.bf16 %v104_v16, %v104_v16  ;;  %v224_v24 = vpack.c.bf16 %v105_v17, %v105_v17 }
  0x16   :  { %181 = vst.msk [vmem:[%s419_s3 + $0x20] sm:$0xf] %vm172_vm0, %v219_v18  ;;  %182 = vst.msk [vmem:[%s419_s3 + $0x24] sm:$0xf] %vm172_vm0, %v220_v1  ;;  %v225_v7 = vpack.c.bf16 %v106_v19, %v106_v19  ;;  %v226_v25 = vpack.c.bf16 %v107_v20, %v107_v20 }
  0x17   :  { %183 = vst.msk [vmem:[%s419_s3 + $0x28] sm:$0xf] %vm172_vm0, %v221_v21  ;;  %184 = vst.msk [vmem:[%s419_s3 + $0x2c] sm:$0xf] %vm172_vm0, %v222_v22 }
  0x18   :  { %185 = vst.msk [vmem:[%s419_s3 + $0x30] sm:$0xf] %vm172_vm0, %v223_v23  ;;  %186 = vst.msk [vmem:[%s419_s3 + $0x34] sm:$0xf] %vm172_vm0, %v224_v24 }
  0x19   :  { %187 = vst.msk [vmem:[%s419_s3 + $0x38] sm:$0xf] %vm172_vm0, %v225_v7  ;;  %188 = vst.msk [vmem:[%s419_s3 + $0x3c] sm:$0xf] %vm172_vm0, %v226_v25 }

// kernel: _lambda_.35
= control target key start
LH: loop header
LB: loop body
LE: loop exit
PB: predicated region body
PF: predicated region fallthrough
CT: control target
= control target key end

     0   :  { %vm14_vm0 = vcmask 188416   ;;  %v195_v0 = vmov 0.0   ;;  %vm50_vm1 = vcmask 195584   ;;  %s289_s0 = inlined_call_operand.vmem [shape: bf16[128,24], index: 0, kind: input, shape index: {}]   ;;  %s290_s1 = inlined_call_operand.vmem [shape: f32[1,24], index: 1, kind: output, shape index: {0}]   ;;  %s291_s2 = inlined_call_operand.vmem [shape: f32[1,24], index: 2, kind: output, shape index: {1}]  }
   0x1   :  { %15 = vst.msk [vmem:[%s290_s1] sm:$0x1] %vm14_vm0, %v195_v0  ;;  %v156_v1 = vld [vmem:[%s289_s0] sm:$0xff]   ;;  %v187_v2 = vld [vmem:[%s289_s0 + $0x8] sm:$0xff]   ;;  %16 = vst.msk [vmem:[%s291_s2] sm:$0x1] %vm14_vm0, %v195_v0 }
   0x2   :  { %v157_v3 = vunpack.c.l.bf16 %v156_v1  ;;  %v158_v4 = vunpack.c.h.bf16 %v156_v1  ;;  %v161_v5 = vunpack.c.l.bf16 %v187_v2  ;;  %v188_v6 = vld [vmem:[%s289_s0 + $0x10] sm:$0xff]   ;;  %v162_v7 = vunpack.c.h.bf16 %v187_v2  ;;  %v189_v14 = vld [vmem:[%s289_s0 + $0x18] sm:$0xff]   ;;  %v190_v24 = vld [vmem:[%s289_s0 + $0x20] sm:$0xff]  }
   0x3   :  { %v165_v12 = vunpack.c.l.bf16 %v188_v6  ;;  %v166_v16 = vunpack.c.h.bf16 %v188_v6  ;;  %v169_v22 = vunpack.c.l.bf16 %v189_v14  ;;  %v170_v27 = vunpack.c.h.bf16 %v189_v14  ;;  %v191_v37 = vld [vmem:[%s289_s0 + $0x28] sm:$0xff]   ;;  %v192_v50 = vld [vmem:[%s289_s0 + $0x30] sm:$0xff]   ;;  %v193_v63 = vld [vmem:[%s289_s0 + $0x38] sm:$0xff]  }
   0x4   :  { %v51_v8 = vsel %vm50_vm1, %v157_v3, 0.0  ;;  %v52_v9 = vsel %vm50_vm1, %v158_v4, 0.0  ;;  %v54_v10 = vsel %vm50_vm1, %v161_v5, 0.0  ;;  %v56_v13 = vsel %vm50_vm1, %v162_v7, 0.0 }
   0x5   :  { %v53_v11 = vadd.f32 %v52_v9, %v51_v8  ;;  %v58_v17 = vsel %vm50_vm1, %v165_v12, 0.0  ;;  %v92_v19 = vmul.f32 %v157_v3, %v157_v3  ;;  %v93_v20 = vmul.f32 %v158_v4, %v158_v4 }
   0x6   :  { %v94_v21 = vmul.f32 %v161_v5, %v161_v5  ;;  %v60_v23 = vsel %vm50_vm1, %v166_v16, 0.0  ;;  %v95_v26 = vmul.f32 %v162_v7, %v162_v7  ;;  %v62_v28 = vsel %vm50_vm1, %v169_v22, 0.0 }
   0x7   :  { %v55_v15 = vadd.f32 %v54_v10, %v53_v11  ;;  %v96_v29 = vmul.f32 %v165_v12, %v165_v12  ;;  %v108_v31 = vsel %vm50_vm1, %v92_v19, 0.0  ;;  %v109_v32 = vsel %vm50_vm1, %v93_v20, 0.0 }
   0x8   :  { %v111_v33 = vsel %vm50_vm1, %v94_v21, 0.0  ;;  %v173_v34 = vunpack.c.l.bf16 %v190_v24  ;;  %v64_v35 = vsel %vm50_vm1, %v170_v27, 0.0  ;;  %v110_v36 = vadd.f32 %v109_v32, %v108_v31 }
   0x9   :  { %v57_v18 = vadd.f32 %v56_v13, %v55_v15  ;;  %v97_v39 = vmul.f32 %v166_v16, %v166_v16  ;;  %v113_v40 = vsel %vm50_vm1, %v95_v26, 0.0  ;;  %v174_v41 = vunpack.c.h.bf16 %v190_v24 }
   0xa   :  { %v66_v42 = vsel %vm50_vm1, %v173_v34, 0.0  ;;  %v112_v43 = vadd.f32 %v111_v33, %v110_v36  ;;  %v98_v45 = vmul.f32 %v169_v22, %v169_v22  ;;  %v115_v46 = vsel %vm50_vm1, %v96_v29, 0.0 }
   0xb   :  { %v59_v25 = vadd.f32 %v58_v17, %v57_v18  ;;  %v177_v47 = vunpack.c.l.bf16 %v191_v37  ;;  %v68_v48 = vsel %vm50_vm1, %v174_v41, 0.0  ;;  %v99_v52 = vmul.f32 %v170_v27, %v170_v27 }
   0xc   :  { %v114_v49 = vadd.f32 %v113_v40, %v112_v43  ;;  %v117_v53 = vsel %vm50_vm1, %v97_v39, 0.0  ;;  %v178_v54 = vunpack.c.h.bf16 %v191_v37  ;;  %v100_v58 = vmul.f32 %v173_v34, %v173_v34 }
   0xd   :  { %v61_v30 = vadd.f32 %v60_v23, %v59_v25  ;;  %v70_v55 = vsel %vm50_vm1, %v177_v47, 0.0  ;;  %v119_v59 = vsel %vm50_vm1, %v98_v45, 0.0  ;;  %v181_v60 = vunpack.c.l.bf16 %v192_v50 }
   0xe   :  { %v116_v56 = vadd.f32 %v115_v46, %v114_v49  ;;  %v72_v61 = vsel %vm50_vm1, %v178_v54, 0.0  ;;  %v101_v1 = vmul.f32 %v174_v41, %v174_v41  ;;  %v121_v2 = vsel %vm50_vm1, %v99_v52, 0.0  ;;  %v91_v52 = vld [vmem:[%s291_s2] sm:$0x1] }
   0xf   :  { %v63_v38 = vadd.f32 %v62_v28, %v61_v30  ;;  %v182_v3 = vunpack.c.h.bf16 %v192_v50  ;;  %v74_v4 = vsel %vm50_vm1, %v181_v60, 0.0  ;;  %v102_v7 = vmul.f32 %v177_v47, %v177_v47 }
  0x10   :  { %v118_v62 = vadd.f32 %v117_v53, %v116_v56  ;;  %v123_v8 = vsel %vm50_vm1, %v100_v58, 0.0  ;;  %v185_v9 = vunpack.c.l.bf16 %v193_v63  ;;  %v103_v13 = vmul.f32 %v178_v54, %v178_v54 }
  0x11   :  { %v65_v44 = vadd.f32 %v64_v35, %v63_v38  ;;  %v76_v10 = vsel %vm50_vm1, %v182_v3, 0.0  ;;  %v125_v14 = vsel %vm50_vm1, %v101_v1, 0.0  ;;  %v186_v15 = vunpack.c.h.bf16 %v193_v63 }
  0x12   :  { %v120_v5 = vadd.f32 %v119_v59, %v118_v62  ;;  %v78_v16 = vsel %vm50_vm1, %v185_v9, 0.0  ;;  %v104_v19 = vmul.f32 %v181_v60, %v181_v60  ;;  %v127_v20 = vsel %vm50_vm1, %v102_v7, 0.0 }
  0x13   :  { %v67_v51 = vadd.f32 %v66_v42, %v65_v44  ;;  %v80_v21 = vsel %vm50_vm1, %v186_v15, 0.0  ;;  %v105_v24 = vmul.f32 %v182_v3, %v182_v3  ;;  %v129_v25 = vsel %vm50_vm1, %v103_v13, 0.0  ;;  %v49_v44 = vld [vmem:[%s290_s1] sm:$0x1] }
  0x14   :  { %v122_v11 = vadd.f32 %v121_v2, %v120_v5  ;;  %v106_v28 = vmul.f32 %v185_v9, %v185_v9  ;;  %v131_v29 = vsel %vm50_vm1, %v104_v19, 0.0  ;;  %v107_v32 = vmul.f32 %v186_v15, %v186_v15 }
  0x15   :  { %v69_v57 = vadd.f32 %v68_v48, %v67_v51  ;;  %v133_v33 = vsel %vm50_vm1, %v105_v24, 0.0 }
  0x16   :  { %v124_v17 = vadd.f32 %v123_v8, %v122_v11  ;;  %v135_v36 = vsel %vm50_vm1, %v106_v28, 0.0  ;;  %v137_v39 = vsel %vm50_vm1, %v107_v32, 0.0 }
  0x17   :  { %v71_v0 = vadd.f32 %v70_v55, %v69_v57 }
  0x18   :  { %v126_v22 = vadd.f32 %v125_v14, %v124_v17 }
  0x19   :  { %v73_v6 = vadd.f32 %v72_v61, %v71_v0 }
  0x1a   :  { %v128_v26 = vadd.f32 %v127_v20, %v126_v22 }
  0x1b   :  { %v75_v12 = vadd.f32 %v74_v4, %v73_v6 }
  0x1c   :  { %v130_v30 = vadd.f32 %v129_v25, %v128_v26 }
  0x1d   :  { %v77_v18 = vadd.f32 %v76_v10, %v75_v12 }
  0x1e   :  { %v132_v34 = vadd.f32 %v131_v29, %v130_v30 }
  0x1f   :  { %v79_v23 = vadd.f32 %v78_v16, %v77_v18 }
  0x20   :  { %v134_v37 = vadd.f32 %v133_v33, %v132_v34 }
  0x21   :  { %v81_v27 = vadd.f32 %v80_v21, %v79_v23 }
  0x22   :  { %v136_v40 = vadd.f32 %v135_v36, %v134_v37 }
  0x23   :  { %v82_v31 = vrot.slane %v81_v27, 4 }
  0x24   :  { %v138_v42 = vadd.f32 %v137_v39, %v136_v40 }
  0x25   :  { %v83_v35 = vadd.f32 %v82_v31, %v81_v27 }
  0x26   :  { %v139_v45 = vrot.slane %v138_v42, 4 }
  0x27   :  { %v84_v38 = vrot.slane %v83_v35, 2 }
  0x28   :  { %v140_v47 = vadd.f32 %v139_v45, %v138_v42 }
  0x29   :  { %v85_v41 = vadd.f32 %v84_v38, %v83_v35 }
  0x2a   :  { %v141_v49 = vrot.slane %v140_v47, 2 }
  0x2b   :  { %v86_v43 = vrot.slane %v85_v41, 1 }
  0x2c   :  { %v142_v50 = vadd.f32 %v141_v49, %v140_v47 }
  0x2d   :  { %v87_v46 = vadd.f32 %v86_v43, %v85_v41 }
  0x2e   :  { %v143_v51 = vrot.slane %v142_v50, 1 }
  0x2f   :  { %v88_v48 = vadd.f32 %v87_v46, %v49_v44 }
  0x30   :  { %v144_v53 = vadd.f32 %v143_v51, %v142_v50 }
  0x31   :  { %90 = vst.msk [vmem:[%s290_s1] sm:$0x1] %vm14_vm0, %v88_v48 }
  0x32   :  { %v145_v54 = vadd.f32 %v144_v53, %v91_v52 }
  0x34   :  { %146 = vst.msk [vmem:[%s291_s2] sm:$0x1] %vm14_vm0, %v145_v54 }

// kernel: _lambda_.36
= control target key start
LH: loop header
LB: loop body
LE: loop exit
PB: predicated region body
PF: predicated region fallthrough
CT: control target
= control target key end

     0   :  { %vm167_vm0 = vcmask 1043456   ;;  %vm142_vm1 = vcmask 195584   ;;  %vm25_vm2 = vcmask 253952   ;;  %vm332_vm3 = vcmask 257024   ;;  %s822_s3 = inlined_call_operand.vmem [shape: bf16[24,32], index: 3, kind: input, shape index: {}]   ;;  %s823_s0 = inlined_call_operand.vmem [shape: bf16[128,24], index: 0, kind: input, shape index: {}]   ;;  %s824_s1 = inlined_call_operand.vmem [shape: f32[1,24], index: 1, kind: input, shape index: {}]   ;;  %s825_s2 = inlined_call_operand.vmem [shape: f32[1,24], index: 2, kind: input, shape index: {}]   ;;  %s826_s5 = inlined_call_operand.vmem [shape: f32[1,32], index: 5, kind: output, shape index: {1}]   ;;  %s827_s6 = inlined_call_operand.vmem [shape: f32[1,32], index: 6, kind: output, shape index: {2}]   ;;  %s828_s4 = inlined_call_operand.vmem [shape: bf16[128,32], index: 4, kind: output, shape index: {0}]  }
   0x1   :  { %v579_v0 = vld [vmem:[%s822_s3 + $0x8] ss:$0 sps:$4 sm:$0xff]   ;;  %v580_v1 = vld [vmem:[%s822_s3] sm:$0xff]   ;;  %v536_v11 = vld [vmem:[%s823_s0 + $0x10] sm:$0xff]   ;;  %vm350_vm4 = vcmask 261120  }
   0x2   :  { %v504_v2 = vld [vmem:[%s823_s0] sm:$0xff]   ;;  %576 = vmatprep.subr.msk.bf16.mxu0 %vm167_vm0, %v579_v0  ;;  %v169_v3 = vsel %vm167_vm0, %v579_v0, 0  ;;  %v535_v7 = vld [vmem:[%s823_s0 + $0x8] sm:$0xff]   ;;  %577 = vmatprep.subr.msk.bf16.mxu1 %vm167_vm0, %v579_v0  ;;  %v537_v12 = vld [vmem:[%s823_s0 + $0x18] sm:$0xff]   ;;  %v513_v15 = vunpack.c.l.bf16 %v536_v11  ;;  %v514_v16 = vunpack.c.h.bf16 %v536_v11 }
   0x3   :  { %v505_v4 = vunpack.c.l.bf16 %v504_v2  ;;  %v506_v5 = vunpack.c.h.bf16 %v504_v2  ;;  %v629_v6 = vld [vmem:[%s824_s1] ss:$0 sm:$0xff]  ;;  %553 = vmatpush3.bf16.msra.mxu0 %v169_v3  ;;  %v509_v9 = vunpack.c.l.bf16 %v535_v7  ;;  %v510_v10 = vunpack.c.h.bf16 %v535_v7  ;;  %574 = vmatpush3.bf16.msra.mxu1 %v169_v3  ;;  %v539_v38 = vld [vmem:[%s823_s0 + $0x28] sm:$0xff]   ;;  %v540_v43 = vld [vmem:[%s823_s0 + $0x30] sm:$0xff]  }
   0x4   :  { %v637_v8 = vld [vmem:[%s825_s2] ss:$0 sm:$0xff]  ;;  %554 = vmatprep.subr.bf16.mxu0 %v580_v1  ;;  %573 = vmatprep.subr.bf16.mxu1 %v580_v1  ;;  %v517_v20 = vunpack.c.l.bf16 %v537_v12  ;;  %v518_v21 = vunpack.c.h.bf16 %v537_v12  ;;  %v71_v24 = vmul.f32 %v513_v15, %v629_v6  ;;  %v72_v25 = vmul.f32 %v514_v16, %v629_v6  ;;  %v541_v48 = vld [vmem:[%s823_s0 + $0x38] sm:$0xff]  }
   0x5   :  { %v67_v13 = vmul.f32 %v505_v4, %v629_v6  ;;  %v68_v14 = vmul.f32 %v506_v5, %v629_v6  ;;  %v538_v17 = vld [vmem:[%s823_s0 + $0x20] sm:$0xff]   ;;  %v69_v18 = vmul.f32 %v509_v9, %v629_v6  ;;  %v70_v19 = vmul.f32 %v510_v10, %v629_v6 }
   0x6   :  { %v73_v28 = vmul.f32 %v517_v20, %v629_v6  ;;  %v521_v29 = vunpack.c.l.bf16 %v538_v17  ;;  %v94_v32 = vadd.f32 %v637_v8, %v71_v24  ;;  %v95_v33 = vadd.f32 %v637_v8, %v72_v25 }
   0x7   :  { %v90_v22 = vadd.f32 %v637_v8, %v67_v13  ;;  %v91_v23 = vadd.f32 %v637_v8, %v68_v14  ;;  %555 = vmatpush3.bf16.msra.mxu0 %v580_v1  ;;  %v92_v26 = vadd.f32 %v637_v8, %v69_v18  ;;  %v93_v27 = vadd.f32 %v637_v8, %v70_v19 }
   0x8   :  { %575 = vmatpush3.bf16.msra.mxu1 %v580_v1  ;;  %v74_v36 = vmul.f32 %v518_v21, %v629_v6  ;;  %v96_v37 = vadd.f32 %v637_v8, %v73_v28  ;;  %v110_v40 = vmax.f32 %v94_v32, 0.0  ;;  %v111_v41 = vmax.f32 %v95_v33, 0.0 }
   0x9   :  { %v106_v30 = vmax.f32 %v90_v22, 0.0  ;;  %v107_v31 = vmax.f32 %v91_v23, 0.0  ;;  %v108_v34 = vmax.f32 %v92_v26, 0.0  ;;  %v109_v35 = vmax.f32 %v93_v27, 0.0 }
   0xa   :  { %v522_v42 = vunpack.c.h.bf16 %v538_v17  ;;  %v97_v45 = vadd.f32 %v637_v8, %v74_v36  ;;  %v112_v46 = vmax.f32 %v96_v37, 0.0  ;;  %v75_v47 = vmul.f32 %v521_v29, %v629_v6 }
   0xb   :  { %v122_v39 = vpack.c.bf16 %v107_v31, %v106_v30  ;;  %v123_v44 = vpack.c.bf16 %v109_v35, %v108_v34  ;;  %v124_v49 = vpack.c.bf16 %v111_v41, %v110_v40  ;;  %v525_v51 = vunpack.c.l.bf16 %v539_v38 }
   0xc   :  { %v76_v50 = vmul.f32 %v522_v42, %v629_v6  ;;  %v526_v52 = vunpack.c.h.bf16 %v539_v38  ;;  %v113_v53 = vmax.f32 %v97_v45, 0.0  ;;  %v98_v54 = vadd.f32 %v637_v8, %v75_v47 }
   0xd   :  { %556 = vmatprep.mubr.msk.bf16.mxu0 %vm142_vm1, %v122_v39  ;;  %v529_v55 = vunpack.c.l.bf16 %v540_v43  ;;  %v530_v56 = vunpack.c.h.bf16 %v540_v43  ;;  %v77_v58 = vmul.f32 %v525_v51, %v629_v6  ;;  %v533_v60 = vunpack.c.l.bf16 %v541_v48 }
   0xe   :  { %557 = vmatmul.mubr.msk.bf16.vlgmr.msra.gmra.mxu0 %vm142_vm1, %v123_v44  ;;  %v99_v57 = vadd.f32 %v637_v8, %v76_v50  ;;  %v78_v59 = vmul.f32 %v526_v52, %v629_v6  ;;  %v114_v61 = vmax.f32 %v98_v54, 0.0  ;;  %v534_v3 = vunpack.c.h.bf16 %v541_v48 }
   0xf   :  { %560 = vmatprep.mubr.msk.bf16.mxu0 %vm142_vm1, %v124_v49  ;;  %v79_v62 = vmul.f32 %v529_v55, %v629_v6  ;;  %v80_v63 = vmul.f32 %v530_v56, %v629_v6  ;;  %v100_v1 = vadd.f32 %v637_v8, %v77_v58  ;;  %v125_v4 = vpack.c.bf16 %v113_v53, %v112_v46 }
  0x10   :  { %v115_v0 = vmax.f32 %v99_v57, 0.0  ;;  %v101_v2 = vadd.f32 %v637_v8, %v78_v59  ;;  %v81_v9 = vmul.f32 %v533_v60, %v629_v6  ;;  %v82_v13 = vmul.f32 %v534_v3, %v629_v6 }
  0x11   :  { %v102_v5 = vadd.f32 %v637_v8, %v79_v62  ;;  %v103_v7 = vadd.f32 %v637_v8, %v80_v63  ;;  %v116_v11 = vmax.f32 %v100_v1, 0.0  ;;  %v581_v6 = vmov 0.0  }
  0x12   :  { %v126_v10 = vpack.c.bf16 %v115_v0, %v114_v61  ;;  %v117_v12 = vmax.f32 %v101_v2, 0.0  ;;  %v104_v16 = vadd.f32 %v637_v8, %v81_v9  ;;  %v105_v18 = vadd.f32 %v637_v8, %v82_v13  ;;  %26 = vst.msk [vmem:[%s826_s5] sm:$0x1] %vm25_vm2, %v581_v6  ;;  %27 = vst.msk [vmem:[%s827_s6] sm:$0x1] %vm25_vm2, %v581_v6 }
  0x13   :  { %v118_v14 = vmax.f32 %v102_v5, 0.0  ;;  %v119_v15 = vmax.f32 %v103_v7, 0.0 }
  0x14   :  { %564 = vmatprep.mubr.msk.bf16.mxu1 %vm142_vm1, %v126_v10  ;;  %v127_v17 = vpack.c.bf16 %v117_v12, %v116_v11  ;;  %v120_v20 = vmax.f32 %v104_v16, 0.0  ;;  %v121_v21 = vmax.f32 %v105_v18, 0.0 }
  0x15   :  { %v128_v19 = vpack.c.bf16 %v119_v15, %v118_v14 }
  0x16   :  { %561 = vmatmul.mubr.msk.bf16.gmra.mxu0 %vm142_vm1, %v125_v4  ;;  %565 = vmatmul.mubr.msk.bf16.vlgmr.msra.gmra.mxu1 %vm142_vm1, %v127_v17  ;;  %v129_v22 = vpack.c.bf16 %v121_v21, %v120_v20 }
  0x17   :  { %568 = vmatprep.mubr.msk.bf16.mxu1 %vm142_vm1, %v128_v19 }
  0x1e   :  { %569 = vmatmul.mubr.msk.bf16.gmra.mxu1 %vm142_vm1, %v129_v22 }
  0xce   :  { %v558_v8 = vpop.f32.mrf.mxu0 }
  0xcf   :  { %v489_v23 = vpack.c.bf16 %v558_v8, %v558_v8  ;;  %v394_v29 = vmul.f32 %v558_v8, %v558_v8  ;;  %v354_v35 = vsel %vm350_vm4, %v558_v8, 0.0 }
  0xd0   :  { %v205_v24 = vpop.f32.mrf.mxu0 }
  0xd1   :  { %335 = vst.msk [vmem:[%s828_s4 + $0x8] sm:$0xf] %vm332_vm3, %v489_v23  ;;  %v487_v25 = vpack.c.bf16 %v205_v24, %v205_v24  ;;  %v392_v27 = vmul.f32 %v205_v24, %v205_v24  ;;  %v351_v31 = vsel %vm350_vm4, %v205_v24, 0.0  ;;  %v411_v47 = vsel %vm350_vm4, %v394_v29, 0.0 }
  0xd2   :  { %v559_v26 = vpop.f32.mrf.mxu0 }
  0xd3   :  { %333 = vst.msk [vmem:[%s828_s4] sm:$0xf] %vm332_vm3, %v487_v25  ;;  %v490_v28 = vpack.c.bf16 %v559_v26, %v559_v26  ;;  %v408_v38 = vsel %vm350_vm4, %v392_v27, 0.0  ;;  %v395_v39 = vmul.f32 %v559_v26, %v559_v26  ;;  %v356_v48 = vsel %vm350_vm4, %v559_v26, 0.0 }
  0xd4   :  { %v208_v30 = vpop.f32.mrf.mxu0 }
  0xd5   :  { %336 = vst.msk [vmem:[%s828_s4 + $0xc] sm:$0xf] %vm332_vm3, %v490_v28  ;;  %v488_v32 = vpack.c.bf16 %v208_v30, %v208_v30  ;;  %v352_v33 = vsel %vm350_vm4, %v208_v30, 0.0  ;;  %v393_v34 = vmul.f32 %v208_v30, %v208_v30  ;;  %v413_v56 = vsel %vm350_vm4, %v395_v39, 0.0 }
  0xd6   :  { %v353_v36 = vadd.f32 %v352_v33, %v351_v31  ;;  %v562_v37 = vpop.f32.mrf.mxu0  ;;  %v726_v42 = vpop.f32.mrf.mxu1 }
  0xd7   :  { %334 = vst.msk [vmem:[%s828_s4 + $0x4] sm:$0xf] %vm332_vm3, %v488_v32  ;;  %v409_v40 = vsel %vm350_vm4, %v393_v34, 0.0  ;;  %v493_v41 = vpack.c.bf16 %v562_v37, %v562_v37  ;;  %v497_v46 = vpack.c.bf16 %v726_v42, %v726_v42  ;;  %v398_v63 = vmul.f32 %v562_v37, %v562_v37 }
  0xd8   :  { %v355_v43 = vadd.f32 %v354_v35, %v353_v36  ;;  %v410_v44 = vadd.f32 %v409_v40, %v408_v38  ;;  %v221_v45 = vpop.f32.mrf.mxu0  ;;  %v237_v51 = vpop.f32.mrf.mxu1  ;;  %v362_v10 = vsel %vm350_vm4, %v562_v37, 0.0  ;;  %v402_v32 = vmul.f32 %v726_v42, %v726_v42 }
  0xd9   :  { %339 = vst.msk [vmem:[%s828_s4 + $0x18] sm:$0xf] %vm332_vm3, %v493_v41  ;;  %v491_v49 = vpack.c.bf16 %v221_v45, %v221_v45  ;;  %v396_v50 = vmul.f32 %v221_v45, %v221_v45  ;;  %343 = vst.msk [vmem:[%s828_s4 + $0x28] sm:$0xf] %vm332_vm3, %v497_v46  ;;  %v495_v55 = vpack.c.bf16 %v237_v51, %v237_v51  ;;  %v358_v57 = vsel %vm350_vm4, %v221_v45, 0.0 }
  0xda   :  { %v412_v52 = vadd.f32 %v411_v47, %v410_v44  ;;  %v357_v53 = vadd.f32 %v356_v48, %v355_v43  ;;  %v563_v54 = vpop.f32.mrf.mxu0  ;;  %v567_v59 = vpop.f32.mrf.mxu1  ;;  %v419_v20 = vsel %vm350_vm4, %v398_v63, 0.0  ;;  %v400_v21 = vmul.f32 %v237_v51, %v237_v51 }
  0xdb   :  { %337 = vst.msk [vmem:[%s828_s4 + $0x10] sm:$0xf] %vm332_vm3, %v491_v49  ;;  %v494_v58 = vpack.c.bf16 %v563_v54, %v563_v54  ;;  %341 = vst.msk [vmem:[%s828_s4 + $0x20] sm:$0xf] %vm332_vm3, %v495_v55  ;;  %v415_v0 = vsel %vm350_vm4, %v396_v50, 0.0  ;;  %v498_v9 = vpack.c.bf16 %v567_v59, %v567_v59  ;;  %v399_v13 = vmul.f32 %v563_v54, %v563_v54 }
  0xdc   :  { %v359_v60 = vadd.f32 %v358_v57, %v357_v53  ;;  %v414_v61 = vadd.f32 %v413_v56, %v412_v52  ;;  %v224_v62 = vpop.f32.mrf.mxu0  ;;  %v240_v3 = vpop.f32.mrf.mxu1  ;;  %v364_v16 = vsel %vm350_vm4, %v563_v54, 0.0  ;;  %v366_v8 = vsel %vm350_vm4, %v237_v51, 0.0 }
  0xdd   :  { %340 = vst.msk [vmem:[%s828_s4 + $0x1c] sm:$0xf] %vm332_vm3, %v494_v58  ;;  %v492_v1 = vpack.c.bf16 %v224_v62, %v224_v62  ;;  %v360_v2 = vsel %vm350_vm4, %v224_v62, 0.0  ;;  %v397_v7 = vmul.f32 %v224_v62, %v224_v62  ;;  %v496_v11 = vpack.c.bf16 %v240_v3, %v240_v3  ;;  %344 = vst.msk [vmem:[%s828_s4 + $0x2c] sm:$0xf] %vm332_vm3, %v498_v9 }
  0xde   :  { %v416_v4 = vadd.f32 %v415_v0, %v414_v61  ;;  %v361_v5 = vadd.f32 %v360_v2, %v359_v60  ;;  %v570_v12 = vpop.f32.mrf.mxu1  ;;  %v421_v25 = vsel %vm350_vm4, %v399_v13, 0.0  ;;  %v401_v27 = vmul.f32 %v240_v3, %v240_v3 }
  0xdf   :  { %338 = vst.msk [vmem:[%s828_s4 + $0x14] sm:$0xf] %vm332_vm3, %v492_v1  ;;  %v417_v15 = vsel %vm350_vm4, %v397_v7, 0.0  ;;  %342 = vst.msk [vmem:[%s828_s4 + $0x24] sm:$0xf] %vm332_vm3, %v496_v11  ;;  %v501_v18 = vpack.c.bf16 %v570_v12, %v570_v12  ;;  %v368_v30 = vsel %vm350_vm4, %v240_v3, 0.0  ;;  %v403_v38 = vmul.f32 %v567_v59, %v567_v59 }
  0xe0   :  { %v363_v14 = vadd.f32 %v362_v10, %v361_v5  ;;  %v418_v17 = vadd.f32 %v417_v15, %v416_v4  ;;  %v253_v19 = vpop.f32.mrf.mxu1  ;;  %v423_v33 = vsel %vm350_vm4, %v400_v21, 0.0  ;;  %v370_v36 = vsel %vm350_vm4, %v726_v42, 0.0 }
  0xe1   :  { %v499_v6 = vpack.c.bf16 %v253_v19, %v253_v19  ;;  %347 = vst.msk [vmem:[%s828_s4 + $0x38] sm:$0xf] %vm332_vm3, %v501_v18  ;;  %v425_v40 = vsel %vm350_vm4, %v401_v27, 0.0  ;;  %v372_v41 = vsel %vm350_vm4, %v567_v59, 0.0  ;;  %v427_v44 = vsel %vm350_vm4, %v402_v32, 0.0 }
  0xe2   :  { %v365_v22 = vadd.f32 %v364_v16, %v363_v14  ;;  %v420_v23 = vadd.f32 %v419_v20, %v418_v17  ;;  %v571_v24 = vpop.f32.mrf.mxu1  ;;  %v404_v46 = vmul.f32 %v253_v19, %v253_v19  ;;  %v374_v42 = vsel %vm350_vm4, %v253_v19, 0.0  ;;  %v349_v14 = vld [vmem:[%s826_s5] sm:$0x1] }
  0xe3   :  { %345 = vst.msk [vmem:[%s828_s4 + $0x30] sm:$0xf] %vm332_vm3, %v499_v6  ;;  %v502_v28 = vpack.c.bf16 %v571_v24, %v571_v24  ;;  %v429_v48 = vsel %vm350_vm4, %v403_v38, 0.0  ;;  %v406_v53 = vmul.f32 %v570_v12, %v570_v12  ;;  %v378_v56 = vsel %vm350_vm4, %v570_v12, 0.0  ;;  %v391_v19 = vld [vmem:[%s827_s6] sm:$0x1] }
  0xe4   :  { %v367_v26 = vadd.f32 %v366_v8, %v365_v22  ;;  %v422_v29 = vadd.f32 %v421_v25, %v420_v23  ;;  %v256_v31 = vpop.f32.mrf.mxu1  ;;  %v431_v54 = vsel %vm350_vm4, %v404_v46, 0.0  ;;  %v407_v58 = vmul.f32 %v571_v24, %v571_v24 }
  0xe5   :  { %348 = vst.msk [vmem:[%s828_s4 + $0x3c] sm:$0xf] %vm332_vm3, %v502_v28  ;;  %v500_v35 = vpack.c.bf16 %v256_v31, %v256_v31  ;;  %v405_v50 = vmul.f32 %v256_v31, %v256_v31  ;;  %v376_v52 = vsel %vm350_vm4, %v256_v31, 0.0  ;;  %v380_v61 = vsel %vm350_vm4, %v571_v24, 0.0 }
  0xe6   :  { %v369_v34 = vadd.f32 %v368_v30, %v367_v26  ;;  %v424_v37 = vadd.f32 %v423_v33, %v422_v29  ;;  %v435_v63 = vsel %vm350_vm4, %v406_v53, 0.0  ;;  %v437_v2 = vsel %vm350_vm4, %v407_v58, 0.0 }
  0xe7   :  { %346 = vst.msk [vmem:[%s828_s4 + $0x34] sm:$0xf] %vm332_vm3, %v500_v35  ;;  %v433_v60 = vsel %vm350_vm4, %v405_v50, 0.0 }
  0xe8   :  { %v371_v39 = vadd.f32 %v370_v36, %v369_v34  ;;  %v426_v43 = vadd.f32 %v425_v40, %v424_v37 }
  0xea   :  { %v373_v45 = vadd.f32 %v372_v41, %v371_v39  ;;  %v428_v47 = vadd.f32 %v427_v44, %v426_v43 }
  0xec   :  { %v375_v49 = vadd.f32 %v374_v42, %v373_v45  ;;  %v430_v51 = vadd.f32 %v429_v48, %v428_v47 }
  0xee   :  { %v377_v55 = vadd.f32 %v376_v52, %v375_v49  ;;  %v432_v57 = vadd.f32 %v431_v54, %v430_v51 }
  0xf0   :  { %v379_v59 = vadd.f32 %v378_v56, %v377_v55  ;;  %v434_v62 = vadd.f32 %v433_v60, %v432_v57 }
  0xf2   :  { %v381_v0 = vadd.f32 %v380_v61, %v379_v59  ;;  %v436_v1 = vadd.f32 %v435_v63, %v434_v62 }
  0xf4   :  { %v382_v3 = vrot.slane %v381_v0, 4  ;;  %v438_v4 = vadd.f32 %v437_v2, %v436_v1 }
  0xf6   :  { %v383_v5 = vadd.f32 %v382_v3, %v381_v0  ;;  %v439_v7 = vrot.slane %v438_v4, 4 }
  0xf8   :  { %v384_v9 = vrot.slane %v383_v5, 2  ;;  %v440_v10 = vadd.f32 %v439_v7, %v438_v4 }
  0xfa   :  { %v385_v11 = vadd.f32 %v384_v9, %v383_v5  ;;  %v441_v12 = vrot.slane %v440_v10, 2 }
  0xfc   :  { %v386_v13 = vrot.slane %v385_v11, 1  ;;  %v442_v15 = vadd.f32 %v441_v12, %v440_v10 }
  0xfe   :  { %v387_v16 = vadd.f32 %v386_v13, %v385_v11  ;;  %v443_v17 = vrot.slane %v442_v15, 1 }
 0x100   :  { %v388_v18 = vadd.f32 %v387_v16, %v349_v14  ;;  %v444_v20 = vadd.f32 %v443_v17, %v442_v15 }
 0x102   :  { %390 = vst.msk [vmem:[%s826_s5] sm:$0x1] %vm25_vm2, %v388_v18  ;;  %v445_v21 = vadd.f32 %v444_v20, %v391_v19 }
 0x104   :  { %446 = vst.msk [vmem:[%s827_s6] sm:$0x1] %vm25_vm2, %v445_v21 }

// kernel: _lambda_.34
= control target key start
LH: loop header
LB: loop body
LE: loop exit
PB: predicated region body
PF: predicated region fallthrough
CT: control target
= control target key end

     0   :  { %s2236_s9 = smov 0   ;;  %s2748_s0 = inlined_call_operand.vmem [shape: bf16[2,10,10,32], index: 0, kind: input, shape index: {}]   ;;  %s2749_s1 = inlined_call_operand.vmem [shape: bf16[288,8], index: 1, kind: input, shape index: {}]   ;;  %s2750_s2 = inlined_call_operand.vmem [shape: bf16[2,8,8,8], index: 2, kind: output, shape index: {}]  }
   0x1 LB: > { %s1819_s10 = sadd.s32 4294967295, %s2219_s9   ;;  %p1823_p0 = scmp.ge.s32.totalorder %s2219_s9, 1  ;;  %s2219_s9 = sphi %s2236_s9, %s12_s9  }
   0x2   : > { %p112_p1 = scmp.lt.s32.totalorder %s2219_s9, 3 }
   0x4   : > { %p113_p2 = pnand %p1823_p0, %p112_p1 }
   0x5   : > { %p134_p3 = scmp.lt.s32.totalorder (!%p113_p2), %s1819_s10, 1 }
   0x6   : > { %116 = sbr.rel (%p113_p2) target bundleno = 313 (0x139), region = 28 }
   0xb   : > { %v2183_v0 = vld [vmem:[%s2749_s1 + $0x18] sm:$0xff]   ;;  %v2184_v1 = vld [vmem:[%s2749_s1 + $0x10] sm:$0xff]   ;;  %s2756_s10 = smov (!%p134_p3, %s1819_s10), 1  ;;  %v2255_v2 = vld [vmem:[%s2749_s1 + $0x8] sm:$0xff]   ;;  %vm165_vm0 = vsmask.f32 3328 }
   0xc   : > { %2170 = vmatprep.subr.bf16.mxu1 %v2183_v0  ;;  %2062 = vmatprep.subr.bf16.mxu0 %v2183_v0  ;;  %s2174_s17 = smul.u32 80, %s2756_s10  ;;  %v2261_v3 = vld [vmem:[%s2749_s1 + $0x28] sm:$0xff]   ;;  %vm166_vm1 = vsmask.f32 7440  ;;  %vm308_vm2 = vcmask 261120   ;;  %vm519_vm4 = vcmask 1042432  }
   0xd   : > { %2172 = vmatpush3.bf16.msra.mxu1 %v2183_v0  ;;  %2063 = vmatpush3.bf16.msra.mxu0 %v2183_v0  ;;  %vm2307_vm3 = vmor %vm165_vm0, %vm166_vm1  ;;  %vm520_vm5 = vcmask 1046532   ;;  %vm1755_vm7 = vcmask 60416  }
   0xe   : > { %2171 = vmatprep.subr.bf16.mxu1 %v2184_v1  ;;  %2064 = vmatprep.subr.bf16.mxu0 %v2184_v1  ;;  %s2266_s22 = scalar_lea.vmem %s2748_s0, %s2174_s17  ;;  %vm2371_vm6 = vmor %vm519_vm4, %vm520_vm5 }
   0xf   : > { %v2269_v4 = vld [vmem:[%s2266_s22] sm:$0xf]  ;;  %v2272_v5 = vld [vmem:[%s2266_s22 + $0x8] sm:$0xf]  ;;  %v2275_v6 = vld [vmem:[%s2266_s22 + $0x4] sm:$0x1] }
  0x10   : > { %v2278_v7 = vld [vmem:[%s2266_s22 + $0xc] sm:$0x1]  ;;  %v169_v8 = vshrl.u32 %v2269_v4, 16  ;;  %v172_v9 = vshll.u32 %v2269_v4, 16  ;;  %v178_v10 = vshll.u32 %v2275_v6, 16  ;;  %v183_v11 = vshrl.u32 %v2272_v5, 16 }
  0x11   : > { %2173 = vmatpush3.bf16.msra.mxu1 %v2184_v1  ;;  %2065 = vmatpush3.bf16.msra.mxu0 %v2184_v1  ;;  %v186_v12 = vshll.u32 %v2272_v5, 16  ;;  %v192_v13 = vshll.u32 %v2278_v7, 16  ;;  %v524_v14 = vrot.slane %v2275_v6, 5  ;;  %v528_v15 = vrot.slane %v2278_v7, 5  ;;  %v2291_v16 = vld [vmem:[%s2266_s22 + $0x20] sm:$0xf] }
  0x12   : > { %2074 = vmatprep.subr.bf16.mxu1 %v2255_v2  ;;  %2086 = vmatprep.subr.bf16.mxu0 %v2261_v3  ;;  %v171_v17 = vrot.slane %v169_v8, 4  ;;  %v174_v18 = vrot.slane %v172_v9, 5  ;;  %v180_v19 = vrot.slane %v178_v10, 5  ;;  %v185_v20 = vrot.slane %v183_v11, 4  ;;  %v2294_v21 = vld [vmem:[%s2266_s22 + $0x28] sm:$0xf] }
  0x13   : > { %v188_v22 = vrot.slane %v186_v12, 5  ;;  %v194_v23 = vrot.slane %v192_v13, 5  ;;  %v2297_v24 = vld [vmem:[%s2266_s22 + $0x24] sm:$0x1]  ;;  %v2300_v25 = vld [vmem:[%s2266_s22 + $0x2c] sm:$0x1] }
  0x14   : > { %v175_v26 = vor.u32 %v174_v18, %v171_v17  ;;  %v225_v27 = vshrl.u32 %v2291_v16, 16  ;;  %v228_v28 = vshll.u32 %v2291_v16, 16  ;;  %v234_v29 = vshll.u32 %v2297_v24, 16  ;;  %v2315_v35 = vld [vmem:[%s2266_s22 + $0x10] sm:$0xf]  ;;  %v2187_v7 = vld [vmem:[%s2749_s1] sm:$0xff]  }
  0x15   : > { %v189_v31 = vor.u32 %v188_v22, %v185_v20  ;;  %v239_v32 = vshrl.u32 %v2294_v21, 16  ;;  %v242_v33 = vshll.u32 %v2294_v21, 16  ;;  %v248_v34 = vshll.u32 %v2300_v25, 16  ;;  %v2318_v40 = vld [vmem:[%s2266_s22 + $0x18] sm:$0xf] }
  0x16   : > { %v176_v36 = vrot.slane %v175_v26, 4  ;;  %v227_v37 = vrot.slane %v225_v27, 4  ;;  %v230_v38 = vrot.slane %v228_v28, 5  ;;  %v236_v39 = vrot.slane %v234_v29, 5  ;;  %v2321_v45 = vld [vmem:[%s2266_s22 + $0x14] sm:$0x1] }
  0x17   : > { %v190_v41 = vrot.slane %v189_v31, 4  ;;  %v241_v42 = vrot.slane %v239_v32, 4  ;;  %v244_v43 = vrot.slane %v242_v33, 5  ;;  %v250_v44 = vrot.slane %v248_v34, 5  ;;  %v2330_v52 = vld [vmem:[%s2266_s22 + $0x1c] sm:$0x1] }
  0x18   : > { %v181_v46 = vsel %vm2307_vm3, %v176_v36, %v180_v19  ;;  %v231_v47 = vor.u32 %v230_v38, %v227_v37  ;;  %v540_v48 = vrot.slane %v2297_v24, 5  ;;  %v544_v49 = vrot.slane %v2300_v25, 5  ;;  %v2335_v55 = vld [vmem:[%s2266_s22 + $0x30] sm:$0xf]  ;;  %v2340_v60 = vld [vmem:[%s2266_s22 + $0x34] sm:$0x1] }
  0x19   : > { %v195_v50 = vsel %vm2307_vm3, %v190_v41, %v194_v23  ;;  %v245_v51 = vor.u32 %v244_v43, %v241_v42  ;;  %v197_v53 = vshrl.u32 %v2315_v35, 16  ;;  %v200_v54 = vshll.u32 %v2315_v35, 16  ;;  %v2344_v1 = vld [vmem:[%s2266_s22 + $0x38] sm:$0xf]  ;;  %v2347_v8 = vld [vmem:[%s2266_s22 + $0x3c] sm:$0x1] }
  0x1a   : > { %v1827_v56 = vcombine.low %v181_v46, %v195_v50  ;;  %v232_v57 = vrot.slane %v231_v47, 4  ;;  %v206_v58 = vshll.u32 %v2321_v45, 16  ;;  %v211_v59 = vshrl.u32 %v2318_v40, 16  ;;  %v495_v20 = vld [vmem:[%s2266_s22] sm:$0xe] }
  0x1b   : > { %v246_v61 = vrot.slane %v245_v51, 4  ;;  %v199_v62 = vrot.slane %v197_v53, 4  ;;  %v202_v63 = vrot.slane %v200_v54, 5  ;;  %v214_v0 = vshll.u32 %v2318_v40, 16  ;;  %v496_v28 = vld [vmem:[%s2266_s22 + $0x8] sm:$0xe] }
  0x1c   : > { %2066 = vmatprep.mubr.msk.bf16.mxu0 %vm308_vm2, %v1827_v56  ;;  %v237_v9 = vsel %vm2307_vm3, %v232_v57, %v236_v39  ;;  %v208_v10 = vrot.slane %v206_v58, 5  ;;  %v213_v11 = vrot.slane %v211_v59, 4  ;;  %v220_v12 = vshll.u32 %v2330_v52, 16  ;;  %v497_v34 = vld [vmem:[%s2266_s22 + $0x10] sm:$0xe] }
  0x1d   : > { %v251_v13 = vsel %vm2307_vm3, %v246_v61, %v250_v44  ;;  %v203_v17 = vor.u32 %v202_v63, %v199_v62  ;;  %v216_v18 = vrot.slane %v214_v0, 5  ;;  %v532_v19 = vrot.slane %v2321_v45, 5  ;;  %v498_v45 = vld [vmem:[%s2266_s22 + $0x18] sm:$0xe]  ;;  %v499_v46 = vld [vmem:[%s2266_s22 + $0x20] sm:$0xe] }
  0x1e   : > { %v1829_v22 = vcombine.low %v237_v9, %v251_v13  ;;  %v222_v23 = vrot.slane %v220_v12, 5  ;;  %v536_v26 = vrot.slane %v2330_v52, 5  ;;  %v253_v27 = vshrl.u32 %v2335_v55, 16  ;;  %v500_v53 = vld [vmem:[%s2266_s22 + $0x28] sm:$0xe]  ;;  %v2188_v62 = vld [vmem:[%s2749_s1 + $0x20] sm:$0xff]  }
  0x1f   : > { %v204_v29 = vrot.slane %v203_v17, 4  ;;  %v217_v31 = vor.u32 %v216_v18, %v213_v11  ;;  %v256_v32 = vshll.u32 %v2335_v55, 16  ;;  %v262_v33 = vshll.u32 %v2340_v60, 16  ;;  %v501_v9 = vld [vmem:[%s2266_s22 + $0x30] sm:$0xe] }
  0x20   : > { %2070 = vmatprep.mubr.msk.bf16.mxu1 %vm308_vm2, %v1829_v22  ;;  %v255_v36 = vrot.slane %v253_v27, 4  ;;  %v267_v37 = vshrl.u32 %v2344_v1, 16  ;;  %v270_v38 = vshll.u32 %v2344_v1, 16  ;;  %v276_v39 = vshll.u32 %v2347_v8, 16  ;;  %v1883_v27 = vld [vmem:[%s2266_s22 + $0x8] sm:$0xf] }
  0x21   : > { %v209_v41 = vsel %vm2307_vm3, %v204_v29, %v208_v10  ;;  %v218_v42 = vrot.slane %v217_v31, 4  ;;  %v258_v43 = vrot.slane %v256_v32, 5  ;;  %v264_v47 = vrot.slane %v262_v33, 5  ;;  %v502_v10 = vld [vmem:[%s2266_s22 + $0x38] sm:$0xe] }
  0x22   : > { %v269_v50 = vrot.slane %v267_v37, 4  ;;  %v272_v51 = vrot.slane %v270_v38, 5  ;;  %v1847_v52 = vrot.slane %v495_v20, 9  ;;  %v278_v57 = vrot.slane %v276_v39, 5  ;;  %v1885_v29 = vld [vmem:[%s2266_s22 + $0x10] sm:$0xf] }
  0x23   : > { %v223_v54 = vsel %vm2307_vm3, %v218_v42, %v222_v23  ;;  %v259_v56 = vor.u32 %v258_v43, %v255_v36  ;;  %v1848_v58 = vrot.slane %v496_v28, 9  ;;  %v1849_v0 = vrot.slane %v497_v34, 9  ;;  %v2422_v28 = vld [vmem:[%s2266_s22 + $0xc] sm:$0x1]  ;;  %v2427_v36 = vld [vmem:[%s2266_s22 + $0x14] sm:$0x1] }
  0x24   : > { %v1828_v59 = vcombine.low %v209_v41, %v223_v54  ;;  %v273_v61 = vor.u32 %v272_v51, %v269_v50  ;;  %v525_v63 = vsel %vm2371_vm6, %v1847_v52, %v524_v14  ;;  %v1850_v13 = vrot.slane %v498_v45, 9  ;;  %v2190_v45 = vld [vmem:[%s2749_s1 + $0x38] sm:$0xff]  }
  0x25   : > { %v260_v11 = vrot.slane %v259_v56, 4  ;;  %v529_v12 = vsel %vm2371_vm6, %v1848_v58, %v528_v15  ;;  %v1851_v17 = vrot.slane %v499_v46, 9  ;;  %v533_v6 = vsel %vm2371_vm6, %v1849_v0, %v532_v19  ;;  %v2452_v54 = vld [vmem:[%s2266_s22 + $0x1c] sm:$0x1]  ;;  %v1889_v56 = vld [vmem:[%s2266_s22 + $0x20] sm:$0xf] }
  0x26   : > { %2067 = vmatmul.mubr.msk.bf16.vlgmr.msra.gmra.mxu0 %vm308_vm2, %v1828_v59  ;;  %v274_v18 = vrot.slane %v273_v61, 4  ;;  %v1855_v20 = vcombine.low %v525_v63, %v529_v12  ;;  %v1852_v14 = vrot.slane %v500_v53, 9  ;;  %v1837_v15 = vcombine.low %v2269_v4, %v2272_v5  ;;  %v1887_v53 = vld [vmem:[%s2266_s22 + $0x18] sm:$0xf] }
  0x27   : > { %v265_v22 = vsel %vm2307_vm3, %v260_v11, %v264_v47  ;;  %2087 = vmatpush3.bf16.msra.mxu0 %v2261_v3  ;;  %v537_v23 = vsel %vm2371_vm6, %v1850_v13, %v536_v26  ;;  %v2192_v3 = vld [vmem:[%s2749_s1 + $0x48] sm:$0xff]   ;;  %v541_v4 = vsel %vm2371_vm6, %v1851_v17, %v540_v48  ;;  %v1853_v26 = vrot.slane %v501_v9, 9 }
  0x28   : > { %v279_v19 = vsel %vm2307_vm3, %v274_v18, %v278_v57  ;;  %2088 = vmatprep.subr.bf16.mxu0 %v2188_v62  ;;  %2090 = vmatprep.mubr.msk.bf16.mxu0 %vm308_vm2, %v1855_v20  ;;  %v545_v5 = vsel %vm2371_vm6, %v1852_v14, %v544_v49  ;;  %v1856_v32 = vcombine.low %v533_v6, %v537_v23  ;;  %v548_v33 = vrot.slane %v2340_v60, 5  ;;  %v2460_v57 = vld [vmem:[%s2266_s22 + $0x24] sm:$0x1]  ;;  %v2467_v13 = vld [vmem:[%s2749_s1 + $0x68] sm:$0xff]  }
  0x29   : > { %v1830_v31 = vcombine.low %v265_v22, %v279_v19  ;;  %v1854_v34 = vrot.slane %v502_v10, 9  ;;  %v552_v24 = vrot.slane %v2347_v8, 5  ;;  %v814_v37 = vshrl.u32 %v1883_v27, 16  ;;  %v2196_v8 = vld [vmem:[%s2749_s1 + $0x40] sm:$0xff]   ;;  %v2477_v22 = vld [vmem:[%s2749_s1 + $0x58] sm:$0xff]  }
  0x2a   : > { %v817_v48 = vshll.u32 %v1883_v27, 16  ;;  %v823_v25 = vshll.u32 %v2422_v28, 16  ;;  %v1857_v49 = vcombine.low %v541_v4, %v545_v5  ;;  %v828_v38 = vshrl.u32 %v1885_v29, 16  ;;  %v1891_v27 = vld [vmem:[%s2266_s22 + $0x28] sm:$0xf] }
  0x2b   : > { %2071 = vmatmul.mubr.msk.bf16.vlgmr.msra.gmra.mxu1 %vm308_vm2, %v1830_v31  ;;  %2089 = vmatpush3.bf16.msra.mxu0 %v2188_v62  ;;  %v831_v39 = vshll.u32 %v1885_v29, 16  ;;  %v837_v41 = vshll.u32 %v2427_v36, 16  ;;  %v1839_v60 = vcombine.low %v2291_v16, %v2294_v21  ;;  %v816_v42 = vrot.slane %v814_v37, 4  ;;  %v2482_v4 = vld [vmem:[%s2266_s22 + $0x2c] sm:$0x1] }
  0x2c   : > { %2075 = vmatpush3.bf16.msra.mxu1 %v2255_v2  ;;  %2078 = vmatprep.mubr.msk.bf16.mxu1 %vm308_vm2, %v1837_v15  ;;  %v819_v43 = vrot.slane %v817_v48, 5  ;;  %v825_v2 = vrot.slane %v823_v25, 5  ;;  %v830_v46 = vrot.slane %v828_v38, 4  ;;  %v1838_v21 = vcombine.low %v2315_v35, %v2318_v40  ;;  %v2194_v35 = vld [vmem:[%s2749_s1 + $0x30] sm:$0xff]  }
  0x2d   : > { %2076 = vmatprep.subr.bf16.mxu1 %v2187_v7  ;;  %2110 = vmatprep.subr.bf16.mxu0 %v2192_v3  ;;  %v833_v47 = vrot.slane %v831_v39, 5  ;;  %v839_v16 = vrot.slane %v837_v41, 5  ;;  %v549_v50 = vsel %vm2371_vm6, %v1853_v26, %v548_v33  ;;  %v553_v51 = vsel %vm2371_vm6, %v1854_v34, %v552_v24  ;;  %v1893_v5 = vld [vmem:[%s2266_s22 + $0x30] sm:$0xf]  ;;  %v2486_v26 = vld [vmem:[%s2266_s22 + $0x34] sm:$0x1] }
  0x2e   : > { %2091 = vmatmul.mubr.msk.bf16.vlgmr.msra.gmra.mxu0 %vm308_vm2, %v1856_v32  ;;  %v820_v52 = vor.u32 %v819_v43, %v816_v42  ;;  %v842_v58 = vshrl.u32 %v1887_v53, 16  ;;  %v845_v59 = vshll.u32 %v1887_v53, 16  ;;  %v851_v61 = vshll.u32 %v2452_v54, 16  ;;  %v2197_v41 = vld [vmem:[%s2266_s22 + $0x8] ss:$8 sps:$4 sm:$0xff]  }
  0x2f   : > { %2111 = vmatpush3.bf16.msra.mxu0 %v2192_v3  ;;  %2094 = vmatprep.mubr.msk.bf16.mxu0 %vm308_vm2, %v1857_v49  ;;  %v834_v40 = vor.u32 %v833_v47, %v830_v46  ;;  %v856_v63 = vshrl.u32 %v1889_v56, 16  ;;  %v859_v0 = vshll.u32 %v1889_v56, 16  ;;  %v865_v9 = vshll.u32 %v2460_v57, 16 }
  0x30   : > { %2077 = vmatpush3.bf16.msra.mxu1 %v2187_v7  ;;  %2112 = vmatprep.subr.bf16.mxu0 %v2196_v8  ;;  %v821_v62 = vrot.slane %v820_v52, 4  ;;  %v844_v11 = vrot.slane %v842_v58, 4  ;;  %v847_v12 = vrot.slane %v845_v59, 5  ;;  %v1858_v17 = vcombine.low %v549_v50, %v553_v51  ;;  %v2204_v52 = vld [vmem:[%s2749_s1 + $0x60] sm:$0xff]  }
  0x31   : > { %2098 = vmatprep.subr.bf16.mxu1 %v2190_v45  ;;  %v835_v10 = vrot.slane %v834_v40, 4  ;;  %v858_v20 = vrot.slane %v856_v63, 4  ;;  %v861_v6 = vrot.slane %v859_v0, 5  ;;  %v853_v15 = vrot.slane %v851_v61, 5  ;;  %v2199_v63 = vld [vmem:[%s2266_s22 + $0x18] ss:$8 sps:$4 sm:$0xff]  }
  0x32   : > { %v826_v18 = vsel %vm2307_vm3, %v821_v62, %v825_v2  ;;  %v848_v7 = vor.u32 %v847_v12, %v844_v11  ;;  %v867_v23 = vrot.slane %v865_v9, 5  ;;  %v870_v31 = vshrl.u32 %v1891_v27, 16  ;;  %v2503_v2 = vld [vmem:[%s2266_s22 + $0x3c] sm:$0x1]  ;;  %v1909_v12 = vld [vmem:[%s2266_s22 + $0x8] sm:$0xe] }
  0x33   : > { %2079 = vmatmul.mubr.msk.bf16.vlgmr.msra.gmra.mxu1 %vm308_vm2, %v1838_v21  ;;  %2113 = vmatpush3.bf16.msra.mxu0 %v2196_v8  ;;  %v840_v14 = vsel %vm2307_vm3, %v835_v10, %v839_v16  ;;  %v862_v3 = vor.u32 %v861_v6, %v858_v20  ;;  %v873_v32 = vshll.u32 %v1891_v27, 16  ;;  %v879_v33 = vshll.u32 %v2482_v4, 16  ;;  %v1897_v16 = vld [vmem:[%s2266_s22 + $0x40] sm:$0xf]  ;;  %v2507_v21 = vld [vmem:[%s2266_s22 + $0x44] sm:$0x1] }
  0x34   : > { %2099 = vmatpush3.bf16.msra.mxu1 %v2190_v45  ;;  %2082 = vmatprep.mubr.msk.bf16.mxu1 %vm308_vm2, %v1839_v60  ;;  %v1899_v19 = vcombine.low %v826_v18, %v840_v14  ;;  %v849_v29 = vrot.slane %v848_v7, 4  ;;  %v884_v24 = vshrl.u32 %v1893_v5, 16  ;;  %v887_v37 = vshll.u32 %v1893_v5, 16  ;;  %v1895_v45 = vld [vmem:[%s2266_s22 + $0x38] sm:$0xf] }
  0x35   : > { %2100 = vmatprep.subr.bf16.mxu1 %v2194_v35  ;;  %2134 = vmatprep.subr.bf16.mxu0 %v2467_v13  ;;  %v863_v34 = vrot.slane %v862_v3, 4  ;;  %v893_v48 = vshll.u32 %v2486_v26, 16  ;;  %v1840_v25 = vcombine.low %v2335_v55, %v2344_v1  ;;  %v872_v38 = vrot.slane %v870_v31, 4  ;;  %v1910_v6 = vld [vmem:[%s2266_s22 + $0x10] sm:$0xe] }
  0x36   : > { %2095 = vmatmul.mubr.msk.bf16.gmra.mxu0 %vm308_vm2, %v1858_v17  ;;  %v854_v49 = vsel %vm2307_vm3, %v849_v29, %v853_v15  ;;  %v875_v39 = vrot.slane %v873_v32, 5  ;;  %v886_v8 = vrot.slane %v884_v24, 4  ;;  %v889_v42 = vrot.slane %v887_v37, 5  ;;  %v2201_v7 = vld [vmem:[%s2266_s22 + $0x28] ss:$8 sps:$4 sm:$0xff]  }
  0x37   : > { %2114 = vmatprep.mubr.msk.bf16.mxu0 %vm308_vm2, %v1899_v19  ;;  %v868_v60 = vsel %vm2307_vm3, %v863_v34, %v867_v23  ;;  %v881_v55 = vrot.slane %v879_v33, 5  ;;  %v895_v1 = vrot.slane %v893_v48, 5  ;;  %v898_v50 = vshrl.u32 %v1895_v45, 16  ;;  %v2202_v23 = vld [vmem:[%s2749_s1 + $0x50] sm:$0xff]   ;;  %v1911_v33 = vld [vmem:[%s2266_s22 + $0x18] sm:$0xe] }
  0x38   : > { %2101 = vmatpush3.bf16.msra.mxu1 %v2194_v35  ;;  %v876_v43 = vor.u32 %v875_v39, %v872_v38  ;;  %v1900_v46 = vcombine.low %v854_v49, %v868_v60  ;;  %v890_v47 = vor.u32 %v889_v42, %v886_v8  ;;  %v901_v51 = vshll.u32 %v1895_v45, 16  ;;  %v2205_v32 = vld [vmem:[%s2266_s22 + $0x10] ss:$8 sps:$4 sm:$0xff]   ;;  %v2538_v34 = vld [vmem:[%s2749_s1 + $0x88] sm:$0xff]  }
  0x39   : > { %2122 = vmatprep.subr.bf16.mxu1 %v2477_v22  ;;  %v907_v56 = vshll.u32 %v2503_v2, 16  ;;  %v912_v35 = vshrl.u32 %v1897_v16, 16  ;;  %v915_v40 = vshll.u32 %v1897_v16, 16  ;;  %v900_v59 = vrot.slane %v898_v50, 4  ;;  %v1914_v60 = vld [vmem:[%s2266_s22 + $0x30] sm:$0xe] }
  0x3a   : > { %v877_v53 = vrot.slane %v876_v43, 4  ;;  %v891_v58 = vrot.slane %v890_v47, 4  ;;  %v903_v61 = vrot.slane %v901_v51, 5  ;;  %v921_v62 = vshll.u32 %v2507_v21, 16  ;;  %v2203_v42 = vld [vmem:[%s2266_s22 + $0x38] ss:$8 sps:$4 sm:$0xff]  }
  0x3b   : > { %2083 = vmatmul.mubr.msk.bf16.gmra.mxu1 %vm308_vm2, %v1840_v25  ;;  %v909_v9 = vrot.slane %v907_v56, 5  ;;  %v914_v10 = vrot.slane %v912_v35, 4  ;;  %v917_v11 = vrot.slane %v915_v40, 5  ;;  %v1917_v14 = vrot.slane %v1909_v12, 9  ;;  %v2207_v47 = vld [vmem:[%s2266_s22 + $0x20] ss:$8 sps:$4 sm:$0xff]  }
  0x3c   : > { %2102 = vmatprep.mubr.msk.bf16.mxu1 %vm308_vm2, %v2197_v41  ;;  %v882_v0 = vsel %vm2307_vm3, %v877_v53, %v881_v55  ;;  %v896_v17 = vsel %vm2307_vm3, %v891_v58, %v895_v1  ;;  %v904_v18 = vor.u32 %v903_v61, %v900_v59  ;;  %v923_v20 = vrot.slane %v921_v62, 5  ;;  %v1913_v41 = vld [vmem:[%s2266_s22 + $0x28] sm:$0xe]  ;;  %v2209_v53 = vld [vmem:[%s2266_s22 + $0x30] ss:$8 sps:$4 sm:$0xff]  }
  0x3d   : > { %v1901_v15 = vcombine.low %v882_v0, %v896_v17  ;;  %v918_v27 = vor.u32 %v917_v11, %v914_v10  ;;  %v1064_v19 = vrot.slane %v2422_v28, 5  ;;  %v1918_v3 = vrot.slane %v1910_v6, 9  ;;  %v1953_v40 = vld [vmem:[%s2266_s22 + $0x10] sm:$0xf]  ;;  %v1955_v61 = vld [vmem:[%s2266_s22 + $0x18] sm:$0xf] }
  0x3e   : > { %2115 = vmatmul.mubr.msk.bf16.vlgmr.msra.gmra.mxu0 %vm308_vm2, %v1900_v46  ;;  %v905_v5 = vrot.slane %v904_v18, 4  ;;  %v1068_v29 = vrot.slane %v2427_v36, 5  ;;  %v1919_v24 = vrot.slane %v1911_v33, 9  ;;  %v1072_v37 = vrot.slane %v2452_v54, 5  ;;  %v1916_v46 = vld [vmem:[%s2266_s22 + $0x40] sm:$0xe] }
  0x3f   : > { %2135 = vmatpush3.bf16.msra.mxu0 %v2467_v13  ;;  %2118 = vmatprep.mubr.msk.bf16.mxu0 %vm308_vm2, %v1901_v15  ;;  %v919_v31 = vrot.slane %v918_v27, 4  ;;  %v1912_v13 = vld [vmem:[%s2266_s22 + $0x20] sm:$0xe]  ;;  %v1076_v25 = vrot.slane %v2460_v57, 5  ;;  %v1080_v49 = vrot.slane %v2482_v4, 5  ;;  %v1065_v54 = vsel %vm2371_vm6, %v1917_v14, %v1064_v19  ;;  %v2559_v57 = vld [vmem:[%s2749_s1 + $0x78] sm:$0xff]  }
  0x40   : > { %2136 = vmatprep.subr.bf16.mxu0 %v2204_v52  ;;  %v910_v28 = vsel %vm2307_vm3, %v905_v5, %v909_v9  ;;  %v1920_v48 = vrot.slane %v1912_v13, 9  ;;  %v1069_v39 = vsel %vm2371_vm6, %v1918_v3, %v1068_v29  ;;  %v1922_v4 = vrot.slane %v1914_v60, 9  ;;  %v1956_v62 = vld [vmem:[%s2266_s22 + $0x1c] sm:$0x1]  ;;  %v2212_v0 = vld [vmem:[%s2749_s1 + $0x80] sm:$0xff]  }
  0x41   : > { %v924_v36 = vsel %vm2307_vm3, %v919_v31, %v923_v20  ;;  %v1084_v8 = vrot.slane %v2486_v26, 5  ;;  %v1925_v43 = vcombine.low %v1065_v54, %v1069_v39  ;;  %v2568_v55 = vsel %vm2371_vm6, %v1919_v24, %v1072_v37  ;;  %v1915_v26 = vld [vmem:[%s2266_s22 + $0x38] sm:$0xe]  ;;  %v1979_v12 = vld [vmem:[%s2266_s22 + $0x10] sm:$0xe] }
  0x42   : > { %v1902_v38 = vcombine.low %v910_v28, %v924_v36  ;;  %v2572_v1 = vsel %vm2371_vm6, %v1920_v48, %v1076_v25  ;;  %v1923_v50 = vrot.slane %v1915_v26, 9  ;;  %v1088_v51 = vrot.slane %v2503_v2, 5  ;;  %v1980_v6 = vld [vmem:[%s2266_s22 + $0x18] sm:$0xe]  ;;  %v1957_v19 = vld [vmem:[%s2266_s22 + $0x20] sm:$0xf] }
  0x43   : > { %2103 = vmatmul.mubr.msk.bf16.vlgmr.msra.gmra.mxu1 %vm308_vm2, %v2199_v63  ;;  %2137 = vmatpush3.bf16.msra.mxu0 %v2204_v52  ;;  %v2583_v16 = vsel %vm2371_vm6, %v1922_v4, %v1084_v8  ;;  %v1924_v52 = vrot.slane %v1916_v46, 9  ;;  %v1092_v56 = vrot.slane %v2507_v21, 5  ;;  %v1926_v58 = vcombine.low %v2568_v55, %v2572_v1  ;;  %v1954_v21 = vld [vmem:[%s2266_s22 + $0x14] sm:$0x1]  ;;  %v2211_v33 = vld [vmem:[%s2266_s22 + $0x40] ss:$8 sps:$4 sm:$0xff]  }
  0x44   : > { %2123 = vmatpush3.bf16.msra.mxu1 %v2477_v22  ;;  %2106 = vmatprep.mubr.msk.bf16.mxu1 %vm308_vm2, %v2201_v7  ;;  %v1921_v22 = vrot.slane %v1913_v41, 9  ;;  %v2591_v35 = vsel %vm2371_vm6, %v1923_v50, %v1088_v51  ;;  %v1354_v9 = vshrl.u32 %v1953_v40, 16  ;;  %v1357_v10 = vshll.u32 %v1953_v40, 16  ;;  %v1959_v37 = vld [vmem:[%s2266_s22 + $0x28] sm:$0xf] }
  0x45   : > { %2124 = vmatprep.subr.bf16.mxu1 %v2202_v23  ;;  %2158 = vmatprep.subr.bf16.mxu0 %v2538_v34  ;;  %v2601_v59 = vsel %vm2371_vm6, %v1924_v52, %v1092_v56  ;;  %v1363_v11 = vshll.u32 %v1954_v21, 16  ;;  %v1368_v17 = vshrl.u32 %v1955_v61, 16  ;;  %v1371_v18 = vshll.u32 %v1955_v61, 16  ;;  %v1960_v25 = vld [vmem:[%s2266_s22 + $0x2c] sm:$0x1] }
  0x46   : > { %2119 = vmatmul.mubr.msk.bf16.gmra.mxu0 %vm308_vm2, %v1902_v38  ;;  %v2576_v45 = vsel %vm2371_vm6, %v1921_v22, %v1080_v49  ;;  %v1928_v63 = vcombine.low %v2591_v35, %v2601_v59  ;;  %v1377_v20 = vshll.u32 %v1956_v62, 16  ;;  %v1987_v14 = vrot.slane %v1979_v12, 9  ;;  %v1981_v4 = vld [vmem:[%s2266_s22 + $0x20] sm:$0xe]  ;;  %v1982_v1 = vld [vmem:[%s2266_s22 + $0x28] sm:$0xe] }
  0x47   : > { %2138 = vmatprep.mubr.msk.bf16.mxu0 %vm308_vm2, %v2205_v32  ;;  %v1927_v2 = vcombine.low %v2576_v45, %v2583_v16  ;;  %v1356_v7 = vrot.slane %v1354_v9, 4  ;;  %v1359_v15 = vrot.slane %v1357_v10, 5  ;;  %v1604_v27 = vrot.slane %v1954_v21, 5  ;;  %v1958_v32 = vld [vmem:[%s2266_s22 + $0x24] sm:$0x1] }
  0x48   : > { %2125 = vmatpush3.bf16.msra.mxu1 %v2202_v23  ;;  %v1365_v23 = vrot.slane %v1363_v11, 5  ;;  %v1370_v3 = vrot.slane %v1368_v17, 4  ;;  %v1373_v5 = vrot.slane %v1371_v18, 5  ;;  %v1379_v29 = vrot.slane %v1377_v20, 5  ;;  %v1961_v16 = vld [vmem:[%s2266_s22 + $0x30] sm:$0xf] }
  0x49   : > { %2146 = vmatprep.subr.bf16.mxu1 %v2559_v57  ;;  %v1988_v31 = vrot.slane %v1980_v6, 9  ;;  %v1360_v13 = vor.u32 %v1359_v15, %v1356_v7  ;;  %v1605_v28 = vsel %vm2371_vm6, %v1987_v14, %v1604_v27  ;;  %v1608_v24 = vrot.slane %v1956_v62, 5  ;;  %v1962_v56 = vld [vmem:[%s2266_s22 + $0x34] sm:$0x1]  ;;  %v1963_v40 = vld [vmem:[%s2266_s22 + $0x38] sm:$0xf] }
  0x4a   : > { %v1382_v36 = vshrl.u32 %v1957_v19, 16  ;;  %v1374_v48 = vor.u32 %v1373_v5, %v1370_v3  ;;  %v1385_v49 = vshll.u32 %v1957_v19, 16  ;;  %v1391_v38 = vshll.u32 %v1958_v32, 16  ;;  %v1964_v11 = vld [vmem:[%s2266_s22 + $0x3c] sm:$0x1] }
  0x4b   : > { %2107 = vmatmul.mubr.msk.bf16.gmra.mxu1 %vm308_vm2, %v2203_v42  ;;  %v1396_v54 = vshrl.u32 %v1959_v37, 16  ;;  %v1361_v39 = vrot.slane %v1360_v13, 4  ;;  %v1609_v41 = vsel %vm2371_vm6, %v1988_v31, %v1608_v24  ;;  %v1399_v22 = vshll.u32 %v1959_v37, 16  ;;  %v1983_v15 = vld [vmem:[%s2266_s22 + $0x30] sm:$0xe] }
  0x4c   : > { %2126 = vmatprep.mubr.msk.bf16.mxu1 %vm308_vm2, %v1925_v43  ;;  %v1384_v60 = vrot.slane %v1382_v36, 4  ;;  %v1375_v8 = vrot.slane %v1374_v48, 4  ;;  %v1995_v42 = vcombine.low %v1605_v28, %v1609_v41  ;;  %v1387_v43 = vrot.slane %v1385_v49, 5  ;;  %v1966_v28 = vld [vmem:[%s2266_s22 + $0x44] sm:$0x1] }
  0x4d   : > { %v1393_v55 = vrot.slane %v1391_v38, 5  ;;  %v1366_v45 = vsel %vm2307_vm3, %v1361_v39, %v1365_v23  ;;  %v1398_v26 = vrot.slane %v1396_v54, 4  ;;  %v1401_v46 = vrot.slane %v1399_v22, 5  ;;  %v1984_v23 = vld [vmem:[%s2266_s22 + $0x38] sm:$0xe] }
  0x4e   : > { %2139 = vmatmul.mubr.msk.bf16.vlgmr.msra.gmra.mxu0 %vm308_vm2, %v2207_v47  ;;  %v1405_v47 = vshll.u32 %v1960_v25, 16  ;;  %v1380_v50 = vsel %vm2307_vm3, %v1375_v8, %v1379_v29  ;;  %v1388_v51 = vor.u32 %v1387_v43, %v1384_v60  ;;  %v1989_v52 = vrot.slane %v1981_v4, 9  ;;  %v1965_v29 = vld [vmem:[%s2266_s22 + $0x40] sm:$0xf]  ;;  %v1967_v48 = vld [vmem:[%s2266_s22 + $0x48] sm:$0xf] }
  0x4f   : > { %2159 = vmatpush3.bf16.msra.mxu0 %v2538_v34  ;;  %2142 = vmatprep.mubr.msk.bf16.mxu0 %vm308_vm2, %v2209_v53  ;;  %v2210_v34 = vld [vmem:[%s2749_s1 + $0x70] sm:$0xff]   ;;  %v1612_v53 = vrot.slane %v1958_v32, 5  ;;  %v1990_v21 = vrot.slane %v1982_v1, 9  ;;  %v1410_v9 = vshrl.u32 %v1961_v16, 16  ;;  %v1413_v12 = vshll.u32 %v1961_v16, 16 }
  0x50   : > { %2160 = vmatprep.subr.bf16.mxu0 %v2212_v0  ;;  %v1389_v61 = vrot.slane %v1388_v51, 4  ;;  %v1419_v17 = vshll.u32 %v1962_v56, 16  ;;  %v1424_v18 = vshrl.u32 %v1963_v40, 16  ;;  %v1427_v7 = vshll.u32 %v1963_v40, 16  ;;  %v1968_v54 = vld [vmem:[%s2266_s22 + $0x4c] sm:$0x1] }
  0x51   : > { %v1613_v62 = vsel %vm2371_vm6, %v1989_v52, %v1612_v53  ;;  %v1412_v14 = vrot.slane %v1410_v9, 4  ;;  %v1415_v3 = vrot.slane %v1413_v12, 5  ;;  %v1433_v13 = vshll.u32 %v1964_v11, 16 }
  0x52   : > { %v1394_v20 = vsel %vm2307_vm3, %v1389_v61, %v1393_v55  ;;  %v1421_v5 = vrot.slane %v1419_v17, 5  ;;  %v1426_v32 = vrot.slane %v1424_v18, 4  ;;  %v1991_v37 = vrot.slane %v1983_v15, 9 }
  0x53   : > { %2127 = vmatmul.mubr.msk.bf16.vlgmr.msra.gmra.mxu1 %vm308_vm2, %v1926_v58  ;;  %2161 = vmatpush3.bf16.msra.mxu0 %v2212_v0  ;;  %v1402_v58 = vor.u32 %v1401_v46, %v1398_v26  ;;  %v1616_v0 = vrot.slane %v1960_v25, 5  ;;  %v1416_v24 = vor.u32 %v1415_v3, %v1412_v14  ;;  %v1620_v36 = vrot.slane %v1962_v56, 5 }
  0x54   : > { %2147 = vmatpush3.bf16.msra.mxu1 %v2559_v57  ;;  %2130 = vmatprep.mubr.msk.bf16.mxu1 %vm308_vm2, %v1927_v2  ;;  %v1969_v57 = vcombine.low %v1366_v45, %v1380_v50  ;;  %v1407_v2 = vrot.slane %v1405_v47, 5  ;;  %v1435_v49 = vrot.slane %v1433_v13, 5  ;;  %v1624_v38 = vrot.slane %v1964_v11, 5  ;;  %v1986_v45 = vld [vmem:[%s2266_s22 + $0x48] sm:$0xe] }
  0x55   : > { %2148 = vmatprep.subr.bf16.mxu1 %v2210_v34  ;;  %v1403_v10 = vrot.slane %v1402_v58, 4  ;;  %v1617_v6 = vsel %vm2371_vm6, %v1990_v21, %v1616_v0  ;;  %v1438_v35 = vshrl.u32 %v1965_v29, 16  ;;  %v1417_v59 = vrot.slane %v1416_v24, 4 }
  0x56   : > { %2143 = vmatmul.mubr.msk.bf16.gmra.mxu0 %vm308_vm2, %v2211_v33  ;;  %v1996_v19 = vcombine.low %v1613_v62, %v1617_v6  ;;  %v1429_v33 = vrot.slane %v1427_v7, 5  ;;  %v1441_v39 = vshll.u32 %v1965_v29, 16  ;;  %v1447_v41 = vshll.u32 %v1966_v28, 16 }
  0x57   : > { %2162 = vmatprep.mubr.msk.bf16.mxu0 %vm308_vm2, %v1995_v42  ;;  %v1408_v27 = vsel %vm2307_vm3, %v1403_v10, %v1407_v2  ;;  %v1440_v4 = vrot.slane %v1438_v35, 4  ;;  %v1452_v8 = vshrl.u32 %v1967_v48, 16  ;;  %v1985_v42 = vld [vmem:[%s2266_s22 + $0x40] sm:$0xe]  ;;  %v1422_v43 = vsel %vm2307_vm3, %v1417_v59, %v1421_v5  ;;  %s2007_s22 = sshll.u32 %s2756_s10, 5 }
  0x58   : > { %2149 = vmatpush3.bf16.msra.mxu1 %v2210_v34  ;;  %v1970_v31 = vcombine.low %v1394_v20, %v1408_v27  ;;  %v1992_v34 = vrot.slane %v1984_v23, 9  ;;  %v1430_v25 = vor.u32 %v1429_v33, %v1426_v32  ;;  %v1443_v1 = vrot.slane %v1441_v39, 5  ;;  %s2721_s28 = scalar_lea.vmem %s2750_s2, %s2007_s22 }
  0x59   : > { %v1454_v46 = vrot.slane %v1452_v8, 4  ;;  %v1455_v47 = vshll.u32 %v1967_v48, 16  ;;  %v1461_v16 = vshll.u32 %v1968_v54, 16  ;;  %v1993_v52 = vrot.slane %v1985_v42, 9 }
  0x5a   : > { %v1431_v60 = vrot.slane %v1430_v25, 4  ;;  %v1625_v22 = vsel %vm2371_vm6, %v1992_v34, %v1624_v38  ;;  %v1444_v51 = vor.u32 %v1443_v1, %v1440_v4  ;;  %v1628_v53 = vrot.slane %v1966_v28, 5 }
  0x5b   : > { %2131 = vmatmul.mubr.msk.bf16.gmra.mxu1 %vm308_vm2, %v1928_v63  ;;  %v1621_v63 = vsel %vm2371_vm6, %v1991_v37, %v1620_v36  ;;  %v1449_v56 = vrot.slane %v1447_v41, 5  ;;  %v1457_v40 = vrot.slane %v1455_v47, 5  ;;  %v1632_v58 = vrot.slane %v1968_v54, 5 }
  0x5c   : > { %2150 = vmatprep.mubr.msk.bf16.mxu1 %vm308_vm2, %v1969_v57  ;;  %v1997_v55 = vcombine.low %v1621_v63, %v1625_v22  ;;  %v1436_v26 = vsel %vm2307_vm3, %v1431_v60, %v1435_v49  ;;  %v1994_v57 = vrot.slane %v1986_v45, 9  ;;  %v1445_v2 = vrot.slane %v1444_v51, 4 }
  0x5d   : > { %v1971_v50 = vcombine.low %v1422_v43, %v1436_v26  ;;  %v1629_v21 = vsel %vm2371_vm6, %v1993_v52, %v1628_v53  ;;  %v1458_v61 = vor.u32 %v1457_v40, %v1454_v46  ;;  %v1463_v62 = vrot.slane %v1461_v16, 5 }
  0x5e   : > { %2163 = vmatmul.mubr.msk.bf16.vlgmr.msra.gmra.mxu0 %vm308_vm2, %v1996_v19  ;;  %v1633_v0 = vsel %vm2371_vm6, %v1994_v57, %v1632_v58  ;;  %v1450_v10 = vsel %vm2307_vm3, %v1445_v2, %v1449_v56 }
  0x5f   : > { %2166 = vmatprep.mubr.msk.bf16.mxu0 %vm308_vm2, %v1997_v55  ;;  %v1998_v9 = vcombine.low %v1629_v21, %v1633_v0  ;;  %v1459_v11 = vrot.slane %v1458_v61, 4 }
  0x61   : > { %v1464_v12 = vsel %vm2307_vm3, %v1459_v11, %v1463_v62 }
  0x62   : > { %v1972_v17 = vcombine.low %v1450_v10, %v1464_v12 }
  0x63   : > { %2151 = vmatmul.mubr.msk.bf16.vlgmr.msra.gmra.mxu1 %vm308_vm2, %v1970_v31 }
  0x64   : > { %2154 = vmatprep.mubr.msk.bf16.mxu1 %vm308_vm2, %v1971_v50 }
  0x66   : > { %2167 = vmatmul.mubr.msk.bf16.gmra.mxu0 %vm308_vm2, %v1998_v9 }
  0x6b   : > { %2155 = vmatmul.mubr.msk.bf16.gmra.mxu1 %vm308_vm2, %v1972_v17 }
  0xe6   : > { %v2068_v18 = vpop.f32.mrf.mxu0 }
  0xe8   : > { %v355_v20 = vpop.f32.mrf.mxu0 }
  0xea   : > { %v2069_v6 = vpop.f32.mrf.mxu0 }
  0xeb   : > { %v2072_v14 = vpop.f32.mrf.mxu1 }
  0xec   : > { %v358_v7 = vpop.f32.mrf.mxu0 }
  0xed   : > { %v371_v44 = vpop.f32.mrf.mxu1 }
  0xee   : > { %v2092_v15 = vpop.f32.mrf.mxu0 }
  0xef   : > { %v2687_v23 = vpop.f32.mrf.mxu1 }
  0xf0   : > { %v628_v27 = vpop.f32.mrf.mxu0 }
  0xf1   : > { %v2689_v19 = vpop.f32.mrf.mxu1 }
  0xf2   : > { %v2093_v3 = vpop.f32.mrf.mxu0 }
  0xf3   : > { %v2080_v5 = vpop.f32.mrf.mxu1 }
  0xf4   : > { %v631_v29 = vpop.f32.mrf.mxu0  ;;  %v473_v26 = vadd.f32 %v2080_v5, %v2068_v18 }
  0xf5   : > { %v464_v30 = vpop.f32.mrf.mxu1 }
  0xf6   : > { %v2096_v31 = vpop.f32.mrf.mxu0  ;;  %v465_v16 = vadd.f32 %v464_v30, %v355_v20  ;;  %v661_v52 = vadd.f32 %v2092_v15, %v473_v26 }
  0xf7   : > { %v2081_v32 = vpop.f32.mrf.mxu1 }
  0xf8   : > { %v644_v33 = vpop.f32.mrf.mxu0  ;;  %v476_v53 = vadd.f32 %v2081_v32, %v2069_v6  ;;  %v659_v57 = vadd.f32 %v628_v27, %v465_v16 }
  0xf9   : > { %v467_v13 = vpop.f32.mrf.mxu1 }
  0xfa   : > { %v2691_v28 = vpop.f32.mrf.mxu0  ;;  %v468_v58 = vadd.f32 %v467_v13, %v358_v7  ;;  %v662_v62 = vadd.f32 %v2093_v3, %v476_v53 }
  0xfb   : > { %v2084_v24 = vpop.f32.mrf.mxu1 }
  0xfc   : > { %v2693_v37 = vpop.f32.mrf.mxu0  ;;  %v489_v10 = vadd.f32 %v2084_v24, %v2072_v14  ;;  %v660_v12 = vadd.f32 %v631_v29, %v468_v58 }
  0xfd   : > { %v480_v36 = vpop.f32.mrf.mxu1 }
  0xfe   : > { %v2116_v34 = vpop.f32.mrf.mxu0  ;;  %v481_v6 = vadd.f32 %v480_v36, %v371_v44  ;;  %v665_v32 = vadd.f32 %v2096_v31, %v489_v10 }
  0xff   : > { %v2085_v48 = vpop.f32.mrf.mxu1 }
 0x100   : > { %v999_v25 = vpop.f32.mrf.mxu0  ;;  %v492_v13 = vadd.f32 %v2085_v48, %v2687_v23  ;;  %v663_v24 = vadd.f32 %v644_v33, %v481_v6 }
 0x101   : > { %v483_v49 = vpop.f32.mrf.mxu1 }
 0x102   : > { %v2117_v38 = vpop.f32.mrf.mxu0  ;;  %v484_v29 = vadd.f32 %v483_v49, %v2689_v19 }
 0x103   : > { %v2104_v35 = vpop.f32.mrf.mxu1 }
 0x104   : > { %v1002_v59 = vpop.f32.mrf.mxu0  ;;  %v791_v2 = vadd.f32 %v2104_v35, %v661_v52 }
 0x105   : > { %v758_v63 = vpop.f32.mrf.mxu1 }
 0x106   : > { %v2695_v54 = vpop.f32.mrf.mxu0  ;;  %v789_v0 = vadd.f32 %v758_v63, %v659_v57  ;;  %v1032_v17 = vadd.f32 %v2116_v34, %v791_v2 }
 0x107   : > { %v2105_v39 = vpop.f32.mrf.mxu1 }
 0x108   : > { %v2697_v41 = vpop.f32.mrf.mxu0  ;;  %v792_v18 = vadd.f32 %v2105_v39, %v662_v62  ;;  %v1030_v5 = vadd.f32 %v999_v25, %v789_v0 }
 0x109   : > { %v761_v60 = vpop.f32.mrf.mxu1 }
 0x10a   : > { %v2699_v22 = vpop.f32.mrf.mxu0  ;;  %v790_v27 = vadd.f32 %v761_v60, %v660_v12  ;;  %v1033_v35 = vadd.f32 %v2117_v38, %v792_v18  ;;  %v666_v60 = vadd.f32 %v2691_v28, %v492_v13 }
 0x10b   : > { %v2108_v4 = vpop.f32.mrf.mxu1 }
 0x10c   : > { %v2701_v8 = vpop.f32.mrf.mxu0  ;;  %v795_v34 = vadd.f32 %v2108_v4, %v665_v32  ;;  %v1031_v26 = vadd.f32 %v1002_v59, %v790_v27 }
 0x10d   : > { %v774_v42 = vpop.f32.mrf.mxu1 }
 0x10e   : > { %v2140_v43 = vpop.f32.mrf.mxu0  ;;  %v1036_v33 = vadd.f32 %v2695_v54, %v795_v34 }
 0x10f   : > { %v2109_v55 = vpop.f32.mrf.mxu1 }
 0x110   : > { %v1298_v1 = vpop.f32.mrf.mxu0  ;;  %v796_v19 = vadd.f32 %v2109_v55, %v666_v60 }
 0x111   : > { %v777_v45 = vpop.f32.mrf.mxu1 }
 0x112   : > { %v2141_v46 = vpop.f32.mrf.mxu0 }
 0x113   : > { %v2128_v47 = vpop.f32.mrf.mxu1 }
 0x114   : > { %v1301_v50 = vpop.f32.mrf.mxu0  ;;  %v1201_v7 = vadd.f32 %v2128_v47, %v1032_v17  ;;  %v793_v47 = vadd.f32 %v774_v42, %v663_v24 }
 0x115   : > { %v1168_v51 = vpop.f32.mrf.mxu1 }
 0x116   : > { %v2703_v56 = vpop.f32.mrf.mxu0  ;;  %v1199_v63 = vadd.f32 %v1168_v51, %v1030_v5  ;;  %v1331_v44 = vadd.f32 %v2140_v43, %v1201_v7  ;;  %v664_v51 = vadd.f32 %v2693_v37, %v484_v29  ;;  %v1034_v52 = vadd.f32 %v2697_v41, %v793_v47 }
 0x117   : > { %v2129_v40 = vpop.f32.mrf.mxu1 }
 0x118   : > { %v2705_v21 = vpop.f32.mrf.mxu0  ;;  %v1202_v36 = vadd.f32 %v2129_v40, %v1033_v35  ;;  %v1329_v16 = vadd.f32 %v1298_v1, %v1199_v63  ;;  %v794_v53 = vadd.f32 %v777_v45, %v664_v51  ;;  %v1037_v40 = vadd.f32 %v2699_v22, %v796_v19 }
 0x119   : > { %v1171_v61 = vpop.f32.mrf.mxu1 }
 0x11a   : > { %v2707_v9 = vpop.f32.mrf.mxu0  ;;  %v1200_v23 = vadd.f32 %v1171_v61, %v1031_v26  ;;  %v1332_v4 = vadd.f32 %v2141_v46, %v1202_v36  ;;  %v1035_v61 = vadd.f32 %v2701_v8, %v794_v53 }
 0x11b   : > { %v2132_v11 = vpop.f32.mrf.mxu1 }
 0x11c   : > { %v2709_v20 = vpop.f32.mrf.mxu0  ;;  %v1205_v28 = vadd.f32 %v2132_v11, %v1036_v33  ;;  %v1330_v37 = vadd.f32 %v1301_v50, %v1200_v23 }
 0x11d   : > { %v1184_v15 = vpop.f32.mrf.mxu1 }
 0x11e   : > { %v2164_v30 = vpop.f32.mrf.mxu0  ;;  %v1203_v57 = vadd.f32 %v1184_v15, %v1034_v52  ;;  %v1335_v62 = vadd.f32 %v2703_v56, %v1205_v28 }
 0x11f   : > { %v2133_v3 = vpop.f32.mrf.mxu1 }
 0x120   : > { %v1708_v14 = vpop.f32.mrf.mxu0  ;;  %v1206_v50 = vadd.f32 %v2133_v3, %v1037_v40  ;;  %v1333_v12 = vadd.f32 %v2705_v21, %v1203_v57 }
 0x121   : > { %v1187_v39 = vpop.f32.mrf.mxu1 }
 0x122   : > { %v2165_v25 = vpop.f32.mrf.mxu0  ;;  %v1204_v17 = vadd.f32 %v1187_v39, %v1035_v61  ;;  %v1336_v8 = vadd.f32 %v2707_v9, %v1206_v50 }
 0x123   : > { %v2152_v31 = vpop.f32.mrf.mxu1 }
 0x124   : > { %v1572_v48 = vadd.f32 %v2152_v31, %v1331_v44  ;;  %v1711_v38 = vpop.f32.mrf.mxu0  ;;  %v1334_v21 = vadd.f32 %v2709_v20, %v1204_v17 }
 0x125   : > { %v1539_v49 = vpop.f32.mrf.mxu1 }
 0x126   : > { %v1741_v59 = vadd.f32 %v2164_v30, %v1572_v48  ;;  %v1570_v43 = vadd.f32 %v1539_v49, %v1329_v16  ;;  %v2168_v46 = vpop.f32.mrf.mxu0 }
 0x127   : > { %v2153_v42 = vpop.f32.mrf.mxu1 }
 0x128   : > { %v1749_v54 = vpack.c.bf16 %v1741_v59, %v1741_v59  ;;  %v1739_v55 = vadd.f32 %v1708_v14, %v1570_v43  ;;  %v1573_v1 = vadd.f32 %v2153_v42, %v1332_v4  ;;  %v1724_v22 = vpop.f32.mrf.mxu0 }
 0x129   : > { %v1542_v41 = vpop.f32.mrf.mxu1 }
 0x12a   : > { %1758 = vst.msk [vmem:[%s2721_s28 + $0x8] sm:$0xf] %vm1755_vm7, %v1749_v54  ;;  %v1747_v45 = vpack.c.bf16 %v1739_v55, %v1739_v55  ;;  %v1742_v58 = vadd.f32 %v2165_v25, %v1573_v1  ;;  %v1571_v2 = vadd.f32 %v1542_v41, %v1330_v37  ;;  %v2169_v7 = vpop.f32.mrf.mxu0 }
 0x12b   : > { %v2156_v11 = vpop.f32.mrf.mxu1 }
 0x12c   : > { %1756 = vst.msk [vmem:[%s2721_s28] sm:$0xf] %vm1755_vm7, %v1747_v45  ;;  %v1750_v0 = vpack.c.bf16 %v1742_v58, %v1742_v58  ;;  %v1740_v10 = vadd.f32 %v1711_v38, %v1571_v2  ;;  %v1576_v18 = vadd.f32 %v2156_v11, %v1335_v62  ;;  %v1727_v14 = vpop.f32.mrf.mxu0 }
 0x12d   : > { %v1555_v15 = vpop.f32.mrf.mxu1 }
 0x12e   : > { %1759 = vst.msk [vmem:[%s2721_s28 + $0xc] sm:$0xf] %vm1755_vm7, %v1750_v0  ;;  %v1748_v6 = vpack.c.bf16 %v1740_v10, %v1740_v10  ;;  %v1745_v56 = vadd.f32 %v2168_v46, %v1576_v18  ;;  %v1574_v5 = vadd.f32 %v1555_v15, %v1333_v12 }
 0x12f   : > { %v2157_v27 = vpop.f32.mrf.mxu1 }
 0x130   : > { %1757 = vst.msk [vmem:[%s2721_s28 + $0x4] sm:$0xf] %vm1755_vm7, %v1748_v6  ;;  %v1753_v30 = vpack.c.bf16 %v1745_v56, %v1745_v56  ;;  %v1743_v32 = vadd.f32 %v1724_v22, %v1574_v5  ;;  %v1577_v13 = vadd.f32 %v2157_v27, %v1336_v8 }
 0x131   : > { %v1558_v3 = vpop.f32.mrf.mxu1 }
 0x132   : > { %1762 = vst.msk [vmem:[%s2721_s28 + $0x18] sm:$0xf] %vm1755_vm7, %v1753_v30  ;;  %v1751_v35 = vpack.c.bf16 %v1743_v32, %v1743_v32  ;;  %v1746_v63 = vadd.f32 %v2169_v7, %v1577_v13  ;;  %v1575_v9 = vadd.f32 %v1558_v3, %v1334_v21 }
 0x134   : > { %1760 = vst.msk [vmem:[%s2721_s28 + $0x10] sm:$0xf] %vm1755_vm7, %v1751_v35  ;;  %v1754_v24 = vpack.c.bf16 %v1746_v63, %v1746_v63  ;;  %v1744_v29 = vadd.f32 %v1727_v14, %v1575_v9 }
 0x136   : > { %1763 = vst.msk [vmem:[%s2721_s28 + $0x1c] sm:$0xf] %vm1755_vm7, %v1754_v24  ;;  %v1752_v34 = vpack.c.bf16 %v1744_v29, %v1744_v29 }
 0x138   : > { %1761 = vst.msk [vmem:[%s2721_s28 + $0x14] sm:$0xf] %vm1755_vm7, %v1752_v34 }
 0x139 PF: > { %s12_s9 = sadd.s32 1, %s2219_s9  }
 0x13a   : > { %p9_p4 = scmp.ge.s32.totalorder %s12_s9, 4  }
 0x13c   :  { %11 = sbr.rel (!%p9_p4) target bundleno = 1 (0x1), region = 60 }

// kernel: _lambda_.40
= control target key start
LH: loop header
LB: loop body
LE: loop exit
PB: predicated region body
PF: predicated region fallthrough
CT: control target
= control target key end

     0   :  { %vm108_vm0 = vcmask 261120   ;;  %vm158_vm1 = vcmask 257024   ;;  %s334_s0 = inlined_call_operand.vmem [shape: bf16[4,32,32], index: 0, kind: input, shape index: {}]   ;;  %s335_s1 = inlined_call_operand.vmem [shape: f32[1,32], index: 1, kind: input, shape index: {}]   ;;  %s336_s2 = inlined_call_operand.vmem [shape: f32[1,32], index: 2, kind: input, shape index: {}]   ;;  %s337_s3 = inlined_call_operand.vmem [shape: bf16[32,32], index: 3, kind: output, shape index: {}]  }
   0x1   :  { %v178_v0 = vld [vmem:[%s334_s0] sm:$0xff]   ;;  %v210_v1 = vld [vmem:[%s334_s0 + $0x10] sm:$0xff]   ;;  %v209_v38 = vld [vmem:[%s334_s0 + $0x8] sm:$0xff]  }
   0x2   :  { %v212_v2 = vld [vmem:[%s334_s0 + $0x20] sm:$0xff]   ;;  %v179_v3 = vunpack.c.l.bf16 %v178_v0  ;;  %v187_v4 = vunpack.c.l.bf16 %v210_v1  ;;  %v214_v6 = vld [vmem:[%s334_s0 + $0x30] sm:$0xff]   ;;  %v180_v8 = vunpack.c.h.bf16 %v178_v0  ;;  %v188_v11 = vunpack.c.h.bf16 %v210_v1  ;;  %v211_v39 = vld [vmem:[%s334_s0 + $0x18] sm:$0xff]  }
   0x3   :  { %v195_v5 = vunpack.c.l.bf16 %v212_v2  ;;  %v251_v7 = vld [vmem:[%s335_s1] ss:$0 sm:$0xff]  ;;  %v203_v9 = vunpack.c.l.bf16 %v214_v6  ;;  %v196_v12 = vunpack.c.h.bf16 %v212_v2  ;;  %v204_v13 = vunpack.c.h.bf16 %v214_v6  ;;  %v213_v44 = vld [vmem:[%s334_s0 + $0x28] sm:$0xff]   ;;  %v215_v45 = vld [vmem:[%s334_s0 + $0x38] sm:$0xff]  }
   0x4   :  { %v256_v10 = vld [vmem:[%s336_s2] ss:$0 sm:$0xff]  ;;  %v53_v14 = vmul.f32 %v179_v3, %v251_v7  ;;  %v57_v15 = vmul.f32 %v187_v4, %v251_v7  ;;  %v54_v17 = vmul.f32 %v180_v8, %v251_v7  ;;  %v58_v19 = vmul.f32 %v188_v11, %v251_v7 }
   0x5   :  { %v61_v16 = vmul.f32 %v195_v5, %v251_v7  ;;  %v65_v18 = vmul.f32 %v203_v9, %v251_v7  ;;  %v62_v20 = vmul.f32 %v196_v12, %v251_v7  ;;  %v66_v21 = vmul.f32 %v204_v13, %v251_v7 }
   0x6   :  { %v76_v22 = vadd.f32 %v256_v10, %v53_v14  ;;  %v80_v23 = vadd.f32 %v256_v10, %v57_v15  ;;  %v77_v25 = vadd.f32 %v256_v10, %v54_v17  ;;  %v81_v27 = vadd.f32 %v256_v10, %v58_v19 }
   0x7   :  { %v84_v24 = vadd.f32 %v256_v10, %v61_v16  ;;  %v88_v26 = vadd.f32 %v256_v10, %v65_v18  ;;  %v85_v28 = vadd.f32 %v256_v10, %v62_v20  ;;  %v89_v29 = vadd.f32 %v256_v10, %v66_v21 }
   0x8   :  { %v92_v30 = vmax.f32 %v76_v22, 0.0  ;;  %v96_v31 = vmax.f32 %v80_v23, 0.0  ;;  %v93_v33 = vmax.f32 %v77_v25, 0.0  ;;  %v97_v35 = vmax.f32 %v81_v27, 0.0 }
   0x9   :  { %v100_v32 = vmax.f32 %v84_v24, 0.0  ;;  %v104_v34 = vmax.f32 %v88_v26, 0.0  ;;  %v101_v36 = vmax.f32 %v85_v28, 0.0  ;;  %v105_v37 = vmax.f32 %v89_v29, 0.0 }
   0xa   :  { %v109_v40 = vsel %vm108_vm0, %v92_v30, 0.0  ;;  %v110_v41 = vsel %vm108_vm0, %v96_v31, 0.0  ;;  %v116_v43 = vsel %vm108_vm0, %v93_v33, 0.0  ;;  %v117_v48 = vsel %vm108_vm0, %v97_v35, 0.0 }
   0xb   :  { %v112_v42 = vsel %vm108_vm0, %v100_v32, 0.0  ;;  %v111_v46 = vadd.f32 %v110_v41, %v109_v40  ;;  %v114_v47 = vsel %vm108_vm0, %v104_v34, 0.0  ;;  %v119_v49 = vsel %vm108_vm0, %v101_v36, 0.0 }
   0xc   :  { %v118_v50 = vadd.f32 %v117_v48, %v116_v43  ;;  %v121_v51 = vsel %vm108_vm0, %v105_v37, 0.0  ;;  %v183_v52 = vunpack.c.l.bf16 %v209_v38  ;;  %v191_v53 = vunpack.c.l.bf16 %v211_v39 }
   0xd   :  { %v113_v54 = vadd.f32 %v112_v42, %v111_v46  ;;  %v199_v55 = vunpack.c.l.bf16 %v213_v44  ;;  %v207_v56 = vunpack.c.l.bf16 %v215_v45  ;;  %v184_v57 = vunpack.c.h.bf16 %v209_v38 }
   0xe   :  { %v120_v58 = vadd.f32 %v119_v49, %v118_v50  ;;  %v55_v59 = vmul.f32 %v183_v52, %v251_v7  ;;  %v59_v60 = vmul.f32 %v191_v53, %v251_v7  ;;  %v192_v61 = vunpack.c.h.bf16 %v211_v39 }
   0xf   :  { %v115_v62 = vadd.f32 %v114_v47, %v113_v54  ;;  %v63_v63 = vmul.f32 %v199_v55, %v251_v7  ;;  %v67_v0 = vmul.f32 %v207_v56, %v251_v7  ;;  %v200_v1 = vunpack.c.h.bf16 %v213_v44 }
  0x10   :  { %v122_v2 = vadd.f32 %v121_v51, %v120_v58  ;;  %v78_v3 = vadd.f32 %v256_v10, %v55_v59  ;;  %v82_v4 = vadd.f32 %v256_v10, %v59_v60  ;;  %v208_v5 = vunpack.c.h.bf16 %v215_v45 }
  0x11   :  { %v138_v6 = vmul.f32 0.25, %v115_v62  ;;  %v86_v8 = vadd.f32 %v256_v10, %v63_v63  ;;  %v90_v9 = vadd.f32 %v256_v10, %v67_v0  ;;  %v56_v11 = vmul.f32 %v184_v57, %v251_v7 }
  0x12   :  { %v139_v12 = vmul.f32 0.25, %v122_v2  ;;  %v94_v13 = vmax.f32 %v78_v3, 0.0  ;;  %v98_v14 = vmax.f32 %v82_v4, 0.0  ;;  %v60_v15 = vmul.f32 %v192_v61, %v251_v7 }
  0x13   :  { %v173_v16 = vpack.c.bf16 %v138_v6, %v138_v6  ;;  %v102_v17 = vmax.f32 %v86_v8, 0.0  ;;  %v106_v18 = vmax.f32 %v90_v9, 0.0  ;;  %v64_v19 = vmul.f32 %v200_v1, %v251_v7 }
  0x14   :  { %v174_v20 = vpack.c.bf16 %v139_v12, %v139_v12  ;;  %v123_v21 = vsel %vm108_vm0, %v94_v13, 0.0  ;;  %v124_v22 = vsel %vm108_vm0, %v98_v14, 0.0  ;;  %v68_v23 = vmul.f32 %v208_v5, %v251_v7 }
  0x15   :  { %159 = vst.msk [vmem:[%s337_s3] sm:$0xf] %vm158_vm1, %v173_v16  ;;  %v125_v24 = vadd.f32 %v124_v22, %v123_v21  ;;  %v126_v25 = vsel %vm108_vm0, %v102_v17, 0.0  ;;  %v79_v26 = vadd.f32 %v256_v10, %v56_v11  ;;  %v128_v27 = vsel %vm108_vm0, %v106_v18, 0.0 }
  0x16   :  { %160 = vst.msk [vmem:[%s337_s3 + $0x4] sm:$0xf] %vm158_vm1, %v174_v20  ;;  %v83_v28 = vadd.f32 %v256_v10, %v60_v15  ;;  %v87_v7 = vadd.f32 %v256_v10, %v64_v19  ;;  %v91_v29 = vadd.f32 %v256_v10, %v68_v23 }
  0x17   :  { %v127_v30 = vadd.f32 %v126_v25, %v125_v24  ;;  %v95_v31 = vmax.f32 %v79_v26, 0.0 }
  0x18   :  { %v99_v32 = vmax.f32 %v83_v28, 0.0  ;;  %v103_v33 = vmax.f32 %v87_v7, 0.0  ;;  %v107_v34 = vmax.f32 %v91_v29, 0.0 }
  0x19   :  { %v129_v35 = vadd.f32 %v128_v27, %v127_v30  ;;  %v130_v36 = vsel %vm108_vm0, %v95_v31, 0.0 }
  0x1a   :  { %v131_v37 = vsel %vm108_vm0, %v99_v32, 0.0  ;;  %v133_v38 = vsel %vm108_vm0, %v103_v33, 0.0  ;;  %v135_v41 = vsel %vm108_vm0, %v107_v34, 0.0 }
  0x1b   :  { %v140_v39 = vmul.f32 0.25, %v129_v35  ;;  %v132_v40 = vadd.f32 %v131_v37, %v130_v36 }
  0x1d   :  { %v175_v42 = vpack.c.bf16 %v140_v39, %v140_v39  ;;  %v134_v43 = vadd.f32 %v133_v38, %v132_v40 }
  0x1f   :  { %161 = vst.msk [vmem:[%s337_s3 + $0x8] sm:$0xf] %vm158_vm1, %v175_v42  ;;  %v136_v10 = vadd.f32 %v135_v41, %v134_v43 }
  0x21   :  { %v141_v44 = vmul.f32 0.25, %v136_v10 }
  0x23   :  { %v176_v45 = vpack.c.bf16 %v141_v44, %v141_v44 }
  0x25   :  { %162 = vst.msk [vmem:[%s337_s3 + $0xc] sm:$0xf] %vm158_vm1, %v176_v45 }

// kernel: _lambda_.39
= control target key start
LH: loop header
LB: loop body
LE: loop exit
PB: predicated region body
PF: predicated region fallthrough
CT: control target
= control target key end

     0   :  { %vm14_vm0 = vcmask 253952   ;;  %v195_v0 = vmov 0.0   ;;  %vm50_vm1 = vcmask 261120   ;;  %s289_s0 = inlined_call_operand.vmem [shape: bf16[128,32], index: 0, kind: input, shape index: {}]   ;;  %s290_s1 = inlined_call_operand.vmem [shape: f32[1,32], index: 1, kind: output, shape index: {0}]   ;;  %s291_s2 = inlined_call_operand.vmem [shape: f32[1,32], index: 2, kind: output, shape index: {1}]  }
   0x1   :  { %15 = vst.msk [vmem:[%s290_s1] sm:$0x1] %vm14_vm0, %v195_v0  ;;  %v156_v1 = vld [vmem:[%s289_s0] sm:$0xff]   ;;  %v187_v2 = vld [vmem:[%s289_s0 + $0x8] sm:$0xff]   ;;  %16 = vst.msk [vmem:[%s291_s2] sm:$0x1] %vm14_vm0, %v195_v0 }
   0x2   :  { %v157_v3 = vunpack.c.l.bf16 %v156_v1  ;;  %v158_v4 = vunpack.c.h.bf16 %v156_v1  ;;  %v161_v5 = vunpack.c.l.bf16 %v187_v2  ;;  %v188_v6 = vld [vmem:[%s289_s0 + $0x10] sm:$0xff]   ;;  %v162_v7 = vunpack.c.h.bf16 %v187_v2  ;;  %v189_v14 = vld [vmem:[%s289_s0 + $0x18] sm:$0xff]   ;;  %v190_v24 = vld [vmem:[%s289_s0 + $0x20] sm:$0xff]  }
   0x3   :  { %v165_v12 = vunpack.c.l.bf16 %v188_v6  ;;  %v166_v16 = vunpack.c.h.bf16 %v188_v6  ;;  %v169_v22 = vunpack.c.l.bf16 %v189_v14  ;;  %v170_v27 = vunpack.c.h.bf16 %v189_v14  ;;  %v191_v37 = vld [vmem:[%s289_s0 + $0x28] sm:$0xff]   ;;  %v192_v50 = vld [vmem:[%s289_s0 + $0x30] sm:$0xff]   ;;  %v193_v63 = vld [vmem:[%s289_s0 + $0x38] sm:$0xff]  }
   0x4   :  { %v51_v8 = vsel %vm50_vm1, %v157_v3, 0.0  ;;  %v52_v9 = vsel %vm50_vm1, %v158_v4, 0.0  ;;  %v54_v10 = vsel %vm50_vm1, %v161_v5, 0.0  ;;  %v56_v13 = vsel %vm50_vm1, %v162_v7, 0.0 }
   0x5   :  { %v53_v11 = vadd.f32 %v52_v9, %v51_v8  ;;  %v58_v17 = vsel %vm50_vm1, %v165_v12, 0.0  ;;  %v92_v19 = vmul.f32 %v157_v3, %v157_v3  ;;  %v93_v20 = vmul.f32 %v158_v4, %v158_v4 }
   0x6   :  { %v94_v21 = vmul.f32 %v161_v5, %v161_v5  ;;  %v60_v23 = vsel %vm50_vm1, %v166_v16, 0.0  ;;  %v95_v26 = vmul.f32 %v162_v7, %v162_v7  ;;  %v62_v28 = vsel %vm50_vm1, %v169_v22, 0.0 }
   0x7   :  { %v55_v15 = vadd.f32 %v54_v10, %v53_v11  ;;  %v96_v29 = vmul.f32 %v165_v12, %v165_v12  ;;  %v108_v31 = vsel %vm50_vm1, %v92_v19, 0.0  ;;  %v109_v32 = vsel %vm50_vm1, %v93_v20, 0.0 }
   0x8   :  { %v111_v33 = vsel %vm50_vm1, %v94_v21, 0.0  ;;  %v173_v34 = vunpack.c.l.bf16 %v190_v24  ;;  %v64_v35 = vsel %vm50_vm1, %v170_v27, 0.0  ;;  %v110_v36 = vadd.f32 %v109_v32, %v108_v31 }
   0x9   :  { %v57_v18 = vadd.f32 %v56_v13, %v55_v15  ;;  %v97_v39 = vmul.f32 %v166_v16, %v166_v16  ;;  %v113_v40 = vsel %vm50_vm1, %v95_v26, 0.0  ;;  %v174_v41 = vunpack.c.h.bf16 %v190_v24 }
   0xa   :  { %v66_v42 = vsel %vm50_vm1, %v173_v34, 0.0  ;;  %v112_v43 = vadd.f32 %v111_v33, %v110_v36  ;;  %v98_v45 = vmul.f32 %v169_v22, %v169_v22  ;;  %v115_v46 = vsel %vm50_vm1, %v96_v29, 0.0 }
   0xb   :  { %v59_v25 = vadd.f32 %v58_v17, %v57_v18  ;;  %v177_v47 = vunpack.c.l.bf16 %v191_v37  ;;  %v68_v48 = vsel %vm50_vm1, %v174_v41, 0.0  ;;  %v99_v52 = vmul.f32 %v170_v27, %v170_v27 }
   0xc   :  { %v114_v49 = vadd.f32 %v113_v40, %v112_v43  ;;  %v117_v53 = vsel %vm50_vm1, %v97_v39, 0.0  ;;  %v178_v54 = vunpack.c.h.bf16 %v191_v37  ;;  %v100_v58 = vmul.f32 %v173_v34, %v173_v34 }
   0xd   :  { %v61_v30 = vadd.f32 %v60_v23, %v59_v25  ;;  %v70_v55 = vsel %vm50_vm1, %v177_v47, 0.0  ;;  %v119_v59 = vsel %vm50_vm1, %v98_v45, 0.0  ;;  %v181_v60 = vunpack.c.l.bf16 %v192_v50 }
   0xe   :  { %v116_v56 = vadd.f32 %v115_v46, %v114_v49  ;;  %v72_v61 = vsel %vm50_vm1, %v178_v54, 0.0  ;;  %v101_v1 = vmul.f32 %v174_v41, %v174_v41  ;;  %v121_v2 = vsel %vm50_vm1, %v99_v52, 0.0  ;;  %v91_v52 = vld [vmem:[%s291_s2] sm:$0x1] }
   0xf   :  { %v63_v38 = vadd.f32 %v62_v28, %v61_v30  ;;  %v182_v3 = vunpack.c.h.bf16 %v192_v50  ;;  %v74_v4 = vsel %vm50_vm1, %v181_v60, 0.0  ;;  %v102_v7 = vmul.f32 %v177_v47, %v177_v47 }
  0x10   :  { %v118_v62 = vadd.f32 %v117_v53, %v116_v56  ;;  %v123_v8 = vsel %vm50_vm1, %v100_v58, 0.0  ;;  %v185_v9 = vunpack.c.l.bf16 %v193_v63  ;;  %v103_v13 = vmul.f32 %v178_v54, %v178_v54 }
  0x11   :  { %v65_v44 = vadd.f32 %v64_v35, %v63_v38  ;;  %v76_v10 = vsel %vm50_vm1, %v182_v3, 0.0  ;;  %v125_v14 = vsel %vm50_vm1, %v101_v1, 0.0  ;;  %v186_v15 = vunpack.c.h.bf16 %v193_v63 }
  0x12   :  { %v120_v5 = vadd.f32 %v119_v59, %v118_v62  ;;  %v78_v16 = vsel %vm50_vm1, %v185_v9, 0.0  ;;  %v104_v19 = vmul.f32 %v181_v60, %v181_v60  ;;  %v127_v20 = vsel %vm50_vm1, %v102_v7, 0.0 }
  0x13   :  { %v67_v51 = vadd.f32 %v66_v42, %v65_v44  ;;  %v80_v21 = vsel %vm50_vm1, %v186_v15, 0.0  ;;  %v105_v24 = vmul.f32 %v182_v3, %v182_v3  ;;  %v129_v25 = vsel %vm50_vm1, %v103_v13, 0.0  ;;  %v49_v44 = vld [vmem:[%s290_s1] sm:$0x1] }
  0x14   :  { %v122_v11 = vadd.f32 %v121_v2, %v120_v5  ;;  %v106_v28 = vmul.f32 %v185_v9, %v185_v9  ;;  %v131_v29 = vsel %vm50_vm1, %v104_v19, 0.0  ;;  %v107_v32 = vmul.f32 %v186_v15, %v186_v15 }
  0x15   :  { %v69_v57 = vadd.f32 %v68_v48, %v67_v51  ;;  %v133_v33 = vsel %vm50_vm1, %v105_v24, 0.0 }
  0x16   :  { %v124_v17 = vadd.f32 %v123_v8, %v122_v11  ;;  %v135_v36 = vsel %vm50_vm1, %v106_v28, 0.0  ;;  %v137_v39 = vsel %vm50_vm1, %v107_v32, 0.0 }
  0x17   :  { %v71_v0 = vadd.f32 %v70_v55, %v69_v57 }
  0x18   :  { %v126_v22 = vadd.f32 %v125_v14, %v124_v17 }
  0x19   :  { %v73_v6 = vadd.f32 %v72_v61, %v71_v0 }
  0x1a   :  { %v128_v26 = vadd.f32 %v127_v20, %v126_v22 }
  0x1b   :  { %v75_v12 = vadd.f32 %v74_v4, %v73_v6 }
  0x1c   :  { %v130_v30 = vadd.f32 %v129_v25, %v128_v26 }
  0x1d   :  { %v77_v18 = vadd.f32 %v76_v10, %v75_v12 }
  0x1e   :  { %v132_v34 = vadd.f32 %v131_v29, %v130_v30 }
  0x1f   :  { %v79_v23 = vadd.f32 %v78_v16, %v77_v18 }
  0x20   :  { %v134_v37 = vadd.f32 %v133_v33, %v132_v34 }
  0x21   :  { %v81_v27 = vadd.f32 %v80_v21, %v79_v23 }
  0x22   :  { %v136_v40 = vadd.f32 %v135_v36, %v134_v37 }
  0x23   :  { %v82_v31 = vrot.slane %v81_v27, 4 }
  0x24   :  { %v138_v42 = vadd.f32 %v137_v39, %v136_v40 }
  0x25   :  { %v83_v35 = vadd.f32 %v82_v31, %v81_v27 }
  0x26   :  { %v139_v45 = vrot.slane %v138_v42, 4 }
  0x27   :  { %v84_v38 = vrot.slane %v83_v35, 2 }
  0x28   :  { %v140_v47 = vadd.f32 %v139_v45, %v138_v42 }
  0x29   :  { %v85_v41 = vadd.f32 %v84_v38, %v83_v35 }
  0x2a   :  { %v141_v49 = vrot.slane %v140_v47, 2 }
  0x2b   :  { %v86_v43 = vrot.slane %v85_v41, 1 }
  0x2c   :  { %v142_v50 = vadd.f32 %v141_v49, %v140_v47 }
  0x2d   :  { %v87_v46 = vadd.f32 %v86_v43, %v85_v41 }
  0x2e   :  { %v143_v51 = vrot.slane %v142_v50, 1 }
  0x2f   :  { %v88_v48 = vadd.f32 %v87_v46, %v49_v44 }
  0x30   :  { %v144_v53 = vadd.f32 %v143_v51, %v142_v50 }
  0x31   :  { %90 = vst.msk [vmem:[%s290_s1] sm:$0x1] %vm14_vm0, %v88_v48 }
  0x32   :  { %v145_v54 = vadd.f32 %v144_v53, %v91_v52 }
  0x34   :  { %146 = vst.msk [vmem:[%s291_s2] sm:$0x1] %vm14_vm0, %v145_v54 }

// kernel: _lambda_.41
= control target key start
LH: loop header
LB: loop body
LE: loop exit
PB: predicated region body
PF: predicated region fallthrough
CT: control target
= control target key end

     0   :  { %vm42_vm0 = vcmask 261120   ;;  %vm114_vm1 = vcmask 125952   ;;  %s192_s1 = inlined_call_operand.vmem [shape: bf16[32,16], index: 1, kind: input, shape index: {}]   ;;  %s193_s0 = inlined_call_operand.vmem [shape: bf16[32,32], index: 0, kind: input, shape index: {}]   ;;  %s194_s2 = inlined_call_operand.vmem [shape: bf16[32,16], index: 2, kind: output, shape index: {}]  }
   0x1   :  { %v149_v0 = vld [vmem:[%s192_s1 + $0x8] sm:$0xff]   ;;  %v150_v1 = vld [vmem:[%s192_s1] sm:$0xff]  }
   0x2   :  { %141 = vmatprep.subr.bf16.mxu0 %v149_v0  ;;  %v151_v2 = vld [vmem:[%s193_s0] sm:$0xff]   ;;  %v152_v3 = vld [vmem:[%s193_s0 + $0x8] sm:$0xff]  }
   0x3   :  { %142 = vmatpush3.bf16.msra.mxu0 %v149_v0  ;;  %145 = vmatprep.mubr.msk.bf16.mxu0 %vm42_vm0, %v151_v2 }
   0x4   :  { %143 = vmatprep.subr.bf16.mxu0 %v150_v1 }
   0x7   :  { %144 = vmatpush3.bf16.msra.mxu0 %v150_v1 }
   0xa   :  { %146 = vmatmul.mubr.msk.bf16.vlgmr.msra.gmra.mxu0 %vm42_vm0, %v152_v3 }
  0xca   :  { %v147_v4 = vpop.f32.mrf.mxu0 }
  0xcb   :  { %v135_v5 = vpack.c.bf16 %v147_v4, %v147_v4 }
  0xcc   :  { %v83_v6 = vpop.f32.mrf.mxu0 }
  0xcd   :  { %117 = vst.msk [vmem:[%s194_s2 + $0x8] sm:$0xf] %vm114_vm1, %v135_v5  ;;  %v133_v7 = vpack.c.bf16 %v83_v6, %v83_v6 }
  0xce   :  { %v148_v8 = vpop.f32.mrf.mxu0 }
  0xcf   :  { %115 = vst.msk [vmem:[%s194_s2] sm:$0xf] %vm114_vm1, %v133_v7  ;;  %v136_v9 = vpack.c.bf16 %v148_v8, %v148_v8 }
  0xd0   :  { %v86_v10 = vpop.f32.mrf.mxu0 }
  0xd1   :  { %118 = vst.msk [vmem:[%s194_s2 + $0xc] sm:$0xf] %vm114_vm1, %v136_v9  ;;  %v134_v11 = vpack.c.bf16 %v86_v10, %v86_v10 }
  0xd3   :  { %116 = vst.msk [vmem:[%s194_s2 + $0x4] sm:$0xf] %vm114_vm1, %v134_v11 }

// kernel: _lambda_.42
= control target key start
LH: loop header
LB: loop body
LE: loop exit
PB: predicated region body
PF: predicated region fallthrough
CT: control target
= control target key end

     0   :  { %vm14_vm0 = vcmask 122880   ;;  %v81_v0 = vmov 0.0   ;;  %vm26_vm1 = vcmask 130048   ;;  %s133_s0 = inlined_call_operand.vmem [shape: bf16[32,16], index: 0, kind: input, shape index: {}]   ;;  %s134_s1 = inlined_call_operand.vmem [shape: f32[1,16], index: 1, kind: output, shape index: {0}]   ;;  %s135_s2 = inlined_call_operand.vmem [shape: f32[1,16], index: 2, kind: output, shape index: {1}]  }
   0x1   :  { %15 = vst.msk [vmem:[%s134_s1] sm:$0x1] %vm14_vm0, %v81_v0  ;;  %v72_v1 = vld [vmem:[%s133_s0] sm:$0xff]   ;;  %v79_v2 = vld [vmem:[%s133_s0 + $0x8] sm:$0xff]   ;;  %16 = vst.msk [vmem:[%s135_s2] sm:$0x1] %vm14_vm0, %v81_v0 }
   0x2   :  { %v73_v3 = vunpack.c.l.bf16 %v72_v1  ;;  %v74_v4 = vunpack.c.h.bf16 %v72_v1  ;;  %v77_v5 = vunpack.c.l.bf16 %v79_v2  ;;  %v78_v6 = vunpack.c.h.bf16 %v79_v2 }
   0x4   :  { %v27_v7 = vsel %vm26_vm1, %v73_v3, 0.0  ;;  %v28_v8 = vsel %vm26_vm1, %v74_v4, 0.0  ;;  %v30_v9 = vsel %vm26_vm1, %v77_v5, 0.0  ;;  %v44_v11 = vmul.f32 %v73_v3, %v73_v3 }
   0x5   :  { %v29_v10 = vadd.f32 %v28_v8, %v27_v7  ;;  %v45_v12 = vmul.f32 %v74_v4, %v74_v4  ;;  %v46_v13 = vmul.f32 %v77_v5, %v77_v5  ;;  %v32_v14 = vsel %vm26_vm1, %v78_v6, 0.0 }
   0x6   :  { %v47_v15 = vmul.f32 %v78_v6, %v78_v6  ;;  %v48_v17 = vsel %vm26_vm1, %v44_v11, 0.0 }
   0x7   :  { %v31_v16 = vadd.f32 %v30_v9, %v29_v10  ;;  %v49_v18 = vsel %vm26_vm1, %v45_v12, 0.0  ;;  %v51_v19 = vsel %vm26_vm1, %v46_v13, 0.0 }
   0x8   :  { %v50_v20 = vadd.f32 %v49_v18, %v48_v17  ;;  %v53_v22 = vsel %vm26_vm1, %v47_v15, 0.0  ;;  %v25_v33 = vld [vmem:[%s134_s1] sm:$0x1] }
   0x9   :  { %v33_v21 = vadd.f32 %v32_v14, %v31_v16  ;;  %v43_v38 = vld [vmem:[%s135_s2] sm:$0x1] }
   0xa   :  { %v52_v23 = vadd.f32 %v51_v19, %v50_v20 }
   0xb   :  { %v34_v24 = vrot.slane %v33_v21, 4 }
   0xc   :  { %v54_v25 = vadd.f32 %v53_v22, %v52_v23 }
   0xd   :  { %v35_v26 = vadd.f32 %v34_v24, %v33_v21 }
   0xe   :  { %v55_v27 = vrot.slane %v54_v25, 4 }
   0xf   :  { %v36_v28 = vrot.slane %v35_v26, 2 }
  0x10   :  { %v56_v29 = vadd.f32 %v55_v27, %v54_v25 }
  0x11   :  { %v37_v30 = vadd.f32 %v36_v28, %v35_v26 }
  0x12   :  { %v57_v31 = vrot.slane %v56_v29, 2 }
  0x13   :  { %v38_v32 = vrot.slane %v37_v30, 1 }
  0x14   :  { %v58_v34 = vadd.f32 %v57_v31, %v56_v29 }
  0x15   :  { %v39_v35 = vadd.f32 %v38_v32, %v37_v30 }
  0x16   :  { %v59_v36 = vrot.slane %v58_v34, 1 }
  0x17   :  { %v40_v37 = vadd.f32 %v39_v35, %v25_v33 }
  0x18   :  { %v60_v39 = vadd.f32 %v59_v36, %v58_v34 }
  0x19   :  { %42 = vst.msk [vmem:[%s134_s1] sm:$0x1] %vm14_vm0, %v40_v37 }
  0x1a   :  { %v61_v40 = vadd.f32 %v60_v39, %v43_v38 }
  0x1c   :  { %62 = vst.msk [vmem:[%s135_s2] sm:$0x1] %vm14_vm0, %v61_v40 }

// kernel: _lambda_.44
= control target key start
LH: loop header
LB: loop body
LE: loop exit
PB: predicated region body
PF: predicated region fallthrough
CT: control target
= control target key end

     0   :  { %vm64_vm0 = vcmask 257024   ;;  %s136_s0 = inlined_call_operand.vmem [shape: bf16[32,32], index: 0, kind: input, shape index: {}]   ;;  %s137_s1 = inlined_call_operand.vmem [shape: f32[1,32], index: 1, kind: input, shape index: {}]   ;;  %s138_s2 = inlined_call_operand.vmem [shape: f32[1,32], index: 2, kind: input, shape index: {}]   ;;  %s139_s3 = inlined_call_operand.vmem [shape: bf16[32,32], index: 3, kind: output, shape index: {}]  }
   0x1   :  { %v84_v0 = vld [vmem:[%s136_s0] sm:$0xff]   ;;  %v91_v4 = vld [vmem:[%s136_s0 + $0x8] sm:$0xff]  }
   0x2   :  { %v73_v1 = vld [vmem:[%s137_s1] ss:$0 sm:$0xff]  ;;  %v85_v2 = vunpack.c.l.bf16 %v84_v0  ;;  %v86_v3 = vunpack.c.h.bf16 %v84_v0  ;;  %v89_v6 = vunpack.c.l.bf16 %v91_v4  ;;  %v90_v7 = vunpack.c.h.bf16 %v91_v4 }
   0x3   :  { %v74_v5 = vld [vmem:[%s138_s2] ss:$0 sm:$0xff] }
   0x4   :  { %v29_v8 = vmul.f32 %v85_v2, %v73_v1  ;;  %v30_v9 = vmul.f32 %v86_v3, %v73_v1  ;;  %v31_v10 = vmul.f32 %v89_v6, %v73_v1  ;;  %v32_v11 = vmul.f32 %v90_v7, %v73_v1 }
   0x6   :  { %v40_v12 = vadd.f32 %v74_v5, %v29_v8  ;;  %v41_v13 = vadd.f32 %v74_v5, %v30_v9  ;;  %v42_v14 = vadd.f32 %v74_v5, %v31_v10  ;;  %v43_v15 = vadd.f32 %v74_v5, %v32_v11 }
   0x8   :  { %v44_v16 = vmax.f32 %v40_v12, 0.0  ;;  %v45_v17 = vmax.f32 %v41_v13, 0.0  ;;  %v46_v18 = vmax.f32 %v42_v14, 0.0  ;;  %v47_v19 = vmax.f32 %v43_v15, 0.0 }
   0xa   :  { %v79_v20 = vpack.c.bf16 %v44_v16, %v44_v16  ;;  %v80_v21 = vpack.c.bf16 %v45_v17, %v45_v17  ;;  %v81_v22 = vpack.c.bf16 %v46_v18, %v46_v18  ;;  %v82_v23 = vpack.c.bf16 %v47_v19, %v47_v19 }
   0xc   :  { %65 = vst.msk [vmem:[%s139_s3] sm:$0xf] %vm64_vm0, %v79_v20  ;;  %66 = vst.msk [vmem:[%s139_s3 + $0x4] sm:$0xf] %vm64_vm0, %v80_v21 }
   0xd   :  { %67 = vst.msk [vmem:[%s139_s3 + $0x8] sm:$0xf] %vm64_vm0, %v81_v22  ;;  %68 = vst.msk [vmem:[%s139_s3 + $0xc] sm:$0xf] %vm64_vm0, %v82_v23 }

// kernel: _lambda_.43
= control target key start
LH: loop header
LB: loop body
LE: loop exit
PB: predicated region body
PF: predicated region fallthrough
CT: control target
= control target key end

     0   :  { %vm72_vm0 = vcmask 130048   ;;  %vm25_vm1 = vcmask 253952   ;;  %v232_v23 = vmov 0.0   ;;  %vm144_vm2 = vcmask 257024   ;;  %s329_s3 = inlined_call_operand.vmem [shape: bf16[16,32], index: 3, kind: input, shape index: {}]   ;;  %s330_s0 = inlined_call_operand.vmem [shape: bf16[32,16], index: 0, kind: input, shape index: {}]   ;;  %s331_s1 = inlined_call_operand.vmem [shape: f32[1,16], index: 1, kind: input, shape index: {}]   ;;  %s332_s2 = inlined_call_operand.vmem [shape: f32[1,16], index: 2, kind: input, shape index: {}]   ;;  %s333_s5 = inlined_call_operand.vmem [shape: f32[1,32], index: 5, kind: output, shape index: {1}]   ;;  %s334_s6 = inlined_call_operand.vmem [shape: f32[1,32], index: 6, kind: output, shape index: {2}]   ;;  %s335_s4 = inlined_call_operand.vmem [shape: bf16[32,32], index: 4, kind: output, shape index: {0}]  }
   0x1   :  { %v231_v0 = vld [vmem:[%s329_s3] sm:$0xff]   ;;  %v220_v2 = vld [vmem:[%s330_s0 + $0x8] sm:$0xff]   ;;  %26 = vst.msk [vmem:[%s333_s5] sm:$0x1] %vm25_vm1, %v232_v23  ;;  %27 = vst.msk [vmem:[%s334_s6] sm:$0x1] %vm25_vm1, %v232_v23 }
   0x2   :  { %v213_v1 = vld [vmem:[%s330_s0] sm:$0xff]   ;;  %224 = vmatprep.subr.bf16.mxu0 %v231_v0  ;;  %v218_v6 = vunpack.c.l.bf16 %v220_v2  ;;  %v219_v7 = vunpack.c.h.bf16 %v220_v2  ;;  %vm150_vm3 = vcmask 261120  }
   0x3   :  { %v199_v3 = vld [vmem:[%s331_s1] ss:$0 sm:$0xff]  ;;  %v214_v4 = vunpack.c.l.bf16 %v213_v1  ;;  %v215_v5 = vunpack.c.h.bf16 %v213_v1  ;;  %225 = vmatpush3.bf16.msra.mxu0 %v231_v0 }
   0x4   :  { %v200_v8 = vld [vmem:[%s332_s2] ss:$0 sm:$0xff]  ;;  %v45_v11 = vmul.f32 %v218_v6, %v199_v3  ;;  %v46_v12 = vmul.f32 %v219_v7, %v199_v3 }
   0x5   :  { %v43_v9 = vmul.f32 %v214_v4, %v199_v3  ;;  %v44_v10 = vmul.f32 %v215_v5, %v199_v3 }
   0x6   :  { %v56_v15 = vadd.f32 %v200_v8, %v45_v11  ;;  %v57_v16 = vadd.f32 %v200_v8, %v46_v12 }
   0x7   :  { %v54_v13 = vadd.f32 %v200_v8, %v43_v9  ;;  %v55_v14 = vadd.f32 %v200_v8, %v44_v10 }
   0x8   :  { %v60_v19 = vmax.f32 %v56_v15, 0.0  ;;  %v61_v20 = vmax.f32 %v57_v16, 0.0  ;;  %v149_v59 = vld [vmem:[%s333_s5] sm:$0x1] }
   0x9   :  { %v58_v17 = vmax.f32 %v54_v13, 0.0  ;;  %v59_v18 = vmax.f32 %v55_v14, 0.0  ;;  %v167_v62 = vld [vmem:[%s334_s6] sm:$0x1] }
   0xa   :  { %v63_v22 = vpack.c.bf16 %v61_v20, %v60_v19 }
   0xb   :  { %v62_v21 = vpack.c.bf16 %v59_v18, %v58_v17 }
   0xd   :  { %226 = vmatprep.mubr.msk.bf16.mxu0 %vm72_vm0, %v62_v21 }
   0xe   :  { %227 = vmatmul.mubr.msk.bf16.vlgmr.msra.gmra.mxu0 %vm72_vm0, %v63_v22 }
  0xce   :  { %v228_v24 = vpop.f32.mrf.mxu0 }
  0xcf   :  { %v210_v25 = vpack.c.bf16 %v228_v24, %v228_v24  ;;  %v170_v31 = vmul.f32 %v228_v24, %v228_v24  ;;  %v154_v38 = vsel %vm150_vm3, %v228_v24, 0.0 }
  0xd0   :  { %v113_v26 = vpop.f32.mrf.mxu0 }
  0xd1   :  { %147 = vst.msk [vmem:[%s335_s4 + $0x8] sm:$0xf] %vm144_vm2, %v210_v25  ;;  %v208_v27 = vpack.c.bf16 %v113_v26, %v113_v26  ;;  %v168_v29 = vmul.f32 %v113_v26, %v113_v26  ;;  %v151_v33 = vsel %vm150_vm3, %v113_v26, 0.0  ;;  %v175_v44 = vsel %vm150_vm3, %v170_v31, 0.0 }
  0xd2   :  { %v229_v28 = vpop.f32.mrf.mxu0 }
  0xd3   :  { %145 = vst.msk [vmem:[%s335_s4] sm:$0xf] %vm144_vm2, %v208_v27  ;;  %v211_v30 = vpack.c.bf16 %v229_v28, %v229_v28  ;;  %v172_v39 = vsel %vm150_vm3, %v168_v29, 0.0  ;;  %v171_v40 = vmul.f32 %v229_v28, %v229_v28  ;;  %v156_v45 = vsel %vm150_vm3, %v229_v28, 0.0 }
  0xd4   :  { %v116_v32 = vpop.f32.mrf.mxu0 }
  0xd5   :  { %148 = vst.msk [vmem:[%s335_s4 + $0xc] sm:$0xf] %vm144_vm2, %v211_v30  ;;  %v209_v34 = vpack.c.bf16 %v116_v32, %v116_v32  ;;  %v152_v35 = vsel %vm150_vm3, %v116_v32, 0.0  ;;  %v169_v36 = vmul.f32 %v116_v32, %v116_v32  ;;  %v177_v48 = vsel %vm150_vm3, %v171_v40, 0.0 }
  0xd6   :  { %v153_v37 = vadd.f32 %v152_v35, %v151_v33 }
  0xd7   :  { %146 = vst.msk [vmem:[%s335_s4 + $0x4] sm:$0xf] %vm144_vm2, %v209_v34  ;;  %v173_v41 = vsel %vm150_vm3, %v169_v36, 0.0 }
  0xd8   :  { %v155_v42 = vadd.f32 %v154_v38, %v153_v37  ;;  %v174_v43 = vadd.f32 %v173_v41, %v172_v39 }
  0xda   :  { %v157_v46 = vadd.f32 %v156_v45, %v155_v42  ;;  %v176_v47 = vadd.f32 %v175_v44, %v174_v43 }
  0xdc   :  { %v158_v49 = vrot.slane %v157_v46, 4  ;;  %v178_v50 = vadd.f32 %v177_v48, %v176_v47 }
  0xde   :  { %v159_v51 = vadd.f32 %v158_v49, %v157_v46  ;;  %v179_v52 = vrot.slane %v178_v50, 4 }
  0xe0   :  { %v160_v53 = vrot.slane %v159_v51, 2  ;;  %v180_v54 = vadd.f32 %v179_v52, %v178_v50 }
  0xe2   :  { %v161_v55 = vadd.f32 %v160_v53, %v159_v51  ;;  %v181_v56 = vrot.slane %v180_v54, 2 }
  0xe4   :  { %v162_v57 = vrot.slane %v161_v55, 1  ;;  %v182_v58 = vadd.f32 %v181_v56, %v180_v54 }
  0xe6   :  { %v163_v60 = vadd.f32 %v162_v57, %v161_v55  ;;  %v183_v61 = vrot.slane %v182_v58, 1 }
  0xe8   :  { %v164_v63 = vadd.f32 %v163_v60, %v149_v59  ;;  %v184_v0 = vadd.f32 %v183_v61, %v182_v58 }
  0xea   :  { %166 = vst.msk [vmem:[%s333_s5] sm:$0x1] %vm25_vm1, %v164_v63  ;;  %v185_v1 = vadd.f32 %v184_v0, %v167_v62 }
  0xec   :  { %186 = vst.msk [vmem:[%s334_s6] sm:$0x1] %vm25_vm1, %v185_v1 }

// kernel: _lambda_.46
= control target key start
LH: loop header
LB: loop body
LE: loop exit
PB: predicated region body
PF: predicated region fallthrough
CT: control target
= control target key end

     0   :  { %vm14_vm0 = vcmask 188416   ;;  %v81_v0 = vmov 0.0   ;;  %vm26_vm1 = vcmask 195584   ;;  %s133_s0 = inlined_call_operand.vmem [shape: bf16[32,24], index: 0, kind: input, shape index: {}]   ;;  %s134_s1 = inlined_call_operand.vmem [shape: f32[1,24], index: 1, kind: output, shape index: {0}]   ;;  %s135_s2 = inlined_call_operand.vmem [shape: f32[1,24], index: 2, kind: output, shape index: {1}]  }
   0x1   :  { %15 = vst.msk [vmem:[%s134_s1] sm:$0x1] %vm14_vm0, %v81_v0  ;;  %v72_v1 = vld [vmem:[%s133_s0] sm:$0xff]   ;;  %v79_v2 = vld [vmem:[%s133_s0 + $0x8] sm:$0xff]   ;;  %16 = vst.msk [vmem:[%s135_s2] sm:$0x1] %vm14_vm0, %v81_v0 }
   0x2   :  { %v73_v3 = vunpack.c.l.bf16 %v72_v1  ;;  %v74_v4 = vunpack.c.h.bf16 %v72_v1  ;;  %v77_v5 = vunpack.c.l.bf16 %v79_v2  ;;  %v78_v6 = vunpack.c.h.bf16 %v79_v2 }
   0x4   :  { %v27_v7 = vsel %vm26_vm1, %v73_v3, 0.0  ;;  %v28_v8 = vsel %vm26_vm1, %v74_v4, 0.0  ;;  %v30_v9 = vsel %vm26_vm1, %v77_v5, 0.0  ;;  %v44_v11 = vmul.f32 %v73_v3, %v73_v3 }
   0x5   :  { %v29_v10 = vadd.f32 %v28_v8, %v27_v7  ;;  %v45_v12 = vmul.f32 %v74_v4, %v74_v4  ;;  %v46_v13 = vmul.f32 %v77_v5, %v77_v5  ;;  %v32_v14 = vsel %vm26_vm1, %v78_v6, 0.0 }
   0x6   :  { %v47_v15 = vmul.f32 %v78_v6, %v78_v6  ;;  %v48_v17 = vsel %vm26_vm1, %v44_v11, 0.0 }
   0x7   :  { %v31_v16 = vadd.f32 %v30_v9, %v29_v10  ;;  %v49_v18 = vsel %vm26_vm1, %v45_v12, 0.0  ;;  %v51_v19 = vsel %vm26_vm1, %v46_v13, 0.0 }
   0x8   :  { %v50_v20 = vadd.f32 %v49_v18, %v48_v17  ;;  %v53_v22 = vsel %vm26_vm1, %v47_v15, 0.0  ;;  %v25_v33 = vld [vmem:[%s134_s1] sm:$0x1] }
   0x9   :  { %v33_v21 = vadd.f32 %v32_v14, %v31_v16  ;;  %v43_v38 = vld [vmem:[%s135_s2] sm:$0x1] }
   0xa   :  { %v52_v23 = vadd.f32 %v51_v19, %v50_v20 }
   0xb   :  { %v34_v24 = vrot.slane %v33_v21, 4 }
   0xc   :  { %v54_v25 = vadd.f32 %v53_v22, %v52_v23 }
   0xd   :  { %v35_v26 = vadd.f32 %v34_v24, %v33_v21 }
   0xe   :  { %v55_v27 = vrot.slane %v54_v25, 4 }
   0xf   :  { %v36_v28 = vrot.slane %v35_v26, 2 }
  0x10   :  { %v56_v29 = vadd.f32 %v55_v27, %v54_v25 }
  0x11   :  { %v37_v30 = vadd.f32 %v36_v28, %v35_v26 }
  0x12   :  { %v57_v31 = vrot.slane %v56_v29, 2 }
  0x13   :  { %v38_v32 = vrot.slane %v37_v30, 1 }
  0x14   :  { %v58_v34 = vadd.f32 %v57_v31, %v56_v29 }
  0x15   :  { %v39_v35 = vadd.f32 %v38_v32, %v37_v30 }
  0x16   :  { %v59_v36 = vrot.slane %v58_v34, 1 }
  0x17   :  { %v40_v37 = vadd.f32 %v39_v35, %v25_v33 }
  0x18   :  { %v60_v39 = vadd.f32 %v59_v36, %v58_v34 }
  0x19   :  { %42 = vst.msk [vmem:[%s134_s1] sm:$0x1] %vm14_vm0, %v40_v37 }
  0x1a   :  { %v61_v40 = vadd.f32 %v60_v39, %v43_v38 }
  0x1c   :  { %62 = vst.msk [vmem:[%s135_s2] sm:$0x1] %vm14_vm0, %v61_v40 }

// kernel: _lambda_.45
= control target key start
LH: loop header
LB: loop body
LE: loop exit
PB: predicated region body
PF: predicated region fallthrough
CT: control target
= control target key end

     0   :  { %s1684_s9 = smov 0   ;;  %s1900_s0 = inlined_call_operand.vmem [shape: bf16[2,6,6,32], index: 0, kind: input, shape index: {}]   ;;  %s1901_s1 = inlined_call_operand.vmem [shape: bf16[288,8], index: 1, kind: input, shape index: {}]   ;;  %s1902_s2 = inlined_call_operand.vmem [shape: bf16[2,4,4,8], index: 2, kind: output, shape index: {}]  }
   0x1 LB: > { %s1419_s10 = sadd.s32 4294967295, %s1664_s9   ;;  %p1423_p0 = scmp.ge.s32.totalorder %s1664_s9, 1  ;;  %s1664_s9 = sphi %s1684_s9, %s12_s9  }
   0x2   : > { %p112_p1 = scmp.lt.s32.totalorder %s1664_s9, 3 }
   0x4   : > { %p113_p2 = pnand %p1423_p0, %p112_p1 }
   0x5   : > { %p134_p3 = scmp.lt.s32.totalorder (!%p113_p2), %s1419_s10, 1 }
   0x6   : > { %116 = sbr.rel (%p113_p2) target bundleno = 275 (0x113), region = 28 }
   0xb   : > { %v1628_v0 = vld [vmem:[%s1901_s1 + $0x18] sm:$0xff]   ;;  %v1666_v1 = vmov 0.0   ;;  %v1629_v2 = vld [vmem:[%s1901_s1 + $0x8] sm:$0xff]   ;;  %v1630_v3 = vld [vmem:[%s1901_s1 + $0x10] sm:$0xff]   ;;  %vm1667_vm0 = vmmov 0   ;;  %v265_v5 = vlaneseq  ;;  %s1908_s10 = smov (!%p134_p3, %s1419_s10), 1 }
   0xc   : > { %1544 = vmatprep.subr.bf16.mxu0 %v1666_v1  ;;  %1552 = vmatprep.subr.bf16.mxu1 %v1666_v1  ;;  %v1631_v4 = vld [vmem:[%s1901_s1] sm:$0xff]   ;;  %vm193_vm1 = vsmask.f32 1280  ;;  %vm194_vm2 = vsmask.f32 3336  ;;  %s1616_s19 = smul.u32 24, %s1908_s10 }
   0xd   : > { %1545 = vmatpush3.bf16.msra.mxu0 %v1628_v0  ;;  %1548 = vmatprep.mubr.msk.bf16.mxu0 %vm1667_vm0, %v1666_v1  ;;  %vm196_vm3 = vsmask.f32 5392  ;;  %v1668_v6 = vmov 1983009808   ;;  %vm198_vm4 = vsmask.f32 7448  ;;  %vm195_vm8 = vmor %vm193_vm1, %vm194_vm2 }
   0xe   : > { %1553 = vmatpush3.bf16.msra.mxu1 %v1629_v2  ;;  %1546 = vmatprep.subr.bf16.mxu0 %v1666_v1  ;;  %v263_v7 = vunpack.c.l.s4 %v1668_v6  ;;  %v266_v8 = vshrl.u32 %v265_v5, 7  ;;  %vm451_vm5 = vcmask 1040384   ;;  %s1719_s22 = scalar_lea.vmem %s1900_s0, %s1616_s19  ;;  %vm452_vm6 = vcmask 1042434   ;;  %vm197_vm9 = vmor %vm195_vm8, %vm196_vm3  ;;  %v1635_v49 = vld [vmem:[%s1901_s1 + $0x38] sm:$0xff]   ;;  %s1516_s25 = sshll.u32 %s1908_s10, 3 }
   0xf   : > { %1554 = vmatprep.subr.bf16.mxu1 %v1666_v1  ;;  %1556 = vmatprep.mubr.msk.bf16.mxu1 %vm1667_vm0, %v1666_v1  ;;  %vm454_vm7 = vcmask 1044484   ;;  %v1427_v10 = vld.sshfl [vmem:[%s1719_s22] sm:$0x13 pattern:$0x76325410]  ;;  %vm289_vm10 = vcmask 261120   ;;  %vm1732_vm11 = vmor %vm197_vm9, %vm198_vm4  ;;  %s143_s28 = scalar_lea.vmem %s1902_s2, %s1516_s25 }
  0x10   : > { %v264_v9 = vunpack.c.0.s8 %v263_v7  ;;  %v1428_v11 = vld.sshfl [vmem:[%s1719_s22 + $0x4] sm:$0x13 pattern:$0x76325410]  ;;  %v168_v12 = vcombine.high %v1427_v10, %v1427_v10  ;;  %v201_v13 = vshrl.u32 %v1427_v10, 16  ;;  %v204_v14 = vshll.u32 %v1427_v10, 16  ;;  %vm453_vm12 = vmor %vm451_vm5, %vm452_vm6 }
  0x11   : > { %1547 = vmatpush3.bf16.msra.mxu0 %v1630_v3  ;;  %v1429_v15 = vld.sshfl [vmem:[%s1719_s22 + $0x8] sm:$0x13 pattern:$0x76325410]  ;;  %v176_v16 = vcombine.high %v1428_v11, %v1428_v11  ;;  %v215_v17 = vshrl.u32 %v1428_v11, 16  ;;  %v218_v18 = vshll.u32 %v1428_v11, 16  ;;  %vm455_vm14 = vmor %vm453_vm12, %vm454_vm7 }
  0x12   : > { %1555 = vmatpush3.bf16.msra.mxu1 %v1631_v4  ;;  %1560 = vmatprep.subr.bf16.mxu0 %v1666_v1  ;;  %v1430_v19 = vld.sshfl [vmem:[%s1719_s22 + $0xc] sm:$0x13 pattern:$0x76325410]  ;;  %v184_v20 = vcombine.high %v1429_v15, %v1429_v15  ;;  %v203_v21 = vrot.slane %v201_v13, 6  ;;  %v206_v22 = vrot.slane %v204_v14, 7  ;;  %v1729_v23 = vsub.s32 %v264_v9, %v266_v8 }
  0x13   : > { %1568 = vmatprep.subr.bf16.mxu1 %v1666_v1  ;;  %v192_v24 = vcombine.high %v1430_v19, %v1430_v19  ;;  %v210_v25 = vshll.u32 %v168_v12, 16  ;;  %v217_v26 = vrot.slane %v215_v17, 6  ;;  %v220_v27 = vrot.slane %v218_v18, 7  ;;  %v1637_v8 = vld [vmem:[%s1901_s1 + $0x30] sm:$0xff]  }
  0x14   : > { %v207_v28 = vor.u32 %v206_v22, %v203_v21  ;;  %v224_v29 = vshll.u32 %v176_v16, 16  ;;  %v229_v30 = vshrl.u32 %v1429_v15, 16  ;;  %v232_v31 = vshll.u32 %v1429_v15, 16  ;;  %v1634_v22 = vld [vmem:[%s1901_s1 + $0x28] sm:$0xff]  }
  0x15   : > { %v212_v33 = vrot.slane %v210_v25, 7  ;;  %v221_v34 = vor.u32 %v220_v27, %v217_v26  ;;  %v238_v35 = vshll.u32 %v184_v20, 16  ;;  %v243_v36 = vshrl.u32 %v1430_v19, 16 }
  0x16   : > { %v208_v37 = vrot.slane %v207_v28, 2  ;;  %v226_v38 = vrot.slane %v224_v29, 7  ;;  %v231_v39 = vrot.slane %v229_v30, 6  ;;  %v234_v40 = vrot.slane %v232_v31, 7  ;;  %v1641_v28 = vld [vmem:[%s1901_s1 + $0x58] sm:$0xff]  }
  0x17   : > { %v1652_v41 = vld.sshfl [vmem:[%s1719_s22] sm:$0xf pattern:$0x76325410]  ;;  %v222_v42 = vrot.slane %v221_v34, 2  ;;  %v245_v43 = vrot.slane %v243_v36, 6 }
  0x18   : > { %v246_v44 = vshll.u32 %v1430_v19, 16  ;;  %v1653_v45 = vld.sshfl [vmem:[%s1719_s22 + $0x8] sm:$0xf pattern:$0x76325410]  ;;  %vm456_vm13 = vcmask 1046534   ;;  %v235_v46 = vor.u32 %v234_v40, %v231_v39  ;;  %v213_v50 = vsel %vm1732_vm11, %v208_v37, %v212_v33 }
  0x19   : > { %v240_v47 = vrot.slane %v238_v35, 7  ;;  %v252_v48 = vshll.u32 %v192_v24, 16  ;;  %v1747_v51 = vsel %vm1732_vm11, %v222_v42, %v226_v38  ;;  %v1437_v55 = vld.sshfl [vmem:[%s1719_s22] sm:$0x12 pattern:$0x76325410]  ;;  %v354_v57 = vcombine.low %v1652_v41, %v1653_v45  ;;  %vm1755_vm15 = vmor %vm455_vm14, %vm456_vm13 }
  0x1a   : > { %v248_v52 = vrot.slane %v246_v44, 7  ;;  %v236_v53 = vrot.slane %v235_v46, 2  ;;  %v1438_v58 = vld.sshfl [vmem:[%s1719_s22 + $0x4] sm:$0x12 pattern:$0x76325410]  ;;  %v426_v59 = vcombine.high %v1437_v55, %v1437_v55  ;;  %v260_v61 = vcombine.low %v213_v50, %v1747_v51 }
  0x1b   : > { %v254_v54 = vrot.slane %v252_v48, 7  ;;  %v1441_v60 = vrot.slane %v1437_v55, 9  ;;  %v1439_v62 = vld.sshfl [vmem:[%s1719_s22 + $0x8] sm:$0x12 pattern:$0x76325410]  ;;  %v434_v63 = vcombine.high %v1438_v58, %v1438_v58  ;;  %1557 = vmatmul.mubr.msk.bf16.vlgmr.msra.gmra.mxu1 %vm289_vm10, %v354_v57 }
  0x1c   : > { %v249_v56 = vor.u32 %v248_v52, %v245_v43  ;;  %v1442_v2 = vrot.slane %v1438_v58, 9  ;;  %v1761_v3 = vsel %vm1732_vm11, %v236_v53, %v240_v47  ;;  %v1440_v5 = vld.sshfl [vmem:[%s1719_s22 + $0xc] sm:$0x12 pattern:$0x76325410]  ;;  %v442_v6 = vcombine.high %v1439_v62, %v1439_v62  ;;  %1569 = vmatpush3.bf16.msra.mxu1 %v1635_v49  ;;  %1572 = vmatprep.mubr.msk.bf16.mxu1 %vm1667_vm0, %v1666_v1  ;;  %v1636_v42 = vld [vmem:[%s1901_s1 + $0x20] sm:$0xff]  }
  0x1d   : > { %v460_v7 = vrot.slane %v426_v59, 7  ;;  %v450_v9 = vcombine.high %v1440_v5, %v1440_v5  ;;  %v464_v10 = vrot.slane %v434_v63, 7  ;;  %v1443_v11 = vrot.slane %v1439_v62, 9  ;;  %1570 = vmatprep.subr.bf16.mxu1 %v1666_v1  ;;  %v1643_v47 = vld [vmem:[%s1901_s1 + $0x50] sm:$0xff]   ;;  %v1640_v55 = vld [vmem:[%s1901_s1 + $0x48] sm:$0xff]  }
  0x1e   : > { %v250_v4 = vrot.slane %v249_v56, 2  ;;  %v1444_v12 = vrot.slane %v1440_v5, 9  ;;  %v468_v15 = vrot.slane %v442_v6, 7  ;;  %v268_v17 = vrot.slane %v260_v61, %v1729_v23  ;;  %v1642_v6 = vld [vmem:[%s1901_s1 + $0x40] sm:$0xff]  }
  0x1f   : > { %v461_v14 = vsel %vm1755_vm15, %v1441_v60, %v460_v7  ;;  %v465_v18 = vsel %vm1755_vm15, %v1442_v2, %v464_v10  ;;  %v472_v19 = vrot.slane %v450_v9, 7  ;;  %v1654_v20 = vld.sshfl [vmem:[%s1719_s22 + $0x4] sm:$0xf pattern:$0x76325410]  ;;  %v741_v52 = vcombine.low %v1747_v51, %v1761_v3  ;;  %v1645_v51 = vld [vmem:[%s1901_s1 + $0x78] sm:$0xff]  }
  0x20   : > { %v1772_v13 = vsel %vm1732_vm11, %v250_v4, %v254_v54  ;;  %v1655_v21 = vld.sshfl [vmem:[%s1719_s22 + $0xc] sm:$0xf pattern:$0x76325410]  ;;  %v469_v24 = vsel %vm1755_vm15, %v1443_v11, %v468_v15  ;;  %v478_v25 = vcombine.low %v461_v14, %v465_v18  ;;  %1571 = vmatpush3.bf16.msra.mxu1 %v1637_v8 }
  0x21   : > { %v261_v16 = vcombine.low %v1761_v3, %v1772_v13  ;;  %v473_v27 = vsel %vm1755_vm15, %v1444_v12, %v472_v19  ;;  %1584 = vmatprep.subr.bf16.mxu1 %v1666_v1  ;;  %v582_v31 = vcombine.low %v1654_v20, %v1655_v21  ;;  %v1462_v33 = vld.sshfl [vmem:[%s1719_s22 + $0x10] sm:$0x13 pattern:$0x76325410]  ;;  %v876_v46 = vcombine.low %v465_v18, %v469_v24  ;;  %v1644_v19 = vld [vmem:[%s1901_s1 + $0x68] sm:$0xff]  }
  0x22   : > { %v479_v29 = vcombine.low %v469_v24, %v473_v27  ;;  %v680_v34 = vcombine.high %v1462_v33, %v1462_v33  ;;  %v724_v35 = vshrl.u32 %v1462_v33, 16  ;;  %v727_v36 = vshll.u32 %v1462_v33, 16  ;;  %v1473_v37 = vld.sshfl [vmem:[%s1719_s22 + $0x10] sm:$0x12 pattern:$0x76325410] }
  0x23   : > { %v1790_v26 = vrot.slane %v261_v16, %v1729_v23  ;;  %v486_v38 = vrot.slane %v478_v25, %v1729_v23  ;;  %1573 = vmatmul.mubr.msk.bf16.vlgmr.msra.gmra.mxu1 %vm289_vm10, %v582_v31  ;;  %v855_v40 = vcombine.high %v1473_v37, %v1473_v37  ;;  %v1477_v41 = vrot.slane %v1473_v37, 9  ;;  %v1495_v59 = vld.sshfl [vmem:[%s1719_s22 + $0x14] sm:$0x13 pattern:$0x76325410]  ;;  %v1646_v25 = vld [vmem:[%s1901_s1 + $0x60] sm:$0xff]  }
  0x24   : > { %v1804_v39 = vrot.slane %v479_v29, %v1729_v23  ;;  %v726_v43 = vrot.slane %v724_v35, 6  ;;  %v729_v44 = vrot.slane %v727_v36, 7  ;;  %v733_v45 = vshll.u32 %v680_v34, 16  ;;  %1585 = vmatpush3.bf16.msra.mxu1 %v1641_v28  ;;  %1588 = vmatprep.mubr.msk.bf16.mxu1 %vm1667_vm0, %v1666_v1  ;;  %v1647_v14 = vld [vmem:[%s1901_s1 + $0x70] sm:$0xff]   ;;  %v1650_v33 = vld [vmem:[%s1901_s1 + $0x88] sm:$0xff]   ;;  %v1651_v34 = vld [vmem:[%s1901_s1 + $0x80] sm:$0xff]  }
  0x25   : > { %v276_v30 = vcombine.low %v268_v17, %v1790_v26  ;;  %v870_v48 = vrot.slane %v855_v40, 7  ;;  %1586 = vmatprep.subr.bf16.mxu1 %v1666_v1  ;;  %v884_v58 = vrot.slane %v876_v46, %v1729_v23  ;;  %v749_v61 = vrot.slane %v741_v52, %v1729_v23  ;;  %v1506_v5 = vld.sshfl [vmem:[%s1719_s22 + $0x14] sm:$0x12 pattern:$0x76325410] }
  0x26   : > { %v730_v49 = vor.u32 %v729_v44, %v726_v43  ;;  %v735_v50 = vrot.slane %v733_v45, 7  ;;  %v494_v53 = vcombine.low %v486_v38, %v1804_v39  ;;  %v1078_v2 = vcombine.high %v1495_v59, %v1495_v59  ;;  %v1656_v15 = vld.sshfl [vmem:[%s1719_s22 + $0x8] sm:$0xf pattern:$0x76325410] }
  0x27   : > { %1549 = vmatmul.mubr.msk.bf16.vlgmr.msra.gmra.mxu0 %vm289_vm10, %v276_v30  ;;  %v1824_v54 = vsel %vm1755_vm15, %v1477_v41, %v870_v48  ;;  %v1122_v3 = vshrl.u32 %v1495_v59, 16  ;;  %v1125_v4 = vshll.u32 %v1495_v59, 16  ;;  %v1253_v8 = vcombine.high %v1506_v5, %v1506_v5  ;;  %v1657_v16 = vld.sshfl [vmem:[%s1719_s22 + $0x10] sm:$0xf pattern:$0x76325410] }
  0x28   : > { %1561 = vmatpush3.bf16.msra.mxu0 %v1634_v22  ;;  %1564 = vmatprep.mubr.msk.bf16.mxu0 %vm1667_vm0, %v1666_v1  ;;  %v731_v56 = vrot.slane %v730_v49, 2  ;;  %v877_v57 = vcombine.low %v473_v27, %v1824_v54  ;;  %v1131_v12 = vshll.u32 %v1078_v2, 16  ;;  %v1510_v20 = vrot.slane %v1506_v5, 9 }
  0x29   : > { %1562 = vmatprep.subr.bf16.mxu0 %v1666_v1  ;;  %1587 = vmatpush3.bf16.msra.mxu1 %v1643_v47  ;;  %v1124_v10 = vrot.slane %v1122_v3, 6  ;;  %v1127_v11 = vrot.slane %v1125_v4, 7  ;;  %v1268_v21 = vrot.slane %v1253_v8, 7  ;;  %v980_v30 = vcombine.low %v1656_v15, %v1657_v16 }
  0x2a   : > { %v736_v60 = vsel %vm1732_vm11, %v731_v56, %v735_v50  ;;  %v891_v62 = vrot.slane %v877_v57, %v1729_v23  ;;  %1600 = vmatprep.subr.bf16.mxu1 %v1666_v1  ;;  %v1133_v18 = vrot.slane %v1131_v12, 7 }
  0x2b   : > { %v742_v63 = vcombine.low %v1772_v13, %v736_v60  ;;  %v1128_v17 = vor.u32 %v1127_v11, %v1124_v10  ;;  %v1269_v28 = vsel %vm1755_vm15, %v1510_v20, %v1268_v21 }
  0x2c   : > { %1563 = vmatpush3.bf16.msra.mxu0 %v1636_v42  ;;  %v892_v7 = vcombine.low %v884_v58, %v891_v62  ;;  %v1275_v32 = vcombine.low %v1824_v54, %v1269_v28 }
  0x2d   : > { %1576 = vmatprep.subr.bf16.mxu0 %v1666_v1  ;;  %v756_v9 = vrot.slane %v742_v63, %v1729_v23  ;;  %v1129_v22 = vrot.slane %v1128_v17, 2 }
  0x2e   : > { %1589 = vmatmul.mubr.msk.bf16.vlgmr.msra.gmra.mxu1 %vm289_vm10, %v892_v7  ;;  %v1289_v0 = vrot.slane %v1275_v32, %v1729_v23 }
  0x2f   : > { %1565 = vmatmul.mubr.msk.bf16.vlgmr.msra.gmra.mxu0 %vm289_vm10, %v494_v53  ;;  %v757_v13 = vcombine.low %v749_v61, %v756_v9  ;;  %1601 = vmatpush3.bf16.msra.mxu1 %v1645_v51  ;;  %v1134_v24 = vsel %vm1732_vm11, %v1129_v22, %v1133_v18 }
  0x30   : > { %1577 = vmatpush3.bf16.msra.mxu0 %v1640_v55  ;;  %1580 = vmatprep.mubr.msk.bf16.mxu0 %vm1667_vm0, %v1666_v1  ;;  %v1140_v27 = vcombine.low %v736_v60, %v1134_v24 }
  0x31   : > { %1578 = vmatprep.subr.bf16.mxu0 %v1666_v1  ;;  %1604 = vmatprep.mubr.msk.bf16.mxu1 %vm1667_vm0, %v1666_v1 }
  0x32   : > { %1602 = vmatprep.subr.bf16.mxu1 %v1666_v1  ;;  %v1154_v29 = vrot.slane %v1140_v27, %v1729_v23 }
  0x33   : > { %1603 = vmatpush3.bf16.msra.mxu1 %v1647_v14 }
  0x34   : > { %1579 = vmatpush3.bf16.msra.mxu0 %v1642_v6  ;;  %v1155_v31 = vcombine.low %v1790_v26, %v1154_v29  ;;  %v1290_v26 = vcombine.low %v1804_v39, %v1289_v0 }
  0x35   : > { %1592 = vmatprep.subr.bf16.mxu0 %v1666_v1 }
  0x36   : > { %1605 = vmatmul.mubr.msk.bf16.vlgmr.msra.gmra.mxu1 %vm289_vm10, %v1155_v31 }
  0x37   : > { %1581 = vmatmul.mubr.msk.bf16.vlgmr.msra.gmra.mxu0 %vm289_vm10, %v757_v13 }
  0x38   : > { %1593 = vmatpush3.bf16.msra.mxu0 %v1644_v19  ;;  %1596 = vmatprep.mubr.msk.bf16.mxu0 %vm1667_vm0, %v1666_v1 }
  0x39   : > { %1594 = vmatprep.subr.bf16.mxu0 %v1666_v1 }
  0x3c   : > { %1595 = vmatpush3.bf16.msra.mxu0 %v1646_v25 }
  0x3d   : > { %1608 = vmatprep.subr.bf16.mxu0 %v1666_v1 }
  0x3f   : > { %1597 = vmatmul.mubr.msk.bf16.vlgmr.msra.gmra.mxu0 %vm289_vm10, %v980_v30 }
  0x40   : > { %1609 = vmatpush3.bf16.msra.mxu0 %v1650_v33  ;;  %1612 = vmatprep.mubr.msk.bf16.mxu0 %vm1667_vm0, %v1666_v1  ;;  %vm1359_vm0 = vcmask 58368  }
  0x41   : > { %1610 = vmatprep.subr.bf16.mxu0 %v1666_v1 }
  0x44   : > { %1611 = vmatpush3.bf16.msra.mxu0 %v1651_v34 }
  0x47   : > { %1613 = vmatmul.mubr.msk.bf16.vlgmr.msra.gmra.mxu0 %vm289_vm10, %v1290_v26 }
  0xdb   : > { %v404_v35 = vpop.f32.mrf.mxu1 }
  0xdd   : > { %v1558_v36 = vpop.f32.mrf.mxu1 }
  0xdf   : > { %v407_v37 = vpop.f32.mrf.mxu1 }
  0xe1   : > { %v1559_v38 = vpop.f32.mrf.mxu1 }
  0xe3   : > { %v632_v40 = vpop.f32.mrf.mxu1 }
  0xe5   : > { %v1574_v42 = vpop.f32.mrf.mxu1 }
  0xe7   : > { %v327_v23 = vpop.f32.mrf.mxu0  ;;  %v635_v44 = vpop.f32.mrf.mxu1 }
  0xe8   : > { %v405_v39 = vadd.f32 %v404_v35, %v327_v23 }
  0xe9   : > { %v1550_v41 = vpop.f32.mrf.mxu0  ;;  %v1575_v46 = vpop.f32.mrf.mxu1 }
  0xeb   : > { %v330_v43 = vpop.f32.mrf.mxu0 }
  0xec   : > { %v408_v56 = vadd.f32 %v407_v37, %v330_v43 }
  0xed   : > { %v1551_v45 = vpop.f32.mrf.mxu0 }
  0xee   : > { %v942_v1 = vpop.f32.mrf.mxu1 }
  0xef   : > { %v544_v47 = vpop.f32.mrf.mxu0 }
  0xf0   : > { %v1590_v50 = vpop.f32.mrf.mxu1  ;;  %v551_v53 = vadd.f32 %v544_v47, %v405_v39 }
  0xf1   : > { %v1566_v48 = vpop.f32.mrf.mxu0 }
  0xf2   : > { %v945_v54 = vpop.f32.mrf.mxu1  ;;  %v639_v51 = vadd.f32 %v632_v40, %v551_v53 }
  0xf3   : > { %v547_v49 = vpop.f32.mrf.mxu0 }
  0xf4   : > { %v1591_v57 = vpop.f32.mrf.mxu1  ;;  %v552_v59 = vadd.f32 %v547_v49, %v408_v56 }
  0xf5   : > { %v1567_v52 = vpop.f32.mrf.mxu0 }
  0xf6   : > { %v640_v63 = vadd.f32 %v635_v44, %v552_v59  ;;  %v1205_v2 = vpop.f32.mrf.mxu1 }
  0xf7   : > { %v807_v55 = vpop.f32.mrf.mxu0 }
  0xf8   : > { %v814_v61 = vadd.f32 %v807_v55, %v639_v51  ;;  %v1606_v6 = vpop.f32.mrf.mxu1 }
  0xf9   : > { %v1582_v58 = vpop.f32.mrf.mxu0 }
  0xfa   : > { %v949_v4 = vadd.f32 %v942_v1, %v814_v61  ;;  %v1208_v9 = vpop.f32.mrf.mxu1 }
  0xfb   : > { %v810_v60 = vpop.f32.mrf.mxu0 }
  0xfc   : > { %v815_v5 = vadd.f32 %v810_v60, %v640_v63  ;;  %v1607_v12 = vpop.f32.mrf.mxu1 }
  0xfd   : > { %v1583_v62 = vpop.f32.mrf.mxu0 }
  0xfe   : > { %v950_v11 = vadd.f32 %v945_v54, %v815_v5 }
  0xff   : > { %v1030_v3 = vpop.f32.mrf.mxu0 }
 0x100   : > { %v1037_v8 = vadd.f32 %v1030_v3, %v949_v4 }
 0x101   : > { %v1598_v7 = vpop.f32.mrf.mxu0 }
 0x102   : > { %v1212_v14 = vadd.f32 %v1205_v2, %v1037_v8 }
 0x103   : > { %v1033_v10 = vpop.f32.mrf.mxu0 }
 0x104   : > { %v1038_v15 = vadd.f32 %v1033_v10, %v950_v11 }
 0x105   : > { %v1599_v13 = vpop.f32.mrf.mxu0 }
 0x106   : > { %v1213_v19 = vadd.f32 %v1208_v9, %v1038_v15 }
 0x107   : > { %v1340_v16 = vpop.f32.mrf.mxu0 }
 0x108   : > { %v1347_v17 = vadd.f32 %v1340_v16, %v1212_v14 }
 0x109   : > { %v1614_v18 = vpop.f32.mrf.mxu0 }
 0x10a   : > { %v1351_v20 = vcombine.high %v1347_v17, %v1347_v17  ;;  %v1355_v21 = vpack.c.bf16 %v1347_v17, %v1347_v17 }
 0x10b   : > { %v1343_v22 = vpop.f32.mrf.mxu0 }
 0x10c   : > { %v1356_v24 = vpack.c.bf16 %v1351_v20, %v1351_v20  ;;  %1360 = vst.msk [vmem:[%s143_s28] sm:$0x3] %vm1359_vm0, %v1355_v21  ;;  %v1348_v25 = vadd.f32 %v1343_v22, %v1213_v19 }
 0x10d   : > { %v1615_v27 = vpop.f32.mrf.mxu0 }
 0x10e   : > { %1361 = vst.msk [vmem:[%s143_s28 + $0x2] sm:$0x3] %vm1359_vm0, %v1356_v24  ;;  %v1352_v28 = vcombine.high %v1348_v25, %v1348_v25  ;;  %v1357_v29 = vpack.c.bf16 %v1348_v25, %v1348_v25 }
 0x110   : > { %v1358_v30 = vpack.c.bf16 %v1352_v28, %v1352_v28  ;;  %1362 = vst.msk [vmem:[%s143_s28 + $0x4] sm:$0x3] %vm1359_vm0, %v1357_v29 }
 0x112   : > { %1363 = vst.msk [vmem:[%s143_s28 + $0x6] sm:$0x3] %vm1359_vm0, %v1358_v30 }
 0x113 PF: > { %s12_s9 = sadd.s32 1, %s1664_s9  }
 0x114   : > { %p9_p4 = scmp.ge.s32.totalorder %s12_s9, 4  }
 0x116   :  { %11 = sbr.rel (!%p9_p4) target bundleno = 1 (0x1), region = 60 }

// kernel: _lambda_.47
= control target key start
LH: loop header
LB: loop body
LE: loop exit
PB: predicated region body
PF: predicated region fallthrough
CT: control target
= control target key end

     0   :  { %vm83_vm0 = vcmask 1043456   ;;  %vm76_vm1 = vcmask 195584   ;;  %vm25_vm2 = vcmask 253952   ;;  %v246_v25 = vmov 0.0   ;;  %s346_s3 = inlined_call_operand.vmem [shape: bf16[24,32], index: 3, kind: input, shape index: {}]   ;;  %s347_s0 = inlined_call_operand.vmem [shape: bf16[32,24], index: 0, kind: input, shape index: {}]   ;;  %s348_s1 = inlined_call_operand.vmem [shape: f32[1,24], index: 1, kind: input, shape index: {}]   ;;  %s349_s2 = inlined_call_operand.vmem [shape: f32[1,24], index: 2, kind: input, shape index: {}]   ;;  %s350_s5 = inlined_call_operand.vmem [shape: f32[1,32], index: 5, kind: output, shape index: {1}]   ;;  %s351_s6 = inlined_call_operand.vmem [shape: f32[1,32], index: 6, kind: output, shape index: {2}]   ;;  %s352_s4 = inlined_call_operand.vmem [shape: bf16[32,32], index: 4, kind: output, shape index: {0}]  }
   0x1   :  { %v244_v0 = vld [vmem:[%s346_s3 + $0x8] ss:$0 sps:$4 sm:$0xff]   ;;  %v245_v1 = vld [vmem:[%s346_s3] sm:$0xff]   ;;  %26 = vst.msk [vmem:[%s350_s5] sm:$0x1] %vm25_vm2, %v246_v25  ;;  %vm152_vm3 = vcmask 257024  }
   0x2   :  { %v222_v2 = vld [vmem:[%s347_s0] sm:$0xff]   ;;  %242 = vmatprep.subr.msk.bf16.mxu0 %vm83_vm0, %v244_v0  ;;  %v85_v3 = vsel %vm83_vm0, %v244_v0, 0  ;;  %v229_v6 = vld [vmem:[%s347_s0 + $0x8] sm:$0xff]   ;;  %27 = vst.msk [vmem:[%s351_s6] sm:$0x1] %vm25_vm2, %v246_v25  ;;  %vm158_vm4 = vcmask 261120  }
   0x3   :  { %v223_v4 = vunpack.c.l.bf16 %v222_v2  ;;  %v224_v5 = vunpack.c.h.bf16 %v222_v2  ;;  %v207_v7 = vld [vmem:[%s348_s1] ss:$0 sm:$0xff]  ;;  %235 = vmatpush3.bf16.msra.mxu0 %v85_v3  ;;  %v227_v8 = vunpack.c.l.bf16 %v229_v6  ;;  %v228_v9 = vunpack.c.h.bf16 %v229_v6 }
   0x4   :  { %v208_v10 = vld [vmem:[%s349_s2] ss:$0 sm:$0xff]  ;;  %236 = vmatprep.subr.bf16.mxu0 %v245_v1 }
   0x5   :  { %v43_v11 = vmul.f32 %v223_v4, %v207_v7  ;;  %v44_v12 = vmul.f32 %v224_v5, %v207_v7  ;;  %v45_v13 = vmul.f32 %v227_v8, %v207_v7  ;;  %v46_v14 = vmul.f32 %v228_v9, %v207_v7 }
   0x7   :  { %v54_v15 = vadd.f32 %v208_v10, %v43_v11  ;;  %v55_v16 = vadd.f32 %v208_v10, %v44_v12  ;;  %237 = vmatpush3.bf16.msra.mxu0 %v245_v1  ;;  %v56_v17 = vadd.f32 %v208_v10, %v45_v13  ;;  %v57_v18 = vadd.f32 %v208_v10, %v46_v14 }
   0x8   :  { %v157_v61 = vld [vmem:[%s350_s5] sm:$0x1] }
   0x9   :  { %v58_v19 = vmax.f32 %v54_v15, 0.0  ;;  %v59_v20 = vmax.f32 %v55_v16, 0.0  ;;  %v60_v21 = vmax.f32 %v56_v17, 0.0  ;;  %v61_v22 = vmax.f32 %v57_v18, 0.0  ;;  %v175_v0 = vld [vmem:[%s351_s6] sm:$0x1] }
   0xb   :  { %v62_v23 = vpack.c.bf16 %v59_v20, %v58_v19  ;;  %v63_v24 = vpack.c.bf16 %v61_v22, %v60_v21 }
   0xd   :  { %238 = vmatprep.mubr.msk.bf16.mxu0 %vm76_vm1, %v62_v23 }
   0xe   :  { %239 = vmatmul.mubr.msk.bf16.vlgmr.msra.gmra.mxu0 %vm76_vm1, %v63_v24 }
  0xce   :  { %v240_v26 = vpop.f32.mrf.mxu0 }
  0xcf   :  { %v219_v27 = vpack.c.bf16 %v240_v26, %v240_v26  ;;  %v178_v33 = vmul.f32 %v240_v26, %v240_v26  ;;  %v162_v40 = vsel %vm158_vm4, %v240_v26, 0.0 }
  0xd0   :  { %v121_v28 = vpop.f32.mrf.mxu0 }
  0xd1   :  { %155 = vst.msk [vmem:[%s352_s4 + $0x8] sm:$0xf] %vm152_vm3, %v219_v27  ;;  %v217_v29 = vpack.c.bf16 %v121_v28, %v121_v28  ;;  %v176_v31 = vmul.f32 %v121_v28, %v121_v28  ;;  %v159_v35 = vsel %vm158_vm4, %v121_v28, 0.0  ;;  %v183_v46 = vsel %vm158_vm4, %v178_v33, 0.0 }
  0xd2   :  { %v241_v30 = vpop.f32.mrf.mxu0 }
  0xd3   :  { %153 = vst.msk [vmem:[%s352_s4] sm:$0xf] %vm152_vm3, %v217_v29  ;;  %v220_v32 = vpack.c.bf16 %v241_v30, %v241_v30  ;;  %v180_v41 = vsel %vm158_vm4, %v176_v31, 0.0  ;;  %v179_v42 = vmul.f32 %v241_v30, %v241_v30  ;;  %v164_v47 = vsel %vm158_vm4, %v241_v30, 0.0 }
  0xd4   :  { %v124_v34 = vpop.f32.mrf.mxu0 }
  0xd5   :  { %156 = vst.msk [vmem:[%s352_s4 + $0xc] sm:$0xf] %vm152_vm3, %v220_v32  ;;  %v218_v36 = vpack.c.bf16 %v124_v34, %v124_v34  ;;  %v160_v37 = vsel %vm158_vm4, %v124_v34, 0.0  ;;  %v177_v38 = vmul.f32 %v124_v34, %v124_v34  ;;  %v185_v50 = vsel %vm158_vm4, %v179_v42, 0.0 }
  0xd6   :  { %v161_v39 = vadd.f32 %v160_v37, %v159_v35 }
  0xd7   :  { %154 = vst.msk [vmem:[%s352_s4 + $0x4] sm:$0xf] %vm152_vm3, %v218_v36  ;;  %v181_v43 = vsel %vm158_vm4, %v177_v38, 0.0 }
  0xd8   :  { %v163_v44 = vadd.f32 %v162_v40, %v161_v39  ;;  %v182_v45 = vadd.f32 %v181_v43, %v180_v41 }
  0xda   :  { %v165_v48 = vadd.f32 %v164_v47, %v163_v44  ;;  %v184_v49 = vadd.f32 %v183_v46, %v182_v45 }
  0xdc   :  { %v166_v51 = vrot.slane %v165_v48, 4  ;;  %v186_v52 = vadd.f32 %v185_v50, %v184_v49 }
  0xde   :  { %v167_v53 = vadd.f32 %v166_v51, %v165_v48  ;;  %v187_v54 = vrot.slane %v186_v52, 4 }
  0xe0   :  { %v168_v55 = vrot.slane %v167_v53, 2  ;;  %v188_v56 = vadd.f32 %v187_v54, %v186_v52 }
  0xe2   :  { %v169_v57 = vadd.f32 %v168_v55, %v167_v53  ;;  %v189_v58 = vrot.slane %v188_v56, 2 }
  0xe4   :  { %v170_v59 = vrot.slane %v169_v57, 1  ;;  %v190_v60 = vadd.f32 %v189_v58, %v188_v56 }
  0xe6   :  { %v171_v62 = vadd.f32 %v170_v59, %v169_v57  ;;  %v191_v63 = vrot.slane %v190_v60, 1 }
  0xe8   :  { %v172_v1 = vadd.f32 %v171_v62, %v157_v61  ;;  %v192_v2 = vadd.f32 %v191_v63, %v190_v60 }
  0xea   :  { %174 = vst.msk [vmem:[%s350_s5] sm:$0x1] %vm25_vm2, %v172_v1  ;;  %v193_v3 = vadd.f32 %v192_v2, %v175_v0 }
  0xec   :  { %194 = vst.msk [vmem:[%s351_s6] sm:$0x1] %vm25_vm2, %v193_v3 }

// kernel: _lambda_.50
= control target key start
LH: loop header
LB: loop body
LE: loop exit
PB: predicated region body
PF: predicated region fallthrough
CT: control target
= control target key end

     0   :  { %vm14_vm0 = vcmask 253952   ;;  %v81_v0 = vmov 0.0   ;;  %vm26_vm1 = vcmask 261120   ;;  %s133_s0 = inlined_call_operand.vmem [shape: bf16[32,32], index: 0, kind: input, shape index: {}]   ;;  %s134_s1 = inlined_call_operand.vmem [shape: f32[1,32], index: 1, kind: output, shape index: {0}]   ;;  %s135_s2 = inlined_call_operand.vmem [shape: f32[1,32], index: 2, kind: output, shape index: {1}]  }
   0x1   :  { %15 = vst.msk [vmem:[%s134_s1] sm:$0x1] %vm14_vm0, %v81_v0  ;;  %v72_v1 = vld [vmem:[%s133_s0] sm:$0xff]   ;;  %v79_v2 = vld [vmem:[%s133_s0 + $0x8] sm:$0xff]   ;;  %16 = vst.msk [vmem:[%s135_s2] sm:$0x1] %vm14_vm0, %v81_v0 }
   0x2   :  { %v73_v3 = vunpack.c.l.bf16 %v72_v1  ;;  %v74_v4 = vunpack.c.h.bf16 %v72_v1  ;;  %v77_v5 = vunpack.c.l.bf16 %v79_v2  ;;  %v78_v6 = vunpack.c.h.bf16 %v79_v2 }
   0x4   :  { %v27_v7 = vsel %vm26_vm1, %v73_v3, 0.0  ;;  %v28_v8 = vsel %vm26_vm1, %v74_v4, 0.0  ;;  %v30_v9 = vsel %vm26_vm1, %v77_v5, 0.0  ;;  %v44_v11 = vmul.f32 %v73_v3, %v73_v3 }
   0x5   :  { %v29_v10 = vadd.f32 %v28_v8, %v27_v7  ;;  %v45_v12 = vmul.f32 %v74_v4, %v74_v4  ;;  %v46_v13 = vmul.f32 %v77_v5, %v77_v5  ;;  %v32_v14 = vsel %vm26_vm1, %v78_v6, 0.0 }
   0x6   :  { %v47_v15 = vmul.f32 %v78_v6, %v78_v6  ;;  %v48_v17 = vsel %vm26_vm1, %v44_v11, 0.0 }
   0x7   :  { %v31_v16 = vadd.f32 %v30_v9, %v29_v10  ;;  %v49_v18 = vsel %vm26_vm1, %v45_v12, 0.0  ;;  %v51_v19 = vsel %vm26_vm1, %v46_v13, 0.0 }
   0x8   :  { %v50_v20 = vadd.f32 %v49_v18, %v48_v17  ;;  %v53_v22 = vsel %vm26_vm1, %v47_v15, 0.0  ;;  %v25_v33 = vld [vmem:[%s134_s1] sm:$0x1] }
   0x9   :  { %v33_v21 = vadd.f32 %v32_v14, %v31_v16  ;;  %v43_v38 = vld [vmem:[%s135_s2] sm:$0x1] }
   0xa   :  { %v52_v23 = vadd.f32 %v51_v19, %v50_v20 }
   0xb   :  { %v34_v24 = vrot.slane %v33_v21, 4 }
   0xc   :  { %v54_v25 = vadd.f32 %v53_v22, %v52_v23 }
   0xd   :  { %v35_v26 = vadd.f32 %v34_v24, %v33_v21 }
   0xe   :  { %v55_v27 = vrot.slane %v54_v25, 4 }
   0xf   :  { %v36_v28 = vrot.slane %v35_v26, 2 }
  0x10   :  { %v56_v29 = vadd.f32 %v55_v27, %v54_v25 }
  0x11   :  { %v37_v30 = vadd.f32 %v36_v28, %v35_v26 }
  0x12   :  { %v57_v31 = vrot.slane %v56_v29, 2 }
  0x13   :  { %v38_v32 = vrot.slane %v37_v30, 1 }
  0x14   :  { %v58_v34 = vadd.f32 %v57_v31, %v56_v29 }
  0x15   :  { %v39_v35 = vadd.f32 %v38_v32, %v37_v30 }
  0x16   :  { %v59_v36 = vrot.slane %v58_v34, 1 }
  0x17   :  { %v40_v37 = vadd.f32 %v39_v35, %v25_v33 }
  0x18   :  { %v60_v39 = vadd.f32 %v59_v36, %v58_v34 }
  0x19   :  { %42 = vst.msk [vmem:[%s134_s1] sm:$0x1] %vm14_vm0, %v40_v37 }
  0x1a   :  { %v61_v40 = vadd.f32 %v60_v39, %v43_v38 }
  0x1c   :  { %62 = vst.msk [vmem:[%s135_s2] sm:$0x1] %vm14_vm0, %v61_v40 }

// kernel: _lambda_.51
= control target key start
LH: loop header
LB: loop body
LE: loop exit
PB: predicated region body
PF: predicated region fallthrough
CT: control target
= control target key end

     0   :  { %vm80_vm0 = vcmask 261120   ;;  %vm25_vm1 = vcmask 253952   ;;  %v244_v24 = vmov 0.0   ;;  %vm152_vm2 = vcmask 257024   ;;  %s346_s3 = inlined_call_operand.vmem [shape: bf16[32,32], index: 3, kind: input, shape index: {}]   ;;  %s347_s0 = inlined_call_operand.vmem [shape: bf16[32,32], index: 0, kind: input, shape index: {}]   ;;  %s348_s1 = inlined_call_operand.vmem [shape: f32[1,32], index: 1, kind: input, shape index: {}]   ;;  %s349_s2 = inlined_call_operand.vmem [shape: f32[1,32], index: 2, kind: input, shape index: {}]   ;;  %s350_s5 = inlined_call_operand.vmem [shape: f32[1,32], index: 5, kind: output, shape index: {1}]   ;;  %s351_s6 = inlined_call_operand.vmem [shape: f32[1,32], index: 6, kind: output, shape index: {2}]   ;;  %s352_s4 = inlined_call_operand.vmem [shape: bf16[32,32], index: 4, kind: output, shape index: {0}]  }
   0x1   :  { %v242_v0 = vld [vmem:[%s346_s3 + $0x8] sm:$0xff]   ;;  %v243_v1 = vld [vmem:[%s346_s3] sm:$0xff]   ;;  %26 = vst.msk [vmem:[%s350_s5] sm:$0x1] %vm25_vm1, %v244_v24  ;;  %27 = vst.msk [vmem:[%s351_s6] sm:$0x1] %vm25_vm1, %v244_v24 }
   0x2   :  { %233 = vmatprep.subr.bf16.mxu0 %v242_v0  ;;  %v221_v2 = vld [vmem:[%s347_s0] sm:$0xff]   ;;  %v228_v3 = vld [vmem:[%s347_s0 + $0x8] sm:$0xff]  }
   0x3   :  { %v206_v4 = vld [vmem:[%s348_s1] ss:$0 sm:$0xff]  ;;  %234 = vmatpush3.bf16.msra.mxu0 %v242_v0  ;;  %v222_v5 = vunpack.c.l.bf16 %v221_v2  ;;  %v223_v6 = vunpack.c.h.bf16 %v221_v2  ;;  %v226_v7 = vunpack.c.l.bf16 %v228_v3  ;;  %v227_v8 = vunpack.c.h.bf16 %v228_v3 }
   0x4   :  { %235 = vmatprep.subr.bf16.mxu0 %v243_v1  ;;  %v207_v9 = vld [vmem:[%s349_s2] ss:$0 sm:$0xff] }
   0x5   :  { %v43_v10 = vmul.f32 %v222_v5, %v206_v4  ;;  %v44_v11 = vmul.f32 %v223_v6, %v206_v4  ;;  %v45_v12 = vmul.f32 %v226_v7, %v206_v4  ;;  %v46_v13 = vmul.f32 %v227_v8, %v206_v4 }
   0x7   :  { %236 = vmatpush3.bf16.msra.mxu0 %v243_v1  ;;  %v54_v14 = vadd.f32 %v207_v9, %v43_v10  ;;  %v55_v15 = vadd.f32 %v207_v9, %v44_v11  ;;  %v56_v16 = vadd.f32 %v207_v9, %v45_v12  ;;  %v57_v17 = vadd.f32 %v207_v9, %v46_v13 }
   0x8   :  { %v157_v60 = vld [vmem:[%s350_s5] sm:$0x1] }
   0x9   :  { %v58_v18 = vmax.f32 %v54_v14, 0.0  ;;  %v59_v19 = vmax.f32 %v55_v15, 0.0  ;;  %v60_v20 = vmax.f32 %v56_v16, 0.0  ;;  %v61_v21 = vmax.f32 %v57_v17, 0.0  ;;  %v174_v63 = vld [vmem:[%s351_s6] sm:$0x1] }
   0xb   :  { %v62_v22 = vpack.c.bf16 %v59_v19, %v58_v18  ;;  %v63_v23 = vpack.c.bf16 %v61_v21, %v60_v20 }
   0xd   :  { %237 = vmatprep.mubr.msk.bf16.mxu0 %vm80_vm0, %v62_v22 }
   0xe   :  { %238 = vmatmul.mubr.msk.bf16.vlgmr.msra.gmra.mxu0 %vm80_vm0, %v63_v23 }
  0xce   :  { %v239_v25 = vpop.f32.mrf.mxu0 }
  0xcf   :  { %v218_v26 = vpack.c.bf16 %v239_v25, %v239_v25  ;;  %v177_v32 = vmul.f32 %v239_v25, %v239_v25  ;;  %v161_v39 = vsel %vm80_vm0, %v239_v25, 0.0 }
  0xd0   :  { %v121_v27 = vpop.f32.mrf.mxu0 }
  0xd1   :  { %155 = vst.msk [vmem:[%s352_s4 + $0x8] sm:$0xf] %vm152_vm2, %v218_v26  ;;  %v216_v28 = vpack.c.bf16 %v121_v27, %v121_v27  ;;  %v175_v30 = vmul.f32 %v121_v27, %v121_v27  ;;  %v158_v34 = vsel %vm80_vm0, %v121_v27, 0.0  ;;  %v182_v45 = vsel %vm80_vm0, %v177_v32, 0.0 }
  0xd2   :  { %v240_v29 = vpop.f32.mrf.mxu0 }
  0xd3   :  { %153 = vst.msk [vmem:[%s352_s4] sm:$0xf] %vm152_vm2, %v216_v28  ;;  %v219_v31 = vpack.c.bf16 %v240_v29, %v240_v29  ;;  %v179_v40 = vsel %vm80_vm0, %v175_v30, 0.0  ;;  %v178_v41 = vmul.f32 %v240_v29, %v240_v29  ;;  %v163_v46 = vsel %vm80_vm0, %v240_v29, 0.0 }
  0xd4   :  { %v124_v33 = vpop.f32.mrf.mxu0 }
  0xd5   :  { %156 = vst.msk [vmem:[%s352_s4 + $0xc] sm:$0xf] %vm152_vm2, %v219_v31  ;;  %v217_v35 = vpack.c.bf16 %v124_v33, %v124_v33  ;;  %v159_v36 = vsel %vm80_vm0, %v124_v33, 0.0  ;;  %v176_v37 = vmul.f32 %v124_v33, %v124_v33  ;;  %v184_v49 = vsel %vm80_vm0, %v178_v41, 0.0 }
  0xd6   :  { %v160_v38 = vadd.f32 %v159_v36, %v158_v34 }
  0xd7   :  { %154 = vst.msk [vmem:[%s352_s4 + $0x4] sm:$0xf] %vm152_vm2, %v217_v35  ;;  %v180_v42 = vsel %vm80_vm0, %v176_v37, 0.0 }
  0xd8   :  { %v162_v43 = vadd.f32 %v161_v39, %v160_v38  ;;  %v181_v44 = vadd.f32 %v180_v42, %v179_v40 }
  0xda   :  { %v164_v47 = vadd.f32 %v163_v46, %v162_v43  ;;  %v183_v48 = vadd.f32 %v182_v45, %v181_v44 }
  0xdc   :  { %v165_v50 = vrot.slane %v164_v47, 4  ;;  %v185_v51 = vadd.f32 %v184_v49, %v183_v48 }
  0xde   :  { %v166_v52 = vadd.f32 %v165_v50, %v164_v47  ;;  %v186_v53 = vrot.slane %v185_v51, 4 }
  0xe0   :  { %v167_v54 = vrot.slane %v166_v52, 2  ;;  %v187_v55 = vadd.f32 %v186_v53, %v185_v51 }
  0xe2   :  { %v168_v56 = vadd.f32 %v167_v54, %v166_v52  ;;  %v188_v57 = vrot.slane %v187_v55, 2 }
  0xe4   :  { %v169_v58 = vrot.slane %v168_v56, 1  ;;  %v189_v59 = vadd.f32 %v188_v57, %v187_v55 }
  0xe6   :  { %v170_v61 = vadd.f32 %v169_v58, %v168_v56  ;;  %v190_v62 = vrot.slane %v189_v59, 1 }
  0xe8   :  { %v171_v0 = vadd.f32 %v170_v61, %v157_v60  ;;  %v191_v1 = vadd.f32 %v190_v62, %v189_v59 }
  0xea   :  { %173 = vst.msk [vmem:[%s350_s5] sm:$0x1] %vm25_vm1, %v171_v0  ;;  %v192_v2 = vadd.f32 %v191_v1, %v174_v63 }
  0xec   :  { %193 = vst.msk [vmem:[%s351_s6] sm:$0x1] %vm25_vm1, %v192_v2 }

// kernel: _lambda_.54
= control target key start
LH: loop header
LB: loop body
LE: loop exit
PB: predicated region body
PF: predicated region fallthrough
CT: control target
= control target key end

     0   :  { %vm14_vm0 = vcmask 319488   ;;  %v81_v0 = vmov 0.0   ;;  %vm26_vm1 = vcmask 326656   ;;  %s133_s0 = inlined_call_operand.vmem [shape: bf16[32,40], index: 0, kind: input, shape index: {}]   ;;  %s134_s1 = inlined_call_operand.vmem [shape: f32[1,40], index: 1, kind: output, shape index: {0}]   ;;  %s135_s2 = inlined_call_operand.vmem [shape: f32[1,40], index: 2, kind: output, shape index: {1}]  }
   0x1   :  { %15 = vst.msk [vmem:[%s134_s1] sm:$0x1] %vm14_vm0, %v81_v0  ;;  %v72_v1 = vld [vmem:[%s133_s0] sm:$0xff]   ;;  %v79_v2 = vld [vmem:[%s133_s0 + $0x8] sm:$0xff]   ;;  %16 = vst.msk [vmem:[%s135_s2] sm:$0x1] %vm14_vm0, %v81_v0 }
   0x2   :  { %v73_v3 = vunpack.c.l.bf16 %v72_v1  ;;  %v74_v4 = vunpack.c.h.bf16 %v72_v1  ;;  %v77_v5 = vunpack.c.l.bf16 %v79_v2  ;;  %v78_v6 = vunpack.c.h.bf16 %v79_v2 }
   0x4   :  { %v27_v7 = vsel %vm26_vm1, %v73_v3, 0.0  ;;  %v28_v8 = vsel %vm26_vm1, %v74_v4, 0.0  ;;  %v30_v9 = vsel %vm26_vm1, %v77_v5, 0.0  ;;  %v44_v11 = vmul.f32 %v73_v3, %v73_v3 }
   0x5   :  { %v29_v10 = vadd.f32 %v28_v8, %v27_v7  ;;  %v45_v12 = vmul.f32 %v74_v4, %v74_v4  ;;  %v46_v13 = vmul.f32 %v77_v5, %v77_v5  ;;  %v32_v14 = vsel %vm26_vm1, %v78_v6, 0.0 }
   0x6   :  { %v47_v15 = vmul.f32 %v78_v6, %v78_v6  ;;  %v48_v17 = vsel %vm26_vm1, %v44_v11, 0.0 }
   0x7   :  { %v31_v16 = vadd.f32 %v30_v9, %v29_v10  ;;  %v49_v18 = vsel %vm26_vm1, %v45_v12, 0.0  ;;  %v51_v19 = vsel %vm26_vm1, %v46_v13, 0.0 }
   0x8   :  { %v50_v20 = vadd.f32 %v49_v18, %v48_v17  ;;  %v53_v22 = vsel %vm26_vm1, %v47_v15, 0.0  ;;  %v25_v33 = vld [vmem:[%s134_s1] sm:$0x1] }
   0x9   :  { %v33_v21 = vadd.f32 %v32_v14, %v31_v16  ;;  %v43_v38 = vld [vmem:[%s135_s2] sm:$0x1] }
   0xa   :  { %v52_v23 = vadd.f32 %v51_v19, %v50_v20 }
   0xb   :  { %v34_v24 = vrot.slane %v33_v21, 4 }
   0xc   :  { %v54_v25 = vadd.f32 %v53_v22, %v52_v23 }
   0xd   :  { %v35_v26 = vadd.f32 %v34_v24, %v33_v21 }
   0xe   :  { %v55_v27 = vrot.slane %v54_v25, 4 }
   0xf   :  { %v36_v28 = vrot.slane %v35_v26, 2 }
  0x10   :  { %v56_v29 = vadd.f32 %v55_v27, %v54_v25 }
  0x11   :  { %v37_v30 = vadd.f32 %v36_v28, %v35_v26 }
  0x12   :  { %v57_v31 = vrot.slane %v56_v29, 2 }
  0x13   :  { %v38_v32 = vrot.slane %v37_v30, 1 }
  0x14   :  { %v58_v34 = vadd.f32 %v57_v31, %v56_v29 }
  0x15   :  { %v39_v35 = vadd.f32 %v38_v32, %v37_v30 }
  0x16   :  { %v59_v36 = vrot.slane %v58_v34, 1 }
  0x17   :  { %v40_v37 = vadd.f32 %v39_v35, %v25_v33 }
  0x18   :  { %v60_v39 = vadd.f32 %v59_v36, %v58_v34 }
  0x19   :  { %42 = vst.msk [vmem:[%s134_s1] sm:$0x1] %vm14_vm0, %v40_v37 }
  0x1a   :  { %v61_v40 = vadd.f32 %v60_v39, %v43_v38 }
  0x1c   :  { %62 = vst.msk [vmem:[%s135_s2] sm:$0x1] %vm14_vm0, %v61_v40 }

// kernel: _lambda_.55
= control target key start
LH: loop header
LB: loop body
LE: loop exit
PB: predicated region body
PF: predicated region fallthrough
CT: control target
= control target key end

     0   :  { %vm117_vm0 = vcmask 1043456   ;;  %v235_v1 = vmov 0.0   ;;  %vm236_vm1 = vmmov 0   ;;  %s300_s0 = inlined_call_operand.vmem [shape: bf16[2,16,40], index: 0, kind: input, shape index: {}]   ;;  %s301_s1 = inlined_call_operand.vmem [shape: f32[1,40], index: 1, kind: input, shape index: {}]   ;;  %s302_s2 = inlined_call_operand.vmem [shape: f32[1,40], index: 2, kind: input, shape index: {}]   ;;  %s303_s3 = inlined_call_operand.vmem [shape: bf16[40,6], index: 3, kind: input, shape index: {}]   ;;  %s304_s4 = inlined_call_operand.vmem [shape: f32[1,6], index: 4, kind: input, shape index: {}]   ;;  %s305_s5 = inlined_call_operand.hbm [shape: f32[2,6], index: 5, kind: output, shape index: {}]  }
   0x1   :  { %v210_v0 = vld [vmem:[%s303_s3 + $0x10] ss:$0 sps:$4 sm:$0xff]   ;;  %197 = vmatprep.subr.bf16.mxu0 %v235_v1  ;;  %v211_v3 = vld [vmem:[%s303_s3 + $0x8] sm:$0xff]   ;;  %203 = vmatprep.mubr.msk.bf16.mxu0 %vm236_vm1, %v235_v1  ;;  %v185_v4 = vld [vmem:[%s300_s0] sm:$0xff]  }
   0x2   :  { %v119_v2 = vsel %vm117_vm0, %v210_v0, 0  ;;  %v192_v5 = vld [vmem:[%s300_s0 + $0x8] sm:$0xff]   ;;  %v177_v6 = vld [vmem:[%s301_s1] ss:$0 sm:$0xff]  ;;  %v186_v7 = vunpack.c.l.bf16 %v185_v4  ;;  %v187_v8 = vunpack.c.h.bf16 %v185_v4 }
   0x3   :  { %198 = vmatpush3.bf16.msra.mxu0 %v119_v2  ;;  %v190_v9 = vunpack.c.l.bf16 %v192_v5  ;;  %v191_v10 = vunpack.c.h.bf16 %v192_v5 }
   0x4   :  { %199 = vmatprep.subr.bf16.mxu0 %v235_v1 }
   0x5   :  { %10 = vsyncpa [#allocation3], 0  ;;  %v178_v11 = vld [vmem:[%s302_s2] ss:$0 sm:$0xff]  ;;  %v37_v12 = vmul.f32 %v186_v7, %v177_v6  ;;  %v38_v13 = vmul.f32 %v187_v8, %v177_v6  ;;  %v39_v14 = vmul.f32 %v190_v9, %v177_v6  ;;  %v40_v15 = vmul.f32 %v191_v10, %v177_v6 }
   0x6   :  { %v212_v16 = vld [vmem:[%s303_s3] sm:$0xff]   ;;  %vm56_vm2 = vcmask 326656   ;;  %vm96_vm3 = vcmask 1041409   ;;  %s237_s3 = smov [#allocation2]   ;;  %vm161_vm4 = vcmask 41984  }
   0x7   :  { %200 = vmatpush3.bf16.msra.mxu0 %v211_v3  ;;  %v48_v17 = vadd.f32 %v178_v11, %v37_v12  ;;  %v49_v18 = vadd.f32 %v178_v11, %v38_v13  ;;  %v50_v19 = vadd.f32 %v178_v11, %v39_v14  ;;  %v51_v20 = vadd.f32 %v178_v11, %v40_v15  ;;  %v179_v51 = vld [vmem:[%s304_s4] ss:$0 sm:$0xff]  ;;  %s169_s6 = sshll.u32 %s237_s3, 4  ;;  %s170_s6 = int_to_ptr.vmem [resolvable:$true] %s169_s6 }
   0x8   :  { %201 = vmatprep.subr.bf16.mxu0 %v235_v1  ;;  %s213_s7 = scalar_lea.vmem %s170_s6, 32  ;;  %p218_p1 = scmp.lt.s32.totalorder %s170_s6, %s170_s6 }
   0x9   :  { %v52_v21 = vmax.f32 %v48_v17, 0.0  ;;  %v53_v22 = vmax.f32 %v49_v18, 0.0  ;;  %v54_v23 = vmax.f32 %v50_v19, 0.0  ;;  %v55_v24 = vmax.f32 %v51_v20, 0.0  ;;  %p214_p0 = scmp.ne.s32.totalorder %s170_s6, %s213_s7  ;;  %p219_p2 = scmp.lt.s32.totalorder %s213_s7, %s213_s7 }
   0xb   :  { %202 = vmatpush3.bf16.msra.mxu0 %v212_v16  ;;  %v57_v25 = vsel %vm56_vm2, %v52_v21, 0.0  ;;  %v58_v26 = vsel %vm56_vm2, %v53_v22, 0.0  ;;  %v66_v27 = vsel %vm56_vm2, %v54_v23, 0.0  ;;  %v67_v28 = vsel %vm56_vm2, %v55_v24, 0.0  ;;  %p220_p3 = por %p219_p2, %p218_p1 }
   0xc   :  { %v59_v29 = vadd.f32 %v58_v26, %v57_v25  ;;  %v68_v30 = vadd.f32 %v67_v28, %v66_v27 }
   0xd   :  { %p221_p4 = pnand %p220_p3, %p214_p0 }
   0xe   :  { %v60_v31 = vrot.slane %v59_v29, 4  ;;  %v69_v32 = vrot.slane %v68_v30, 4 }
  0x10   :  { %v61_v33 = vadd.f32 %v60_v31, %v59_v29  ;;  %v70_v34 = vadd.f32 %v69_v32, %v68_v30 }
  0x12   :  { %v62_v35 = vrot.slane %v61_v33, 2  ;;  %v71_v36 = vrot.slane %v70_v34, 2 }
  0x14   :  { %v63_v37 = vadd.f32 %v62_v35, %v61_v33  ;;  %v72_v38 = vadd.f32 %v71_v36, %v70_v34 }
  0x16   :  { %v64_v39 = vrot.slane %v63_v37, 1  ;;  %v73_v40 = vrot.slane %v72_v38, 1 }
  0x18   :  { %v65_v41 = vadd.f32 %v64_v39, %v63_v37  ;;  %v74_v42 = vadd.f32 %v73_v40, %v72_v38 }
  0x1a   :  { %v76_v43 = vmul.f32 0.0625, %v65_v41  ;;  %v77_v44 = vmul.f32 0.0625, %v74_v42 }
  0x1c   :  { %v78_v45 = vpack.c.bf16 %v76_v43, %v76_v43  ;;  %v79_v46 = vpack.c.bf16 %v77_v44, %v77_v44 }
  0x1e   :  { %v94_v47 = vunpack.c.l.b16 %v78_v45  ;;  %v95_v48 = vunpack.c.l.b16 %v79_v46 }
  0x20   :  { %v97_v49 = vsel %vm96_vm3, %v95_v48, %v94_v47 }
  0x21   :  { %v98_v50 = vpack.c.b16 %v97_v49, %v97_v49 }
  0x23   :  { %204 = vmatmul.mubr.msk.bf16.vlgmr.msra.gmra.mxu0 %vm56_vm2, %v98_v50 }
  0xe3   :  { %v155_v52 = vpop.f32.mrf.mxu0 }
  0xe4   :  { %v156_v53 = vadd.f32 %v179_v51, %v155_v52 }
  0xe5   :  { %v205_v54 = vpop.f32.mrf.mxu0 }
  0xe6   :  { %162 = vst.msk [vmem:[#allocation2] sm:$0x3] %vm161_vm4, %v156_v53 }
  0xe7   :  { %v158_v55 = vpop.f32.mrf.mxu0 }
  0xe8   :  { %224 = shalt.err (!%p221_p4)
}
  0xe9   :  { %172 = dma.vmem_to_hbm [thread:$0]  %s170_s6, 32, %s305_s5, [#allocation3]   ;;  %v206_v56 = vpop.f32.mrf.mxu0 }
  0xea   :  { %233 = dma.done.wait [#allocation3], 32  }
  0xeb   :  { %234 = vsyncadd [#allocation3], 4294967264 }
  0xec   :  { %176 = vsyncpa [#allocation3], 1 }

</bundles_post_ra>
